<compile_context>
chip_gen: v7x
topology: tpu7x:2x2x1
jax: 0.10.0
libtpu: 0.0.40
codegen_flags: <defaults>
</compile_context>

<pallas_src>
import functools
import math

import jax
import jax.numpy as jnp
from jax import lax
from jax.experimental import pallas as pl
from jax.experimental.pallas import tpu as pltpu


def _round_up(a, b):
    return (a + b - 1) // b * b


def make_sinusoidal_table(d_model, max_len):
    """Deterministic buffer setup (matches PositionalEncoding.__init__)."""
    position = jnp.arange(max_len, dtype=jnp.float32)[:, None]            # [L, 1]
    div_term = jnp.exp(jnp.arange(0, d_model, 2, dtype=jnp.float32)
                       * (-math.log(10000.0) / d_model))                  # [D/2]
    pe = jnp.zeros((max_len, d_model), jnp.float32)
    pe = pe.at[:, 0::2].set(jnp.sin(position * div_term))
    pe = pe.at[:, 1::2].set(jnp.cos(position * div_term))
    return pe


def _pos_enc_kernel(idx_ref, x_ref, pe_ref, o_ref, *,
                    pack, k_chunk, n_chunks, phase_stride,
                    dropout_p, train, seed):
    """One grid step = TM packed rows (TM x W tile, W = pack * d_model).

    idx_ref : VMEM [TM, pack] int32      pe-row index of each original row
    x_ref   : VMEM [TM, W]               pack original rows per packed row
    pe_ref  : VMEM [pack * Kp, W]        phase-shifted, zero-padded pe table
    o_ref   : VMEM [TM, W]
    """
    tm, w = x_ref.shape

    # Lane iota hoisted out of all loops (shared by every phase/chunk compare).
    pos0 = lax.broadcasted_iota(jnp.int32, (tm, k_chunk), 1)      # [TM, KC]

    # Gather on the otherwise-idle MXU: for each packed "phase" p, a K-chunked
    # one-hot matmul against the phase-shifted table lands pe[idx] directly in
    # lanes p*D:(p+1)*D.  Exact: each output element has one non-zero term and
    # precision=HIGHEST keeps full f32.
    acc = jnp.zeros((tm, w), jnp.float32)
    for p in range(pack):                                         # static, pack <= 16
        idx_p = idx_ref[:, p:p + 1]                               # [TM, 1] int32

        def body(c, a, idx_p=idx_p, p=p):
            onehot = (idx_p == pos0 + c * k_chunk).astype(jnp.float32)
            start = pl.multiple_of(p * phase_stride + c * k_chunk, k_chunk)
            chunk = pe_ref[pl.ds(start, k_chunk), :]              # [KC, W]
            return a + jnp.dot(onehot, chunk,
                               preferred_element_type=jnp.float32,
                               precision=lax.Precision.HIGHEST)

        acc = lax.fori_loop(0, n_chunks, body, acc, unroll=n_chunks <= 8)

    y = x_ref[...].astype(jnp.float32) + acc                      # [TM, W]

    if train and dropout_p > 0.0:
        # Inverted dropout; integer-domain threshold compare on raw PRNG bits.
        pltpu.prng_seed(seed + pl.program_id(0))
        bits = pltpu.bitcast(pltpu.prng_random_bits(y.shape), jnp.uint32)
        thresh = min(int(round(dropout_p * 2.0 ** 32)), 0xFFFFFFFF)
        keep = bits >= jnp.uint32(thresh)
        y = jnp.where(keep, y * (1.0 / (1.0 - dropout_p)), 0.0)
        # TODO(synk): the TPU hardware PRNG is not bitwise identical to
        # torch's dropout RNG (inherently random op).

    o_ref[...] = y.astype(o_ref.dtype)


def positional_encoding_forward(x, index, pe, *, dropout_p=0.1, train=False,
                                seed=0, row_tile=512, k_chunk=256,
                                max_pack=16):
    """Pallas forward of PositionalEncoding: dropout(x + pe[index]).

    x: [B, S, D] float; index: [B, S] int; pe: [max_len, D] float32.
    """
    B, S, D = x.shape
    max_len = pe.shape[0]
    assert index.shape == (B, S)
    assert row_tile % 8 == 0

    # ---- lane-dense packing: fold `pack` consecutive (b, s) rows into one
    # 128-lane row so x loads / o stores are unmasked full-lane ops.
    if D < 128 and 128 % D == 0 and (128 // D) <= max_pack:
        pack = 128 // D
    else:
        pack = 1
        # TODO(synk): D < 128 with 128 % D != 0 keeps masked (sub-128-lane)
        # stores; an lcm(D, 128)-based packing would make those dense too.
    W = pack * D

    # ---- flatten (B, S) -> rows and zero-pad so `pack` and the row tile
    # divide evenly (padded rows gather pe[0] and are sliced off below).
    N = B * S
    M = _round_up(N, pack) // pack               # packed rows
    tm = min(_round_up(M, 8), row_tile)          # >=8 sublanes, <= row_tile
    Mp = _round_up(M, tm)
    NT = Mp * pack

    x_flat = x.reshape(N, D)
    idx_flat = index.reshape(N).astype(jnp.int32)
    if NT != N:
        x_flat = jnp.pad(x_flat, ((0, NT - N), (0, 0)))
        idx_flat = jnp.pad(idx_flat, (0, NT - N))
    x2 = x_flat.reshape(Mp, W)
    idx2 = idx_flat.reshape(Mp, pack)

    # ---- phase-shifted table: pe_wide[p*Kp + k, p*D:(p+1)*D] = pe[k, :],
    # zeros elsewhere; rows zero-padded to a multiple of the gather chunk.
    kc = min(k_chunk, _round_up(max_len, 128))
    Kp = _round_up(max_len, kc)
    n_chunks = Kp // kc
    pe_f32 = pe.astype(jnp.float32)
    if pack == 1:
        pe_wide = jnp.pad(pe_f32, ((0, Kp - max_len), (0, 0)))
    else:
        eye = jnp.eye(pack, dtype=jnp.float32)
        pe_wide = jnp.einsum('pc,kd->pkcd', eye, pe_f32).reshape(pack, max_len, W)
        pe_wide = jnp.pad(pe_wide, ((0, 0), (0, Kp - max_len), (0, 0)))
        pe_wide = pe_wide.reshape(pack * Kp, W)

    kernel = functools.partial(
        _pos_enc_kernel, pack=pack, k_chunk=kc, n_chunks=n_chunks,
        phase_stride=Kp, dropout_p=dropout_p, train=train, seed=seed)

    # ---- VMEM budget: double-buffered blocks (x, o, lane-padded idx, pe_wide)
    # plus in-kernel temporaries (one-hot chunk, lane iota, f32 accumulator/y).
    lane = 128
    w_pad = _round_up(W, lane)
    itemsize = jnp.dtype(x.dtype).itemsize
    est = (2 * 2 * tm * w_pad * itemsize          # x + o blocks (double-buffered)
           + 2 * tm * lane * 4                    # idx block (pack -> 128 lanes)
           + 2 * pack * Kp * w_pad * 4            # pe_wide table (double-buffered)
           + 2 * tm * kc * 4                      # one-hot chunk + lane iota
           + 2 * tm * w_pad * 4                   # f32 accumulator + y
           + (2 << 20))                           # headroom
    vmem_limit = int(min(max(est, 32 << 20), 64 << 20))
    # TODO(synk): for very large max_len * d_model (esp. on v7x's 64 MiB VMEM)
    # keep pe_wide in pl.ANY / single-buffer it instead of holding the whole
    # table resident in a double-buffered block.

    out2 = pl.pallas_call(
        kernel,
        out_shape=jax.ShapeDtypeStruct((Mp, W), x.dtype),
        grid=(Mp // tm,),
        in_specs=[
            pl.BlockSpec((tm, pack), lambda i: (i, 0)),        # index
            pl.BlockSpec((tm, W), lambda i: (i, 0)),           # x (lane-dense)
            pl.BlockSpec((pack * Kp, W), lambda i: (0, 0)),    # pe_wide (resident)
        ],
        out_specs=pl.BlockSpec((tm, W), lambda i: (i, 0)),
        compiler_params=pltpu.CompilerParams(
            dimension_semantics=("parallel",),
            vmem_limit_bytes=vmem_limit),
    )(idx2, x2, pe_wide)

    return out2.reshape(NT, D)[:N].reshape(B, S, D)


if __name__ == "__main__":
    B, S, D, MAX_LEN = 2, 8, 32, 300

    key = jax.random.PRNGKey(0)
    kx, ki = jax.random.split(key)
    x = jax.random.normal(kx, (B, S, D), dtype=jnp.float32)
    index = jax.random.randint(ki, (B, S), 0, MAX_LEN, dtype=jnp.int32)

    pe = make_sinusoidal_table(D, MAX_LEN)

    out = positional_encoding_forward(x, index, pe, dropout_p=0.1, train=False)
    out = jax.block_until_ready(out)

    # Pure-JAX reference (eval mode: dropout == identity).
    ref = x + pe[index]
    assert out.shape == (B, S, D)
    assert jnp.allclose(out, ref, atol=1e-5), "mismatch vs reference"

    print("KERNEL_OK")
</pallas_src>

<mosaic_0001>
module attributes {stable_mosaic.version = 11 : i64} {
  func.func @_pos_enc_kernel(%arg0: i32, %arg1: memref<8x4xi32, #tpu.memory_space<vmem>>, %arg2: memref<8x128xf32, #tpu.memory_space<vmem>>, %arg3: memref<2048x128xf32, #tpu.memory_space<vmem>>, %arg4: memref<8x128xf32, #tpu.memory_space<vmem>>) attributes {dimension_semantics = [#tpu.dimension_semantics<parallel>], iteration_bounds = array<i64: 1>, scalar_prefetch = 0 : i64, scratch_operands = 0 : i64, tpu.core_type = #tpu.core_type<tc>, window_params = [{transform_indices = @transform_0, window_bounds = array<i64: 8, 4>}, {transform_indices = @transform_1, window_bounds = array<i64: 8, 128>}, {pipeline_mode = #tpu.pipeline_mode<synchronous>, transform_indices = @transform_2, window_bounds = array<i64: 2048, 128>}, {transform_indices = @transform_3, window_bounds = array<i64: 8, 128>}]} {
    %0 = tpu.iota {dimensions = array<i32: 1>} : vector<8x256xi32>
    %cst = arith.constant 0.000000e+00 : f32
    %1 = vector.broadcast %cst : f32 to vector<8x128xf32>
    %c0 = arith.constant 0 : index
    %c0_0 = arith.constant 0 : index
    %2 = vector.load %arg1[%c0, %c0_0] : memref<8x4xi32, #tpu.memory_space<vmem>>, vector<8x1xi32>
    %c0_i32 = arith.constant 0 : i32
    %c256_i32 = arith.constant 256 : i32
    %3 = arith.muli %c0_i32, %c256_i32 : i32
    %4 = vector.broadcast %3 : i32 to vector<8x256xi32>
    %5 = arith.addi %0, %4 : vector<8x256xi32>
    %6 = vector.broadcast %2 : vector<8x1xi32> to vector<8x256xi32>
    %7 = arith.cmpi eq, %6, %5 : vector<8x256xi32>
    %8 = arith.extui %7 : vector<8x256xi1> to vector<8x256xi32>
    %9 = arith.sitofp %8 : vector<8x256xi32> to vector<8x256xf32>
    %c256_i32_1 = arith.constant 256 : i32
    %10 = arith.muli %c0_i32, %c256_i32_1 : i32
    %c0_i32_2 = arith.constant 0 : i32
    %11 = arith.addi %c0_i32_2, %10 : i32
    %12 = tpu.assume_multiple %11, 256 : i32
    %13 = arith.index_cast %12 : i32 to index
    %c0_3 = arith.constant 0 : index
    %14 = vector.load %arg3[%13, %c0_3] : memref<2048x128xf32, #tpu.memory_space<vmem>>, vector<256x128xf32>
    %cst_4 = arith.constant dense<0.000000e+00> : vector<8x128xf32>
    %15 = tpu.matmul %9, %14, %cst_4 {dimension_numbers = #tpu.dot_dimension_numbers<[1], [0], [0], [1], [0, 0, 1, 1], [], []>, precision = #tpu.contract_precision<fp32>} : vector<8x256xf32>, vector<256x128xf32>, vector<8x128xf32> -> vector<8x128xf32>
    %16 = arith.addf %1, %15 : vector<8x128xf32>
    %c1_i32 = arith.constant 1 : i32
    %c256_i32_5 = arith.constant 256 : i32
    %17 = arith.muli %c1_i32, %c256_i32_5 : i32
    %18 = vector.broadcast %17 : i32 to vector<8x256xi32>
    %19 = arith.addi %0, %18 : vector<8x256xi32>
    %20 = vector.broadcast %2 : vector<8x1xi32> to vector<8x256xi32>
    %21 = arith.cmpi eq, %20, %19 : vector<8x256xi32>
    %22 = arith.extui %21 : vector<8x256xi1> to vector<8x256xi32>
    %23 = arith.sitofp %22 : vector<8x256xi32> to vector<8x256xf32>
    %c256_i32_6 = arith.constant 256 : i32
    %24 = arith.muli %c1_i32, %c256_i32_6 : i32
    %c0_i32_7 = arith.constant 0 : i32
    %25 = arith.addi %c0_i32_7, %24 : i32
    %26 = tpu.assume_multiple %25, 256 : i32
    %27 = arith.index_cast %26 : i32 to index
    %c0_8 = arith.constant 0 : index
    %28 = vector.load %arg3[%27, %c0_8] : memref<2048x128xf32, #tpu.memory_space<vmem>>, vector<256x128xf32>
    %cst_9 = arith.constant dense<0.000000e+00> : vector<8x128xf32>
    %29 = tpu.matmul %23, %28, %cst_9 {dimension_numbers = #tpu.dot_dimension_numbers<[1], [0], [0], [1], [0, 0, 1, 1], [], []>, precision = #tpu.contract_precision<fp32>} : vector<8x256xf32>, vector<256x128xf32>, vector<8x128xf32> -> vector<8x128xf32>
    %30 = arith.addf %16, %29 : vector<8x128xf32>
    %c2_i32 = arith.constant 2 : i32
    %c0_10 = arith.constant 0 : index
    %c1 = arith.constant 1 : index
    %31 = vector.load %arg1[%c0_10, %c1] : memref<8x4xi32, #tpu.memory_space<vmem>>, vector<8x1xi32>
    %c0_i32_11 = arith.constant 0 : i32
    %c256_i32_12 = arith.constant 256 : i32
    %32 = arith.muli %c0_i32_11, %c256_i32_12 : i32
    %33 = vector.broadcast %32 : i32 to vector<8x256xi32>
    %34 = arith.addi %0, %33 : vector<8x256xi32>
    %35 = vector.broadcast %31 : vector<8x1xi32> to vector<8x256xi32>
    %36 = arith.cmpi eq, %35, %34 : vector<8x256xi32>
    %37 = arith.extui %36 : vector<8x256xi1> to vector<8x256xi32>
    %38 = arith.sitofp %37 : vector<8x256xi32> to vector<8x256xf32>
    %c256_i32_13 = arith.constant 256 : i32
    %39 = arith.muli %c0_i32_11, %c256_i32_13 : i32
    %c512_i32 = arith.constant 512 : i32
    %40 = arith.addi %c512_i32, %39 : i32
    %41 = tpu.assume_multiple %40, 256 : i32
    %42 = arith.index_cast %41 : i32 to index
    %c0_14 = arith.constant 0 : index
    %43 = vector.load %arg3[%42, %c0_14] : memref<2048x128xf32, #tpu.memory_space<vmem>>, vector<256x128xf32>
    %cst_15 = arith.constant dense<0.000000e+00> : vector<8x128xf32>
    %44 = tpu.matmul %38, %43, %cst_15 {dimension_numbers = #tpu.dot_dimension_numbers<[1], [0], [0], [1], [0, 0, 1, 1], [], []>, precision = #tpu.contract_precision<fp32>} : vector<8x256xf32>, vector<256x128xf32>, vector<8x128xf32> -> vector<8x128xf32>
    %45 = arith.addf %30, %44 : vector<8x128xf32>
    %c1_i32_16 = arith.constant 1 : i32
    %c256_i32_17 = arith.constant 256 : i32
    %46 = arith.muli %c1_i32_16, %c256_i32_17 : i32
    %47 = vector.broadcast %46 : i32 to vector<8x256xi32>
    %48 = arith.addi %0, %47 : vector<8x256xi32>
    %49 = vector.broadcast %31 : vector<8x1xi32> to vector<8x256xi32>
    %50 = arith.cmpi eq, %49, %48 : vector<8x256xi32>
    %51 = arith.extui %50 : vector<8x256xi1> to vector<8x256xi32>
    %52 = arith.sitofp %51 : vector<8x256xi32> to vector<8x256xf32>
    %c256_i32_18 = arith.constant 256 : i32
    %53 = arith.muli %c1_i32_16, %c256_i32_18 : i32
    %c512_i32_19 = arith.constant 512 : i32
    %54 = arith.addi %c512_i32_19, %53 : i32
    %55 = tpu.assume_multiple %54, 256 : i32
    %56 = arith.index_cast %55 : i32 to index
    %c0_20 = arith.constant 0 : index
    %57 = vector.load %arg3[%56, %c0_20] : memref<2048x128xf32, #tpu.memory_space<vmem>>, vector<256x128xf32>
    %cst_21 = arith.constant dense<0.000000e+00> : vector<8x128xf32>
    %58 = tpu.matmul %52, %57, %cst_21 {dimension_numbers = #tpu.dot_dimension_numbers<[1], [0], [0], [1], [0, 0, 1, 1], [], []>, precision = #tpu.contract_precision<fp32>} : vector<8x256xf32>, vector<256x128xf32>, vector<8x128xf32> -> vector<8x128xf32>
    %59 = arith.addf %45, %58 : vector<8x128xf32>
    %c2_i32_22 = arith.constant 2 : i32
    %c0_23 = arith.constant 0 : index
    %c2 = arith.constant 2 : index
    %60 = vector.load %arg1[%c0_23, %c2] : memref<8x4xi32, #tpu.memory_space<vmem>>, vector<8x1xi32>
    %c0_i32_24 = arith.constant 0 : i32
    %c256_i32_25 = arith.constant 256 : i32
    %61 = arith.muli %c0_i32_24, %c256_i32_25 : i32
    %62 = vector.broadcast %61 : i32 to vector<8x256xi32>
    %63 = arith.addi %0, %62 : vector<8x256xi32>
    %64 = vector.broadcast %60 : vector<8x1xi32> to vector<8x256xi32>
    %65 = arith.cmpi eq, %64, %63 : vector<8x256xi32>
    %66 = arith.extui %65 : vector<8x256xi1> to vector<8x256xi32>
    %67 = arith.sitofp %66 : vector<8x256xi32> to vector<8x256xf32>
    %c256_i32_26 = arith.constant 256 : i32
    %68 = arith.muli %c0_i32_24, %c256_i32_26 : i32
    %c1024_i32 = arith.constant 1024 : i32
    %69 = arith.addi %c1024_i32, %68 : i32
    %70 = tpu.assume_multiple %69, 256 : i32
    %71 = arith.index_cast %70 : i32 to index
    %c0_27 = arith.constant 0 : index
    %72 = vector.load %arg3[%71, %c0_27] : memref<2048x128xf32, #tpu.memory_space<vmem>>, vector<256x128xf32>
    %cst_28 = arith.constant dense<0.000000e+00> : vector<8x128xf32>
    %73 = tpu.matmul %67, %72, %cst_28 {dimension_numbers = #tpu.dot_dimension_numbers<[1], [0], [0], [1], [0, 0, 1, 1], [], []>, precision = #tpu.contract_precision<fp32>} : vector<8x256xf32>, vector<256x128xf32>, vector<8x128xf32> -> vector<8x128xf32>
    %74 = arith.addf %59, %73 : vector<8x128xf32>
    %c1_i32_29 = arith.constant 1 : i32
    %c256_i32_30 = arith.constant 256 : i32
    %75 = arith.muli %c1_i32_29, %c256_i32_30 : i32
    %76 = vector.broadcast %75 : i32 to vector<8x256xi32>
    %77 = arith.addi %0, %76 : vector<8x256xi32>
    %78 = vector.broadcast %60 : vector<8x1xi32> to vector<8x256xi32>
    %79 = arith.cmpi eq, %78, %77 : vector<8x256xi32>
    %80 = arith.extui %79 : vector<8x256xi1> to vector<8x256xi32>
    %81 = arith.sitofp %80 : vector<8x256xi32> to vector<8x256xf32>
    %c256_i32_31 = arith.constant 256 : i32
    %82 = arith.muli %c1_i32_29, %c256_i32_31 : i32
    %c1024_i32_32 = arith.constant 1024 : i32
    %83 = arith.addi %c1024_i32_32, %82 : i32
    %84 = tpu.assume_multiple %83, 256 : i32
    %85 = arith.index_cast %84 : i32 to index
    %c0_33 = arith.constant 0 : index
    %86 = vector.load %arg3[%85, %c0_33] : memref<2048x128xf32, #tpu.memory_space<vmem>>, vector<256x128xf32>
    %cst_34 = arith.constant dense<0.000000e+00> : vector<8x128xf32>
    %87 = tpu.matmul %81, %86, %cst_34 {dimension_numbers = #tpu.dot_dimension_numbers<[1], [0], [0], [1], [0, 0, 1, 1], [], []>, precision = #tpu.contract_precision<fp32>} : vector<8x256xf32>, vector<256x128xf32>, vector<8x128xf32> -> vector<8x128xf32>
    %88 = arith.addf %74, %87 : vector<8x128xf32>
    %c2_i32_35 = arith.constant 2 : i32
    %c0_36 = arith.constant 0 : index
    %c3 = arith.constant 3 : index
    %89 = vector.load %arg1[%c0_36, %c3] : memref<8x4xi32, #tpu.memory_space<vmem>>, vector<8x1xi32>
    %c0_i32_37 = arith.constant 0 : i32
    %c256_i32_38 = arith.constant 256 : i32
    %90 = arith.muli %c0_i32_37, %c256_i32_38 : i32
    %91 = vector.broadcast %90 : i32 to vector<8x256xi32>
    %92 = arith.addi %0, %91 : vector<8x256xi32>
    %93 = vector.broadcast %89 : vector<8x1xi32> to vector<8x256xi32>
    %94 = arith.cmpi eq, %93, %92 : vector<8x256xi32>
    %95 = arith.extui %94 : vector<8x256xi1> to vector<8x256xi32>
    %96 = arith.sitofp %95 : vector<8x256xi32> to vector<8x256xf32>
    %c256_i32_39 = arith.constant 256 : i32
    %97 = arith.muli %c0_i32_37, %c256_i32_39 : i32
    %c1536_i32 = arith.constant 1536 : i32
    %98 = arith.addi %c1536_i32, %97 : i32
    %99 = tpu.assume_multiple %98, 256 : i32
    %100 = arith.index_cast %99 : i32 to index
    %c0_40 = arith.constant 0 : index
    %101 = vector.load %arg3[%100, %c0_40] : memref<2048x128xf32, #tpu.memory_space<vmem>>, vector<256x128xf32>
    %cst_41 = arith.constant dense<0.000000e+00> : vector<8x128xf32>
    %102 = tpu.matmul %96, %101, %cst_41 {dimension_numbers = #tpu.dot_dimension_numbers<[1], [0], [0], [1], [0, 0, 1, 1], [], []>, precision = #tpu.contract_precision<fp32>} : vector<8x256xf32>, vector<256x128xf32>, vector<8x128xf32> -> vector<8x128xf32>
    %103 = arith.addf %88, %102 : vector<8x128xf32>
    %c1_i32_42 = arith.constant 1 : i32
    %c256_i32_43 = arith.constant 256 : i32
    %104 = arith.muli %c1_i32_42, %c256_i32_43 : i32
    %105 = vector.broadcast %104 : i32 to vector<8x256xi32>
    %106 = arith.addi %0, %105 : vector<8x256xi32>
    %107 = vector.broadcast %89 : vector<8x1xi32> to vector<8x256xi32>
    %108 = arith.cmpi eq, %107, %106 : vector<8x256xi32>
    %109 = arith.extui %108 : vector<8x256xi1> to vector<8x256xi32>
    %110 = arith.sitofp %109 : vector<8x256xi32> to vector<8x256xf32>
    %c256_i32_44 = arith.constant 256 : i32
    %111 = arith.muli %c1_i32_42, %c256_i32_44 : i32
    %c1536_i32_45 = arith.constant 1536 : i32
    %112 = arith.addi %c1536_i32_45, %111 : i32
    %113 = tpu.assume_multiple %112, 256 : i32
    %114 = arith.index_cast %113 : i32 to index
    %c0_46 = arith.constant 0 : index
    %115 = vector.load %arg3[%114, %c0_46] : memref<2048x128xf32, #tpu.memory_space<vmem>>, vector<256x128xf32>
    %cst_47 = arith.constant dense<0.000000e+00> : vector<8x128xf32>
    %116 = tpu.matmul %110, %115, %cst_47 {dimension_numbers = #tpu.dot_dimension_numbers<[1], [0], [0], [1], [0, 0, 1, 1], [], []>, precision = #tpu.contract_precision<fp32>} : vector<8x256xf32>, vector<256x128xf32>, vector<8x128xf32> -> vector<8x128xf32>
    %117 = arith.addf %103, %116 : vector<8x128xf32>
    %c2_i32_48 = arith.constant 2 : i32
    %c0_49 = arith.constant 0 : index
    %c0_50 = arith.constant 0 : index
    %118 = vector.load %arg2[%c0_49, %c0_50] : memref<8x128xf32, #tpu.memory_space<vmem>>, vector<8x128xf32>
    %119 = arith.addf %118, %117 : vector<8x128xf32>
    %c0_51 = arith.constant 0 : index
    %c0_52 = arith.constant 0 : index
    %120 = vector.load %arg4[%c0_51, %c0_52] : memref<8x128xf32, #tpu.memory_space<vmem>>, vector<8x128xf32>
    tpu.vector_store %arg4[%c0_51, %c0_52], %119 {strides = array<i32>} : memref<8x128xf32, #tpu.memory_space<vmem>>, vector<8x128xf32>,
    return
  }
  func.func @transform_0(%arg0: i32) -> (i32, i32) {
    %c0_i32 = arith.constant 0 : i32
    %c0_i32_0 = arith.constant 0 : i32
    return %arg0, %c0_i32 : i32, i32
  }
  func.func @transform_1(%arg0: i32) -> (i32, i32) {
    %c0_i32 = arith.constant 0 : i32
    %c0_i32_0 = arith.constant 0 : i32
    return %arg0, %c0_i32 : i32, i32
  }
  func.func @transform_2(%arg0: i32) -> (i32, i32) {
    %c0_i32 = arith.constant 0 : i32
    %c0_i32_0 = arith.constant 0 : i32
    %c0_i32_1 = arith.constant 0 : i32
    return %c0_i32, %c0_i32_0 : i32, i32
  }
  func.func @transform_3(%arg0: i32) -> (i32, i32) {
    %c0_i32 = arith.constant 0 : i32
    %c0_i32_0 = arith.constant 0 : i32
    return %arg0, %c0_i32 : i32, i32
  }
}

</mosaic_0001>

<bundles_post_ra>
// kernel: tpu_custom_call.1
= control target key start
LH: loop header
LB: loop body
LE: loop exit
PB: predicated region body
PF: predicated region fallthrough
CT: control target
= control target key end

     0   :  { %8 = vsyncpa [#allocation3], 0  ;;  %s16457_s0 = inlined_call_operand.vmem [shape: s32[8,4], index: 0, kind: input, shape index: {}]   ;;  %s16458_s1 = inlined_call_operand.vmem [shape: f32[8,128], index: 1, kind: input, shape index: {}]   ;;  %s16459_s2 = inlined_call_operand.hbm [shape: f32[2048,128], index: 2, kind: input, shape index: {}]   ;;  %s16460_s3 = inlined_call_operand.hbm [shape: f32[8,128], index: 3, kind: output, shape index: {}]  }
   0x1   :  { %9 = vsyncpa [#allocation4], 0  ;;  %s10623_s12 = smov [#allocation2]   ;;  %s10575_s16 = scalar_lea.hbm %s16459_s2, 32768 }
   0x2   :  { %s19_s13 = sshll.u32 %s10623_s12, 4  ;;  %p10576_p0 = scmp.ne.s32.totalorder %s16459_s2, %s10575_s16  ;;  %s20_s13 = int_to_ptr.vmem [resolvable:$true] %s19_s13 }
   0x3   :  { %p10579_p1 = scmp.lt.u32.totalorder %s10575_s16, %s16459_s2 }
   0x5   :  { %p10581_p2 = pnand %p10579_p1, %p10576_p0 }
   0x7   :  { %10584 = shalt.err (!%p10581_p2)
}
   0x8   :  { %s10585_s21 = scalar_lea.vmem %s20_s13, 32768  ;;  %p10590_p4 = scmp.lt.s32.totalorder %s20_s13, %s20_s13 }
   0x9   :  { %p10586_p3 = scmp.ne.s32.totalorder %s20_s13, %s10585_s21  ;;  %p10591_p5 = scmp.lt.s32.totalorder %s10585_s21, %s10585_s21 }
   0xb   :  { %p10592_p6 = por %p10591_p5, %p10590_p4 }
   0xd   :  { %p10593_p7 = pnand %p10592_p6, %p10586_p3 }
   0xf   :  { %10596 = shalt.err (!%p10593_p7)
}
  0x10   :  { %s10624_s22 = smov 128   ;;  %s10625_s23 = smov 8  }
  0x11   :  { %25 = dma.hbm_to_vmem [thread:$0]  %s16459_s2, 32768, %s20_s13, [#allocation3], %s10624_s22, %s10624_s22, %s10625_s23  }
  0x12   :  { %10619 = dma.done.wait [#allocation3], 32768  }
  0x13   :  { %10620 = vsyncadd [#allocation3], 4294934528  ;;  %v10626_v0 = vmov 0   ;;  %v10668_v1 = vld [vmem:[%s16457_s0] sm:$0xff]  ;;  %v99_v2 = vld [vmem:[#allocation2 + $0x180] sm:$0xff]  ;;  %s10632_s5 = smov [#allocation5]  }
  0x14   :  { %10568 = vset.pattern.permute.xlu0 %v10626_v0  ;;  %v100_v3 = vld [vmem:[#allocation2 + $0x188] sm:$0xff]  ;;  %v164_v4 = vand.u32 4294901760, %v99_v2  ;;  %v10671_v6 = vld [vmem:[#allocation2 + $0x100] sm:$0xff]  ;;  %v10675_v8 = vld [vmem:[#allocation2 + $0x190] sm:$0xff]  ;;  %s7269_s6 = sshll.u32 %s10632_s5, 4  ;;  %s7270_s6 = int_to_ptr.vmem [resolvable:$true] %s7269_s6 }
  0x15   :  { %34 = vperm.xlu0 %10568, %v10668_v1   ;;  %v167_v5 = vand.u32 4294901760, %v100_v3  ;;  %v10673_v7 = vld [vmem:[#allocation2 + $0x108] sm:$0xff]  ;;  %v116_v9 = vand.u32 4294901760, %v10671_v6  ;;  %v10679_v11 = vld [vmem:[#allocation2 + $0x198] sm:$0xff]  ;;  %v170_v12 = vand.u32 4294901760, %v10675_v8  ;;  %v10682_v13 = vld [vmem:[#allocation2 + $0x110] sm:$0xff]  ;;  %p10602_p9 = scmp.lt.s32.totalorder %s7270_s6, %s7270_s6 }
  0x16   :  { %v119_v10 = vand.u32 4294901760, %v10673_v7  ;;  %v10684_v14 = vld [vmem:[#allocation2 + $0x118] sm:$0xff]  ;;  %v10686_v15 = vsub.f32 %v99_v2, %v164_v4  ;;  %v173_v17 = vand.u32 4294901760, %v10679_v11  ;;  %v122_v18 = vand.u32 4294901760, %v10682_v13  ;;  %v10742_v39 = vld [vmem:[#allocation2 + $0x1a0] sm:$0xff]  ;;  %v10750_v44 = vld [vmem:[#allocation2 + $0x1a8] sm:$0xff] }
  0x17   :  { %v10688_v16 = vsub.f32 %v100_v3, %v167_v5  ;;  %v10693_v19 = vsub.f32 %v10671_v6, %v116_v9  ;;  %v10701_v21 = vsub.f32 %v10675_v8, %v170_v12  ;;  %v125_v22 = vand.u32 4294901760, %v10684_v14  ;;  %v10755_v49 = vld [vmem:[#allocation2 + $0x120] sm:$0xff]  ;;  %v10757_v50 = vld [vmem:[#allocation2 + $0x128] sm:$0xff]  ;;  %v10760_v55 = vld [vmem:[#allocation2 + $0x1b0] sm:$0xff]  ;;  %s10597_s7 = scalar_lea.vmem %s7270_s6, 128 }
  0x18   :  { %v10696_v20 = vsub.f32 %v10673_v7, %v119_v10  ;;  %v16480_v23 = vand.u32 4294901760, %v10686_v15  ;;  %v10709_v25 = vsub.f32 %v10679_v11, %v173_v17  ;;  %v10714_v26 = vsub.f32 %v10682_v13, %v122_v18  ;;  %v10765_v60 = vld [vmem:[#allocation2 + $0x1b8] sm:$0xff]  ;;  %v10774_v2 = vld [vmem:[#allocation2 + $0x130] sm:$0xff]  ;;  %p10598_p8 = scmp.ne.s32.totalorder %s7270_s6, %s10597_s7  ;;  %p10603_p10 = scmp.lt.s32.totalorder %s10597_s7, %s10597_s7 }
  0x19   :  { %v16478_v24 = vand.u32 4294901760, %v10688_v16  ;;  %v16476_v27 = vand.u32 4294901760, %v10693_v19  ;;  %v16474_v29 = vand.u32 4294901760, %v10701_v21  ;;  %v10722_v30 = vsub.f32 %v10684_v14, %v125_v22 }
  0x1a   :  { %v16475_v28 = vand.u32 4294901760, %v10696_v20  ;;  %v343_v31 = vsub.f32 %v10686_v15, %v16480_v23  ;;  %v16471_v33 = vand.u32 4294901760, %v10709_v25  ;;  %v16467_v34 = vand.u32 4294901760, %v10714_v26  ;;  %p10604_p11 = por %p10603_p10, %p10602_p9 }
  0x1b   :  { %v350_v32 = vsub.f32 %v10688_v16, %v16478_v24  ;;  %v231_v35 = vsub.f32 %v10693_v19, %v16476_v27  ;;  %v357_v37 = vsub.f32 %v10701_v21, %v16474_v29  ;;  %v16466_v38 = vand.u32 4294901760, %v10722_v30 }
  0x1c   :  { %v238_v36 = vsub.f32 %v10696_v20, %v16475_v28  ;;  %v344_v40 = vand.u32 4294901760, %v343_v31  ;;  %v364_v42 = vsub.f32 %v10709_v25, %v16471_v33  ;;  %v245_v43 = vsub.f32 %v10714_v26, %v16467_v34  ;;  %v10960_v28 = vld [vmem:[#allocation2 + $0x1e0] sm:$0xff]  ;;  %p10605_p12 = pnand %p10604_p11, %p10598_p8 }
  0x1d   :  { %v351_v41 = vand.u32 4294901760, %v350_v32  ;;  %v232_v45 = vand.u32 4294901760, %v231_v35  ;;  %v358_v47 = vand.u32 4294901760, %v357_v37  ;;  %v252_v48 = vsub.f32 %v10722_v30, %v16466_v38 }
  0x1e   :  { %v239_v46 = vand.u32 4294901760, %v238_v36  ;;  %v365_v52 = vand.u32 4294901760, %v364_v42  ;;  %v246_v53 = vand.u32 4294901760, %v245_v43  ;;  %v176_v54 = vand.u32 4294901760, %v10742_v39  ;;  %v10797_v36 = vld [vmem:[#allocation2 + $0x138] sm:$0xff] }
  0x1f   :  { %v9054_v51 = vpack.c.bf16 %v351_v41, %v344_v40  ;;  %v253_v57 = vand.u32 4294901760, %v252_v48  ;;  %v179_v58 = vand.u32 4294901760, %v10750_v44  ;;  %v10763_v59 = vpack.c.bf16 %v167_v5, %v164_v4 }
  0x20   :  { %v9056_v56 = vpack.c.bf16 %v239_v46, %v232_v45  ;;  %v9058_v61 = vpack.c.bf16 %v365_v52, %v358_v47  ;;  %v10770_v62 = vsub.f32 %v10742_v39, %v176_v54  ;;  %v128_v63 = vand.u32 4294901760, %v10755_v49 }
  0x21   :  { %9055 = vmatprep.subr.bf16.mxu1 %v9054_v51  ;;  %v131_v0 = vand.u32 4294901760, %v10757_v50  ;;  %v9060_v3 = vpack.c.bf16 %v253_v57, %v246_v53  ;;  %v10779_v4 = vsub.f32 %v10750_v44, %v179_v58  ;;  %9023 = vmatprep.subr.bf16.mxu0 %v10763_v59  ;;  %v10782_v5 = vpack.c.bf16 %v119_v10, %v116_v9 }
  0x22   :  { %9057 = vmatpush3.bf16.msra.mxu1 %v9056_v56  ;;  %v182_v6 = vand.u32 4294901760, %v10760_v55  ;;  %v16465_v7 = vand.u32 4294901760, %v10770_v62  ;;  %v10789_v31 = vsub.f32 %v10755_v49, %v128_v63  ;;  %v185_v35 = vand.u32 4294901760, %v10765_v60  ;;  %v10922_v49 = vld [vmem:[#allocation2 + $0x158] sm:$0xff] }
  0x23   :  { %9059 = vmatprep.subr.bf16.mxu1 %v9058_v61  ;;  %v10794_v32 = vsub.f32 %v10757_v50, %v131_v0  ;;  %v16464_v9 = vand.u32 4294901760, %v10779_v4  ;;  %9025 = vmatpush3.bf16.msra.mxu0 %v10782_v5  ;;  %v10810_v37 = vpack.c.bf16 %v173_v17, %v170_v12  ;;  %v134_v40 = vand.u32 4294901760, %v10774_v2  ;;  %v10850_v61 = vld [vmem:[#allocation2 + $0x1c0] sm:$0xff] }
  0x24   :  { %v10804_v10 = vsub.f32 %v10760_v55, %v182_v6  ;;  %v371_v41 = vsub.f32 %v10770_v62, %v16465_v7  ;;  %v16463_v42 = vand.u32 4294901760, %v10789_v31  ;;  %v10821_v45 = vsub.f32 %v10765_v60, %v185_v35 }
  0x25   :  { %v16461_v43 = vand.u32 4294901760, %v10794_v32  ;;  %v378_v8 = vsub.f32 %v10779_v4, %v16464_v9  ;;  %9027 = vmatprep.subr.bf16.mxu0 %v10810_v37  ;;  %v137_v12 = vand.u32 4294901760, %v10797_v36  ;;  %v10832_v17 = vsub.f32 %v10774_v2, %v134_v40 }
  0x26   :  { %9061 = vmatpush3.bf16.msra.mxu1 %v9060_v3  ;;  %v16462_v11 = vand.u32 4294901760, %v10804_v10  ;;  %v372_v46 = vand.u32 4294901760, %v371_v41  ;;  %v259_v47 = vsub.f32 %v10789_v31, %v16463_v42  ;;  %v16468_v51 = vand.u32 4294901760, %v10821_v45  ;;  %v10852_v3 = vld [vmem:[#allocation2 + $0x1c8] sm:$0xff]  ;;  %v10863_v42 = vld [vmem:[#allocation2 + $0x140] sm:$0xff] }
  0x27   :  { %v266_v48 = vsub.f32 %v10794_v32, %v16461_v43  ;;  %v379_v52 = vand.u32 4294901760, %v378_v8  ;;  %v16470_v56 = vand.u32 4294901760, %v10832_v17  ;;  %v10848_v57 = vsub.f32 %v10797_v36, %v137_v12 }
  0x28   :  { %v385_v53 = vsub.f32 %v10804_v10, %v16462_v11  ;;  %v260_v41 = vand.u32 4294901760, %v259_v47  ;;  %v392_v8 = vsub.f32 %v10821_v45, %v16468_v51  ;;  %v10861_v11 = vpack.c.bf16 %v125_v22, %v122_v18  ;;  %v10874_v18 = vld [vmem:[#allocation2 + $0x1d0] sm:$0xff] }
  0x29   :  { %v267_v43 = vand.u32 4294901760, %v266_v48  ;;  %v9062_v9 = vpack.c.bf16 %v379_v52, %v372_v46  ;;  %v273_v38 = vsub.f32 %v10832_v17, %v16470_v56  ;;  %v16469_v47 = vand.u32 4294901760, %v10848_v57  ;;  %v10869_v48 = vld [vmem:[#allocation2 + $0x148] sm:$0xff] }
  0x2a   :  { %v386_v7 = vand.u32 4294901760, %v385_v53  ;;  %v393_v51 = vand.u32 4294901760, %v392_v8  ;;  %9029 = vmatpush3.bf16.msra.mxu0 %v10861_v11  ;;  %v188_v13 = vand.u32 4294901760, %v10850_v61  ;;  %v191_v14 = vand.u32 4294901760, %v10852_v3  ;;  %v10886_v53 = vld [vmem:[#allocation2 + $0x1d8] sm:$0xff] }
  0x2b   :  { %v9064_v34 = vpack.c.bf16 %v267_v43, %v260_v41  ;;  %9063 = vmatprep.subr.bf16.mxu1 %v9062_v9  ;;  %v274_v22 = vand.u32 4294901760, %v273_v38  ;;  %v280_v46 = vsub.f32 %v10848_v57, %v16469_v47  ;;  %v10883_v43 = vpack.c.bf16 %v179_v58, %v176_v54  ;;  %v10920_v47 = vld [vmem:[#allocation2 + $0x150] sm:$0xff] }
  0x2c   :  { %v140_v52 = vand.u32 4294901760, %v10863_v42  ;;  %v9066_v41 = vpack.c.bf16 %v393_v51, %v386_v7  ;;  %v10891_v38 = vsub.f32 %v10850_v61, %v188_v13  ;;  %v10896_v9 = vsub.f32 %v10852_v3, %v191_v14 }
  0x2d   :  { %9065 = vmatpush3.bf16.msra.mxu1 %v9064_v34  ;;  %v16486_v39 = vand.u32 4294901760, %v10869_v48  ;;  %v281_v44 = vand.u32 4294901760, %v280_v46  ;;  %9031 = vmatprep.subr.bf16.mxu0 %v10883_v43  ;;  %v10909_v54 = vpack.c.bf16 %v131_v0, %v128_v63  ;;  %v16485_v58 = vand.u32 4294901760, %v10874_v18 }
  0x2e   :  { %v10903_v34 = vsub.f32 %v10863_v42, %v140_v52  ;;  %9067 = vmatprep.subr.bf16.mxu1 %v9066_v41  ;;  %v16473_v7 = vand.u32 4294901760, %v10891_v38  ;;  %v16472_v51 = vand.u32 4294901760, %v10896_v9  ;;  %v16483_v46 = vand.u32 4294901760, %v10886_v53 }
  0x2f   :  { %v10917_v8 = vsub.f32 %v10869_v48, %v16486_v39  ;;  %v9068_v50 = vpack.c.bf16 %v281_v44, %v274_v22  ;;  %9033 = vmatpush3.bf16.msra.mxu0 %v10909_v54  ;;  %v10929_v0 = vsub.f32 %v10874_v18, %v16485_v58  ;;  %v10935_v41 = vpack.c.bf16 %v185_v35, %v182_v6 }
  0x30   :  { %v16477_v63 = vand.u32 4294901760, %v10903_v34  ;;  %v399_v56 = vsub.f32 %v10891_v38, %v16473_v7  ;;  %v406_v22 = vsub.f32 %v10896_v9, %v16472_v51  ;;  %v10947_v33 = vsub.f32 %v10886_v53, %v16483_v46 }
  0x31   :  { %17044 = vst [vmem:[#allocation8_spill] sm:$0xff] %v10935_v41  ;;  %v16479_v44 = vand.u32 4294901760, %v10917_v8  ;;  %9069 = vmatpush3.bf16.msra.mxu1 %v9068_v50  ;;  %v16481_v60 = vand.u32 4294901760, %v10929_v0  ;;  %9035 = vmatprep.subr.bf16.mxu0 %v10935_v41  ;;  %v16482_v6 = vand.u32 4294901760, %v10920_v47  ;;  %v16484_v35 = vand.u32 4294901760, %v10922_v49 }
  0x32   :  { %v287_v55 = vsub.f32 %v10903_v34, %v16477_v63  ;;  %v400_v51 = vand.u32 4294901760, %v399_v56  ;;  %v407_v7 = vand.u32 4294901760, %v406_v22  ;;  %v16489_v50 = vand.u32 4294901760, %v10947_v33  ;;  %v10975_v22 = vld [vmem:[#allocation2 + $0x1e8] sm:$0xff] }
  0x33   :  { %v294_v29 = vsub.f32 %v10917_v8, %v16479_v44  ;;  %v413_v63 = vsub.f32 %v10929_v0, %v16481_v60  ;;  %v10968_v24 = vsub.f32 %v10920_v47, %v16482_v6  ;;  %v10973_v56 = vsub.f32 %v10922_v49, %v16484_v35  ;;  %v10986_v6 = vld [vmem:[#allocation2 + $0x160] sm:$0xff] }
  0x34   :  { %v288_v27 = vand.u32 4294901760, %v287_v55  ;;  %v9070_v44 = vpack.c.bf16 %v407_v7, %v400_v51  ;;  %v420_v55 = vsub.f32 %v10947_v33, %v16489_v50  ;;  %v10984_v60 = vpack.c.bf16 %v137_v12, %v134_v40 }
  0x35   :  { %v295_v23 = vand.u32 4294901760, %v294_v29  ;;  %v414_v46 = vand.u32 4294901760, %v413_v63  ;;  %v16488_v35 = vand.u32 4294901760, %v10968_v24  ;;  %v16487_v58 = vand.u32 4294901760, %v10973_v56  ;;  %v96_v29 = vld [vmem:[#allocation2 + $0x168] sm:$0xff]  ;;  %v113_v63 = vld [vmem:[#allocation2 + $0x1f0] sm:$0xff] }
  0x36   :  { %17045 = vst [vmem:[#allocation9_spill] sm:$0xff] %v10984_v60  ;;  %v200_v7 = vand.u32 4294901760, %v10960_v28  ;;  %9071 = vmatprep.subr.bf16.mxu1 %v9070_v44  ;;  %v421_v39 = vand.u32 4294901760, %v420_v55  ;;  %9037 = vmatpush3.bf16.msra.mxu0 %v10984_v60  ;;  %v203_v2 = vand.u32 4294901760, %v10975_v22  ;;  %v10997_v36 = vpack.c.bf16 %v191_v14, %v188_v13  ;;  %v114_v44 = vld [vmem:[#allocation2 + $0x1f8] sm:$0xff] }
  0x37   :  { %v9072_v51 = vpack.c.bf16 %v295_v23, %v288_v27  ;;  %v301_v40 = vsub.f32 %v10968_v24, %v16488_v35  ;;  %v308_v12 = vsub.f32 %v10973_v56, %v16487_v58  ;;  %v152_v27 = vand.u32 4294901760, %v10986_v6 }
  0x38   :  { %17046 = vst [vmem:[#allocation10_spill] sm:$0xff] %v10997_v36  ;;  %v11006_v23 = vsub.f32 %v10960_v28, %v200_v7  ;;  %v9074_v61 = vpack.c.bf16 %v421_v39, %v414_v46  ;;  %v11010_v3 = vsub.f32 %v10975_v22, %v203_v2  ;;  %9039 = vmatprep.subr.bf16.mxu0 %v10997_v36  ;;  %v155_v13 = vand.u32 4294901760, %v96_v29 }
  0x39   :  { %9073 = vmatpush3.bf16.msra.mxu1 %v9072_v51  ;;  %v17047_v14 = vand.u32 4294901760, %v10869_v48  ;;  %v302_v28 = vand.u32 4294901760, %v301_v40  ;;  %v309_v58 = vand.u32 4294901760, %v308_v12  ;;  %v11021_v50 = vsub.f32 %v10986_v6, %v152_v27  ;;  %v97_v51 = vld [vmem:[#allocation2 + $0x170] sm:$0xff]  ;;  %v98_v48 = vld [vmem:[#allocation2 + $0x178] sm:$0xff] }
  0x3a   :  { %v16495_v35 = vand.u32 4294901760, %v11006_v23  ;;  %9075 = vmatprep.subr.bf16.mxu1 %v9074_v61  ;;  %v16494_v39 = vand.u32 4294901760, %v11010_v3  ;;  %v11024_v46 = vsub.f32 %v96_v29, %v155_v13  ;;  %v206_v22 = vand.u32 4294901760, %v113_v63 }
  0x3b   :  { %v11017_v55 = vpack.c.bf16 %v17047_v14, %v140_v52  ;;  %v209_v42 = vand.u32 4294901760, %v114_v44  ;;  %v9076_v52 = vpack.c.bf16 %v309_v58, %v302_v28  ;;  %v16496_v12 = vand.u32 4294901760, %v11021_v50 }
  0x3c   :  { %v427_v40 = vsub.f32 %v11006_v23, %v16495_v35  ;;  %v17049_v6 = vand.u32 4294901760, %v10874_v18  ;;  %v17050_v61 = vand.u32 4294901760, %v10886_v53  ;;  %v434_v29 = vsub.f32 %v11010_v3, %v16494_v39 }
  0x3d   :  { %17048 = vst [vmem:[#allocation11_spill] sm:$0xff] %v11017_v55  ;;  %9041 = vmatpush3.bf16.msra.mxu0 %v11017_v55  ;;  %v16503_v55 = vand.u32 4294901760, %v11024_v46  ;;  %v11041_v36 = vsub.f32 %v113_v63, %v206_v22  ;;  %v11043_v58 = vsub.f32 %v114_v44, %v209_v42  ;;  %9077 = vmatpush3.bf16.msra.mxu1 %v9076_v52  ;;  %v158_v53 = vand.u32 4294901760, %v97_v51 }
  0x3e   :  { %v11035_v14 = vpack.c.bf16 %v17050_v61, %v17049_v6  ;;  %v428_v28 = vand.u32 4294901760, %v427_v40  ;;  %v315_v18 = vsub.f32 %v11021_v50, %v16496_v12  ;;  %v161_v6 = vand.u32 4294901760, %v98_v48 }
  0x3f   :  { %v435_v61 = vand.u32 4294901760, %v434_v29  ;;  %v322_v39 = vsub.f32 %v11024_v46, %v16503_v55  ;;  %v16505_v63 = vand.u32 4294901760, %v11041_v36  ;;  %v16504_v44 = vand.u32 4294901760, %v11043_v58 }
  0x40   :  { %17051 = vst [vmem:[#allocation12_spill] sm:$0xff] %v11035_v14  ;;  %9043 = vmatprep.subr.bf16.mxu0 %v11035_v14  ;;  %v316_v35 = vand.u32 4294901760, %v315_v18  ;;  %v11054_v52 = vsub.f32 %v97_v51, %v158_v53  ;;  %v11056_v40 = vsub.f32 %v98_v48, %v161_v6  ;;  %v17052_v12 = vand.u32 4294901760, %v10920_v47 }
  0x41   :  { %v17053_v14 = vand.u32 4294901760, %v10922_v49  ;;  %v9078_v29 = vpack.c.bf16 %v435_v61, %v428_v28  ;;  %v323_v41 = vand.u32 4294901760, %v322_v39  ;;  %v441_v55 = vsub.f32 %v11041_v36, %v16505_v63 }
  0x42   :  { %v448_v18 = vsub.f32 %v11043_v58, %v16504_v44  ;;  %v328_v51 = vand.u32 4294901760, %v11054_v52  ;;  %v335_v48 = vand.u32 4294901760, %v11056_v40  ;;  %v11073_v47 = vpack.c.bf16 %v203_v2, %v200_v7 }
  0x43   :  { %v11062_v60 = vpack.c.bf16 %v17053_v14, %v17052_v12  ;;  %v11075_v49 = vpack.c.bf16 %v155_v13, %v152_v27  ;;  %9079 = vmatprep.subr.bf16.mxu1 %v9078_v29  ;;  %v9080_v39 = vpack.c.bf16 %v323_v41, %v316_v35  ;;  %v442_v12 = vand.u32 4294901760, %v441_v55 }
  0x44   :  { %v449_v14 = vand.u32 4294901760, %v448_v18  ;;  %v11077_v28 = vpack.c.bf16 %v209_v42, %v206_v22  ;;  %v329_v61 = vsub.f32 %v11054_v52, %v328_v51  ;;  %v336_v44 = vsub.f32 %v11056_v40, %v335_v48 }
  0x45   :  { %9045 = vmatpush3.bf16.msra.mxu0 %v11062_v60  ;;  %v11082_v63 = vpack.c.bf16 %v161_v6, %v158_v53  ;;  %v9086_v7 = vpack.c.bf16 %v10688_v16, %v10686_v15  ;;  %9081 = vmatpush3.bf16.msra.mxu1 %v9080_v39  ;;  %v17055_v39 = vand.u32 4294901760, %v10688_v16  ;;  %v17057_v18 = vand.u32 4294901760, %v10696_v20 }
  0x46   :  { %9047 = vmatprep.subr.bf16.mxu0 %v11073_v47  ;;  %v9082_v2 = vpack.c.bf16 %v449_v14, %v442_v12  ;;  %v330_v13 = vand.u32 4294901760, %v329_v61  ;;  %v337_v55 = vand.u32 4294901760, %v336_v44  ;;  %v17056_v14 = vand.u32 4294901760, %v10693_v19 }
  0x47   :  { %v17059_v44 = vand.u32 4294901760, %v10709_v25  ;;  %v17061_v16 = vand.u32 4294901760, %v10722_v30  ;;  %v17067_v6 = vand.u32 4294901760, %v10821_v45  ;;  %v17081_v41 = vand.u32 4294901760, %v11006_v23 }
  0x48   :  { %9083 = vmatprep.subr.bf16.mxu1 %v9082_v2  ;;  %v9084_v29 = vpack.c.bf16 %v337_v55, %v330_v13  ;;  %v17054_v55 = vand.u32 4294901760, %v10686_v15  ;;  %v11129_v61 = vpack.c.bf16 %v17057_v18, %v17056_v14  ;;  %v17058_v2 = vand.u32 4294901760, %v10701_v21 }
  0x49   :  { %9049 = vmatpush3.bf16.msra.mxu0 %v11075_v49  ;;  %v17060_v15 = vand.u32 4294901760, %v10714_v26  ;;  %v17063_v18 = vand.u32 4294901760, %v10779_v4 }
  0x4a   :  { %9051 = vmatprep.subr.bf16.mxu0 %v11077_v28  ;;  %9085 = vmatpush3.bf16.msra.mxu1 %v9084_v29  ;;  %v11123_v12 = vpack.c.bf16 %v17055_v39, %v17054_v55  ;;  %v11135_v13 = vpack.c.bf16 %v17059_v44, %v17058_v2  ;;  %v17062_v39 = vand.u32 4294901760, %v10770_v62  ;;  %v17064_v55 = vand.u32 4294901760, %v10789_v31 }
  0x4b   :  { %9119 = vmatprep.subr.bf16.mxu1 %v10763_v59  ;;  %v11142_v29 = vpack.c.bf16 %v17061_v16, %v17060_v15  ;;  %v17065_v44 = vand.u32 4294901760, %v10794_v32  ;;  %v17068_v15 = vand.u32 4294901760, %v10832_v17  ;;  %v17069_v16 = vand.u32 4294901760, %v10848_v57 }
  0x4c   :  { %v11148_v14 = vpack.c.bf16 %v17063_v18, %v17062_v39  ;;  %v17070_v39 = vand.u32 4294901760, %v10891_v38  ;;  %v17071_v18 = vand.u32 4294901760, %v10896_v9 }
  0x4d   :  { %9053 = vmatpush3.bf16.msra.mxu0 %v11082_v63  ;;  %v11154_v2 = vpack.c.bf16 %v17065_v44, %v17064_v55  ;;  %v11166_v42 = vpack.c.bf16 %v17069_v16, %v17068_v15  ;;  %v17072_v55 = vand.u32 4294901760, %v10903_v34  ;;  %v17073_v44 = vand.u32 4294901760, %v10917_v8 }
  0x4e   :  { %9087 = vmatprep.subr.bf16.mxu0 %v9086_v7  ;;  %v17066_v7 = vand.u32 4294901760, %v10804_v10  ;;  %v11172_v22 = vpack.c.bf16 %v17071_v18, %v17070_v39  ;;  %v10627_v15 = vmov 1   ;;  %v17078_v16 = vand.u32 4294901760, %v10968_v24 }
  0x4f   :  { %v11178_v27 = vpack.c.bf16 %v17073_v44, %v17072_v55  ;;  %10569 = vset.pattern.permute.xlu0 %v10627_v15  ;;  %v17079_v39 = vand.u32 4294901760, %v10973_v56  ;;  %v17082_v55 = vand.u32 4294901760, %v11010_v3  ;;  %v17087_v15 = vand.u32 4294901760, %v11043_v58 }
  0x50   :  { %v11160_v53 = vpack.c.bf16 %v17067_v6, %v17066_v7  ;;  %v17075_v6 = vand.u32 4294901760, %v10929_v0  ;;  %v17076_v7 = vand.u32 4294901760, %v10947_v33  ;;  %1840 = vperm.xlu0 %10569, %v10668_v1   ;;  %v17086_v1 = vand.u32 4294901760, %v11041_v36 }
  0x51   :  { %17074 = vst [vmem:[#allocation13_spill] sm:$0xff] %v11178_v27  ;;  %v11191_v18 = vpack.c.bf16 %v17079_v39, %v17078_v16  ;;  %v11197_v44 = vpack.c.bf16 %v17082_v55, %v17081_v41  ;;  %v17083_v27 = vand.u32 4294901760, %v11021_v50  ;;  %v11211_v16 = vpack.c.bf16 %v335_v48, %v328_v51 }
  0x52   :  { %v11184_v35 = vpack.c.bf16 %v17076_v7, %v17075_v6  ;;  %v17084_v6 = vand.u32 4294901760, %v11024_v46  ;;  %v29_v39 = vlaneseq  ;;  %v16508_v51 = vmov 0.0  }
  0x53   :  { %17080 = vst [vmem:[#allocation15_spill] sm:$0xff] %v11191_v18  ;;  %17089 = vst [vmem:[#allocation18_spill] sm:$0xff] %v11211_v16 }
  0x54   :  { %17077 = vst [vmem:[#allocation14_spill] sm:$0xff] %v11184_v35  ;;  %v11203_v7 = vpack.c.bf16 %v17084_v6, %v17083_v27  ;;  %v11209_v35 = vpack.c.bf16 %v17087_v15, %v17086_v1  ;;  %v11213_v18 = vand.u32 127, %v29_v39  ;;  %v16510_v1 = vmov 1.0  }
  0x56   :  { %17085 = vst [vmem:[#allocation16_spill] sm:$0xff] %v11203_v7  ;;  %17088 = vst [vmem:[#allocation17_spill] sm:$0xff] %v11209_v35  ;;  %v11216_v41 = vadd.s32 128, %v11213_v18  ;;  %v11222_v27 = vadd.s32 256, %v11213_v18 }
  0x57   :  { %17090 = vst [vmem:[#allocation19_spill] sm:$0xff] %v11213_v18 }
  0x58   :  { %17091 = vst [vmem:[#allocation20_spill] sm:$0xff] %v11216_v41  ;;  %v11219_v55 = vadd.s32 256, %v11216_v41  ;;  %17093 = vst [vmem:[#allocation22_spill] sm:$0xff] %v11222_v27 }
  0x5a   :  { %17092 = vst [vmem:[#allocation21_spill] sm:$0xff] %v11219_v55 }
  0x94   :  { %v11224_v6 = vpop.permute.xlu0 %34 }
  0x95   :  { %vm77_vm0 = vcmp.eq.s32.totalorder %v11224_v6, %v11219_v55  ;;  %vm76_vm1 = vcmp.eq.s32.totalorder %v11224_v6, %v11222_v27  ;;  %v17097_v27 = vld [vmem:[#allocation9_spill] sm:$0xff]  ;;  %vm37_vm2 = vcmp.eq.s32.totalorder %v11224_v6, %v11216_v41 }
  0x96   :  { %v7281_v48 = vsel %vm77_vm0, 1.0, %v16508_v51  ;;  %7282 = vmatprep.mubr.msk.f32.mxu1 %vm77_vm0, %v16510_v1  ;;  %v7280_v15 = vsel %vm76_vm1, 1.0, %v16508_v51 }
  0x97   :  { %v212_v39 = vsub.f32 %v7281_v48, %v7281_v48  ;;  %v11242_v18 = vsub.f32 %v7280_v15, %v7280_v15  ;;  %7283 = vmatmul.mubr.msk.f32.vlgmr.msra.gmra.mrb[0].mxu1 %vm76_vm1, %v16510_v1  ;;  %v17094_v1 = vpack.c.bf16 %v10696_v20, %v10693_v19  ;;  %v17101_v19 = vld [vmem:[#allocation11_spill] sm:$0xff]  ;;  %v17102_v20 = vpack.c.bf16 %v10794_v32, %v10789_v31 }
  0x98   :  { %9121 = vmatpush3.bf16.msra.mxu1 %v10782_v5  ;;  %v17109_v31 = vpack.c.bf16 %v10848_v57, %v10832_v17  ;;  %v17113_v17 = vpack.c.bf16 %v10917_v8, %v10903_v34  ;;  %v11309_v57 = vld [vmem:[#allocation2 + $0x80] sm:$0xff]  ;;  %v17114_v34 = vpack.c.bf16 %v10947_v33, %v10929_v0  ;;  %v11326_v8 = vld [vmem:[#allocation2 + $0x88] sm:$0xff]  ;;  %v11346_v0 = vld [vmem:[#allocation2 + $0x98] sm:$0xff] }
  0x99   :  { %9123 = vmatprep.subr.bf16.mxu1 %v10810_v37  ;;  %v213_v16 = vand.u32 4294901760, %v212_v39  ;;  %v16512_v35 = vand.u32 4294901760, %v11242_v18 }
  0x9b   :  { %696 = vmatprep.mubr.f32.mxu1 %v213_v16  ;;  %v214_v7 = vsub.f32 %v212_v39, %v213_v16  ;;  %v220_v48 = vsub.f32 %v11242_v18, %v16512_v35  ;;  %v17095_v16 = vld [vmem:[#allocation8_spill] sm:$0xff]  ;;  %v17096_v35 = vpack.c.bf16 %v10709_v25, %v10701_v21  ;;  %v17104_v25 = vpack.c.bf16 %v10821_v45, %v10804_v10 }
  0x9c   :  { %9125 = vmatpush3.bf16.msra.mxu1 %v10861_v11  ;;  %v17103_v21 = vld [vmem:[#allocation12_spill] sm:$0xff]  ;;  %v17110_v45 = vpack.c.bf16 %v10896_v9, %v10891_v38 }
  0x9d   :  { %9127 = vmatprep.subr.bf16.mxu1 %v10883_v43  ;;  %v215_v15 = vand.u32 4294901760, %v214_v7  ;;  %v221_v51 = vand.u32 4294901760, %v220_v48  ;;  %v17098_v7 = vpack.c.bf16 %v10722_v30, %v10714_v26  ;;  %v17099_v48 = vld [vmem:[#allocation10_spill] sm:$0xff]  ;;  %v11280_v26 = vld [vmem:[#allocation2 + $0x60] sm:$0xff]  ;;  %v11282_v30 = vld [vmem:[#allocation2 + $0x68] sm:$0xff] }
  0x9e   :  { %17105 = vst [vmem:[#allocation8_spill] sm:$0xff] %v11280_v26  ;;  %17106 = vst [vmem:[#allocation9_spill] sm:$0xff] %v11282_v30  ;;  %v16517_v32 = vand.u32 4294901760, %v11280_v26  ;;  %v16515_v10 = vand.u32 4294901760, %v11282_v30 }
  0x9f   :  { %216 = vmatprep.mubr.f32.mxu0 %v215_v15 }
  0xa0   :  { %9129 = vmatpush3.bf16.msra.mxu1 %v10909_v54  ;;  %222 = vmatmul.mubr.f32.vlgmr.msra.gmra.mrb[0].mxu0 %v221_v51  ;;  %v17100_v51 = vpack.c.bf16 %v10779_v4, %v10770_v62  ;;  %v11285_v62 = vld [vmem:[#allocation2 + $0xf0] sm:$0xff]  ;;  %v11287_v4 = vld [vmem:[#allocation2 + $0xf8] sm:$0xff]  ;;  %v11314_v38 = vsub.f32 %v11280_v26, %v16517_v32  ;;  %v11319_v9 = vsub.f32 %v11282_v30, %v16515_v10 }
  0xa1   :  { %9089 = vmatpush3.bf16.msra.mxu0 %v17094_v1  ;;  %589 = vmatprep.mubr.f32.mxu0 %v212_v39  ;;  %17107 = vst [vmem:[#allocation10_spill] sm:$0xff] %v11285_v62  ;;  %17108 = vst [vmem:[#allocation11_spill] sm:$0xff] %v11287_v4  ;;  %v11300_v1 = vld [vmem:[#allocation2 + $0x78] sm:$0xff]  ;;  %v16516_v39 = vand.u32 4294901760, %v11285_v62  ;;  %v16518_v15 = vand.u32 4294901760, %v11287_v4  ;;  %v11352_v10 = vld [vmem:[#allocation2 + $0x10] sm:$0xff]  ;;  %v17122_v32 = vpack.c.bf16 %v11024_v46, %v11021_v50 }
  0xa2   :  { %9131 = vmatprep.subr.bf16.mxu1 %v17095_v16  ;;  %9091 = vmatprep.subr.bf16.mxu0 %v17096_v35  ;;  %v11298_v35 = vld [vmem:[#allocation2 + $0x70] sm:$0xff]  ;;  %17112 = vst [vmem:[#allocation23_spill] sm:$0xff] %v11300_v1  ;;  %v17127_v50 = vand.u32 4294901760, %v11326_v8 }
  0xa3   :  { %17111 = vst [vmem:[#allocation12_spill] sm:$0xff] %v11298_v35 }
  0xa4   :  { %9133 = vmatpush3.bf16.msra.mxu1 %v17097_v27  ;;  %v11418_v46 = vsub.f32 %v11326_v8, %v17127_v50  ;;  %v11440_v50 = vld [vmem:[#allocation2 + $0xa8] sm:$0xff] }
  0xa5   :  { %9093 = vmatpush3.bf16.msra.mxu0 %v17098_v7  ;;  %9135 = vmatprep.subr.bf16.mxu1 %v17099_v48  ;;  %v16519_v7 = vand.u32 4294901760, %v11298_v35 }
  0xa6   :  { %9095 = vmatprep.subr.bf16.mxu0 %v17100_v51  ;;  %v16521_v51 = vand.u32 4294901760, %v11300_v1  ;;  %17128 = vst [vmem:[#allocation27_spill] sm:$0xff] %v11418_v46 }
  0xa7   :  { %v11361_v33 = vsub.f32 %v11298_v35, %v16519_v7  ;;  %v17117_v7 = vand.u32 4294901760, %v11242_v18 }
  0xa8   :  { %9137 = vmatpush3.bf16.msra.mxu1 %v17101_v19 }
  0xa9   :  { %9097 = vmatpush3.bf16.msra.mxu0 %v17102_v20  ;;  %9139 = vmatprep.subr.bf16.mxu1 %v17103_v21  ;;  %v11328_v20 = vld [vmem:[#allocation2] sm:$0xff] }
  0xaa   :  { %9099 = vmatprep.subr.bf16.mxu0 %v17104_v25  ;;  %v11330_v25 = vld [vmem:[#allocation2 + $0x8] sm:$0xff] }
  0xac   :  { %9141 = vmatpush3.bf16.msra.mxu1 %v11062_v60 }
  0xad   :  { %9101 = vmatpush3.bf16.msra.mxu0 %v17109_v31  ;;  %9143 = vmatprep.subr.bf16.mxu1 %v11073_v47  ;;  %v11332_v31 = vld [vmem:[#allocation2 + $0x90] sm:$0xff] }
  0xae   :  { %9103 = vmatprep.subr.bf16.mxu0 %v17110_v45  ;;  %v11337_v45 = vsub.f32 %v11285_v62, %v16516_v39  ;;  %v11354_v39 = vld [vmem:[#allocation2 + $0x18] sm:$0xff]  ;;  %v17198_v26 = vand.u32 4294901760, %v11332_v31 }
  0xb0   :  { %9145 = vmatpush3.bf16.msra.mxu1 %v11075_v49 }
  0xb1   :  { %9105 = vmatpush3.bf16.msra.mxu0 %v17113_v17  ;;  %9147 = vmatprep.subr.bf16.mxu1 %v11077_v28  ;;  %v11342_v17 = vsub.f32 %v11287_v4, %v16518_v15  ;;  %v17121_v15 = vmov 1.0   ;;  %v17143_v4 = vpack.c.bf16 %v11056_v40, %v11054_v52 }
  0xb2   :  { %9107 = vmatprep.subr.bf16.mxu0 %v17114_v34  ;;  %v17115_v34 = vpack.c.bf16 %v10973_v56, %v10968_v24  ;;  %v11366_v24 = vsub.f32 %v11300_v1, %v16521_v51  ;;  %v16524_v51 = vand.u32 4294901760, %v11337_v45 }
  0xb3   :  { %v16523_v1 = vand.u32 4294901760, %v11342_v17 }
  0xb4   :  { %9149 = vmatpush3.bf16.msra.mxu1 %v11082_v63 }
  0xb5   :  { %9109 = vmatpush3.bf16.msra.mxu0 %v17115_v34  ;;  %9183 = vmatprep.subr.bf16.mxu1 %v10763_v59  ;;  %v17116_v59 = vpack.c.bf16 %v11010_v3, %v11006_v23  ;;  %v17118_v23 = vand.u32 4294901760, %v11314_v38  ;;  %v17119_v3 = vand.u32 4294901760, %v11319_v9  ;;  %v16526_v34 = vand.u32 4294901760, %v11361_v33 }
  0xb6   :  { %v11410_v35 = vpack.c.bf16 %v16523_v1, %v16524_v51  ;;  %v17133_v1 = vand.u32 4294901760, %v11332_v31 }
  0xb7   :  { %9111 = vmatprep.subr.bf16.mxu0 %v17116_v59  ;;  %700 = vmatmul.mubr.f32.vlgmr.msra.gmra.mrb[2].mxu1 %v17117_v7  ;;  %v11384_v59 = vpack.c.bf16 %v17119_v3, %v17118_v23  ;;  %v17123_v23 = vand.u32 4294901760, %v11309_v57  ;;  %v17131_v7 = vand.u32 4294901760, %v11330_v25 }
  0xb8   :  { %9185 = vmatpush3.bf16.msra.mxu1 %v10782_v5  ;;  %7286 = vmatprep.mubr.msk.f32.mxu1 %vm77_vm0, %v17121_v15  ;;  %v11402_v5 = vld [vmem:[#allocation2 + $0xa0] sm:$0xff]  ;;  %17125 = vst [vmem:[#allocation26_spill] sm:$0xff] %v11410_v35  ;;  %v17141_v35 = vand.u32 4294901760, %v11354_v39 }
  0xb9   :  { %17120 = vst [vmem:[#allocation24_spill] sm:$0xff] %v11384_v59  ;;  %9113 = vmatpush3.bf16.msra.mxu0 %v17122_v32  ;;  %9187 = vmatprep.subr.bf16.mxu1 %v10810_v37  ;;  %v11400_v3 = vsub.f32 %v11309_v57, %v17123_v23  ;;  %v17126_v37 = vpack.c.bf16 %v11043_v58, %v11041_v36  ;;  %v17129_v32 = vand.u32 4294901760, %v11328_v20  ;;  %v17135_v58 = vand.u32 4294901760, %v11346_v0 }
  0xba   :  { %v11428_v56 = vsub.f32 %v11330_v25, %v17131_v7  ;;  %v11433_v36 = vsub.f32 %v11332_v31, %v17133_v1  ;;  %v17139_v7 = vand.u32 4294901760, %v11352_v10 }
  0xbb   :  { %17124 = vst [vmem:[#allocation25_spill] sm:$0xff] %v11400_v3  ;;  %9115 = vmatprep.subr.bf16.mxu0 %v17126_v37  ;;  %v11423_v23 = vsub.f32 %v11328_v20, %v17129_v32  ;;  %v11438_v37 = vsub.f32 %v11346_v0, %v17135_v58  ;;  %v17137_v32 = vand.u32 4294901760, %v11366_v24  ;;  %v11457_v58 = vsub.f32 %v11354_v39, %v17141_v35  ;;  %v11469_v35 = vld [vmem:[#allocation2 + $0x20] sm:$0xff] }
  0xbc   :  { %17132 = vst [vmem:[#allocation29_spill] sm:$0xff] %v11428_v56  ;;  %17134 = vst [vmem:[#allocation30_spill] sm:$0xff] %v11433_v36  ;;  %9189 = vmatpush3.bf16.msra.mxu1 %v10861_v11  ;;  %v11452_v1 = vsub.f32 %v11352_v10, %v17139_v7  ;;  %v16527_v11 = vand.u32 4294901760, %v11400_v3  ;;  %v16531_v59 = vand.u32 4294901760, %v11428_v56 }
  0xbd   :  { %17130 = vst [vmem:[#allocation28_spill] sm:$0xff] %v11423_v23  ;;  %17136 = vst [vmem:[#allocation31_spill] sm:$0xff] %v11438_v37  ;;  %v11446_v51 = vpack.c.bf16 %v17137_v32, %v16526_v34  ;;  %9117 = vmatpush3.bf16.msra.mxu0 %v17143_v4  ;;  %9191 = vmatprep.subr.bf16.mxu1 %v10883_v43  ;;  %v16529_v32 = vand.u32 4294901760, %v11418_v46  ;;  %v16528_v7 = vand.u32 4294901760, %v11423_v23  ;;  %v16530_v34 = vand.u32 4294901760, %v11440_v50 }
  0xbe   :  { %17140 = vst [vmem:[#allocation33_spill] sm:$0xff] %v11452_v1  ;;  %17142 = vst [vmem:[#allocation34_spill] sm:$0xff] %v11457_v58  ;;  %9151 = vmatprep.subr.bf16.mxu0 %v11123_v12  ;;  %v16534_v52 = vand.u32 4294901760, %v11438_v37  ;;  %v16535_v43 = vand.u32 4294901760, %v11452_v1  ;;  %v17144_v12 = vand.u32 4294901760, %v11402_v5  ;;  %v1100_v40 = vsub.f32 %v11428_v56, %v16531_v59 }
  0xbf   :  { %17138 = vst [vmem:[#allocation32_spill] sm:$0xff] %v11446_v51  ;;  %v16536_v51 = vand.u32 4294901760, %v11433_v36 }
  0xc0   :  { %592 = vmatmul.mubr.f32.vlgmr.msra.gmra.mrb[2].mxu0 %v11242_v18  ;;  %9193 = vmatpush3.bf16.msra.mxu1 %v10909_v54  ;;  %v11481_v4 = vsub.f32 %v11402_v5, %v17144_v12  ;;  %v1205_v54 = vsub.f32 %v11400_v3, %v16527_v11  ;;  %v11491_v18 = vld [vmem:[#allocation2 + $0x28] sm:$0xff]  ;;  %v1093_v12 = vsub.f32 %v11423_v23, %v16528_v7  ;;  %v1101_v59 = vand.u32 4294901760, %v1100_v40  ;;  %v11660_v23 = vld [vmem:[#allocation2 + $0xe0] sm:$0xff] }
  0xc1   :  { %9153 = vmatpush3.bf16.msra.mxu0 %v11129_v61  ;;  %7284 = vmatprep.mubr.msk.f32.mxu0 %vm77_vm0, %v17121_v15  ;;  %v1212_v61 = vsub.f32 %v11418_v46, %v16529_v32  ;;  %v11505_v11 = vsub.f32 %v11440_v50, %v16530_v34  ;;  %v1107_v7 = vsub.f32 %v11452_v1, %v16535_v43  ;;  %v17147_v32 = vand.u32 4294901760, %v11457_v58  ;;  %v11662_v46 = vld [vmem:[#allocation2 + $0xe8] sm:$0xff] }
  0xc2   :  { %17145 = vst [vmem:[#allocation35_spill] sm:$0xff] %v11481_v4  ;;  %9195 = vmatprep.subr.bf16.mxu1 %v17095_v16  ;;  %9155 = vmatprep.subr.bf16.mxu0 %v11135_v13  ;;  %v1219_v13 = vsub.f32 %v11433_v36, %v16536_v51  ;;  %v1226_v16 = vsub.f32 %v11438_v37, %v16534_v52  ;;  %v17148_v52 = vand.u32 4294901760, %v11469_v35  ;;  %v1206_v43 = vand.u32 4294901760, %v1205_v54  ;;  %v11540_v36 = vld [vmem:[#allocation2 + $0x38] sm:$0xff] }
  0xc3   :  { %17146 = vst [vmem:[#allocation36_spill] sm:$0xff] %v11505_v11  ;;  %v1114_v34 = vsub.f32 %v11457_v58, %v17147_v32  ;;  %v1213_v51 = vand.u32 4294901760, %v1212_v61  ;;  %v1094_v1 = vand.u32 4294901760, %v1093_v12  ;;  %v16547_v32 = vand.u32 4294901760, %v11505_v11  ;;  %v11534_v58 = vld [vmem:[#allocation2 + $0xb0] sm:$0xff] }
  0xc4   :  { %9197 = vmatpush3.bf16.msra.mxu1 %v17097_v27  ;;  %v11530_v27 = vsub.f32 %v11469_v35, %v17148_v52  ;;  %v1220_v55 = vand.u32 4294901760, %v1219_v13  ;;  %v1227_v37 = vand.u32 4294901760, %v1226_v16  ;;  %v1108_v52 = vand.u32 4294901760, %v1107_v7  ;;  %v11551_v13 = vld [vmem:[#allocation2 + $0xc0] sm:$0xff] }
  0xc5   :  { %9157 = vmatpush3.bf16.msra.mxu0 %v11142_v29  ;;  %9199 = vmatprep.subr.bf16.mxu1 %v17099_v48  ;;  %v11536_v29 = vld [vmem:[#allocation2 + $0xb8] sm:$0xff]  ;;  %v11538_v48 = vld [vmem:[#allocation2 + $0x30] sm:$0xff]  ;;  %v17150_v54 = vand.u32 4294901760, %v11481_v4  ;;  %v17151_v12 = vand.u32 4294901760, %v11491_v18  ;;  %v16552_v16 = vand.u32 4294901760, %v11551_v13 }
  0xc6   :  { %17149 = vst [vmem:[#allocation37_spill] sm:$0xff] %v11530_v27  ;;  %9159 = vmatprep.subr.bf16.mxu0 %v11148_v14  ;;  %v1115_v14 = vand.u32 4294901760, %v1114_v34  ;;  %v1240_v34 = vsub.f32 %v11505_v11, %v16547_v32  ;;  %v11575_v11 = vld [vmem:[#allocation2 + $0x40] sm:$0xff] }
  0xc7   :  { %v1233_v61 = vsub.f32 %v11481_v4, %v17150_v54  ;;  %v11549_v40 = vsub.f32 %v11491_v18, %v17151_v12  ;;  %v16550_v54 = vand.u32 4294901760, %v11538_v48  ;;  %v16551_v12 = vand.u32 4294901760, %v11540_v36  ;;  %v11564_v4 = vld [vmem:[#allocation2 + $0xc8] sm:$0xff] }
  0xc8   :  { %9201 = vmatpush3.bf16.msra.mxu1 %v17101_v19  ;;  %v11572_v19 = vpack.c.bf16 %v1115_v14, %v1108_v52  ;;  %v17156_v52 = vand.u32 4294901760, %v11536_v29 }
  0xc9   :  { %17152 = vst [vmem:[#allocation38_spill] sm:$0xff] %v11549_v40  ;;  %9161 = vmatpush3.bf16.msra.mxu0 %v11154_v2  ;;  %9203 = vmatprep.subr.bf16.mxu1 %v17103_v21  ;;  %v9246_v2 = vpack.c.bf16 %v1213_v51, %v1206_v43  ;;  %v11566_v21 = vpack.c.bf16 %v1101_v59, %v1094_v1  ;;  %v1234_v32 = vand.u32 4294901760, %v1233_v61  ;;  %v17153_v51 = vand.u32 4294901760, %v11530_v27  ;;  %v11592_v1 = vld [vmem:[#allocation2 + $0x48] sm:$0xff] }
  0xca   :  { %9163 = vmatprep.subr.bf16.mxu0 %v11160_v53  ;;  %v11570_v53 = vpack.c.bf16 %v1227_v37, %v1220_v55  ;;  %v17154_v55 = vand.u32 4294901760, %v11534_v58  ;;  %v1241_v43 = vand.u32 4294901760, %v1240_v34  ;;  %v11602_v14 = vsub.f32 %v11536_v29, %v17156_v52 }
  0xcb   :  { %v11607_v61 = vsub.f32 %v11538_v48, %v16550_v54  ;;  %v17162_v37 = vand.u32 4294901760, %v11328_v20  ;;  %v17163_v52 = vand.u32 4294901760, %v11330_v25  ;;  %v11629_v54 = vsub.f32 %v11551_v13, %v16552_v16 }
  0xcc   :  { %9205 = vmatpush3.bf16.msra.mxu1 %v11062_v60  ;;  %v11584_v60 = vsub.f32 %v11530_v27, %v17153_v51  ;;  %v11589_v59 = vsub.f32 %v11534_v58, %v17154_v55  ;;  %17157 = vst [vmem:[#allocation40_spill] sm:$0xff] %v11602_v14  ;;  %v11612_v51 = vsub.f32 %v11540_v36, %v16551_v12  ;;  %v17160_v55 = vand.u32 4294901760, %v11309_v57  ;;  %v17170_v27 = vld [vmem:[#allocation14_spill] sm:$0xff] }
  0xcd   :  { %9165 = vmatpush3.bf16.msra.mxu0 %v11166_v42  ;;  %9207 = vmatprep.subr.bf16.mxu1 %v11073_v47  ;;  %v11594_v42 = vld [vmem:[#allocation2 + $0xd0] sm:$0xff]  ;;  %v11596_v47 = vld [vmem:[#allocation2 + $0xd8] sm:$0xff]  ;;  %17158 = vst [vmem:[#allocation41_spill] sm:$0xff] %v11607_v61  ;;  %v11624_v7 = vpack.c.bf16 %v17163_v52, %v17162_v37  ;;  %17164 = vst [vmem:[#allocation43_spill] sm:$0xff] %v11629_v54  ;;  %v17165_v57 = vmov 0.0   ;;  %v17167_v16 = vand.u32 4294901760, %v11549_v40  ;;  %v9254_v56 = vpack.c.bf16 %v1241_v43, %v1234_v32 }
  0xce   :  { %17155 = vst [vmem:[#allocation39_spill] sm:$0xff] %v11589_v59  ;;  %9167 = vmatprep.subr.bf16.mxu0 %v11172_v22  ;;  %17159 = vst [vmem:[#allocation42_spill] sm:$0xff] %v11612_v51  ;;  %v17161_v22 = vand.u32 4294901760, %v11326_v8  ;;  %v7279_v8 = vsel %vm37_vm2, 1.0, %v17165_v57  ;;  %v17166_v52 = vld [vmem:[#allocation13_spill] sm:$0xff]  ;;  %v17168_v25 = vand.u32 4294901760, %v11564_v4 }
  0xcf   :  { %v1128_v12 = vsub.f32 %v11549_v40, %v17167_v16  ;;  %17171 = vst [vmem:[#allocation14_spill] sm:$0xff] %v11662_v46  ;;  %v11664_v16 = vsub.f32 %v7279_v8, %v7279_v8  ;;  %v17173_v43 = vand.u32 4294901760, %v11592_v1  ;;  %v17174_v8 = vand.u32 4294901760, %v11594_v42 }
  0xd0   :  { %v11618_v34 = vpack.c.bf16 %v17161_v22, %v17160_v55  ;;  %9209 = vmatpush3.bf16.msra.mxu1 %v11075_v49  ;;  %v11640_v55 = vld [vmem:[#allocation2 + $0x50] sm:$0xff]  ;;  %v11642_v22 = vld [vmem:[#allocation2 + $0x58] sm:$0xff]  ;;  %v1122_v49 = vand.u32 4294901760, %v11584_v60  ;;  %v11654_v37 = vsub.f32 %v11564_v4, %v17168_v25  ;;  %v17176_v25 = vand.u32 4294901760, %v11596_v47 }
  0xd1   :  { %9169 = vmatpush3.bf16.msra.mxu0 %v17166_v52  ;;  %9211 = vmatprep.subr.bf16.mxu1 %v11077_v28  ;;  %v11678_v60 = vsub.f32 %v11592_v1, %v17173_v43  ;;  %v11683_v20 = vsub.f32 %v11594_v42, %v17174_v8  ;;  %v17178_v8 = vand.u32 4294901760, %v11589_v59  ;;  %v17179_v62 = vand.u32 4294901760, %v11602_v14  ;;  %v11969_v43 = vld [vmem:[#allocation2 + $0x270] sm:$0xff] }
  0xd2   :  { %17169 = vst [vmem:[#allocation13_spill] sm:$0xff] %v11654_v37  ;;  %9171 = vmatprep.subr.bf16.mxu0 %v17170_v27  ;;  %v17172_v27 = vand.u32 4294901760, %v11575_v11  ;;  %v11688_v40 = vsub.f32 %v11596_v47, %v17176_v25  ;;  %v17192_v30 = vand.u32 4294901760, %v11664_v16 }
  0xd3   :  { %17175 = vst [vmem:[#allocation44_spill] sm:$0xff] %v11683_v20  ;;  %v1247_v3 = vsub.f32 %v11589_v59, %v17178_v8  ;;  %v1254_v25 = vsub.f32 %v11602_v14, %v17179_v62  ;;  %v17183_v8 = vand.u32 4294901760, %v11629_v54  ;;  %v17184_v62 = vand.u32 4294901760, %v11640_v55 }
  0xd4   :  { %9213 = vmatpush3.bf16.msra.mxu1 %v11082_v63  ;;  %v11673_v32 = vsub.f32 %v11575_v11, %v17172_v27  ;;  %v17177_v63 = vld [vmem:[#allocation15_spill] sm:$0xff]  ;;  %v1129_v27 = vand.u32 4294901760, %v1128_v12 }
  0xd5   :  { %9173 = vmatpush3.bf16.msra.mxu0 %v17177_v63  ;;  %9247 = vmatprep.subr.bf16.mxu1 %v9246_v2  ;;  %v17180_v63 = vand.u32 4294901760, %v11607_v61  ;;  %v17181_v2 = vand.u32 4294901760, %v11612_v51  ;;  %v1261_v28 = vsub.f32 %v11629_v54, %v17183_v8  ;;  %v11718_v14 = vsub.f32 %v11640_v55, %v17184_v62  ;;  %v17191_v54 = vld [vmem:[#allocation17_spill] sm:$0xff] }
  0xd6   :  { %9175 = vmatprep.subr.bf16.mxu0 %v11197_v44  ;;  %v17189_v44 = vand.u32 4294901760, %v11662_v46  ;;  %v9256_v62 = vpack.c.bf16 %v1129_v27, %v1122_v49  ;;  %v1255_v59 = vand.u32 4294901760, %v1254_v25  ;;  %v17195_v49 = vand.u32 4294901760, %v11683_v20  ;;  %v17197_v25 = vld [vmem:[#allocation18_spill] sm:$0xff] }
  0xd7   :  { %v1135_v12 = vsub.f32 %v11607_v61, %v17180_v63  ;;  %v1142_v52 = vsub.f32 %v11612_v51, %v17181_v2  ;;  %7287 = vmatmul.mubr.msk.f32.vlgmr.msra.gmra.mrb[4].mxu1 %vm76_vm1, %v17121_v15  ;;  %v17185_v63 = vand.u32 4294901760, %v11642_v22  ;;  %v17186_v51 = vld [vmem:[#allocation16_spill] sm:$0xff]  ;;  %v17188_v61 = vand.u32 4294901760, %v11660_v23 }
  0xd8   :  { %9249 = vmatpush3.bf16.msra.mxu1 %v11566_v21  ;;  %7288 = vmatprep.mubr.msk.f32.mxu1 %vm37_vm2, %v17121_v15  ;;  %v11747_v8 = vsub.f32 %v11662_v46, %v17189_v44  ;;  %v17193_v44 = vand.u32 4294901760, %v11673_v32  ;;  %v1275_v27 = vsub.f32 %v11683_v20, %v17195_v49  ;;  %v17199_v49 = vand.u32 4294901760, %v11346_v0 }
  0xd9   :  { %v11723_v2 = vsub.f32 %v11642_v22, %v17185_v63  ;;  %9177 = vmatpush3.bf16.msra.mxu0 %v17186_v51  ;;  %9251 = vmatprep.subr.bf16.mxu1 %v11570_v53  ;;  %v17187_v63 = vand.u32 4294901760, %v11654_v37  ;;  %v11742_v41 = vsub.f32 %v11660_v23, %v17188_v61  ;;  %v1248_v51 = vand.u32 4294901760, %v1247_v3 }
  0xda   :  { %17190 = vst [vmem:[#allocation15_spill] sm:$0xff] %v11747_v8  ;;  %9179 = vmatprep.subr.bf16.mxu0 %v17191_v54  ;;  %v1136_v53 = vand.u32 4294901760, %v1135_v12  ;;  %v1149_v46 = vsub.f32 %v11673_v32, %v17193_v44  ;;  %v17194_v54 = vand.u32 4294901760, %v11678_v60  ;;  %v11776_v20 = vpack.c.bf16 %v17199_v49, %v17198_v26 }
  0xdb   :  { %v1268_v21 = vsub.f32 %v11654_v37, %v17187_v63  ;;  %v1076_v63 = vsub.f32 %v11664_v16, %v17192_v30  ;;  %v1143_v37 = vand.u32 4294901760, %v1142_v52  ;;  %v17196_v30 = vand.u32 4294901760, %v11688_v40 }
  0xdc   :  { %9253 = vmatpush3.bf16.msra.mxu1 %v11572_v19  ;;  %v1156_v3 = vsub.f32 %v11678_v60, %v17194_v54  ;;  %v1262_v19 = vand.u32 4294901760, %v1261_v28  ;;  %v9258_v54 = vpack.c.bf16 %v1255_v59, %v1248_v51  ;;  %v17202_v61 = vand.u32 4294901760, %v11718_v14 }
  0xdd   :  { %v1282_v52 = vsub.f32 %v11688_v40, %v17196_v30  ;;  %9181 = vmatpush3.bf16.msra.mxu0 %v17197_v25  ;;  %9255 = vmatprep.subr.bf16.mxu1 %v9254_v56  ;;  %v1269_v12 = vand.u32 4294901760, %v1268_v21  ;;  %v17200_v30 = vand.u32 4294901760, %v11352_v10  ;;  %v17201_v25 = vand.u32 4294901760, %v11354_v39 }
  0xde   :  { %9215 = vmatprep.subr.bf16.mxu0 %v11618_v34  ;;  %v1077_v28 = vand.u32 4294901760, %v1076_v63  ;;  %v9260_v21 = vpack.c.bf16 %v1143_v37, %v1136_v53  ;;  %v1163_v44 = vsub.f32 %v11718_v14, %v17202_v61  ;;  %v17203_v59 = vand.u32 4294901760, %v11723_v2 }
  0xdf   :  { %v11782_v56 = vpack.c.bf16 %v17201_v25, %v17200_v30  ;;  %v1150_v26 = vand.u32 4294901760, %v1149_v46  ;;  %v1157_v10 = vand.u32 4294901760, %v1156_v3  ;;  %v1276_v39 = vand.u32 4294901760, %v1275_v27 }
  0xe0   :  { %v1170_v31 = vsub.f32 %v11723_v2, %v17203_v59  ;;  %7285 = vmatmul.mubr.msk.f32.vlgmr.msra.gmra.mrb[4].mxu0 %vm76_vm1, %v17121_v15  ;;  %9257 = vmatpush3.bf16.msra.mxu1 %v9256_v62  ;;  %v1283_v0 = vand.u32 4294901760, %v1282_v52  ;;  %v9262_v37 = vpack.c.bf16 %v1269_v12, %v1262_v19  ;;  %v17204_v51 = vand.u32 4294901760, %v11742_v41 }
  0xe1   :  { %9217 = vmatpush3.bf16.msra.mxu0 %v11624_v7  ;;  %1078 = vmatprep.mubr.f32.mxu0 %v1077_v28  ;;  %v17205_v63 = vand.u32 4294901760, %v11747_v8  ;;  %v17206_v46 = vand.u32 4294901760, %v11402_v5  ;;  %v17207_v62 = vand.u32 4294901760, %v11440_v50  ;;  %v17208_v27 = vand.u32 4294901760, %v11469_v35 }
  0xe2   :  { %v1289_v53 = vsub.f32 %v11742_v41, %v17204_v51  ;;  %9259 = vmatprep.subr.bf16.mxu1 %v9258_v54  ;;  %9219 = vmatprep.subr.bf16.mxu0 %v11776_v20  ;;  %v17209_v52 = vand.u32 4294901760, %v11491_v18  ;;  %v1164_v12 = vand.u32 4294901760, %v1163_v44  ;;  %v1171_v49 = vand.u32 4294901760, %v1170_v31 }
  0xe3   :  { %v1296_v61 = vsub.f32 %v11747_v8, %v17205_v63  ;;  %v11806_v3 = vpack.c.bf16 %v17207_v62, %v17206_v46  ;;  %v9264_v30 = vpack.c.bf16 %v1157_v10, %v1150_v26  ;;  %v9266_v25 = vpack.c.bf16 %v1283_v0, %v1276_v39 }
  0xe4   :  { %v11812_v19 = vpack.c.bf16 %v17209_v52, %v17208_v27  ;;  %9261 = vmatpush3.bf16.msra.mxu1 %v9260_v21  ;;  %v17210_v54 = vand.u32 4294901760, %v11314_v38  ;;  %v17211_v5 = vand.u32 4294901760, %v11319_v9  ;;  %v1290_v35 = vand.u32 4294901760, %v1289_v53 }
  0xe5   :  { %9221 = vmatpush3.bf16.msra.mxu0 %v11782_v56  ;;  %9263 = vmatprep.subr.bf16.mxu1 %v9262_v37  ;;  %v1297_v18 = vand.u32 4294901760, %v1296_v61  ;;  %v17212_v59 = vand.u32 4294901760, %v11337_v45  ;;  %v17213_v21 = vand.u32 4294901760, %v11342_v17  ;;  %v17214_v26 = vand.u32 4294901760, %v11534_v58 }
  0xe6   :  { %v1177_v28 = vsub.f32 %v11314_v38, %v17210_v54  ;;  %v1184_v50 = vsub.f32 %v11319_v9, %v17211_v5  ;;  %9223 = vmatprep.subr.bf16.mxu0 %v11806_v3  ;;  %v17215_v10 = vand.u32 4294901760, %v11536_v29  ;;  %v9268_v0 = vpack.c.bf16 %v1171_v49, %v1164_v12 }
  0xe7   :  { %v1303_v44 = vsub.f32 %v11337_v45, %v17212_v59  ;;  %v1310_v31 = vsub.f32 %v11342_v17, %v17213_v21  ;;  %v17216_v53 = vand.u32 4294901760, %v11361_v33  ;;  %v17217_v61 = vand.u32 4294901760, %v11366_v24 }
  0xe8   :  { %v11832_v39 = vpack.c.bf16 %v17215_v10, %v17214_v26  ;;  %9265 = vmatpush3.bf16.msra.mxu1 %v9264_v30  ;;  %v1178_v37 = vand.u32 4294901760, %v1177_v28  ;;  %v1185_v51 = vand.u32 4294901760, %v1184_v50  ;;  %v17218_v58 = vand.u32 4294901760, %v11538_v48  ;;  %v17222_v48 = vld [vmem:[#allocation19_spill] sm:$0xff]  ;;  %v17232_v26 = vld [vmem:[#allocation14_spill] sm:$0xff] }
  0xe9   :  { %v1191_v63 = vsub.f32 %v11361_v33, %v17216_v53  ;;  %v1198_v46 = vsub.f32 %v11366_v24, %v17217_v61  ;;  %9225 = vmatpush3.bf16.msra.mxu0 %v11812_v19  ;;  %9267 = vmatprep.subr.bf16.mxu1 %v9266_v25  ;;  %v17219_v29 = vand.u32 4294901760, %v11540_v36  ;;  %v9270_v27 = vpack.c.bf16 %v1297_v18, %v1290_v35 }
  0xea   :  { %v1304_v52 = vand.u32 4294901760, %v1303_v44  ;;  %v1311_v12 = vand.u32 4294901760, %v1310_v31  ;;  %9227 = vmatprep.subr.bf16.mxu0 %v11832_v39  ;;  %v17220_v49 = vand.u32 4294901760, %v11551_v13  ;;  %v17221_v30 = vand.u32 4294901760, %v11564_v4 }
  0xeb   :  { %v11845_v62 = vpack.c.bf16 %v17219_v29, %v17218_v58  ;;  %v9272_v28 = vpack.c.bf16 %v1185_v51, %v1178_v37  ;;  %v1192_v25 = vand.u32 4294901760, %v1191_v63  ;;  %v1199_v5 = vand.u32 4294901760, %v1198_v46  ;;  %v17240_v63 = vld [vmem:[#allocation10_spill] sm:$0xff] }
  0xec   :  { %v11852_v54 = vpack.c.bf16 %v17221_v30, %v17220_v49  ;;  %9269 = vmatpush3.bf16.msra.mxu1 %v9268_v0  ;;  %vm36_vm3 = vcmp.eq.s32.totalorder %v11224_v6, %v17222_v48  ;;  %v17223_v36 = vand.u32 4294901760, %v11575_v11  ;;  %v17224_v50 = vand.u32 4294901760, %v11592_v1  ;;  %v17248_v49 = vld [vmem:[#allocation23_spill] sm:$0xff]  ;;  %v11971_v48 = vld [vmem:[#allocation2 + $0x278] sm:$0xff] }
  0xed   :  { %9229 = vmatpush3.bf16.msra.mxu0 %v11845_v62  ;;  %9271 = vmatprep.subr.bf16.mxu1 %v9270_v27  ;;  %v9274_v13 = vpack.c.bf16 %v1311_v12, %v1304_v52  ;;  %v17225_v4 = vand.u32 4294901760, %v11594_v42  ;;  %v17226_v18 = vand.u32 4294901760, %v11596_v47  ;;  %v7278_v44 = vsel %vm36_vm3, 1.0, %v17165_v57  ;;  %v17246_v52 = vld [vmem:[#allocation12_spill] sm:$0xff] }
  0xee   :  { %v11861_v35 = vpack.c.bf16 %v17224_v50, %v17223_v36  ;;  %9231 = vmatprep.subr.bf16.mxu0 %v11852_v54  ;;  %v9276_v11 = vpack.c.bf16 %v1199_v5, %v1192_v25  ;;  %v17228_v1 = vand.u32 4294901760, %v11640_v55  ;;  %v17229_v21 = vand.u32 4294901760, %v11642_v22  ;;  %v17235_v55 = vld [vmem:[#allocation8_spill] sm:$0xff]  ;;  %v17237_v22 = vld [vmem:[#allocation9_spill] sm:$0xff]  ;;  %v17252_v36 = vld [vmem:[#allocation27_spill] sm:$0xff] }
  0xef   :  { %v11868_v59 = vpack.c.bf16 %v17226_v18, %v17225_v4  ;;  %v11882_v42 = vsub.f32 %v7278_v44, %v7278_v44  ;;  %v17231_v47 = vand.u32 4294901760, %v11660_v23  ;;  %v17233_v10 = vand.u32 4294901760, %v17232_v26  ;;  %v17242_v23 = vld [vmem:[#allocation11_spill] sm:$0xff]  ;;  %v17251_v5 = vld [vmem:[#allocation25_spill] sm:$0xff]  ;;  %v17258_v26 = vld [vmem:[#allocation34_spill] sm:$0xff]  ;;  %17275 = vst [vmem:[#allocation27_spill] sm:$0xff] %v11971_v48 }
  0xf0   :  { %9273 = vmatpush3.bf16.msra.mxu1 %v9272_v28  ;;  %v11879_v31 = vpack.c.bf16 %v17229_v21, %v17228_v1  ;;  %v17236_v37 = vand.u32 4294901760, %v17235_v55  ;;  %v17238_v51 = vand.u32 4294901760, %v17237_v22  ;;  %v17241_v61 = vand.u32 4294901760, %v17240_v63  ;;  %v17254_v4 = vld [vmem:[#allocation29_spill] sm:$0xff]  ;;  %v17256_v1 = vld [vmem:[#allocation31_spill] sm:$0xff]  ;;  %v17262_v63 = vld [vmem:[#allocation38_spill] sm:$0xff] }
  0xf1   :  { %17227 = vst [vmem:[#allocation16_spill] sm:$0xff] %v11868_v59  ;;  %9233 = vmatpush3.bf16.msra.mxu0 %v11861_v35  ;;  %9275 = vmatprep.subr.bf16.mxu1 %v9274_v13  ;;  %v11888_v0 = vpack.c.bf16 %v17233_v10, %v17231_v47  ;;  %v17243_v46 = vand.u32 4294901760, %v17242_v23  ;;  %v16585_v29 = vand.u32 4294901760, %v11882_v42  ;;  %v17245_v27 = vand.u32 4294901760, %v11664_v16  ;;  %v17253_v13 = vld [vmem:[#allocation28_spill] sm:$0xff]  ;;  %v17257_v47 = vld [vmem:[#allocation33_spill] sm:$0xff] }
  0xf2   :  { %17230 = vst [vmem:[#allocation17_spill] sm:$0xff] %v11879_v31  ;;  %9235 = vmatprep.subr.bf16.mxu0 %v11868_v59  ;;  %v11896_v53 = vpack.c.bf16 %v17238_v51, %v17236_v37  ;;  %v17247_v12 = vand.u32 4294901760, %v17246_v52  ;;  %v17249_v30 = vand.u32 4294901760, %v17248_v49  ;;  %v9278_v50 = vpack.c.bf16 %v17252_v36, %v17251_v5  ;;  %v17259_v55 = vld [vmem:[#allocation35_spill] sm:$0xff]  ;;  %v17260_v37 = vld [vmem:[#allocation36_spill] sm:$0xff]  ;;  %v17261_v51 = vld [vmem:[#allocation37_spill] sm:$0xff] }
  0xf3   :  { %17234 = vst [vmem:[#allocation18_spill] sm:$0xff] %v11888_v0  ;;  %v11903_v58 = vpack.c.bf16 %v17243_v46, %v17241_v61  ;;  %v1082_v25 = vsub.f32 %v11882_v42, %v16585_v29  ;;  %v9280_v18 = vpack.c.bf16 %v17254_v4, %v17253_v13  ;;  %v9284_v10 = vpack.c.bf16 %v17258_v26, %v17257_v47  ;;  %v17263_v23 = vld [vmem:[#allocation39_spill] sm:$0xff]  ;;  %v17266_v52 = vld [vmem:[#allocation42_spill] sm:$0xff] }
  0xf4   :  { %9277 = vmatpush3.bf16.msra.mxu1 %v9276_v11  ;;  %17239 = vst [vmem:[#allocation14_spill] sm:$0xff] %v11896_v53  ;;  %v11919_v28 = vpack.c.bf16 %v17249_v30, %v17247_v12  ;;  %v17255_v11 = vld [vmem:[#allocation30_spill] sm:$0xff]  ;;  %v9286_v22 = vpack.c.bf16 %v17260_v37, %v17259_v55  ;;  %v9288_v61 = vpack.c.bf16 %v17262_v63, %v17261_v51  ;;  %v11951_v49 = vld [vmem:[#allocation2 + $0x260] sm:$0xff]  ;;  %17274 = vst [vmem:[#allocation25_spill] sm:$0xff] %v11969_v43 }
  0xf5   :  { %9237 = vmatpush3.bf16.msra.mxu0 %v11879_v31  ;;  %9311 = vmatprep.subr.bf16.mxu1 %v11618_v34  ;;  %17244 = vst [vmem:[#allocation8_spill] sm:$0xff] %v11903_v58  ;;  %v1083_v44 = vand.u32 4294901760, %v1082_v25  ;;  %v9282_v21 = vpack.c.bf16 %v17256_v1, %v17255_v11  ;;  %17267 = vst [vmem:[#allocation10_spill] sm:$0xff] %v11951_v49  ;;  %v17268_v30 = vld [vmem:[#allocation43_spill] sm:$0xff]  ;;  %v17269_v25 = vld [vmem:[#allocation13_spill] sm:$0xff] }
  0xf6   :  { %9239 = vmatprep.subr.bf16.mxu0 %v11888_v0  ;;  %17250 = vst [vmem:[#allocation9_spill] sm:$0xff] %v11919_v28 }
  0xf7   :  { %7289 = vmatmul.mubr.msk.f32.vlgmr.msra.gmra.mrb[6].mxu1 %vm36_vm3, %v17121_v15 }
  0xf8   :  { %9313 = vmatpush3.bf16.msra.mxu1 %v11624_v7  ;;  %1558 = vmatprep.mubr.f32.mxu1 %v17245_v27  ;;  %v17265_v27 = vld [vmem:[#allocation41_spill] sm:$0xff] }
  0xf9   :  { %9241 = vmatpush3.bf16.msra.mxu0 %v11896_v53  ;;  %9315 = vmatprep.subr.bf16.mxu1 %v11776_v20  ;;  %v9292_v12 = vpack.c.bf16 %v17266_v52, %v17265_v27 }
  0xfa   :  { %9243 = vmatprep.subr.bf16.mxu0 %v11903_v58 }
  0xfc   :  { %9317 = vmatpush3.bf16.msra.mxu1 %v11782_v56 }
  0xfd   :  { %9245 = vmatpush3.bf16.msra.mxu0 %v11919_v28  ;;  %9319 = vmatprep.subr.bf16.mxu1 %v11806_v3 }
  0xfe   :  { %9279 = vmatprep.subr.bf16.mxu0 %v9278_v50  ;;  %v9294_v50 = vpack.c.bf16 %v17269_v25, %v17268_v30 }
 0x100   :  { %1084 = vmatmul.mubr.f32.vlgmr.msra.gmra.mrb[6].mxu0 %v1083_v44  ;;  %9321 = vmatpush3.bf16.msra.mxu1 %v11812_v19  ;;  %v12013_v44 = vld [vmem:[#allocation2 + $0x200] sm:$0xff] }
 0x101   :  { %9281 = vmatpush3.bf16.msra.mxu0 %v9280_v18  ;;  %1451 = vmatprep.mubr.f32.mxu0 %v11664_v16  ;;  %v17264_v16 = vld [vmem:[#allocation40_spill] sm:$0xff] }
 0x102   :  { %9323 = vmatprep.subr.bf16.mxu1 %v11832_v39  ;;  %9283 = vmatprep.subr.bf16.mxu0 %v9282_v21  ;;  %v9290_v46 = vpack.c.bf16 %v17264_v16, %v17263_v23  ;;  %v11955_v18 = vld [vmem:[#allocation2 + $0x268] sm:$0xff]  ;;  %v11959_v21 = vld [vmem:[#allocation2 + $0x2f0] sm:$0xff] }
 0x103   :  { %17270 = vst [vmem:[#allocation11_spill] sm:$0xff] %v11955_v18  ;;  %17271 = vst [vmem:[#allocation12_spill] sm:$0xff] %v11959_v21 }
 0x104   :  { %9325 = vmatpush3.bf16.msra.mxu1 %v11845_v62 }
 0x105   :  { %9285 = vmatpush3.bf16.msra.mxu0 %v9284_v10  ;;  %9327 = vmatprep.subr.bf16.mxu1 %v11852_v54  ;;  %v11961_v10 = vld [vmem:[#allocation2 + $0x2f8] sm:$0xff] }
 0x106   :  { %9287 = vmatprep.subr.bf16.mxu0 %v9286_v22  ;;  %17272 = vst [vmem:[#allocation23_spill] sm:$0xff] %v11961_v10  ;;  %v9296_v22 = vpack.c.bf16 %v11678_v60, %v11673_v32 }
 0x108   :  { %9329 = vmatpush3.bf16.msra.mxu1 %v11861_v35 }
 0x109   :  { %9289 = vmatpush3.bf16.msra.mxu0 %v9288_v61  ;;  %9331 = vmatprep.subr.bf16.mxu1 %v11868_v59  ;;  %v16595_v61 = vand.u32 4294901760, %v11955_v18  ;;  %v10630_v59 = vmov 2  }
 0x10a   :  { %9291 = vmatprep.subr.bf16.mxu0 %v9290_v46  ;;  %v17273_v46 = vld [vmem:[#allocation44_spill] sm:$0xff]  ;;  %10570 = vset.pattern.permute.xlu1 %v10630_v59  ;;  %v9304_v59 = vpack.c.bf16 %v11319_v9, %v11314_v38  ;;  %v17281_v38 = vand.u32 4294901760, %v11971_v48 }
 0x10b   :  { %v9298_v29 = vpack.c.bf16 %v11688_v40, %v17273_v46 }
 0x10c   :  { %9333 = vmatpush3.bf16.msra.mxu1 %v11879_v31  ;;  %v11987_v31 = vsub.f32 %v11955_v18, %v16595_v61  ;;  %v17278_v61 = vand.u32 4294901760, %v11961_v10  ;;  %v17279_v18 = vand.u32 4294901760, %v11969_v43  ;;  %v12032_v9 = vsub.f32 %v11971_v48, %v17281_v38 }
 0x10d   :  { %9293 = vmatpush3.bf16.msra.mxu0 %v9292_v12  ;;  %9335 = vmatprep.subr.bf16.mxu1 %v11888_v0  ;;  %v9300_v12 = vpack.c.bf16 %v11723_v2, %v11718_v14  ;;  %v17276_v0 = vand.u32 4294901760, %v11951_v49 }
 0x10e   :  { %9295 = vmatprep.subr.bf16.mxu0 %v9294_v50  ;;  %v12005_v57 = vsub.f32 %v11961_v10, %v17278_v61  ;;  %v12020_v61 = vld [vmem:[#allocation2 + $0x298] sm:$0xff]  ;;  %17282 = vst [vmem:[#allocation29_spill] sm:$0xff] %v12032_v9  ;;  %v17287_v10 = vld [vmem:[#allocation20_spill] sm:$0xff] }
 0x10f   :  { %v11981_v50 = vsub.f32 %v11951_v49, %v17276_v0  ;;  %v11993_v0 = vld [vmem:[#allocation2 + $0x280] sm:$0xff]  ;;  %v17277_v49 = vand.u32 4294901760, %v11959_v21 }
 0x110   :  { %9337 = vmatpush3.bf16.msra.mxu1 %v11896_v53  ;;  %v9302_v53 = vpack.c.bf16 %v11747_v8, %v11742_v41  ;;  %v12038_v8 = vld [vmem:[#allocation2 + $0x210] sm:$0xff] }
 0x111   :  { %9297 = vmatpush3.bf16.msra.mxu0 %v9296_v22  ;;  %9339 = vmatprep.subr.bf16.mxu1 %v11903_v58  ;;  %v11995_v22 = vld [vmem:[#allocation2 + $0x288] sm:$0xff]  ;;  %v12000_v58 = vsub.f32 %v11959_v21, %v17277_v49  ;;  %v12018_v21 = vld [vmem:[#allocation2 + $0x290] sm:$0xff]  ;;  %v17284_v48 = vand.u32 4294901760, %v11981_v50 }
 0x112   :  { %9299 = vmatprep.subr.bf16.mxu0 %v9298_v29  ;;  %v10573_v29 = vld [vmem:[%s16457_s0] sm:$0xff]  ;;  %v12016_v49 = vld [vmem:[#allocation2 + $0x208] sm:$0xff] }
 0x113   :  { %3647 = vperm.xlu1 %10570, %v10573_v29   ;;  %v17283_v29 = vand.u32 4294901760, %v11882_v42 }
 0x114   :  { %9341 = vmatpush3.bf16.msra.mxu1 %v11919_v28  ;;  %v12027_v28 = vsub.f32 %v11969_v43, %v17279_v18  ;;  %v12043_v43 = vld [vmem:[#allocation2 + $0x218] sm:$0xff]  ;;  %v17293_v18 = vand.u32 4294901760, %v11993_v0 }
 0x115   :  { %9301 = vmatpush3.bf16.msra.mxu0 %v9300_v12  ;;  %9375 = vmatprep.subr.bf16.mxu1 %v11618_v34  ;;  %v9306_v34 = vpack.c.bf16 %v11342_v17, %v11337_v45  ;;  %v17285_v45 = vand.u32 4294901760, %v11987_v31  ;;  %v12080_v12 = vld [vmem:[#allocation2 + $0x2a8] sm:$0xff] }
 0x116   :  { %17280 = vst [vmem:[#allocation28_spill] sm:$0xff] %v12027_v28  ;;  %9303 = vmatprep.subr.bf16.mxu0 %v9302_v53  ;;  %v17291_v53 = vand.u32 4294901760, %v17251_v5  ;;  %v12085_v38 = vsub.f32 %v11993_v0, %v17293_v18  ;;  %v17302_v18 = vand.u32 4294901760, %v12016_v49 }
 0x117   :  { %1562 = vmatmul.mubr.f32.vlgmr.msra.gmra.mrb[8].mxu1 %v17283_v29  ;;  %v12051_v17 = vpack.c.bf16 %v17285_v45, %v17284_v48  ;;  %v9308_v29 = vpack.c.bf16 %v11366_v24, %v11361_v33  ;;  %v17289_v33 = vand.u32 4294901760, %v12005_v57  ;;  %v17295_v45 = vand.u32 4294901760, %v11995_v22 }
 0x118   :  { %9377 = vmatpush3.bf16.msra.mxu1 %v11624_v7  ;;  %7292 = vmatprep.mubr.msk.f32.mxu1 %vm37_vm2, %v17121_v15  ;;  %v12065_v7 = vld [vmem:[#allocation2 + $0x2a0] sm:$0xff]  ;;  %17294 = vst [vmem:[#allocation33_spill] sm:$0xff] %v12085_v38 }
 0x119   :  { %17286 = vst [vmem:[#allocation30_spill] sm:$0xff] %v12051_v17  ;;  %9305 = vmatpush3.bf16.msra.mxu0 %v9304_v59  ;;  %9379 = vmatprep.subr.bf16.mxu1 %v11776_v20  ;;  %v17288_v17 = vand.u32 4294901760, %v12000_v58  ;;  %v17292_v59 = vand.u32 4294901760, %v17252_v36  ;;  %v17299_v36 = vand.u32 4294901760, %v12027_v28  ;;  %v17403_v6 = vand.u32 4294901760, %v12065_v7 }
 0x11a   :  { %9307 = vmatprep.subr.bf16.mxu0 %v9306_v34  ;;  %v17297_v34 = vand.u32 4294901760, %v12013_v44 }
 0x11b   :  { %v12073_v24 = vpack.c.bf16 %v17289_v33, %v17288_v17  ;;  %v9342_v20 = vpack.c.bf16 %v17292_v59, %v17291_v53  ;;  %v12090_v17 = vsub.f32 %v11995_v22, %v17295_v45  ;;  %v17300_v53 = vand.u32 4294901760, %v12032_v9 }
 0x11c   :  { %v12095_v5 = vsub.f32 %v12013_v44, %v17297_v34  ;;  %9381 = vmatpush3.bf16.msra.mxu1 %v11782_v56  ;;  %v12107_v59 = vsub.f32 %v12016_v49, %v17302_v18  ;;  %v17304_v45 = vand.u32 4294901760, %v12018_v21  ;;  %v17306_v34 = vand.u32 4294901760, %v12020_v61 }
 0x11d   :  { %17290 = vst [vmem:[#allocation31_spill] sm:$0xff] %v12073_v24  ;;  %17296 = vst [vmem:[#allocation34_spill] sm:$0xff] %v12090_v17  ;;  %v12101_v33 = vpack.c.bf16 %v17300_v53, %v17299_v36  ;;  %9309 = vmatpush3.bf16.msra.mxu0 %v9308_v29  ;;  %9383 = vmatprep.subr.bf16.mxu1 %v11806_v3  ;;  %v17308_v56 = vand.u32 4294901760, %v17253_v13  ;;  %v17309_v53 = vand.u32 4294901760, %v17254_v4  ;;  %v16607_v9 = vand.u32 4294901760, %v12080_v12 }
 0x11e   :  { %17298 = vst [vmem:[#allocation35_spill] sm:$0xff] %v12095_v5  ;;  %17303 = vst [vmem:[#allocation37_spill] sm:$0xff] %v12107_v59  ;;  %v12112_v48 = vsub.f32 %v12018_v21, %v17304_v45  ;;  %v12117_v24 = vsub.f32 %v12020_v61, %v17306_v34  ;;  %9343 = vmatprep.subr.bf16.mxu0 %v9342_v20  ;;  %v17312_v34 = vand.u32 4294901760, %v17255_v11  ;;  %v17313_v36 = vand.u32 4294901760, %v17256_v1 }
 0x11f   :  { %17301 = vst [vmem:[#allocation36_spill] sm:$0xff] %v12101_v33  ;;  %v9344_v18 = vpack.c.bf16 %v17309_v53, %v17308_v56  ;;  %v17310_v33 = vand.u32 4294901760, %v12038_v8  ;;  %v17314_v3 = vand.u32 4294901760, %v17257_v47  ;;  %v17315_v13 = vand.u32 4294901760, %v17258_v26 }
 0x120   :  { %17305 = vst [vmem:[#allocation38_spill] sm:$0xff] %v12112_v48  ;;  %17307 = vst [vmem:[#allocation39_spill] sm:$0xff] %v12117_v24  ;;  %v9346_v29 = vpack.c.bf16 %v17313_v36, %v17312_v34  ;;  %v17316_v4 = vand.u32 4294901760, %v12043_v43  ;;  %v17318_v53 = vand.u32 4294901760, %v17259_v55  ;;  %v17319_v20 = vand.u32 4294901760, %v17260_v37  ;;  %1454 = vmatmul.mubr.f32.vlgmr.msra.gmra.mrb[8].mxu0 %v11882_v42  ;;  %9385 = vmatpush3.bf16.msra.mxu1 %v11812_v19 }
 0x121   :  { %v12128_v45 = vsub.f32 %v12038_v8, %v17310_v33  ;;  %v9348_v28 = vpack.c.bf16 %v17315_v13, %v17314_v3  ;;  %v12144_v33 = vld [vmem:[#allocation2 + $0x220] sm:$0xff]  ;;  %v16612_v1 = vand.u32 4294901760, %v12085_v38  ;;  %v16611_v36 = vand.u32 4294901760, %v12090_v17  ;;  %9345 = vmatpush3.bf16.msra.mxu0 %v9344_v18  ;;  %7290 = vmatprep.mubr.msk.f32.mxu0 %vm37_vm2, %v17121_v15 }
 0x122   :  { %v12142_v56 = vsub.f32 %v12043_v43, %v17316_v4  ;;  %v9350_v11 = vpack.c.bf16 %v17319_v20, %v17318_v53  ;;  %v16610_v47 = vand.u32 4294901760, %v12095_v5  ;;  %v16609_v26 = vand.u32 4294901760, %v12107_v59  ;;  %9387 = vmatprep.subr.bf16.mxu1 %v11832_v39  ;;  %9347 = vmatprep.subr.bf16.mxu0 %v9346_v29  ;;  %v12194_v39 = vld [vmem:[#allocation2 + $0x228] sm:$0xff] }
 0x123   :  { %17311 = vst [vmem:[#allocation40_spill] sm:$0xff] %v12128_v45  ;;  %v16608_v34 = vand.u32 4294901760, %v12112_v48  ;;  %v17320_v55 = vand.u32 4294901760, %v12065_v7  ;;  %v17322_v42 = vand.u32 4294901760, %v17261_v51  ;;  %v17323_v19 = vand.u32 4294901760, %v17262_v63 }
 0x124   :  { %17317 = vst [vmem:[#allocation41_spill] sm:$0xff] %v12142_v56  ;;  %v12175_v53 = vsub.f32 %v12080_v12, %v16607_v9  ;;  %v17325_v18 = vand.u32 4294901760, %v17263_v23  ;;  %v17327_v63 = vand.u32 4294901760, %v17265_v27  ;;  %v17329_v4 = vand.u32 4294901760, %v17268_v30  ;;  %9389 = vmatpush3.bf16.msra.mxu1 %v11845_v62 }
 0x125   :  { %v12161_v37 = vsub.f32 %v12065_v7, %v17320_v55  ;;  %v9352_v13 = vpack.c.bf16 %v17323_v19, %v17322_v42  ;;  %v17326_v55 = vand.u32 4294901760, %v17264_v16  ;;  %v17328_v42 = vand.u32 4294901760, %v17266_v52  ;;  %9349 = vmatpush3.bf16.msra.mxu0 %v9348_v28  ;;  %9391 = vmatprep.subr.bf16.mxu1 %v11852_v54 }
 0x126   :  { %17324 = vst [vmem:[#allocation43_spill] sm:$0xff] %v12175_v53  ;;  %v17330_v9 = vand.u32 4294901760, %v17269_v25  ;;  %v16613_v20 = vand.u32 4294901760, %v12142_v56  ;;  %v17331_v23 = vand.u32 4294901760, %v11673_v32  ;;  %v17332_v16 = vand.u32 4294901760, %v11678_v60  ;;  %v12211_v25 = vld [vmem:[#allocation2 + $0x2b0] sm:$0xff]  ;;  %9351 = vmatprep.subr.bf16.mxu0 %v9350_v11 }
 0x127   :  { %17321 = vst [vmem:[#allocation42_spill] sm:$0xff] %v12161_v37  ;;  %v9354_v51 = vpack.c.bf16 %v17326_v55, %v17325_v18  ;;  %v9356_v19 = vpack.c.bf16 %v17328_v42, %v17327_v63  ;;  %v2109_v27 = vsub.f32 %v12085_v38, %v16612_v1  ;;  %v2116_v52 = vsub.f32 %v12090_v17, %v16611_v36 }
 0x128   :  { %v12191_v3 = vpack.c.bf16 %v17330_v9, %v17329_v4  ;;  %v12200_v29 = vpack.c.bf16 %v17332_v16, %v17331_v23  ;;  %v1997_v30 = vsub.f32 %v12095_v5, %v16610_v47  ;;  %v12213_v9 = vld [vmem:[#allocation2 + $0x2b8] sm:$0xff]  ;;  %v2004_v60 = vsub.f32 %v12107_v59, %v16609_v26  ;;  %9393 = vmatpush3.bf16.msra.mxu1 %v11861_v35  ;;  %v17349_v35 = vld [vmem:[#allocation15_spill] sm:$0xff] }
 0x129   :  { %v2123_v32 = vsub.f32 %v12112_v48, %v16608_v34  ;;  %v17333_v4 = vand.u32 4294901760, %v12117_v24  ;;  %v16615_v55 = vand.u32 4294901760, %v12161_v37  ;;  %v17334_v63 = vand.u32 4294901760, %v12128_v45  ;;  %9353 = vmatpush3.bf16.msra.mxu0 %v9352_v13 }
 0x12a   :  { %v16614_v42 = vand.u32 4294901760, %v12175_v53  ;;  %v17335_v16 = vand.u32 4294901760, %v12144_v33  ;;  %v17338_v28 = vand.u32 4294901760, %v11688_v40  ;;  %v2018_v54 = vsub.f32 %v12142_v56, %v16613_v20  ;;  %v12254_v40 = vld [vmem:[#allocation2 + $0x230] sm:$0xff]  ;;  %9355 = vmatprep.subr.bf16.mxu0 %v9354_v51 }
 0x12b   :  { %v2130_v18 = vsub.f32 %v12117_v24, %v17333_v4  ;;  %v2011_v62 = vsub.f32 %v12128_v45, %v17334_v63  ;;  %v17337_v4 = vand.u32 4294901760, %v17273_v46  ;;  %v17339_v36 = vand.u32 4294901760, %v11718_v14  ;;  %v12260_v63 = vld [vmem:[#allocation2 + $0x238] sm:$0xff]  ;;  %v12262_v14 = vld [vmem:[#allocation2 + $0x2c0] sm:$0xff] }
 0x12c   :  { %v12235_v34 = vsub.f32 %v12144_v33, %v17335_v16  ;;  %v17340_v16 = vand.u32 4294901760, %v11723_v2  ;;  %v2110_v11 = vand.u32 4294901760, %v2109_v27  ;;  %v2117_v46 = vand.u32 4294901760, %v2116_v52  ;;  %v17341_v2 = vld [vmem:[#allocation16_spill] sm:$0xff] }
 0x12d   :  { %v12241_v26 = vpack.c.bf16 %v17338_v28, %v17337_v4  ;;  %v1998_v23 = vand.u32 4294901760, %v1997_v30  ;;  %v2005_v4 = vand.u32 4294901760, %v2004_v60  ;;  %v2124_v28 = vand.u32 4294901760, %v2123_v32  ;;  %9395 = vmatprep.subr.bf16.mxu1 %v17341_v2  ;;  %v12274_v60 = vpop.permute.xlu0 %1840  ;;  %v12300_v2 = vld [vmem:[#allocation2 + $0x240] sm:$0xff]  ;;  %9357 = vmatpush3.bf16.msra.mxu0 %v9356_v19 }
 0x12e   :  { %17336 = vst [vmem:[#allocation13_spill] sm:$0xff] %v12235_v34  ;;  %v12252_v1 = vpack.c.bf16 %v17340_v16, %v17339_v36  ;;  %v2131_v20 = vand.u32 4294901760, %v2130_v18  ;;  %v2137_v47 = vsub.f32 %v12161_v37, %v16615_v55  ;;  %v2012_v36 = vand.u32 4294901760, %v2011_v62  ;;  %v17351_v37 = vld [vmem:[#allocation17_spill] sm:$0xff]  ;;  %9359 = vmatprep.subr.bf16.mxu0 %v12191_v3 }
 0x12f   :  { %v2144_v27 = vsub.f32 %v12175_v53, %v16614_v42  ;;  %v17342_v52 = vand.u32 4294901760, %v12194_v39  ;;  %v2019_v32 = vand.u32 4294901760, %v2018_v54  ;;  %v17344_v13 = vand.u32 4294901760, %v12211_v25  ;;  %v12287_v42 = vld [vmem:[#allocation2 + $0x2c8] sm:$0xff]  ;;  %9397 = vmatpush3.bf16.msra.mxu1 %v17351_v37 }
 0x130   :  { %v17346_v62 = vand.u32 4294901760, %v12213_v9  ;;  %v17348_v55 = vand.u32 4294901760, %v11742_v41  ;;  %v17350_v51 = vand.u32 4294901760, %v17349_v35  ;;  %v16624_v53 = vand.u32 4294901760, %v12260_v63  ;;  %v17352_v41 = vld [vmem:[#allocation18_spill] sm:$0xff] }
 0x131   :  { %v12272_v30 = vsub.f32 %v12194_v39, %v17342_v52  ;;  %v12279_v18 = vsub.f32 %v12211_v25, %v17344_v13  ;;  %v9438_v52 = vpack.c.bf16 %v2117_v46, %v2110_v11  ;;  %v16625_v13 = vand.u32 4294901760, %v12262_v14  ;;  %9399 = vmatprep.subr.bf16.mxu1 %v17352_v41  ;;  %9361 = vmatpush3.bf16.msra.mxu0 %v12200_v29 }
 0x132   :  { %v12284_v16 = vsub.f32 %v12213_v9, %v17346_v62  ;;  %v9366_v54 = vpack.c.bf16 %v17350_v51, %v17348_v55  ;;  %v12296_v56 = vpack.c.bf16 %v2005_v4, %v1998_v23  ;;  %v12298_v62 = vpack.c.bf16 %v2131_v20, %v2124_v28  ;;  %v12312_v23 = vld [vmem:[#allocation2 + $0x248] sm:$0xff]  ;;  %v12316_v4 = vld [vmem:[#allocation2 + $0x2d8] sm:$0xff]  ;;  %9363 = vmatprep.subr.bf16.mxu0 %v12241_v26 }
 0x133   :  { %17343 = vst [vmem:[#allocation44_spill] sm:$0xff] %v12272_v30  ;;  %17345 = vst [vmem:[#allocation16_spill] sm:$0xff] %v12279_v18  ;;  %v2138_v45 = vand.u32 4294901760, %v2137_v47  ;;  %vm1843_vm4 = vcmp.eq.s32.totalorder %v12274_v60, %v17287_v10  ;;  %v2145_v55 = vand.u32 4294901760, %v2144_v27  ;;  %v17353_v11 = vand.u32 4294901760, %v12235_v34  ;;  %v12314_v47 = vld [vmem:[#allocation2 + $0x2d0] sm:$0xff] }
 0x134   :  { %17347 = vst [vmem:[#allocation45_spill] sm:$0xff] %v12284_v16  ;;  %v12319_v19 = vpack.c.bf16 %v2019_v32, %v2012_v36  ;;  %v17354_v35 = vand.u32 4294901760, %v12254_v40  ;;  %v17356_v41 = vand.u32 4294901760, %v11993_v0  ;;  %v12337_v3 = vsub.f32 %v12260_v63, %v16624_v53  ;;  %v17361_v0 = vld [vmem:[#allocation14_spill] sm:$0xff]  ;;  %v12353_v27 = vld [vmem:[#allocation2 + $0x250] sm:$0xff] }
 0x135   :  { %v12308_v46 = vsub.f32 %v12235_v34, %v17353_v11  ;;  %v17357_v11 = vand.u32 4294901760, %v11995_v22  ;;  %v12342_v36 = vsub.f32 %v12262_v14, %v16625_v13  ;;  %v17360_v32 = vmov 0.0   ;;  %9401 = vmatpush3.bf16.msra.mxu1 %v17361_v0  ;;  %v12355_v28 = vld [vmem:[#allocation2 + $0x258] sm:$0xff]  ;;  %v17362_v13 = vld [vmem:[#allocation8_spill] sm:$0xff]  ;;  %9365 = vmatpush3.bf16.msra.mxu0 %v12252_v1  ;;  %v17375_v1 = vld [vmem:[#allocation19_spill] sm:$0xff] }
 0x136   :  { %v12326_v51 = vsub.f32 %v12254_v40, %v17354_v35  ;;  %17358 = vst [vmem:[#allocation17_spill] sm:$0xff] %v12337_v3  ;;  %v7295_v35 = vsel %vm1843_vm4, 1.0, %v17360_v32  ;;  %9403 = vmatprep.subr.bf16.mxu1 %v17362_v13  ;;  %v9446_v37 = vpack.c.bf16 %v2145_v55, %v2138_v45  ;;  %v17363_v0 = vand.u32 4294901760, %v12272_v30  ;;  %9367 = vmatprep.subr.bf16.mxu0 %v9366_v54  ;;  %v17387_v10 = vld [vmem:[#allocation26_spill] sm:$0xff] }
 0x137   :  { %v12332_v20 = vpack.c.bf16 %v17357_v11, %v17356_v41  ;;  %17359 = vst [vmem:[#allocation18_spill] sm:$0xff] %v12342_v36  ;;  %v2026_v34 = vand.u32 4294901760, %v12308_v46  ;;  %v17364_v41 = vand.u32 4294901760, %v12287_v42  ;;  %v17366_v53 = vand.u32 4294901760, %v12279_v18  ;;  %v12376_v46 = vld [vmem:[#allocation2 + $0x2e0] sm:$0xff] }
 0x138   :  { %17355 = vst [vmem:[#allocation15_spill] sm:$0xff] %v12326_v51  ;;  %v2032_v22 = vsub.f32 %v12272_v30, %v17363_v0  ;;  %v17367_v13 = vand.u32 4294901760, %v12284_v16  ;;  %17368 = vst [vmem:[#allocation8_spill] sm:$0xff] %v12376_v46  ;;  %v12378_v0 = vld [vmem:[#allocation2 + $0x2e8] sm:$0xff]  ;;  %v12380_v30 = vsub.f32 %v7295_v35, %v7295_v35  ;;  %v17373_v24 = vand.u32 4294901760, %v12316_v4 }
 0x139   :  { %v12366_v11 = vsub.f32 %v12287_v42, %v17364_v41  ;;  %v2151_v29 = vsub.f32 %v12279_v18, %v17366_v53  ;;  %v17369_v18 = vld [vmem:[#allocation9_spill] sm:$0xff]  ;;  %v17372_v41 = vand.u32 4294901760, %v12314_v47  ;;  %v17383_v48 = vand.u32 4294901760, %v12376_v46 }
 0x13a   :  { %v2158_v45 = vsub.f32 %v12284_v16, %v17367_v13  ;;  %9405 = vmatpush3.bf16.msra.mxu1 %v17369_v18  ;;  %v17370_v13 = vand.u32 4294901760, %v12300_v2  ;;  %v17371_v16 = vand.u32 4294901760, %v12312_v23  ;;  %v12405_v53 = vsub.f32 %v12316_v4, %v17373_v24 }
 0x13b   :  { %17365 = vst [vmem:[#allocation14_spill] sm:$0xff] %v12366_v11  ;;  %v12400_v26 = vsub.f32 %v12314_v47, %v17372_v41  ;;  %9439 = vmatprep.subr.bf16.mxu1 %v9438_v52  ;;  %v2033_v18 = vand.u32 4294901760, %v2032_v22  ;;  %v2152_v59 = vand.u32 4294901760, %v2151_v29  ;;  %v17374_v41 = vand.u32 4294901760, %v12326_v51 }
 0x13c   :  { %v12390_v55 = vsub.f32 %v12300_v2, %v17370_v13  ;;  %v12395_v35 = vsub.f32 %v12312_v23, %v17371_v16  ;;  %v2159_v5 = vand.u32 4294901760, %v2158_v45  ;;  %v17376_v52 = vand.u32 4294901760, %v12337_v3 }
 0x13d   :  { %v2039_v17 = vsub.f32 %v12326_v51, %v17374_v41  ;;  %7293 = vmatmul.mubr.msk.f32.vlgmr.msra.gmra.mrb[10].mxu1 %vm36_vm3, %v17121_v15  ;;  %v17377_v16 = vand.u32 4294901760, %v12342_v36  ;;  %v17378_v29 = vand.u32 4294901760, %v12353_v27  ;;  %v17379_v41 = vand.u32 4294901760, %v12355_v28 }
 0x13e   :  { %v2046_v22 = vsub.f32 %v12337_v3, %v17376_v52  ;;  %9441 = vmatpush3.bf16.msra.mxu1 %v12296_v56  ;;  %7296 = vmatprep.mubr.msk.f32.mxu1 %vm1843_vm4, %v17121_v15  ;;  %v12452_v52 = vsub.f32 %v12376_v46, %v17383_v48  ;;  %v9450_v51 = vpack.c.bf16 %v2159_v5, %v2152_v59  ;;  %v17394_v5 = vand.u32 4294901760, %v12405_v53 }
 0x13f   :  { %v2165_v54 = vsub.f32 %v12342_v36, %v17377_v16  ;;  %v12428_v45 = vsub.f32 %v12353_v27, %v17378_v29  ;;  %v12433_v24 = vsub.f32 %v12355_v28, %v17379_v41  ;;  %v17381_v29 = vld [vmem:[#allocation24_spill] sm:$0xff]  ;;  %9443 = vmatprep.subr.bf16.mxu1 %v12298_v62  ;;  %v17382_v41 = vand.u32 4294901760, %v12366_v11 }
 0x140   :  { %9369 = vmatpush3.bf16.msra.mxu0 %v17381_v29  ;;  %17384 = vst [vmem:[#allocation24_spill] sm:$0xff] %v12452_v52  ;;  %v17385_v16 = vand.u32 4294901760, %v12378_v0  ;;  %v9448_v36 = vpack.c.bf16 %v2033_v18, %v2026_v34  ;;  %v17388_v29 = vand.u32 4294901760, %v12013_v44  ;;  %v17389_v62 = vand.u32 4294901760, %v12016_v49  ;;  %v17395_v18 = vld [vmem:[#allocation32_spill] sm:$0xff] }
 0x141   :  { %17380 = vst [vmem:[#allocation9_spill] sm:$0xff] %v12433_v24  ;;  %v2172_v56 = vsub.f32 %v12366_v11, %v17382_v41  ;;  %9371 = vmatprep.subr.bf16.mxu0 %v17387_v10  ;;  %v2040_v41 = vand.u32 4294901760, %v2039_v17  ;;  %v17390_v11 = vand.u32 4294901760, %v12380_v30  ;;  %v2047_v38 = vand.u32 4294901760, %v2046_v22 }
 0x142   :  { %v12457_v13 = vsub.f32 %v12378_v0, %v17385_v16  ;;  %v12464_v3 = vpack.c.bf16 %v17389_v62, %v17388_v29  ;;  %9445 = vmatpush3.bf16.msra.mxu1 %v12319_v19  ;;  %v17391_v10 = vand.u32 4294901760, %v12390_v55  ;;  %v17392_v49 = vand.u32 4294901760, %v12395_v35 }
 0x143   :  { %v1980_v48 = vsub.f32 %v12380_v30, %v17390_v11  ;;  %v17393_v34 = vand.u32 4294901760, %v12400_v26  ;;  %v2186_v59 = vsub.f32 %v12405_v53, %v17394_v5  ;;  %9447 = vmatprep.subr.bf16.mxu1 %v9446_v37  ;;  %v2166_v19 = vand.u32 4294901760, %v2165_v54 }
 0x144   :  { %17386 = vst [vmem:[#allocation46_spill] sm:$0xff] %v12457_v13  ;;  %v2053_v44 = vsub.f32 %v12390_v55, %v17391_v10  ;;  %v2060_v17 = vsub.f32 %v12395_v35, %v17392_v49  ;;  %9373 = vmatpush3.bf16.msra.mxu0 %v17395_v18  ;;  %v2173_v22 = vand.u32 4294901760, %v2172_v56  ;;  %v16656_v29 = vand.u32 4294901760, %v12452_v52 }
 0x145   :  { %v2179_v11 = vsub.f32 %v12400_v26, %v17393_v34  ;;  %9407 = vmatprep.subr.bf16.mxu0 %v12332_v20  ;;  %v17396_v10 = vand.u32 4294901760, %v12018_v21  ;;  %v17397_v49 = vand.u32 4294901760, %v12020_v61  ;;  %v1981_v16 = vand.u32 4294901760, %v1980_v48 }
 0x146   :  { %v9452_v46 = vpack.c.bf16 %v2047_v38, %v2040_v41  ;;  %v17398_v5 = vand.u32 4294901760, %v12038_v8  ;;  %v17399_v37 = vand.u32 4294901760, %v12043_v43  ;;  %v17400_v56 = vand.u32 4294901760, %v12428_v45  ;;  %9449 = vmatpush3.bf16.msra.mxu1 %v9448_v36 }
 0x147   :  { %v12492_v34 = vpack.c.bf16 %v17397_v49, %v17396_v10  ;;  %v17401_v62 = vand.u32 4294901760, %v12433_v24  ;;  %7291 = vmatmul.mubr.msk.f32.vlgmr.msra.gmra.mrb[10].mxu0 %vm36_vm3, %v17121_v15  ;;  %v2054_v61 = vand.u32 4294901760, %v2053_v44  ;;  %v2061_v8 = vand.u32 4294901760, %v2060_v17  ;;  %9451 = vmatprep.subr.bf16.mxu1 %v9450_v51 }
 0x148   :  { %v12498_v54 = vpack.c.bf16 %v17399_v37, %v17398_v5  ;;  %v2067_v18 = vsub.f32 %v12428_v45, %v17400_v56  ;;  %v2180_v38 = vand.u32 4294901760, %v2179_v11  ;;  %v2187_v43 = vand.u32 4294901760, %v2186_v59  ;;  %9409 = vmatpush3.bf16.msra.mxu0 %v12464_v3  ;;  %1982 = vmatprep.mubr.f32.mxu0 %v1981_v16 }
 0x149   :  { %v2074_v21 = vsub.f32 %v12433_v24, %v17401_v62  ;;  %v9454_v41 = vpack.c.bf16 %v2173_v22, %v2166_v19  ;;  %v2193_v48 = vsub.f32 %v12452_v52, %v16656_v29  ;;  %v17402_v62 = vand.u32 4294901760, %v12457_v13  ;;  %9411 = vmatprep.subr.bf16.mxu0 %v12492_v34  ;;  %v12675_v29 = vld [vmem:[#allocation2 + $0x3f0] sm:$0xff] }
 0x14a   :  { %v17404_v36 = vand.u32 4294901760, %v12080_v12  ;;  %v17405_v51 = vand.u32 4294901760, %v12144_v33  ;;  %v17406_v17 = vand.u32 4294901760, %v12194_v39  ;;  %v2068_v59 = vand.u32 4294901760, %v2067_v18  ;;  %9453 = vmatpush3.bf16.msra.mxu1 %v9452_v46 }
 0x14b   :  { %v2200_v10 = vsub.f32 %v12457_v13, %v17402_v62  ;;  %v2075_v19 = vand.u32 4294901760, %v2074_v21  ;;  %v9456_v22 = vpack.c.bf16 %v2061_v8, %v2054_v61  ;;  %v9458_v49 = vpack.c.bf16 %v2187_v43, %v2180_v38  ;;  %9455 = vmatprep.subr.bf16.mxu1 %v9454_v41 }
 0x14c   :  { %v12522_v44 = vpack.c.bf16 %v17404_v36, %v17403_v6  ;;  %v12528_v11 = vpack.c.bf16 %v17406_v17, %v17405_v51  ;;  %v17407_v5 = vand.u32 4294901760, %v11981_v50  ;;  %v17408_v12 = vand.u32 4294901760, %v11987_v31  ;;  %9413 = vmatpush3.bf16.msra.mxu0 %v12498_v54  ;;  %v17415_v6 = vld [vmem:[#allocation29_spill] sm:$0xff] }
 0x14d   :  { %v2194_v33 = vand.u32 4294901760, %v2193_v48  ;;  %v2201_v39 = vand.u32 4294901760, %v2200_v10  ;;  %v17409_v16 = vand.u32 4294901760, %v12000_v58  ;;  %v17410_v46 = vand.u32 4294901760, %v12005_v57  ;;  %v17413_v48 = vld [vmem:[#allocation28_spill] sm:$0xff] }
 0x14e   :  { %v2081_v7 = vsub.f32 %v11981_v50, %v17407_v5  ;;  %v2088_v37 = vsub.f32 %v11987_v31, %v17408_v12  ;;  %9415 = vmatprep.subr.bf16.mxu0 %v12522_v44  ;;  %v17411_v21 = vand.u32 4294901760, %v12211_v25  ;;  %v17412_v61 = vand.u32 4294901760, %v12213_v9  ;;  %9457 = vmatpush3.bf16.msra.mxu1 %v9456_v22 }
 0x14f   :  { %v2207_v56 = vsub.f32 %v12000_v58, %v17409_v16  ;;  %v2214_v18 = vsub.f32 %v12005_v57, %v17410_v46  ;;  %v9460_v38 = vpack.c.bf16 %v2075_v19, %v2068_v59  ;;  %v17414_v62 = vand.u32 4294901760, %v17413_v48  ;;  %9459 = vmatprep.subr.bf16.mxu1 %v9458_v49 }
 0x150   :  { %v12548_v8 = vpack.c.bf16 %v17412_v61, %v17411_v21  ;;  %v2082_v43 = vand.u32 4294901760, %v2081_v7  ;;  %v2089_v41 = vand.u32 4294901760, %v2088_v37  ;;  %v17416_v36 = vand.u32 4294901760, %v17415_v6  ;;  %9417 = vmatpush3.bf16.msra.mxu0 %v12528_v11 }
 0x151   :  { %v2095_v10 = vsub.f32 %v17413_v48, %v17414_v62  ;;  %v17417_v25 = vand.u32 4294901760, %v12254_v40  ;;  %v17418_v9 = vand.u32 4294901760, %v12260_v63  ;;  %v9462_v59 = vpack.c.bf16 %v2201_v39, %v2194_v33 }
 0x152   :  { %v2102_v51 = vsub.f32 %v17415_v6, %v17416_v36  ;;  %v2208_v19 = vand.u32 4294901760, %v2207_v56  ;;  %v2215_v22 = vand.u32 4294901760, %v2214_v18  ;;  %9419 = vmatprep.subr.bf16.mxu0 %v12548_v8  ;;  %v17419_v5 = vand.u32 4294901760, %v12262_v14  ;;  %9461 = vmatpush3.bf16.msra.mxu1 %v9460_v38  ;;  %v17439_v36 = vld [vmem:[#allocation12_spill] sm:$0xff] }
 0x153   :  { %v12561_v17 = vpack.c.bf16 %v17418_v9, %v17417_v25  ;;  %v17420_v7 = vand.u32 4294901760, %v12287_v42  ;;  %v9464_v37 = vpack.c.bf16 %v2089_v41, %v2082_v43  ;;  %vm1842_vm5 = vcmp.eq.s32.totalorder %v12274_v60, %v17375_v1  ;;  %9463 = vmatprep.subr.bf16.mxu1 %v9462_v59  ;;  %v17441_v25 = vld [vmem:[#allocation23_spill] sm:$0xff] }
 0x154   :  { %v2096_v40 = vand.u32 4294901760, %v2095_v10  ;;  %v2103_v63 = vand.u32 4294901760, %v2102_v51  ;;  %v17421_v49 = vand.u32 4294901760, %v12300_v2  ;;  %v17422_v33 = vand.u32 4294901760, %v12312_v23 }
 0x155   :  { %v12568_v12 = vpack.c.bf16 %v17420_v7, %v17419_v5  ;;  %9421 = vmatpush3.bf16.msra.mxu0 %v12561_v17  ;;  %v9466_v14 = vpack.c.bf16 %v2215_v22, %v2208_v19  ;;  %v17424_v42 = vand.u32 4294901760, %v12314_v47  ;;  %v17425_v16 = vand.u32 4294901760, %v12316_v4  ;;  %v17430_v4 = vld [vmem:[#allocation8_spill] sm:$0xff]  ;;  %v17445_v22 = vld [vmem:[#allocation25_spill] sm:$0xff]  ;;  %v17447_v7 = vld [vmem:[#allocation27_spill] sm:$0xff] }
 0x156   :  { %v12577_v39 = vpack.c.bf16 %v17422_v33, %v17421_v49  ;;  %v7294_v46 = vsel %vm1842_vm5, 1.0, %v17360_v32  ;;  %9465 = vmatpush3.bf16.msra.mxu1 %v9464_v37  ;;  %v9468_v2 = vpack.c.bf16 %v2103_v63, %v2096_v40  ;;  %v17427_v23 = vand.u32 4294901760, %v12353_v27  ;;  %v17434_v27 = vld [vmem:[#allocation10_spill] sm:$0xff]  ;;  %v17450_v49 = vld [vmem:[#allocation33_spill] sm:$0xff]  ;;  %17470 = vst [vmem:[#allocation25_spill] sm:$0xff] %v12675_v29 }
 0x157   :  { %9423 = vmatprep.subr.bf16.mxu0 %v12568_v12  ;;  %v12584_v56 = vpack.c.bf16 %v17425_v16, %v17424_v42  ;;  %9467 = vmatprep.subr.bf16.mxu1 %v9466_v14  ;;  %v17428_v18 = vand.u32 4294901760, %v12355_v28  ;;  %v12597_v47 = vsub.f32 %v7294_v46, %v7294_v46  ;;  %v17431_v61 = vand.u32 4294901760, %v17430_v4  ;;  %v17436_v28 = vld [vmem:[#allocation11_spill] sm:$0xff]  ;;  %v17451_v33 = vld [vmem:[#allocation34_spill] sm:$0xff]  ;;  %v17453_v16 = vld [vmem:[#allocation37_spill] sm:$0xff] }
 0x158   :  { %17423 = vst [vmem:[#allocation26_spill] sm:$0xff] %v12577_v39  ;;  %v17432_v38 = vand.u32 4294901760, %v12378_v0  ;;  %v17435_v41 = vand.u32 4294901760, %v17434_v27  ;;  %v17437_v62 = vand.u32 4294901760, %v17436_v28  ;;  %v17440_v51 = vand.u32 4294901760, %v17439_v36  ;;  %v17452_v42 = vld [vmem:[#allocation35_spill] sm:$0xff] }
 0x159   :  { %17426 = vst [vmem:[#allocation32_spill] sm:$0xff] %v12584_v56  ;;  %9425 = vmatpush3.bf16.msra.mxu0 %v12577_v39  ;;  %v12595_v21 = vpack.c.bf16 %v17428_v18, %v17427_v23  ;;  %v17442_v9 = vand.u32 4294901760, %v17441_v25  ;;  %v16657_v59 = vand.u32 4294901760, %v12597_v47  ;;  %v17444_v19 = vand.u32 4294901760, %v12380_v30  ;;  %v17454_v23 = vld [vmem:[#allocation38_spill] sm:$0xff]  ;;  %v17455_v18 = vld [vmem:[#allocation39_spill] sm:$0xff] }
 0x15a   :  { %9427 = vmatprep.subr.bf16.mxu0 %v12584_v56  ;;  %v12604_v43 = vpack.c.bf16 %v17432_v38, %v17431_v61  ;;  %9469 = vmatpush3.bf16.msra.mxu1 %v9468_v2  ;;  %v12612_v10 = vpack.c.bf16 %v17437_v62, %v17435_v41  ;;  %v17446_v5 = vand.u32 4294901760, %v17445_v22  ;;  %v17448_v37 = vand.u32 4294901760, %v17447_v7  ;;  %v17456_v61 = vld [vmem:[#allocation40_spill] sm:$0xff]  ;;  %v17457_v38 = vld [vmem:[#allocation41_spill] sm:$0xff]  ;;  %v17458_v41 = vld [vmem:[#allocation42_spill] sm:$0xff] }
 0x15b   :  { %17429 = vst [vmem:[#allocation28_spill] sm:$0xff] %v12595_v21  ;;  %9503 = vmatprep.subr.bf16.mxu1 %v12332_v20  ;;  %v12619_v0 = vpack.c.bf16 %v17442_v9, %v17440_v51  ;;  %v1986_v63 = vsub.f32 %v12597_v47, %v16657_v59  ;;  %v9470_v14 = vpack.c.bf16 %v17451_v33, %v17450_v49  ;;  %v17459_v28 = vld [vmem:[#allocation43_spill] sm:$0xff]  ;;  %v17460_v36 = vld [vmem:[#allocation13_spill] sm:$0xff]  ;;  %v17461_v51 = vld [vmem:[#allocation44_spill] sm:$0xff] }
 0x15c   :  { %17433 = vst [vmem:[#allocation29_spill] sm:$0xff] %v12604_v43  ;;  %17438 = vst [vmem:[#allocation8_spill] sm:$0xff] %v12612_v10  ;;  %v12635_v40 = vpack.c.bf16 %v17448_v37, %v17446_v5  ;;  %v9472_v46 = vpack.c.bf16 %v17453_v16, %v17452_v42  ;;  %v9474_v4 = vpack.c.bf16 %v17455_v18, %v17454_v23  ;;  %v17462_v9 = vld [vmem:[#allocation16_spill] sm:$0xff]  ;;  %v17464_v22 = vld [vmem:[#allocation15_spill] sm:$0xff] }
 0x15d   :  { %9429 = vmatpush3.bf16.msra.mxu0 %v12595_v21  ;;  %17443 = vst [vmem:[#allocation10_spill] sm:$0xff] %v12619_v0  ;;  %7297 = vmatmul.mubr.msk.f32.vlgmr.msra.gmra.mrb[12].mxu1 %vm1842_vm5, %v17121_v15  ;;  %v1987_v2 = vand.u32 4294901760, %v1986_v63  ;;  %v9476_v27 = vpack.c.bf16 %v17457_v38, %v17456_v61  ;;  %v9478_v62 = vpack.c.bf16 %v17459_v28, %v17458_v41  ;;  %v17465_v5 = vld [vmem:[#allocation17_spill] sm:$0xff]  ;;  %v12667_v37 = vld [vmem:[#allocation2 + $0x360] sm:$0xff]  ;;  %v12677_v59 = vld [vmem:[#allocation2 + $0x3f8] sm:$0xff] }
 0x15e   :  { %9431 = vmatprep.subr.bf16.mxu0 %v12604_v43  ;;  %9505 = vmatpush3.bf16.msra.mxu1 %v12464_v3  ;;  %17449 = vst [vmem:[#allocation11_spill] sm:$0xff] %v12635_v40  ;;  %v9480_v25 = vpack.c.bf16 %v17461_v51, %v17460_v36  ;;  %v9484_v7 = vpack.c.bf16 %v17465_v5, %v17464_v22  ;;  %17466 = vst [vmem:[#allocation12_spill] sm:$0xff] %v12667_v37 }
 0x15f   :  { %2462 = vmatprep.mubr.f32.mxu1 %v17444_v19  ;;  %9507 = vmatprep.subr.bf16.mxu1 %v12492_v34  ;;  %17471 = vst [vmem:[#allocation27_spill] sm:$0xff] %v12677_v59  ;;  %v9492_v1 = vpack.c.bf16 %v12433_v24, %v12428_v45 }
 0x161   :  { %9433 = vmatpush3.bf16.msra.mxu0 %v12612_v10 }
 0x162   :  { %9435 = vmatprep.subr.bf16.mxu0 %v12619_v0  ;;  %9509 = vmatpush3.bf16.msra.mxu1 %v12498_v54 }
 0x163   :  { %9511 = vmatprep.subr.bf16.mxu1 %v12522_v44 }
 0x165   :  { %9437 = vmatpush3.bf16.msra.mxu0 %v12635_v40 }
 0x166   :  { %9471 = vmatprep.subr.bf16.mxu0 %v9470_v14  ;;  %9513 = vmatpush3.bf16.msra.mxu1 %v12528_v11  ;;  %v17467_v14 = vld [vmem:[#allocation18_spill] sm:$0xff] }
 0x167   :  { %9515 = vmatprep.subr.bf16.mxu1 %v12548_v8 }
 0x168   :  { %1988 = vmatmul.mubr.f32.vlgmr.msra.gmra.mrb[12].mxu0 %v1987_v2 }
 0x169   :  { %9473 = vmatpush3.bf16.msra.mxu0 %v9472_v46  ;;  %2355 = vmatprep.mubr.f32.mxu0 %v12380_v30  ;;  %v17463_v30 = vld [vmem:[#allocation45_spill] sm:$0xff]  ;;  %v17468_v46 = vld [vmem:[#allocation14_spill] sm:$0xff] }
 0x16a   :  { %9475 = vmatprep.subr.bf16.mxu0 %v9474_v4  ;;  %9517 = vmatpush3.bf16.msra.mxu1 %v12561_v17  ;;  %v9482_v19 = vpack.c.bf16 %v17463_v30, %v17462_v9  ;;  %v7409_v63 = vpop.f32.mrb[0].mxu1  ;;  %v9486_v2 = vpack.c.bf16 %v17468_v46, %v17467_v14  ;;  %v12671_v4 = vld [vmem:[#allocation2 + $0x368] sm:$0xff] }
 0x16b   :  { %9519 = vmatprep.subr.bf16.mxu1 %v12568_v12  ;;  %17469 = vst [vmem:[#allocation23_spill] sm:$0xff] %v12671_v4 }
 0x16d   :  { %9477 = vmatpush3.bf16.msra.mxu0 %v9476_v27  ;;  %v7410_v27 = vpop.f32.mrb[1].mxu1 }
 0x16e   :  { %9479 = vmatprep.subr.bf16.mxu0 %v9478_v62  ;;  %9521 = vmatpush3.bf16.msra.mxu1 %v12577_v39  ;;  %v7411_v62 = vadd.f32 %v7410_v27, %v7409_v63  ;;  %v9490_v63 = vpack.c.bf16 %v12405_v53, %v12400_v26  ;;  %v12685_v27 = vld [vmem:[#allocation2 + $0x370] sm:$0xff] }
 0x16f   :  { %9523 = vmatprep.subr.bf16.mxu1 %v12584_v56  ;;  %17472 = vst [vmem:[#allocation33_spill] sm:$0xff] %v12685_v27 }
 0x171   :  { %9481 = vmatpush3.bf16.msra.mxu0 %v9480_v25  ;;  %v17476_v25 = vand.u32 4294901760, %v12671_v4 }
 0x172   :  { %9483 = vmatprep.subr.bf16.mxu0 %v9482_v19  ;;  %9525 = vmatpush3.bf16.msra.mxu1 %v12595_v21  ;;  %v9488_v19 = vpack.c.bf16 %v12395_v35, %v12390_v55  ;;  %v12687_v21 = vld [vmem:[#allocation2 + $0x378] sm:$0xff] }
 0x173   :  { %9527 = vmatprep.subr.bf16.mxu1 %v12604_v43  ;;  %17473 = vst [vmem:[#allocation34_spill] sm:$0xff] %v12687_v21  ;;  %v17475_v43 = vand.u32 4294901760, %v12667_v37  ;;  %v12705_v56 = vsub.f32 %v12671_v4, %v17476_v25  ;;  %v17477_v25 = vand.u32 4294901760, %v12675_v29 }
 0x175   :  { %9485 = vmatpush3.bf16.msra.mxu0 %v9484_v7  ;;  %v17474_v7 = vld [vmem:[#allocation21_spill] sm:$0xff] }
 0x176   :  { %9487 = vmatprep.subr.bf16.mxu0 %v9486_v2  ;;  %9529 = vmatpush3.bf16.msra.mxu1 %v12612_v10  ;;  %vm2745_vm6 = vcmp.eq.s32.totalorder %v12274_v60, %v17474_v7  ;;  %v12697_v2 = vsub.f32 %v12667_v37, %v17475_v43  ;;  %v9494_v43 = vpack.c.bf16 %v12457_v13, %v12452_v52  ;;  %v7374_v37 = vpop.f32.mrb[0].mxu0  ;;  %v12732_v52 = vld [vmem:[#allocation2 + $0x300] sm:$0xff] }
 0x177   :  { %9531 = vmatprep.subr.bf16.mxu1 %v12619_v0  ;;  %v12713_v0 = vld [vmem:[#allocation2 + $0x388] sm:$0xff]  ;;  %v7303_v24 = vsel %vm2745_vm6, 1.0, %v17360_v32  ;;  %v12722_v10 = vsub.f32 %v12675_v29, %v17477_v25  ;;  %v7375_v4 = vpop.f32.mrb[1].mxu0  ;;  %v9496_v13 = vpack.c.bf16 %v11987_v31, %v11981_v50  ;;  %v12738_v29 = vld [vmem:[#allocation2 + $0x390] sm:$0xff]  ;;  %v17481_v50 = vand.u32 4294901760, %v12687_v21 }
 0x178   :  { %v7376_v7 = vadd.f32 %v7375_v4, %v7374_v37  ;;  %v12736_v25 = vld [vmem:[#allocation2 + $0x308] sm:$0xff]  ;;  %v12757_v32 = vsub.f32 %v7303_v24, %v7303_v24  ;;  %v12780_v4 = vld [vmem:[#allocation2 + $0x310] sm:$0xff] }
 0x179   :  { %9489 = vmatpush3.bf16.msra.mxu0 %v9488_v19  ;;  %v12711_v19 = vld [vmem:[#allocation2 + $0x380] sm:$0xff]  ;;  %v12751_v37 = vsub.f32 %v12687_v21, %v17481_v50  ;;  %v17486_v21 = vand.u32 4294901760, %v12705_v56  ;;  %v12806_v24 = vld [vmem:[#allocation2 + $0x3a8] sm:$0xff] }
 0x17a   :  { %9491 = vmatprep.subr.bf16.mxu0 %v9490_v63  ;;  %v17478_v63 = vand.u32 4294901760, %v12677_v59  ;;  %9533 = vmatpush3.bf16.msra.mxu1 %v12635_v40  ;;  %v17479_v40 = vand.u32 4294901760, %v12685_v27  ;;  %17483 = vst [vmem:[#allocation38_spill] sm:$0xff] %v12757_v32 }
 0x17b   :  { %9567 = vmatprep.subr.bf16.mxu1 %v12332_v20  ;;  %17482 = vst [vmem:[#allocation37_spill] sm:$0xff] %v12751_v37  ;;  %v9498_v20 = vpack.c.bf16 %v12005_v57, %v12000_v58 }
 0x17c   :  { %v12727_v39 = vsub.f32 %v12677_v59, %v17478_v63  ;;  %v12740_v63 = vld [vmem:[#allocation2 + $0x398] sm:$0xff]  ;;  %v12746_v31 = vsub.f32 %v12685_v27, %v17479_v40  ;;  %v12759_v59 = vadd.f32 %v7411_v62, %v7376_v7  ;;  %v17484_v40 = vand.u32 4294901760, %v12597_v47 }
 0x17d   :  { %9493 = vmatpush3.bf16.msra.mxu0 %v9492_v1  ;;  %v16678_v27 = vand.u32 4294901760, %v12722_v10  ;;  %v12782_v1 = vld [vmem:[#allocation2 + $0x318] sm:$0xff] }
 0x17e   :  { %17480 = vst [vmem:[#allocation35_spill] sm:$0xff] %v12746_v31  ;;  %9495 = vmatprep.subr.bf16.mxu0 %v9494_v43  ;;  %2466 = vmatmul.mubr.f32.vlgmr.msra.gmra.mrb[14].mxu1 %v17484_v40  ;;  %v16677_v50 = vand.u32 4294901760, %v12727_v39  ;;  %v17485_v43 = vand.u32 4294901760, %v12697_v2  ;;  %v17490_v40 = vand.u32 4294901760, %v17450_v49 }
 0x17f   :  { %9569 = vmatpush3.bf16.msra.mxu1 %v12464_v3  ;;  %7300 = vmatprep.mubr.msk.f32.mxu1 %vm1843_vm4, %v17121_v15  ;;  %v9500_v3 = vpack.c.bf16 %v17415_v6, %v17413_v48  ;;  %v12804_v6 = vld [vmem:[#allocation2 + $0x3a0] sm:$0xff] }
 0x180   :  { %v12769_v57 = vpack.c.bf16 %v17486_v21, %v17485_v43  ;;  %9571 = vmatprep.subr.bf16.mxu1 %v12492_v34  ;;  %v16679_v21 = vand.u32 4294901760, %v12746_v31  ;;  %v12793_v7 = vpack.c.bf16 %v16677_v50, %v16678_v27  ;;  %v17492_v34 = vand.u32 4294901760, %v12711_v19  ;;  %v12859_v31 = vld [vmem:[#allocation2 + $0x320] sm:$0xff] }
 0x181   :  { %9497 = vmatpush3.bf16.msra.mxu0 %v9496_v13  ;;  %v17491_v13 = vand.u32 4294901760, %v17451_v33  ;;  %v17494_v50 = vand.u32 4294901760, %v12713_v0  ;;  %v17502_v33 = vand.u32 4294901760, %v12738_v29 }
 0x182   :  { %17487 = vst [vmem:[#allocation39_spill] sm:$0xff] %v12769_v57  ;;  %17489 = vst [vmem:[#allocation40_spill] sm:$0xff] %v12793_v7  ;;  %9499 = vmatprep.subr.bf16.mxu0 %v9498_v20  ;;  %v12802_v48 = vsub.f32 %v12711_v19, %v17492_v34  ;;  %v17498_v34 = vand.u32 4294901760, %v12732_v52  ;;  %v16685_v7 = vand.u32 4294901760, %v12806_v24  ;;  %v17509_v57 = vand.u32 4294901760, %v17455_v18 }
 0x183   :  { %v9534_v62 = vpack.c.bf16 %v17491_v13, %v17490_v40  ;;  %v12812_v20 = vsub.f32 %v12713_v0, %v17494_v50  ;;  %v17496_v40 = vand.u32 4294901760, %v12751_v37  ;;  %9573 = vmatpush3.bf16.msra.mxu1 %v12498_v54  ;;  %v17500_v50 = vand.u32 4294901760, %v12736_v25 }
 0x184   :  { %17493 = vst [vmem:[#allocation41_spill] sm:$0xff] %v12802_v48  ;;  %v12826_v27 = vsub.f32 %v12732_v52, %v17498_v34  ;;  %v12836_v49 = vsub.f32 %v12738_v29, %v17502_v33  ;;  %9575 = vmatprep.subr.bf16.mxu1 %v12522_v44  ;;  %v17506_v54 = vand.u32 4294901760, %v17452_v42  ;;  %v17507_v34 = vand.u32 4294901760, %v17453_v16 }
 0x185   :  { %17495 = vst [vmem:[#allocation42_spill] sm:$0xff] %v12812_v20  ;;  %v12820_v13 = vpack.c.bf16 %v17496_v40, %v16679_v21  ;;  %v12831_v43 = vsub.f32 %v12736_v25, %v17500_v50  ;;  %v17504_v40 = vand.u32 4294901760, %v12740_v63  ;;  %9501 = vmatpush3.bf16.msra.mxu0 %v9500_v3  ;;  %v16684_v50 = vand.u32 4294901760, %v12804_v6 }
 0x186   :  { %17499 = vst [vmem:[#allocation13_spill] sm:$0xff] %v12826_v27  ;;  %17503 = vst [vmem:[#allocation16_spill] sm:$0xff] %v12836_v49  ;;  %9535 = vmatprep.subr.bf16.mxu0 %v9534_v62  ;;  %v17508_v33 = vand.u32 4294901760, %v17454_v23  ;;  %v17511_v3 = vand.u32 4294901760, %v17457_v38  ;;  %v16691_v42 = vand.u32 4294901760, %v12802_v48  ;;  %v17512_v16 = vand.u32 4294901760, %v12757_v32 }
 0x187   :  { %17497 = vst [vmem:[#allocation43_spill] sm:$0xff] %v12820_v13  ;;  %17501 = vst [vmem:[#allocation44_spill] sm:$0xff] %v12831_v43  ;;  %v12841_v21 = vsub.f32 %v12740_v63, %v17504_v40  ;;  %v9536_v13 = vpack.c.bf16 %v17507_v34, %v17506_v54  ;;  %v17510_v40 = vand.u32 4294901760, %v17456_v61  ;;  %v17513_v62 = vand.u32 4294901760, %v17458_v41  ;;  %9577 = vmatpush3.bf16.msra.mxu1 %v12528_v11 }
 0x188   :  { %v9538_v37 = vpack.c.bf16 %v17509_v57, %v17508_v33  ;;  %v12864_v54 = vsub.f32 %v12757_v32, %v17512_v16  ;;  %v17514_v23 = vand.u32 4294901760, %v17459_v28  ;;  %v16690_v57 = vand.u32 4294901760, %v12812_v20  ;;  %2358 = vmatmul.mubr.f32.vlgmr.msra.gmra.mrb[14].mxu0 %v12597_v47  ;;  %v12887_v16 = vld [vmem:[#allocation2 + $0x328] sm:$0xff]  ;;  %9579 = vmatprep.subr.bf16.mxu1 %v12548_v8 }
 0x189   :  { %17505 = vst [vmem:[#allocation45_spill] sm:$0xff] %v12841_v21  ;;  %v9540_v44 = vpack.c.bf16 %v17511_v3, %v17510_v40  ;;  %v17515_v61 = vand.u32 4294901760, %v12780_v4  ;;  %v17517_v34 = vand.u32 4294901760, %v12782_v1  ;;  %v16688_v41 = vand.u32 4294901760, %v12826_v27  ;;  %9537 = vmatpush3.bf16.msra.mxu0 %v9536_v13  ;;  %7298 = vmatprep.mubr.msk.f32.mxu0 %vm1843_vm4, %v17121_v15 }
 0x18a   :  { %v9542_v18 = vpack.c.bf16 %v17514_v23, %v17513_v62  ;;  %v16686_v28 = vand.u32 4294901760, %v12831_v43  ;;  %v16687_v40 = vand.u32 4294901760, %v12836_v49  ;;  %v16689_v3 = vand.u32 4294901760, %v12841_v21  ;;  %9539 = vmatprep.subr.bf16.mxu0 %v9538_v37 }
 0x18b   :  { %v12874_v38 = vsub.f32 %v12780_v4, %v17515_v61  ;;  %v12879_v33 = vsub.f32 %v12782_v1, %v17517_v34  ;;  %v17519_v47 = vand.u32 4294901760, %v17460_v36  ;;  %v17520_v11 = vand.u32 4294901760, %v17461_v51  ;;  %9581 = vmatpush3.bf16.msra.mxu1 %v12561_v17 }
 0x18c   :  { %v12900_v23 = vsub.f32 %v12804_v6, %v16684_v50  ;;  %v12905_v61 = vsub.f32 %v12806_v24, %v16685_v7  ;;  %v17523_v36 = vand.u32 4294901760, %v17462_v9  ;;  %v17524_v51 = vand.u32 4294901760, %v17463_v30  ;;  %9583 = vmatprep.subr.bf16.mxu1 %v12568_v12 }
 0x18d   :  { %17516 = vst [vmem:[#allocation15_spill] sm:$0xff] %v12874_v38  ;;  %17518 = vst [vmem:[#allocation17_spill] sm:$0xff] %v12879_v33  ;;  %v9544_v62 = vpack.c.bf16 %v17520_v11, %v17519_v47  ;;  %v17525_v47 = vand.u32 4294901760, %v17464_v22  ;;  %v17526_v11 = vand.u32 4294901760, %v17465_v5  ;;  %v3011_v7 = vsub.f32 %v12802_v48, %v16691_v42  ;;  %9541 = vmatpush3.bf16.msra.mxu0 %v9540_v44 }
 0x18e   :  { %17521 = vst [vmem:[#allocation18_spill] sm:$0xff] %v12900_v23  ;;  %17522 = vst [vmem:[#allocation14_spill] sm:$0xff] %v12905_v61  ;;  %v9546_v34 = vpack.c.bf16 %v17524_v51, %v17523_v36  ;;  %v3018_v13 = vsub.f32 %v12812_v20, %v16690_v57  ;;  %v16693_v8 = vand.u32 4294901760, %v12874_v38  ;;  %v16692_v9 = vand.u32 4294901760, %v12879_v33  ;;  %9543 = vmatprep.subr.bf16.mxu0 %v9542_v18  ;;  %v17536_v57 = vld [vmem:[#allocation9_spill] sm:$0xff] }
 0x18f   :  { %v9548_v50 = vpack.c.bf16 %v17526_v11, %v17525_v47  ;;  %v16694_v30 = vand.u32 4294901760, %v12887_v16  ;;  %v2899_v22 = vsub.f32 %v12826_v27, %v16688_v41  ;;  %v2906_v5 = vsub.f32 %v12831_v43, %v16686_v28  ;;  %v12973_v18 = vld [vmem:[#allocation2 + $0x3b0] sm:$0xff]  ;;  %v17566_v43 = vld [vmem:[#allocation11_spill] sm:$0xff] }
 0x190   :  { %v12936_v37 = vsub.f32 %v12836_v49, %v16687_v40  ;;  %v12941_v36 = vsub.f32 %v12841_v21, %v16689_v3  ;;  %v17527_v17 = vand.u32 4294901760, %v17467_v14  ;;  %v17528_v51 = vand.u32 4294901760, %v17468_v46  ;;  %v17545_v21 = vld [vmem:[#allocation46_spill] sm:$0xff] }
 0x191   :  { %v16698_v11 = vand.u32 4294901760, %v12900_v23  ;;  %v17529_v40 = vand.u32 4294901760, %v12859_v31  ;;  %v17531_v3 = vand.u32 4294901760, %v12390_v55  ;;  %v17532_v44 = vand.u32 4294901760, %v12395_v35  ;;  %v12975_v55 = vld [vmem:[#allocation2 + $0x3b8] sm:$0xff]  ;;  %9545 = vmatpush3.bf16.msra.mxu0 %v9544_v62 }
 0x192   :  { %v9550_v47 = vpack.c.bf16 %v17528_v51, %v17527_v17  ;;  %v17533_v14 = vand.u32 4294901760, %v12400_v26  ;;  %v17534_v46 = vand.u32 4294901760, %v12405_v53  ;;  %v17535_v51 = vand.u32 4294901760, %v12428_v45  ;;  %9547 = vmatprep.subr.bf16.mxu0 %v9546_v34 }
 0x193   :  { %v12953_v41 = vsub.f32 %v12859_v31, %v17529_v40  ;;  %v12959_v12 = vpack.c.bf16 %v17532_v44, %v17531_v3  ;;  %v17537_v42 = vand.u32 4294901760, %v17536_v57  ;;  %v3012_v40 = vand.u32 4294901760, %v3011_v7  ;;  %v12990_v7 = vld [vmem:[#allocation2 + $0x338] sm:$0xff]  ;;  %v12992_v57 = vld [vmem:[#allocation2 + $0x3c0] sm:$0xff] }
 0x194   :  { %v12965_v17 = vpack.c.bf16 %v17534_v46, %v17533_v14  ;;  %v3019_v35 = vand.u32 4294901760, %v3018_v13  ;;  %v2913_v26 = vsub.f32 %v12874_v38, %v16693_v8  ;;  %v2920_v53 = vsub.f32 %v12879_v33, %v16692_v9  ;;  %v17539_v3 = vld [vmem:[#allocation26_spill] sm:$0xff]  ;;  %v17540_v9 = vld [vmem:[#allocation32_spill] sm:$0xff] }
 0x195   :  { %17530 = vst [vmem:[#allocation47_spill] sm:$0xff] %v12953_v41  ;;  %v12971_v28 = vpack.c.bf16 %v17537_v42, %v17535_v51  ;;  %v12986_v45 = vsub.f32 %v12887_v16, %v16694_v30  ;;  %v12988_v42 = vld [vmem:[#allocation2 + $0x330] sm:$0xff]  ;;  %9585 = vmatpush3.bf16.msra.mxu1 %v17539_v3  ;;  %v2900_v13 = vand.u32 4294901760, %v2899_v22  ;;  %v2907_v44 = vand.u32 4294901760, %v2906_v5  ;;  %v12997_v51 = vld [vmem:[#allocation2 + $0x3c8] sm:$0xff]  ;;  %v13023_v3 = vld [vmem:[#allocation2 + $0x340] sm:$0xff]  ;;  %9549 = vmatpush3.bf16.msra.mxu0 %v9548_v50 }
 0x196   :  { %v3026_v14 = vand.u32 4294901760, %v12936_v37  ;;  %v3033_v46 = vand.u32 4294901760, %v12941_v36  ;;  %9587 = vmatprep.subr.bf16.mxu1 %v17540_v9  ;;  %v3039_v8 = vsub.f32 %v12900_v23, %v16698_v11  ;;  %v17541_v30 = vand.u32 4294901760, %v12905_v61  ;;  %v7479_v37 = vpop.f32.mrb[2].mxu1  ;;  %v17542_v5 = vld [vmem:[#allocation28_spill] sm:$0xff]  ;;  %9551 = vmatprep.subr.bf16.mxu0 %v9550_v47 }
 0x197   :  { %17538 = vst [vmem:[#allocation9_spill] sm:$0xff] %v12986_v45  ;;  %v7480_v33 = vpop.f32.mrb[3].mxu1  ;;  %v2914_v11 = vand.u32 4294901760, %v2913_v26  ;;  %v2921_v23 = vand.u32 4294901760, %v2920_v53  ;;  %v9630_v34 = vpack.c.bf16 %v3019_v35, %v3012_v40  ;;  %v17546_v62 = vand.u32 4294901760, %v17545_v21  ;;  %v17547_v26 = vld [vmem:[#allocation29_spill] sm:$0xff] }
 0x198   :  { %v3046_v58 = vsub.f32 %v12905_v61, %v17541_v30  ;;  %v16713_v30 = vand.u32 4294901760, %v12997_v51  ;;  %v13014_v22 = vadd.f32 %v7480_v33, %v7479_v37  ;;  %v17543_v61 = vld [vmem:[#allocation24_spill] sm:$0xff]  ;;  %v13021_v9 = vpack.c.bf16 %v2907_v44, %v2900_v13  ;;  %v13038_v35 = vld [vmem:[#allocation2 + $0x3d0] sm:$0xff]  ;;  %v13040_v13 = vld [vmem:[#allocation2 + $0x3d8] sm:$0xff] }
 0x199   :  { %9589 = vmatpush3.bf16.msra.mxu1 %v17542_v5  ;;  %v17544_v36 = vand.u32 4294901760, %v17543_v61  ;;  %v3040_v53 = vand.u32 4294901760, %v3039_v8  ;;  %v17548_v33 = vand.u32 4294901760, %v12953_v41  ;;  %v17549_v40 = vand.u32 4294901760, %v12973_v18  ;;  %v13036_v21 = vld [vmem:[#allocation2 + $0x348] sm:$0xff]  ;;  %9553 = vmatpush3.bf16.msra.mxu0 %v12959_v12 }
 0x19a   :  { %9591 = vmatprep.subr.bf16.mxu1 %v17547_v26  ;;  %v3047_v38 = vand.u32 4294901760, %v3046_v58  ;;  %v17551_v50 = vand.u32 4294901760, %v12975_v55  ;;  %v17553_v8 = vand.u32 4294901760, %v12988_v42  ;;  %v17555_v5 = vand.u32 4294901760, %v12990_v7  ;;  %9555 = vmatprep.subr.bf16.mxu0 %v12965_v17 }
 0x19b   :  { %v9558_v49 = vpack.c.bf16 %v17546_v62, %v17544_v36  ;;  %v13029_v37 = vsub.f32 %v12953_v41, %v17548_v33  ;;  %v13034_v61 = vsub.f32 %v12973_v18, %v17549_v40  ;;  %v17557_v62 = vand.u32 4294901760, %v12992_v57  ;;  %v17561_v41 = vld [vmem:[#allocation8_spill] sm:$0xff] }
 0x19c   :  { %v13045_v58 = vsub.f32 %v12975_v55, %v17551_v50  ;;  %v13050_v44 = vsub.f32 %v12988_v42, %v17553_v8  ;;  %v13055_v36 = vsub.f32 %v12990_v7, %v17555_v5  ;;  %v9634_v47 = vpack.c.bf16 %v3033_v46, %v3026_v14  ;;  %v13079_v14 = vld [vmem:[#allocation2 + $0x358] sm:$0xff] }
 0x19d   :  { %17550 = vst [vmem:[#allocation26_spill] sm:$0xff] %v13034_v61  ;;  %v13060_v26 = vsub.f32 %v12992_v57, %v17557_v62  ;;  %v13062_v33 = vpack.c.bf16 %v2921_v23, %v2914_v11  ;;  %v17559_v40 = vand.u32 4294901760, %v12986_v45  ;;  %v13070_v8 = vsub.f32 %v12997_v51, %v16713_v30  ;;  %9593 = vmatpush3.bf16.msra.mxu1 %v17561_v41  ;;  %v13077_v11 = vld [vmem:[#allocation2 + $0x350] sm:$0xff]  ;;  %v17562_v46 = vld [vmem:[#allocation10_spill] sm:$0xff] }
 0x19e   :  { %17552 = vst [vmem:[#allocation32_spill] sm:$0xff] %v13045_v58  ;;  %17554 = vst [vmem:[#allocation28_spill] sm:$0xff] %v13050_v44  ;;  %9595 = vmatprep.subr.bf16.mxu1 %v17562_v46  ;;  %v17563_v41 = vand.u32 4294901760, %v12711_v19  ;;  %v17564_v30 = vand.u32 4294901760, %v12713_v0  ;;  %v2928_v62 = vand.u32 4294901760, %v13029_v37  ;;  %v13100_v19 = vld [vmem:[#allocation2 + $0x3e8] sm:$0xff]  ;;  %9557 = vmatpush3.bf16.msra.mxu0 %v12971_v28 }
 0x19f   :  { %17556 = vst [vmem:[#allocation24_spill] sm:$0xff] %v13055_v36  ;;  %17558 = vst [vmem:[#allocation46_spill] sm:$0xff] %v13060_v26  ;;  %v2934_v50 = vsub.f32 %v12986_v45, %v17559_v40  ;;  %v13083_v40 = vpack.c.bf16 %v3047_v38, %v3040_v53  ;;  %v13098_v53 = vld [vmem:[#allocation2 + $0x3e0] sm:$0xff]  ;;  %v7444_v0 = vpop.f32.mrb[2].mxu0  ;;  %v17567_v12 = vand.u32 4294901760, %v13023_v3  ;;  %v17568_v38 = vand.u32 4294901760, %v13036_v21  ;;  %9559 = vmatprep.subr.bf16.mxu0 %v9558_v49 }
 0x1a0   :  { %17560 = vst [vmem:[#allocation29_spill] sm:$0xff] %v13070_v8  ;;  %v13089_v5 = vpack.c.bf16 %v17564_v30, %v17563_v41  ;;  %17565 = vst [vmem:[#allocation8_spill] sm:$0xff] %v13098_v53  ;;  %v7445_v23 = vpop.f32.mrb[3].mxu0  ;;  %v17571_v17 = vand.u32 4294901760, %v13040_v13  ;;  %v17576_v28 = vand.u32 4294901760, %v13055_v36  ;;  %v13405_v49 = vld [vmem:[#allocation2 + $0x4f0] sm:$0xff] }
 0x1a1   :  { %v2935_v30 = vand.u32 4294901760, %v2934_v50  ;;  %9597 = vmatpush3.bf16.msra.mxu1 %v17566_v43  ;;  %v13109_v46 = vsub.f32 %v13023_v3, %v17567_v12  ;;  %v13114_v45 = vsub.f32 %v13036_v21, %v17568_v38  ;;  %v17569_v50 = vand.u32 4294901760, %v13038_v35 }
 0x1a2   :  { %v13124_v41 = vsub.f32 %v13040_v13, %v17571_v17  ;;  %v7446_v43 = vadd.f32 %v7445_v23, %v7444_v0  ;;  %9631 = vmatprep.subr.bf16.mxu1 %v9630_v34  ;;  %v17573_v12 = vand.u32 4294901760, %v13034_v61  ;;  %v17575_v17 = vand.u32 4294901760, %v13050_v44 }
 0x1a3   :  { %v13119_v37 = vsub.f32 %v13038_v35, %v17569_v50  ;;  %v17574_v50 = vand.u32 4294901760, %v13045_v58  ;;  %v2948_v34 = vsub.f32 %v13055_v36, %v17576_v28  ;;  %v17577_v0 = vand.u32 4294901760, %v13060_v26 }
 0x1a4   :  { %17572 = vst [vmem:[#allocation11_spill] sm:$0xff] %v13124_v41  ;;  %v3053_v27 = vsub.f32 %v13034_v61, %v17573_v12  ;;  %v2941_v23 = vsub.f32 %v13050_v44, %v17575_v17  ;;  %v594_v38 = vadd.f32 %v7446_v43, %v12759_v59  ;;  %7301 = vmatmul.mubr.msk.f32.vlgmr.msra.gmra.mrb[16].mxu1 %vm1842_vm5, %v17121_v15  ;;  %v17580_v17 = vand.u32 4294901760, %v13077_v11 }
 0x1a5   :  { %17570 = vst [vmem:[#allocation10_spill] sm:$0xff] %v13119_v37  ;;  %v3060_v48 = vsub.f32 %v13045_v58, %v17574_v50  ;;  %v3067_v12 = vsub.f32 %v13060_v26, %v17577_v0  ;;  %v17579_v50 = vand.u32 4294901760, %v13070_v8  ;;  %v17582_v28 = vand.u32 4294901760, %v13079_v14  ;;  %9633 = vmatpush3.bf16.msra.mxu1 %v13021_v9  ;;  %7304 = vmatprep.mubr.msk.f32.mxu1 %vm2745_vm6, %v17121_v15  ;;  %v17585_v26 = vld [vmem:[#allocation30_spill] sm:$0xff] }
 0x1a6   :  { %v13155_v44 = vsub.f32 %v13077_v11, %v17580_v17  ;;  %9561 = vmatpush3.bf16.msra.mxu0 %v17585_v26  ;;  %9635 = vmatprep.subr.bf16.mxu1 %v9634_v47  ;;  %v17588_v36 = vand.u32 4294901760, %v13100_v19  ;;  %v13183_v43 = vadd.f32 %v13014_v22, %v594_v38  ;;  %v17591_v17 = vand.u32 4294901760, %v12732_v52 }
 0x1a7   :  { %v3074_v20 = vsub.f32 %v13070_v8, %v17579_v50  ;;  %v13160_v0 = vsub.f32 %v13079_v14, %v17582_v28  ;;  %v17586_v28 = vand.u32 4294901760, %v13098_v53  ;;  %v17590_v50 = vld [vmem:[#allocation31_spill] sm:$0xff]  ;;  %v9640_v8 = vpack.c.bf16 %v2935_v30, %v2928_v62 }
 0x1a8   :  { %17581 = vst [vmem:[#allocation48_spill] sm:$0xff] %v13155_v44  ;;  %v13180_v59 = vsub.f32 %v13100_v19, %v17588_v36  ;;  %9563 = vmatprep.subr.bf16.mxu0 %v17590_v50  ;;  %v17592_v26 = vand.u32 4294901760, %v12736_v25  ;;  %v3054_v58 = vand.u32 4294901760, %v3053_v27  ;;  %v2942_v61 = vand.u32 4294901760, %v2941_v23  ;;  %v17597_v23 = vld [vmem:[#allocation36_spill] sm:$0xff] }
 0x1a9   :  { %17583 = vst [vmem:[#allocation49_spill] sm:$0xff] %v13160_v0  ;;  %v13175_v9 = vsub.f32 %v13098_v53, %v17586_v28  ;;  %v3061_v28 = vand.u32 4294901760, %v3060_v48  ;;  %v2949_v32 = vand.u32 4294901760, %v2948_v34  ;;  %v16739_v53 = vand.u32 4294901760, %v13155_v44  ;;  %9637 = vmatpush3.bf16.msra.mxu1 %v13062_v33 }
 0x1aa   :  { %17589 = vst [vmem:[#allocation50_spill] sm:$0xff] %v13180_v59  ;;  %v13190_v47 = vpack.c.bf16 %v17592_v26, %v17591_v17  ;;  %v16738_v36 = vand.u32 4294901760, %v13160_v0  ;;  %v17593_v22 = vand.u32 4294901760, %v13109_v46  ;;  %v17594_v52 = vand.u32 4294901760, %v13114_v45  ;;  %9565 = vmatpush3.bf16.msra.mxu0 %v17597_v23  ;;  %9639 = vmatprep.subr.bf16.mxu1 %v13083_v40 }
 0x1ab   :  { %17587 = vst [vmem:[#allocation30_spill] sm:$0xff] %v13175_v9  ;;  %v17595_v30 = vand.u32 4294901760, %v13119_v37  ;;  %v17596_v48 = vand.u32 4294901760, %v13124_v41  ;;  %v3068_v33 = vand.u32 4294901760, %v3067_v12  ;;  %v3075_v34 = vand.u32 4294901760, %v3074_v20  ;;  %9599 = vmatprep.subr.bf16.mxu0 %v13089_v5 }
 0x1ac   :  { %v2955_v62 = vsub.f32 %v13109_v46, %v17593_v22  ;;  %v2962_v25 = vsub.f32 %v13114_v45, %v17594_v52  ;;  %v16737_v50 = vand.u32 4294901760, %v13175_v9  ;;  %v2883_v26 = vand.u32 4294901760, %v12864_v54 }
 0x1ad   :  { %v3081_v27 = vsub.f32 %v13119_v37, %v17595_v30  ;;  %v3088_v38 = vsub.f32 %v13124_v41, %v17596_v48  ;;  %v9642_v22 = vpack.c.bf16 %v3061_v28, %v3054_v58  ;;  %v17598_v52 = vand.u32 4294901760, %v12738_v29  ;;  %7299 = vmatmul.mubr.msk.f32.vlgmr.msra.gmra.mrb[16].mxu0 %vm1842_vm5, %v17121_v15  ;;  %9641 = vmatpush3.bf16.msra.mxu1 %v9640_v8 }
 0x1ae   :  { %v17599_v30 = vand.u32 4294901760, %v12740_v63  ;;  %v9644_v23 = vpack.c.bf16 %v2949_v32, %v2942_v61  ;;  %v17600_v40 = vand.u32 4294901760, %v12780_v4  ;;  %v17601_v20 = vand.u32 4294901760, %v12782_v1  ;;  %9601 = vmatpush3.bf16.msra.mxu0 %v13190_v47  ;;  %2884 = vmatprep.mubr.f32.mxu0 %v2883_v26 }
 0x1af   :  { %v2969_v17 = vsub.f32 %v13155_v44, %v16739_v53  ;;  %v2976_v54 = vsub.f32 %v13160_v0, %v16738_v36  ;;  %v2956_v32 = vand.u32 4294901760, %v2955_v62  ;;  %v2963_v29 = vand.u32 4294901760, %v2962_v25  ;;  %9643 = vmatprep.subr.bf16.mxu1 %v9642_v22  ;;  %v13399_v53 = vld [vmem:[#allocation2 + $0x468] sm:$0xff] }
 0x1b0   :  { %v13217_v48 = vpack.c.bf16 %v17599_v30, %v17598_v52  ;;  %v13223_v12 = vpack.c.bf16 %v17601_v20, %v17600_v40  ;;  %v3082_v63 = vand.u32 4294901760, %v3081_v27  ;;  %v3089_v1 = vand.u32 4294901760, %v3088_v38 }
 0x1b1   :  { %v9646_v4 = vpack.c.bf16 %v3075_v34, %v3068_v33  ;;  %v3095_v61 = vsub.f32 %v13175_v9, %v16737_v50  ;;  %v17602_v58 = vand.u32 4294901760, %v13180_v59  ;;  %v17603_v8 = vand.u32 4294901760, %v12804_v6  ;;  %9645 = vmatpush3.bf16.msra.mxu1 %v9644_v23  ;;  %v17671_v50 = vld [vmem:[#allocation29_spill] sm:$0xff] }
 0x1b2   :  { %9603 = vmatprep.subr.bf16.mxu0 %v13217_v48  ;;  %v17604_v62 = vand.u32 4294901760, %v12806_v24  ;;  %v17605_v27 = vand.u32 4294901760, %v12859_v31  ;;  %v17606_v38 = vand.u32 4294901760, %v12887_v16  ;;  %v2970_v34 = vand.u32 4294901760, %v2969_v17 }
 0x1b3   :  { %v3102_v28 = vsub.f32 %v13180_v59, %v17602_v58  ;;  %v2977_v26 = vand.u32 4294901760, %v2976_v54  ;;  %v9648_v52 = vpack.c.bf16 %v2963_v29, %v2956_v32  ;;  %v9650_v30 = vpack.c.bf16 %v3089_v1, %v3082_v63  ;;  %9605 = vmatpush3.bf16.msra.mxu0 %v13223_v12  ;;  %9647 = vmatprep.subr.bf16.mxu1 %v9646_v4  ;;  %v17613_v58 = vld [vmem:[#allocation35_spill] sm:$0xff] }
 0x1b4   :  { %v13247_v25 = vpack.c.bf16 %v17604_v62, %v17603_v8  ;;  %v13253_v33 = vpack.c.bf16 %v17606_v38, %v17605_v27  ;;  %v17607_v22 = vand.u32 4294901760, %v12697_v2  ;;  %v17608_v6 = vand.u32 4294901760, %v12705_v56  ;;  %v17615_v62 = vld [vmem:[#allocation37_spill] sm:$0xff] }
 0x1b5   :  { %v3096_v31 = vand.u32 4294901760, %v3095_v61  ;;  %v3103_v16 = vand.u32 4294901760, %v3102_v28  ;;  %v17609_v20 = vand.u32 4294901760, %v12722_v10  ;;  %v17610_v23 = vand.u32 4294901760, %v12727_v39  ;;  %9649 = vmatpush3.bf16.msra.mxu1 %v9648_v52 }
 0x1b6   :  { %v2983_v40 = vsub.f32 %v12697_v2, %v17607_v22  ;;  %v2990_v24 = vsub.f32 %v12705_v56, %v17608_v6  ;;  %9607 = vmatprep.subr.bf16.mxu0 %v13247_v25  ;;  %v17611_v32 = vand.u32 4294901760, %v12973_v18  ;;  %v17612_v29 = vand.u32 4294901760, %v12975_v55  ;;  %9651 = vmatprep.subr.bf16.mxu1 %v9650_v30 }
 0x1b7   :  { %v3109_v17 = vsub.f32 %v12722_v10, %v17609_v20  ;;  %v3116_v54 = vsub.f32 %v12727_v39, %v17610_v23  ;;  %v9652_v1 = vpack.c.bf16 %v2977_v26, %v2970_v34  ;;  %v17614_v28 = vand.u32 4294901760, %v17613_v58  ;;  %9609 = vmatpush3.bf16.msra.mxu0 %v13253_v33  ;;  %v17621_v23 = vld [vmem:[#allocation22_spill] sm:$0xff] }
 0x1b8   :  { %v13273_v63 = vpack.c.bf16 %v17612_v29, %v17611_v32  ;;  %v2984_v4 = vand.u32 4294901760, %v2983_v40  ;;  %v2991_v61 = vand.u32 4294901760, %v2990_v24  ;;  %v17616_v27 = vand.u32 4294901760, %v17615_v62  ;;  %v7549_v40 = vpop.f32.mrb[4].mxu1 }
 0x1b9   :  { %v2997_v8 = vsub.f32 %v17613_v58, %v17614_v28  ;;  %v17617_v18 = vand.u32 4294901760, %v12988_v42  ;;  %v17618_v55 = vand.u32 4294901760, %v12990_v7  ;;  %v9654_v34 = vpack.c.bf16 %v3103_v16, %v3096_v31  ;;  %v7550_v42 = vpop.f32.mrb[5].mxu1  ;;  %9653 = vmatpush3.bf16.msra.mxu1 %v9652_v1 }
 0x1ba   :  { %v3004_v38 = vsub.f32 %v17615_v62, %v17616_v27  ;;  %v3110_v26 = vand.u32 4294901760, %v3109_v17  ;;  %v3117_v52 = vand.u32 4294901760, %v3116_v54  ;;  %9611 = vmatprep.subr.bf16.mxu0 %v13273_v63  ;;  %v17619_v6 = vand.u32 4294901760, %v12992_v57 }
 0x1bb   :  { %v13286_v22 = vpack.c.bf16 %v17618_v55, %v17617_v18  ;;  %v17620_v24 = vand.u32 4294901760, %v12997_v51  ;;  %vm2744_vm7 = vcmp.eq.s32.totalorder %v12274_v60, %v17621_v23  ;;  %v7551_v30 = vadd.f32 %v7550_v42, %v7549_v40  ;;  %9655 = vmatprep.subr.bf16.mxu1 %v9654_v34  ;;  %v7514_v55 = vpop.f32.mrb[4].mxu0  ;;  %v17643_v42 = vld [vmem:[#allocation27_spill] sm:$0xff]  ;;  %v13407_v23 = vld [vmem:[#allocation2 + $0x4f8] sm:$0xff] }
 0x1bc   :  { %v9656_v7 = vpack.c.bf16 %v2991_v61, %v2984_v4  ;;  %v2998_v32 = vand.u32 4294901760, %v2997_v8  ;;  %v3005_v31 = vand.u32 4294901760, %v3004_v38  ;;  %v17622_v16 = vand.u32 4294901760, %v13023_v3  ;;  %v7515_v34 = vpop.f32.mrb[5].mxu0  ;;  %17672 = vst [vmem:[#allocation27_spill] sm:$0xff] %v13399_v53 }
 0x1bd   :  { %v13293_v20 = vpack.c.bf16 %v17620_v24, %v17619_v6  ;;  %9613 = vmatpush3.bf16.msra.mxu0 %v13286_v22  ;;  %v17623_v57 = vand.u32 4294901760, %v13036_v21  ;;  %v9658_v51 = vpack.c.bf16 %v3117_v52, %v3110_v26  ;;  %v17625_v54 = vand.u32 4294901760, %v13038_v35  ;;  %v17638_v52 = vld [vmem:[#allocation23_spill] sm:$0xff]  ;;  %v17641_v24 = vld [vmem:[#allocation25_spill] sm:$0xff] }
 0x1be   :  { %v17626_v29 = vand.u32 4294901760, %v13040_v13  ;;  %v17628_v4 = vmov 0.0   ;;  %9657 = vmatpush3.bf16.msra.mxu1 %v9656_v7  ;;  %v9660_v3 = vpack.c.bf16 %v3005_v31, %v2998_v32  ;;  %v17629_v21 = vand.u32 4294901760, %v13077_v11  ;;  %v17632_v13 = vld [vmem:[#allocation8_spill] sm:$0xff] }
 0x1bf   :  { %v13302_v17 = vpack.c.bf16 %v17623_v57, %v17622_v16  ;;  %9615 = vmatprep.subr.bf16.mxu0 %v13293_v20  ;;  %v7302_v61 = vsel %vm2744_vm7, 1.0, %v17628_v4  ;;  %9659 = vmatprep.subr.bf16.mxu1 %v9658_v51  ;;  %v17630_v28 = vand.u32 4294901760, %v13079_v14  ;;  %v17633_v27 = vand.u32 4294901760, %v17632_v13  ;;  %v17636_v11 = vld [vmem:[#allocation12_spill] sm:$0xff]  ;;  %v17646_v57 = vld [vmem:[#allocation38_spill] sm:$0xff]  ;;  %v17653_v13 = vld [vmem:[#allocation41_spill] sm:$0xff] }
 0x1c0   :  { %v13309_v1 = vpack.c.bf16 %v17626_v29, %v17625_v54  ;;  %v13322_v35 = vsub.f32 %v7302_v61, %v7302_v61  ;;  %v17634_v38 = vand.u32 4294901760, %v13100_v19  ;;  %v7516_v26 = vadd.f32 %v7515_v34, %v7514_v55  ;;  %v17648_v54 = vld [vmem:[#allocation33_spill] sm:$0xff]  ;;  %v17650_v61 = vld [vmem:[#allocation34_spill] sm:$0xff]  ;;  %v17656_v34 = vld [vmem:[#allocation44_spill] sm:$0xff]  ;;  %17673 = vst [vmem:[#allocation38_spill] sm:$0xff] %v13405_v49 }
 0x1c1   :  { %17624 = vst [vmem:[#allocation31_spill] sm:$0xff] %v13302_v17  ;;  %9617 = vmatpush3.bf16.msra.mxu0 %v13302_v17  ;;  %v13320_v8 = vpack.c.bf16 %v17630_v28, %v17629_v21  ;;  %v17637_v14 = vand.u32 4294901760, %v17636_v11  ;;  %v17639_v40 = vand.u32 4294901760, %v17638_v52  ;;  %v17642_v19 = vand.u32 4294901760, %v17641_v24  ;;  %v17655_v55 = vld [vmem:[#allocation13_spill] sm:$0xff]  ;;  %v17657_v11 = vld [vmem:[#allocation16_spill] sm:$0xff] }
 0x1c2   :  { %17627 = vst [vmem:[#allocation36_spill] sm:$0xff] %v13309_v1  ;;  %9619 = vmatprep.subr.bf16.mxu0 %v13309_v1  ;;  %v13329_v18 = vpack.c.bf16 %v17634_v38, %v17633_v27  ;;  %9661 = vmatpush3.bf16.msra.mxu1 %v9660_v3  ;;  %v17644_v7 = vand.u32 4294901760, %v17643_v42  ;;  %v16740_v31 = vand.u32 4294901760, %v13322_v35  ;;  %v870_v16 = vadd.f32 %v7516_v26, %v13183_v43  ;;  %v17654_v27 = vld [vmem:[#allocation42_spill] sm:$0xff]  ;;  %v17660_v24 = vld [vmem:[#allocation17_spill] sm:$0xff] }
 0x1c3   :  { %17631 = vst [vmem:[#allocation35_spill] sm:$0xff] %v13320_v8  ;;  %9695 = vmatprep.subr.bf16.mxu1 %v13089_v5  ;;  %v13337_v6 = vpack.c.bf16 %v17639_v40, %v17637_v14  ;;  %v17647_v51 = vand.u32 4294901760, %v17646_v57  ;;  %v17649_v29 = vand.u32 4294901760, %v17648_v54  ;;  %v17651_v3 = vand.u32 4294901760, %v17650_v61  ;;  %v17658_v14 = vld [vmem:[#allocation45_spill] sm:$0xff]  ;;  %v17659_v40 = vld [vmem:[#allocation15_spill] sm:$0xff] }
 0x1c4   :  { %17635 = vst [vmem:[#allocation37_spill] sm:$0xff] %v13329_v18  ;;  %v13344_v32 = vpack.c.bf16 %v17644_v7, %v17642_v19  ;;  %v13363_v43 = vadd.f32 %v7551_v30, %v870_v16  ;;  %v2888_v28 = vsub.f32 %v13322_v35, %v16740_v31  ;;  %v9662_v38 = vpack.c.bf16 %v17654_v27, %v17653_v13  ;;  %v17661_v42 = vld [vmem:[#allocation18_spill] sm:$0xff]  ;;  %v17664_v54 = vld [vmem:[#allocation9_spill] sm:$0xff] }
 0x1c5   :  { %9621 = vmatpush3.bf16.msra.mxu0 %v13320_v8  ;;  %17640 = vst [vmem:[#allocation8_spill] sm:$0xff] %v13337_v6  ;;  %7305 = vmatmul.mubr.msk.f32.vlgmr.msra.gmra.mrb[18].mxu1 %vm2744_vm7, %v17121_v15  ;;  %v13361_v21 = vpack.c.bf16 %v17651_v3, %v17649_v29  ;;  %v9664_v26 = vpack.c.bf16 %v17656_v34, %v17655_v55  ;;  %v17662_v7 = vld [vmem:[#allocation14_spill] sm:$0xff]  ;;  %17674 = vst [vmem:[#allocation33_spill] sm:$0xff] %v13407_v23 }
 0x1c6   :  { %9623 = vmatprep.subr.bf16.mxu0 %v13329_v18  ;;  %17645 = vst [vmem:[#allocation12_spill] sm:$0xff] %v13344_v32  ;;  %9697 = vmatpush3.bf16.msra.mxu1 %v13190_v47  ;;  %v2889_v30 = vand.u32 4294901760, %v2888_v28  ;;  %v9666_v52 = vpack.c.bf16 %v17658_v14, %v17657_v11  ;;  %v9668_v19 = vpack.c.bf16 %v17660_v24, %v17659_v40  ;;  %v17665_v61 = vld [vmem:[#allocation26_spill] sm:$0xff]  ;;  %v17667_v28 = vld [vmem:[#allocation28_spill] sm:$0xff] }
 0x1c7   :  { %3364 = vmatprep.mubr.f32.mxu1 %v17647_v51  ;;  %9699 = vmatprep.subr.bf16.mxu1 %v13217_v48  ;;  %17652 = vst [vmem:[#allocation23_spill] sm:$0xff] %v13361_v21  ;;  %v9670_v16 = vpack.c.bf16 %v17662_v7, %v17661_v42  ;;  %v17663_v51 = vld [vmem:[#allocation47_spill] sm:$0xff] }
 0x1c8   :  { %v9672_v29 = vpack.c.bf16 %v17664_v54, %v17663_v51 }
 0x1c9   :  { %9625 = vmatpush3.bf16.msra.mxu0 %v13337_v6 }
 0x1ca   :  { %9627 = vmatprep.subr.bf16.mxu0 %v13344_v32  ;;  %9701 = vmatpush3.bf16.msra.mxu1 %v13223_v12 }
 0x1cb   :  { %9703 = vmatprep.subr.bf16.mxu1 %v13247_v25 }
 0x1cd   :  { %9629 = vmatpush3.bf16.msra.mxu0 %v13361_v21 }
 0x1ce   :  { %9663 = vmatprep.subr.bf16.mxu0 %v9662_v38  ;;  %9705 = vmatpush3.bf16.msra.mxu1 %v13253_v33  ;;  %v17668_v38 = vld [vmem:[#allocation24_spill] sm:$0xff] }
 0x1cf   :  { %9707 = vmatprep.subr.bf16.mxu1 %v13273_v63 }
 0x1d0   :  { %2890 = vmatmul.mubr.f32.vlgmr.msra.gmra.mrb[18].mxu0 %v2889_v30  ;;  %v13395_v30 = vld [vmem:[#allocation2 + $0x460] sm:$0xff] }
 0x1d1   :  { %9665 = vmatpush3.bf16.msra.mxu0 %v9664_v26  ;;  %3257 = vmatprep.mubr.f32.mxu0 %v17646_v57  ;;  %v17666_v57 = vld [vmem:[#allocation32_spill] sm:$0xff]  ;;  %v9676_v26 = vpack.c.bf16 %v17668_v38, %v17667_v28  ;;  %17669 = vst [vmem:[#allocation25_spill] sm:$0xff] %v13395_v30 }
 0x1d2   :  { %9667 = vmatprep.subr.bf16.mxu0 %v9666_v52  ;;  %9709 = vmatpush3.bf16.msra.mxu1 %v13286_v22  ;;  %v9674_v3 = vpack.c.bf16 %v17666_v57, %v17665_v61  ;;  %v7619_v52 = vpop.f32.mrb[6].mxu1 }
 0x1d3   :  { %9711 = vmatprep.subr.bf16.mxu1 %v13293_v20 }
 0x1d5   :  { %9669 = vmatpush3.bf16.msra.mxu0 %v9668_v19  ;;  %v17670_v19 = vld [vmem:[#allocation46_spill] sm:$0xff] }
 0x1d6   :  { %9671 = vmatprep.subr.bf16.mxu0 %v9670_v16  ;;  %9713 = vmatpush3.bf16.msra.mxu1 %v13302_v17  ;;  %v9678_v36 = vpack.c.bf16 %v17671_v50, %v17670_v19  ;;  %v7620_v16 = vpop.f32.mrb[7].mxu1  ;;  %v13432_v17 = vld [vmem:[#allocation2 + $0x488] sm:$0xff] }
 0x1d7   :  { %9715 = vmatprep.subr.bf16.mxu1 %v13309_v1  ;;  %v13401_v31 = vadd.f32 %v7620_v16, %v7619_v52  ;;  %v9682_v52 = vpack.c.bf16 %v13124_v41, %v13119_v37  ;;  %v13415_v16 = vld [vmem:[#allocation2 + $0x470] sm:$0xff]  ;;  %v13434_v41 = vld [vmem:[#allocation2 + $0x400] sm:$0xff]  ;;  %v17678_v1 = vand.u32 4294901760, %v13399_v53  ;;  %v13448_v37 = vld [vmem:[#allocation2 + $0x408] sm:$0xff] }
 0x1d8   :  { %17675 = vst [vmem:[#allocation34_spill] sm:$0xff] %v13415_v16 }
 0x1d9   :  { %9673 = vmatpush3.bf16.msra.mxu0 %v9672_v29  ;;  %v13419_v29 = vld [vmem:[#allocation2 + $0x480] sm:$0xff] }
 0x1da   :  { %9675 = vmatprep.subr.bf16.mxu0 %v9674_v3  ;;  %9717 = vmatpush3.bf16.msra.mxu1 %v13320_v8  ;;  %v9680_v3 = vpack.c.bf16 %v13114_v45, %v13109_v46  ;;  %v13417_v8 = vld [vmem:[#allocation2 + $0x478] sm:$0xff] }
 0x1db   :  { %9719 = vmatprep.subr.bf16.mxu1 %v13329_v18  ;;  %17676 = vst [vmem:[#allocation41_spill] sm:$0xff] %v13417_v8  ;;  %v9684_v18 = vpack.c.bf16 %v13160_v0, %v13155_v44  ;;  %v9688_v44 = vpack.c.bf16 %v12705_v56, %v12697_v2  ;;  %v17679_v0 = vand.u32 4294901760, %v13405_v49  ;;  %v10574_v56 = vld [vmem:[%s16457_s0] sm:$0xff] }
 0x1dd   :  { %9677 = vmatpush3.bf16.msra.mxu0 %v9676_v26  ;;  %v13439_v26 = vsub.f32 %v13399_v53, %v17678_v1  ;;  %v13450_v1 = vld [vmem:[#allocation2 + $0x490] sm:$0xff]  ;;  %v13452_v53 = vld [vmem:[#allocation2 + $0x498] sm:$0xff] }
 0x1de   :  { %9679 = vmatprep.subr.bf16.mxu0 %v9678_v36  ;;  %9721 = vmatpush3.bf16.msra.mxu1 %v13337_v6  ;;  %v17677_v36 = vand.u32 4294901760, %v13395_v30  ;;  %v17680_v6 = vand.u32 4294901760, %v13407_v23 }
 0x1df   :  { %9723 = vmatprep.subr.bf16.mxu1 %v13344_v32  ;;  %v7584_v32 = vpop.f32.mrb[6].mxu0 }
 0x1e0   :  { %v13429_v4 = vsub.f32 %v13395_v30, %v17677_v36  ;;  %v9686_v36 = vpack.c.bf16 %v13180_v59, %v13175_v9  ;;  %v10631_v30 = vmov 3   ;;  %v7585_v2 = vpop.f32.mrb[7].mxu0  ;;  %v9690_v59 = vpack.c.bf16 %v12727_v39, %v12722_v10 }
 0x1e1   :  { %9681 = vmatpush3.bf16.msra.mxu0 %v9680_v3  ;;  %10571 = vset.pattern.permute.xlu1 %v10631_v30  ;;  %v13462_v3 = vsub.f32 %v13407_v23, %v17680_v6  ;;  %v7586_v6 = vadd.f32 %v7585_v2, %v7584_v32  ;;  %v16760_v23 = vand.u32 4294901760, %v13439_v26  ;;  %v17683_v10 = vand.u32 4294901760, %v13419_v29 }
 0x1e2   :  { %9683 = vmatprep.subr.bf16.mxu0 %v9682_v52  ;;  %v13457_v52 = vsub.f32 %v13405_v49, %v17679_v0  ;;  %5454 = vperm.xlu1 %10571, %v10574_v56   ;;  %v16762_v0 = vand.u32 4294901760, %v13432_v17  ;;  %v16761_v9 = vand.u32 4294901760, %v13429_v4  ;;  %v17685_v49 = vand.u32 4294901760, %v13322_v35 }
 0x1e3   :  { %10572 = vset.pattern.permute.xlu0 %v10631_v30  ;;  %9725 = vmatpush3.bf16.msra.mxu1 %v13361_v21  ;;  %v17681_v30 = vand.u32 4294901760, %v13415_v16  ;;  %v17682_v21 = vand.u32 4294901760, %v13417_v8  ;;  %v13488_v32 = vsub.f32 %v13419_v29, %v17683_v10 }
 0x1e4   :  { %9759 = vmatprep.subr.bf16.mxu1 %v13089_v5  ;;  %v16765_v5 = vand.u32 4294901760, %v13448_v37  ;;  %v13502_v10 = vpack.c.bf16 %v16760_v23, %v16761_v9  ;;  %v13522_v23 = vld [vmem:[#allocation2 + $0x418] sm:$0xff]  ;;  %v13524_v9 = vld [vmem:[#allocation2 + $0x4a0] sm:$0xff] }
 0x1e5   :  { %9685 = vmatpush3.bf16.msra.mxu0 %v9684_v18  ;;  %v13478_v56 = vsub.f32 %v13415_v16, %v17681_v30  ;;  %v13483_v39 = vsub.f32 %v13417_v8, %v17682_v21  ;;  %17684 = vst [vmem:[#allocation42_spill] sm:$0xff] %v13488_v32  ;;  %v1086_v30 = vadd.f32 %v7586_v6, %v13363_v43  ;;  %v16764_v21 = vand.u32 4294901760, %v13457_v52  ;;  %v13516_v6 = vld [vmem:[#allocation2 + $0x410] sm:$0xff] }
 0x1e6   :  { %9687 = vmatprep.subr.bf16.mxu0 %v9686_v36  ;;  %3368 = vmatmul.mubr.f32.vlgmr.msra.gmra.mrb[20].mxu1 %v17685_v49  ;;  %v16763_v36 = vand.u32 4294901760, %v13462_v3  ;;  %17686 = vst [vmem:[#allocation13_spill] sm:$0xff] %v13502_v10  ;;  %v9692_v49 = vpack.c.bf16 %v17615_v62, %v17613_v58  ;;  %v13514_v43 = vsub.f32 %v13432_v17, %v16762_v0  ;;  %v17692_v0 = vand.u32 4294901760, %v13434_v41 }
 0x1e7   :  { %9761 = vmatpush3.bf16.msra.mxu1 %v13190_v47  ;;  %7308 = vmatprep.mubr.msk.f32.mxu1 %vm2745_vm6, %v17121_v15  ;;  %v13520_v47 = vadd.f32 %v13401_v31, %v1086_v30  ;;  %v13547_v58 = vsub.f32 %v13448_v37, %v16765_v5  ;;  %v17702_v30 = vand.u32 4294901760, %v17655_v55  ;;  %v17707_v55 = vand.u32 4294901760, %v17660_v24 }
 0x1e8   :  { %17688 = vst [vmem:[#allocation44_spill] sm:$0xff] %v13514_v43  ;;  %9763 = vmatprep.subr.bf16.mxu1 %v13217_v48  ;;  %v13532_v62 = vpack.c.bf16 %v16763_v36, %v16764_v21  ;;  %v17691_v48 = vand.u32 4294901760, %v17654_v27  ;;  %v13542_v18 = vsub.f32 %v13434_v41, %v17692_v0  ;;  %v13549_v36 = vld [vmem:[#allocation2 + $0x4a8] sm:$0xff]  ;;  %v17697_v27 = vand.u32 4294901760, %v13452_v53 }
 0x1e9   :  { %9689 = vmatpush3.bf16.msra.mxu0 %v9688_v44  ;;  %v17690_v44 = vand.u32 4294901760, %v17653_v13  ;;  %17694 = vst [vmem:[#allocation15_spill] sm:$0xff] %v13547_v58  ;;  %v17700_v21 = vand.u32 4294901760, %v13483_v39  ;;  %v16767_v10 = vand.u32 4294901760, %v13514_v43  ;;  %v17704_v0 = vand.u32 4294901760, %v17657_v11 }
 0x1ea   :  { %17689 = vst [vmem:[#allocation16_spill] sm:$0xff] %v13532_v62  ;;  %9691 = vmatprep.subr.bf16.mxu0 %v9690_v59  ;;  %17693 = vst [vmem:[#allocation45_spill] sm:$0xff] %v13542_v18  ;;  %v17695_v59 = vand.u32 4294901760, %v13450_v1  ;;  %v16768_v8 = vand.u32 4294901760, %v13549_v36  ;;  %v17711_v11 = vand.u32 4294901760, %v17664_v54  ;;  %v16771_v24 = vand.u32 4294901760, %v13542_v18 }
 0x1eb   :  { %v9726_v31 = vpack.c.bf16 %v17691_v48, %v17690_v44  ;;  %v13559_v44 = vsub.f32 %v13452_v53, %v17697_v27  ;;  %v17699_v48 = vand.u32 4294901760, %v13478_v56  ;;  %9765 = vmatpush3.bf16.msra.mxu1 %v13223_v12  ;;  %v17706_v12 = vand.u32 4294901760, %v17659_v40 }
 0x1ec   :  { %v13554_v13 = vsub.f32 %v13450_v1, %v17695_v59  ;;  %v17703_v59 = vand.u32 4294901760, %v17656_v34  ;;  %9767 = vmatprep.subr.bf16.mxu1 %v13247_v25  ;;  %v17710_v25 = vand.u32 4294901760, %v17663_v51  ;;  %v17713_v40 = vand.u32 4294901760, %v17666_v57 }
 0x1ed   :  { %17698 = vst [vmem:[#allocation18_spill] sm:$0xff] %v13559_v44  ;;  %v13566_v5 = vpack.c.bf16 %v17700_v21, %v17699_v48  ;;  %9693 = vmatpush3.bf16.msra.mxu0 %v9692_v49  ;;  %v17705_v21 = vand.u32 4294901760, %v17658_v14  ;;  %v9732_v34 = vpack.c.bf16 %v17707_v55, %v17706_v12  ;;  %v17712_v14 = vand.u32 4294901760, %v17665_v61  ;;  %v13616_v55 = vld [vmem:[#allocation2 + $0x4b0] sm:$0xff] }
 0x1ee   :  { %17696 = vst [vmem:[#allocation17_spill] sm:$0xff] %v13554_v13  ;;  %v9728_v62 = vpack.c.bf16 %v17703_v59, %v17702_v30  ;;  %v17708_v30 = vand.u32 4294901760, %v17661_v42  ;;  %v17709_v59 = vand.u32 4294901760, %v17662_v7  ;;  %9727 = vmatprep.subr.bf16.mxu0 %v9726_v31  ;;  %v9736_v49 = vpack.c.bf16 %v17711_v11, %v17710_v25  ;;  %v13602_v7 = vld [vmem:[#allocation2 + $0x420] sm:$0xff] }
 0x1ef   :  { %17701 = vst [vmem:[#allocation14_spill] sm:$0xff] %v13566_v5  ;;  %v9730_v48 = vpack.c.bf16 %v17705_v21, %v17704_v0  ;;  %v13598_v0 = vpack.c.bf16 %v17713_v40, %v17712_v14  ;;  %v16770_v42 = vand.u32 4294901760, %v13547_v58  ;;  %v13604_v21 = vld [vmem:[#allocation2 + $0x428] sm:$0xff]  ;;  %v17714_v31 = vand.u32 4294901760, %v13488_v32  ;;  %9769 = vmatpush3.bf16.msra.mxu1 %v13253_v33  ;;  %v17743_v5 = vld [vmem:[#allocation50_spill] sm:$0xff] }
 0x1f0   :  { %v9734_v27 = vpack.c.bf16 %v17709_v59, %v17708_v30  ;;  %v16769_v54 = vand.u32 4294901760, %v13554_v13  ;;  %v16772_v61 = vand.u32 4294901760, %v13559_v44  ;;  %v17715_v57 = vand.u32 4294901760, %v13516_v6  ;;  %3260 = vmatmul.mubr.f32.vlgmr.msra.gmra.mrb[20].mxu0 %v13322_v35  ;;  %9771 = vmatprep.subr.bf16.mxu1 %v13273_v63 }
 0x1f1   :  { %v3916_v51 = vsub.f32 %v13488_v32, %v17714_v31  ;;  %v3923_v30 = vsub.f32 %v13514_v43, %v16767_v10  ;;  %v17717_v59 = vand.u32 4294901760, %v13522_v23  ;;  %v17719_v11 = vand.u32 4294901760, %v13524_v9  ;;  %9729 = vmatpush3.bf16.msra.mxu0 %v9728_v62  ;;  %7306 = vmatprep.mubr.msk.f32.mxu0 %vm2745_vm6, %v17121_v15 }
 0x1f2   :  { %v13614_v12 = vsub.f32 %v13516_v6, %v17715_v57  ;;  %v17721_v33 = vand.u32 4294901760, %v17667_v28  ;;  %v17722_v35 = vand.u32 4294901760, %v17668_v38  ;;  %v13646_v31 = vsub.f32 %v13549_v36, %v16768_v8  ;;  %9731 = vmatprep.subr.bf16.mxu0 %v9730_v48 }
 0x1f3   :  { %v13626_v25 = vsub.f32 %v13522_v23, %v17717_v59  ;;  %v13631_v14 = vsub.f32 %v13524_v9, %v17719_v11  ;;  %v16773_v57 = vand.u32 4294901760, %v13602_v7  ;;  %v16774_v62 = vand.u32 4294901760, %v13604_v21  ;;  %9773 = vmatpush3.bf16.msra.mxu1 %v13286_v22 }
 0x1f4   :  { %17716 = vst [vmem:[#allocation47_spill] sm:$0xff] %v13614_v12  ;;  %v13641_v40 = vpack.c.bf16 %v17722_v35, %v17721_v33  ;;  %17723 = vst [vmem:[#allocation32_spill] sm:$0xff] %v13646_v31  ;;  %v17724_v59 = vand.u32 4294901760, %v17670_v19  ;;  %v17725_v28 = vand.u32 4294901760, %v17671_v50  ;;  %v17726_v38 = vand.u32 4294901760, %v13109_v46  ;;  %v13677_v19 = vld [vmem:[#allocation2 + $0x4b8] sm:$0xff]  ;;  %9775 = vmatprep.subr.bf16.mxu1 %v13293_v20 }
 0x1f5   :  { %17718 = vst [vmem:[#allocation9_spill] sm:$0xff] %v13626_v25  ;;  %17720 = vst [vmem:[#allocation26_spill] sm:$0xff] %v13631_v14  ;;  %v17727_v33 = vand.u32 4294901760, %v13114_v45  ;;  %v3804_v10 = vsub.f32 %v13542_v18, %v16771_v24  ;;  %v16775_v8 = vand.u32 4294901760, %v13616_v55  ;;  %v3811_v63 = vsub.f32 %v13547_v58, %v16770_v42  ;;  %9733 = vmatpush3.bf16.msra.mxu0 %v9732_v34  ;;  %v17730_v42 = vld [vmem:[#allocation11_spill] sm:$0xff]  ;;  %v17734_v20 = vld [vmem:[#allocation48_spill] sm:$0xff] }
 0x1f6   :  { %v13655_v11 = vpack.c.bf16 %v17725_v28, %v17724_v59  ;;  %v3930_v50 = vsub.f32 %v13554_v13, %v16769_v54  ;;  %v3937_v45 = vsub.f32 %v13559_v44, %v16772_v61  ;;  %v3917_v48 = vand.u32 4294901760, %v3916_v51  ;;  %9735 = vmatprep.subr.bf16.mxu0 %v9734_v27  ;;  %v13712_v46 = vld [vmem:[#allocation2 + $0x430] sm:$0xff]  ;;  %v13766_v18 = vld [vmem:[#allocation2 + $0x448] sm:$0xff] }
 0x1f7   :  { %v13661_v35 = vpack.c.bf16 %v17727_v33, %v17726_v38  ;;  %v3924_v59 = vand.u32 4294901760, %v3923_v30  ;;  %v17728_v33 = vld [vmem:[#allocation10_spill] sm:$0xff]  ;;  %v17731_v24 = vand.u32 4294901760, %v17730_v42  ;;  %v13693_v22 = vsub.f32 %v13602_v7, %v16773_v57  ;;  %v17736_v30 = vld [vmem:[#allocation49_spill] sm:$0xff] }
 0x1f8   :  { %v17729_v54 = vand.u32 4294901760, %v17728_v33  ;;  %v13698_v51 = vsub.f32 %v13604_v21, %v16774_v62  ;;  %v17735_v34 = vand.u32 4294901760, %v17734_v20  ;;  %v17737_v33 = vand.u32 4294901760, %v17736_v30  ;;  %v13717_v30 = vld [vmem:[#allocation2 + $0x438] sm:$0xff] }
 0x1f9   :  { %17732 = vst [vmem:[#allocation28_spill] sm:$0xff] %v13693_v22  ;;  %v13710_v57 = vsub.f32 %v13616_v55, %v16775_v8  ;;  %v3812_v38 = vand.u32 4294901760, %v3811_v63  ;;  %v3931_v62 = vand.u32 4294901760, %v3930_v50  ;;  %v3938_v28 = vand.u32 4294901760, %v3937_v45  ;;  %9737 = vmatpush3.bf16.msra.mxu0 %v9736_v49 }
 0x1fa   :  { %v13687_v61 = vpack.c.bf16 %v17731_v24, %v17729_v54  ;;  %17733 = vst [vmem:[#allocation24_spill] sm:$0xff] %v13698_v51  ;;  %v13704_v42 = vpack.c.bf16 %v17737_v33, %v17735_v34  ;;  %v3805_v24 = vand.u32 4294901760, %v3804_v10  ;;  %v17739_v27 = vand.u32 4294901760, %v13614_v12  ;;  %v13719_v34 = vld [vmem:[#allocation2 + $0x4c0] sm:$0xff]  ;;  %v17741_v54 = vld [vmem:[#allocation30_spill] sm:$0xff]  ;;  %9739 = vmatprep.subr.bf16.mxu0 %v13598_v0 }
 0x1fb   :  { %17738 = vst [vmem:[#allocation46_spill] sm:$0xff] %v13710_v57  ;;  %v17740_v10 = vld [vmem:[#allocation31_spill] sm:$0xff]  ;;  %v13722_v33 = vpack.c.bf16 %v3924_v59, %v3917_v48  ;;  %v17742_v8 = vand.u32 4294901760, %v17741_v54  ;;  %v17744_v2 = vand.u32 4294901760, %v17743_v5  ;;  %v17745_v63 = vand.u32 4294901760, %v13626_v25  ;;  %v13745_v54 = vpop.permute.xlu1 %3647 }
 0x1fc   :  { %v3818_v20 = vsub.f32 %v13614_v12, %v17739_v27  ;;  %9777 = vmatpush3.bf16.msra.mxu1 %v17740_v10  ;;  %v17746_v45 = vand.u32 4294901760, %v13631_v14  ;;  %v13736_v12 = vld [vmem:[#allocation2 + $0x4c8] sm:$0xff]  ;;  %v17749_v48 = vand.u32 4294901760, %v13646_v31  ;;  %v17750_v49 = vand.u32 4294901760, %v13677_v19 }
 0x1fd   :  { %v13728_v44 = vpack.c.bf16 %v17744_v2, %v17742_v8  ;;  %v3825_v50 = vsub.f32 %v13626_v25, %v17745_v63  ;;  %17747 = vst [vmem:[#allocation29_spill] sm:$0xff] %v13736_v12  ;;  %v17748_v10 = vld [vmem:[#allocation36_spill] sm:$0xff]  ;;  %v7689_v63 = vpop.f32.mrb[8].mxu1  ;;  %v16799_v8 = vand.u32 4294901760, %v13719_v34  ;;  %v13756_v5 = vpack.c.bf16 %v3812_v38, %v3805_v24  ;;  %9741 = vmatpush3.bf16.msra.mxu0 %v13641_v40  ;;  %v13789_v40 = vld [vmem:[#allocation2 + $0x4d8] sm:$0xff] }
 0x1fe   :  { %v3944_v27 = vsub.f32 %v13631_v14, %v17746_v45  ;;  %9779 = vmatprep.subr.bf16.mxu1 %v17748_v10  ;;  %v3951_v59 = vsub.f32 %v13646_v31, %v17749_v48  ;;  %v13752_v10 = vsub.f32 %v13677_v19, %v17750_v49  ;;  %v7690_v31 = vpop.f32.mrb[9].mxu1  ;;  %v13758_v2 = vpack.c.bf16 %v3938_v28, %v3931_v62  ;;  %v17752_v45 = vld [vmem:[#allocation35_spill] sm:$0xff]  ;;  %v17754_v48 = vld [vmem:[#allocation20_spill] sm:$0xff]  ;;  %v17755_v62 = vld [vmem:[#allocation37_spill] sm:$0xff] }
 0x1ff   :  { %v3819_v14 = vand.u32 4294901760, %v3818_v20  ;;  %v16804_v25 = vand.u32 4294901760, %v13736_v12  ;;  %v13761_v0 = vadd.f32 %v7690_v31, %v7689_v63  ;;  %v3826_v13 = vand.u32 4294901760, %v3825_v50  ;;  %v13764_v49 = vld [vmem:[#allocation2 + $0x440] sm:$0xff]  ;;  %v13787_v63 = vld [vmem:[#allocation2 + $0x4d0] sm:$0xff]  ;;  %9743 = vmatprep.subr.bf16.mxu0 %v13655_v11 }
 0x200   :  { %17751 = vst [vmem:[#allocation10_spill] sm:$0xff] %v13752_v10  ;;  %9781 = vmatpush3.bf16.msra.mxu1 %v17752_v45  ;;  %v3945_v58 = vand.u32 4294901760, %v3944_v27  ;;  %17753 = vst [vmem:[#allocation11_spill] sm:$0xff] %v13764_v49  ;;  %vm3650_vm8 = vcmp.eq.s32.totalorder %v13745_v54, %v17754_v48  ;;  %v3952_v28 = vand.u32 4294901760, %v3951_v59  ;;  %v17756_v38 = vand.u32 4294901760, %v13693_v22 }
 0x201   :  { %9783 = vmatprep.subr.bf16.mxu1 %v17755_v62  ;;  %v17757_v24 = vand.u32 4294901760, %v13698_v51  ;;  %v17758_v50 = vand.u32 4294901760, %v13712_v46  ;;  %17760 = vst [vmem:[#allocation49_spill] sm:$0xff] %v13787_v63  ;;  %v17761_v59 = vand.u32 4294901760, %v13710_v57  ;;  %v13811_v11 = vsub.f32 %v13736_v12, %v16804_v25  ;;  %9745 = vmatpush3.bf16.msra.mxu0 %v13661_v35 }
 0x202   :  { %v13775_v31 = vsub.f32 %v13693_v22, %v17756_v38  ;;  %v17762_v38 = vand.u32 4294901760, %v13717_v30  ;;  %v17766_v62 = vmov 0.0   ;;  %v13820_v22 = vpack.c.bf16 %v3826_v13, %v3819_v14  ;;  %v13837_v14 = vld [vmem:[#allocation2 + $0x450] sm:$0xff]  ;;  %9747 = vmatprep.subr.bf16.mxu0 %v13687_v61 }
 0x203   :  { %v13780_v20 = vsub.f32 %v13698_v51, %v17757_v24  ;;  %v13785_v27 = vsub.f32 %v13712_v46, %v17758_v50  ;;  %v13795_v45 = vsub.f32 %v13710_v57, %v17761_v59  ;;  %v13806_v50 = vsub.f32 %v13719_v34, %v16799_v8  ;;  %17765 = vst [vmem:[#allocation50_spill] sm:$0xff] %v13811_v11  ;;  %v17767_v51 = vld [vmem:[#allocation8_spill] sm:$0xff] }
 0x204   :  { %v13801_v24 = vsub.f32 %v13717_v30, %v17762_v38  ;;  %v7311_v38 = vsel %vm3650_vm8, 1.0, %v17766_v62  ;;  %9785 = vmatpush3.bf16.msra.mxu1 %v17767_v51  ;;  %v17768_v8 = vand.u32 4294901760, %v13419_v29  ;;  %v17769_v43 = vand.u32 4294901760, %v13432_v17  ;;  %v17770_v57 = vld [vmem:[#allocation12_spill] sm:$0xff]  ;;  %v13839_v17 = vld [vmem:[#allocation2 + $0x458] sm:$0xff] }
 0x205   :  { %17759 = vst [vmem:[#allocation48_spill] sm:$0xff] %v13785_v27  ;;  %17764 = vst [vmem:[#allocation30_spill] sm:$0xff] %v13806_v50  ;;  %9787 = vmatprep.subr.bf16.mxu1 %v17770_v57  ;;  %v13832_v16 = vpack.c.bf16 %v3952_v28, %v3945_v58  ;;  %v3833_v51 = vand.u32 4294901760, %v13775_v31  ;;  %v3840_v13 = vand.u32 4294901760, %v13780_v20  ;;  %v13849_v28 = vld [vmem:[#allocation2 + $0x4e8] sm:$0xff]  ;;  %v13851_v31 = vsub.f32 %v7311_v38, %v7311_v38  ;;  %v7654_v20 = vpop.f32.mrb[8].mxu0 }
 0x206   :  { %17763 = vst [vmem:[#allocation31_spill] sm:$0xff] %v13801_v24  ;;  %v13826_v32 = vpack.c.bf16 %v17769_v43, %v17768_v8  ;;  %v17771_v43 = vand.u32 4294901760, %v13752_v10  ;;  %v13847_v8 = vld [vmem:[#allocation2 + $0x4e0] sm:$0xff]  ;;  %17772 = vst [vmem:[#allocation36_spill] sm:$0xff] %v13849_v28  ;;  %v3959_v29 = vand.u32 4294901760, %v13795_v45  ;;  %v17773_v61 = vand.u32 4294901760, %v13764_v49  ;;  %9749 = vmatpush3.bf16.msra.mxu0 %v13704_v42 }
 0x207   :  { %v7655_v57 = vpop.f32.mrb[9].mxu0  ;;  %v17776_v38 = vand.u32 4294901760, %v13787_v63  ;;  %v17778_v45 = vand.u32 4294901760, %v13789_v40  ;;  %9751 = vmatprep.subr.bf16.mxu0 %v13728_v44  ;;  %v17784_v44 = vand.u32 4294901760, %v13811_v11 }
 0x208   :  { %v3965_v35 = vsub.f32 %v13752_v10, %v17771_v43  ;;  %v13858_v25 = vsub.f32 %v13764_v49, %v17773_v61  ;;  %v17774_v43 = vand.u32 4294901760, %v13766_v18  ;;  %v17775_v10 = vld [vmem:[#allocation23_spill] sm:$0xff]  ;;  %v7656_v12 = vadd.f32 %v7655_v57, %v7654_v20 }
 0x209   :  { %9789 = vmatpush3.bf16.msra.mxu1 %v17775_v10  ;;  %v13869_v62 = vsub.f32 %v13787_v63, %v17776_v38  ;;  %v13874_v59 = vsub.f32 %v13789_v40, %v17778_v45  ;;  %v17780_v10 = vand.u32 4294901760, %v13785_v27  ;;  %v17781_v61 = vand.u32 4294901760, %v13801_v24 }
 0x20a   :  { %v13863_v58 = vsub.f32 %v13766_v18, %v17774_v43  ;;  %9823 = vmatprep.subr.bf16.mxu1 %v13722_v33  ;;  %v3966_v45 = vand.u32 4294901760, %v3965_v35  ;;  %v17782_v57 = vand.u32 4294901760, %v13806_v50  ;;  %v1456_v20 = vadd.f32 %v7656_v12, %v13520_v47 }
 0x20b   :  { %17777 = vst [vmem:[#allocation35_spill] sm:$0xff] %v13869_v62  ;;  %17779 = vst [vmem:[#allocation37_spill] sm:$0xff] %v13874_v59  ;;  %v3846_v43 = vsub.f32 %v13785_v27, %v17780_v10  ;;  %v3853_v49 = vsub.f32 %v13801_v24, %v17781_v61  ;;  %v3979_v35 = vsub.f32 %v13811_v11, %v17784_v44  ;;  %v17785_v47 = vand.u32 4294901760, %v13837_v14  ;;  %v17792_v61 = vld [vmem:[#allocation40_spill] sm:$0xff] }
 0x20c   :  { %v3972_v42 = vsub.f32 %v13806_v50, %v17782_v57  ;;  %7309 = vmatmul.mubr.msk.f32.vlgmr.msra.gmra.mrb[22].mxu1 %vm2744_vm7, %v17121_v15  ;;  %v17786_v38 = vand.u32 4294901760, %v13839_v17  ;;  %v17789_v44 = vand.u32 4294901760, %v13847_v8  ;;  %v9832_v63 = vpack.c.bf16 %v3840_v13, %v3833_v51 }
 0x20d   :  { %9825 = vmatpush3.bf16.msra.mxu1 %v13756_v5  ;;  %v13909_v12 = vsub.f32 %v13837_v14, %v17785_v47  ;;  %7312 = vmatprep.mubr.msk.f32.mxu1 %vm3650_vm8, %v17121_v15  ;;  %v17788_v5 = vld [vmem:[#allocation39_spill] sm:$0xff]  ;;  %v17790_v47 = vand.u32 4294901760, %v13849_v28  ;;  %v3847_v11 = vand.u32 4294901760, %v3846_v43  ;;  %v9834_v27 = vpack.c.bf16 %v3966_v45, %v3959_v29 }
 0x20e   :  { %v13914_v50 = vsub.f32 %v13839_v17, %v17786_v38  ;;  %9753 = vmatpush3.bf16.msra.mxu0 %v17788_v5  ;;  %9827 = vmatprep.subr.bf16.mxu1 %v13758_v2  ;;  %v13925_v33 = vsub.f32 %v13847_v8, %v17789_v44  ;;  %v13933_v38 = vadd.f32 %v13761_v0, %v1456_v20  ;;  %v17793_v5 = vand.u32 4294901760, %v13434_v41  ;;  %v17800_v45 = vld [vmem:[#allocation43_spill] sm:$0xff] }
 0x20f   :  { %v13930_v57 = vsub.f32 %v13849_v28, %v17790_v47  ;;  %9755 = vmatprep.subr.bf16.mxu0 %v17792_v61  ;;  %v17794_v2 = vand.u32 4294901760, %v13448_v37  ;;  %v17795_v44 = vand.u32 4294901760, %v13851_v31  ;;  %v3854_v47 = vand.u32 4294901760, %v3853_v49 }
 0x210   :  { %17787 = vst [vmem:[#allocation8_spill] sm:$0xff] %v13914_v50  ;;  %v17796_v28 = vand.u32 4294901760, %v13858_v25  ;;  %v17797_v20 = vand.u32 4294901760, %v13863_v58  ;;  %v17798_v37 = vand.u32 4294901760, %v13869_v62  ;;  %v17799_v13 = vand.u32 4294901760, %v13874_v59 }
 0x211   :  { %17791 = vst [vmem:[#allocation12_spill] sm:$0xff] %v13930_v57  ;;  %v13940_v48 = vpack.c.bf16 %v17794_v2, %v17793_v5  ;;  %v3787_v24 = vsub.f32 %v13851_v31, %v17795_v44  ;;  %9829 = vmatpush3.bf16.msra.mxu1 %v13820_v22  ;;  %v16823_v49 = vand.u32 4294901760, %v13909_v12  ;;  %v16822_v29 = vand.u32 4294901760, %v13914_v50 }
 0x212   :  { %v3860_v0 = vsub.f32 %v13858_v25, %v17796_v28  ;;  %v3867_v51 = vsub.f32 %v13863_v58, %v17797_v20  ;;  %v3986_v41 = vsub.f32 %v13869_v62, %v17798_v37  ;;  %v3993_v43 = vsub.f32 %v13874_v59, %v17799_v13  ;;  %9757 = vmatpush3.bf16.msra.mxu0 %v17800_v45 }
 0x213   :  { %9831 = vmatprep.subr.bf16.mxu1 %v13832_v16  ;;  %v3973_v28 = vand.u32 4294901760, %v3972_v42  ;;  %v3980_v61 = vand.u32 4294901760, %v3979_v35  ;;  %v16821_v5 = vand.u32 4294901760, %v13930_v57  ;;  %9791 = vmatprep.subr.bf16.mxu0 %v13826_v32  ;;  %v17801_v2 = vand.u32 4294901760, %v13450_v1 }
 0x214   :  { %v17802_v44 = vand.u32 4294901760, %v13452_v53  ;;  %v3788_v37 = vand.u32 4294901760, %v3787_v24  ;;  %v9836_v13 = vpack.c.bf16 %v3854_v47, %v3847_v11  ;;  %v17803_v45 = vand.u32 4294901760, %v13516_v6 }
 0x215   :  { %v17804_v16 = vand.u32 4294901760, %v13522_v23  ;;  %v3861_v35 = vand.u32 4294901760, %v3860_v0  ;;  %v3868_v22 = vand.u32 4294901760, %v3867_v51  ;;  %7307 = vmatmul.mubr.msk.f32.vlgmr.msra.gmra.mrb[22].mxu0 %vm2744_vm7, %v17121_v15  ;;  %9833 = vmatpush3.bf16.msra.mxu1 %v9832_v63  ;;  %v3987_v1 = vand.u32 4294901760, %v3986_v41 }
 0x216   :  { %v13969_v20 = vpack.c.bf16 %v17802_v44, %v17801_v2  ;;  %v3994_v53 = vand.u32 4294901760, %v3993_v43  ;;  %v3874_v24 = vsub.f32 %v13909_v12, %v16823_v49  ;;  %v3881_v23 = vsub.f32 %v13914_v50, %v16822_v29  ;;  %9793 = vmatpush3.bf16.msra.mxu0 %v13940_v48  ;;  %9835 = vmatprep.subr.bf16.mxu1 %v9834_v27  ;;  %v14153_v29 = vld [vmem:[#allocation2 + $0x5e0] sm:$0xff] }
 0x217   :  { %v13975_v42 = vpack.c.bf16 %v17804_v16, %v17803_v45  ;;  %v9838_v6 = vpack.c.bf16 %v3980_v61, %v3973_v28  ;;  %v17805_v11 = vand.u32 4294901760, %v13925_v33  ;;  %v4007_v63 = vsub.f32 %v13930_v57, %v16821_v5  ;;  %3789 = vmatprep.mubr.f32.mxu0 %v3788_v37  ;;  %v14157_v49 = vld [vmem:[#allocation2 + $0x560] sm:$0xff] }
 0x218   :  { %9795 = vmatprep.subr.bf16.mxu0 %v13969_v20  ;;  %v17806_v47 = vand.u32 4294901760, %v13524_v9  ;;  %v17807_v0 = vand.u32 4294901760, %v13549_v36  ;;  %v17808_v27 = vand.u32 4294901760, %v13602_v7  ;;  %v17809_v41 = vand.u32 4294901760, %v13604_v21 }
 0x219   :  { %v4000_v60 = vsub.f32 %v13925_v33, %v17805_v11  ;;  %v17810_v28 = vand.u32 4294901760, %v13429_v4  ;;  %v17811_v2 = vand.u32 4294901760, %v13439_v26  ;;  %9837 = vmatpush3.bf16.msra.mxu1 %v9836_v13  ;;  %v9840_v9 = vpack.c.bf16 %v3868_v22, %v3861_v35 }
 0x21a   :  { %v13999_v51 = vpack.c.bf16 %v17807_v0, %v17806_v47  ;;  %v14005_v43 = vpack.c.bf16 %v17809_v41, %v17808_v27  ;;  %v9842_v36 = vpack.c.bf16 %v3994_v53, %v3987_v1  ;;  %v3875_v45 = vand.u32 4294901760, %v3874_v24  ;;  %9797 = vmatpush3.bf16.msra.mxu0 %v13975_v42  ;;  %9839 = vmatprep.subr.bf16.mxu1 %v9838_v6 }
 0x21b   :  { %v3888_v61 = vsub.f32 %v13429_v4, %v17810_v28  ;;  %v3895_v44 = vsub.f32 %v13439_v26, %v17811_v2  ;;  %v3882_v16 = vand.u32 4294901760, %v3881_v23  ;;  %v4001_v7 = vand.u32 4294901760, %v4000_v60  ;;  %v7759_v2 = vpop.f32.mrb[10].mxu1 }
 0x21c   :  { %v4008_v21 = vand.u32 4294901760, %v4007_v63  ;;  %v17812_v37 = vand.u32 4294901760, %v13457_v52  ;;  %v17813_v47 = vand.u32 4294901760, %v13462_v3  ;;  %9799 = vmatprep.subr.bf16.mxu0 %v13999_v51  ;;  %v17814_v22 = vand.u32 4294901760, %v13616_v55 }
 0x21d   :  { %v17815_v13 = vand.u32 4294901760, %v13677_v19  ;;  %v3889_v1 = vand.u32 4294901760, %v3888_v61  ;;  %v3896_v53 = vand.u32 4294901760, %v3895_v44  ;;  %9841 = vmatpush3.bf16.msra.mxu1 %v9840_v9  ;;  %v9844_v24 = vpack.c.bf16 %v3882_v16, %v3875_v45  ;;  %v17822_v9 = vld [vmem:[#allocation29_spill] sm:$0xff] }
 0x21e   :  { %v4014_v11 = vsub.f32 %v13457_v52, %v17812_v37  ;;  %v4021_v0 = vsub.f32 %v13462_v3, %v17813_v47  ;;  %v17816_v23 = vand.u32 4294901760, %v13478_v56  ;;  %v17817_v60 = vand.u32 4294901760, %v13483_v39  ;;  %9801 = vmatpush3.bf16.msra.mxu0 %v14005_v43  ;;  %9843 = vmatprep.subr.bf16.mxu1 %v9842_v36  ;;  %v7760_v37 = vpop.f32.mrb[11].mxu1 }
 0x21f   :  { %v14025_v35 = vpack.c.bf16 %v17815_v13, %v17814_v22  ;;  %v17818_v55 = vand.u32 4294901760, %v13712_v46  ;;  %v17819_v19 = vand.u32 4294901760, %v13717_v30  ;;  %v9846_v41 = vpack.c.bf16 %v4008_v21, %v4001_v7  ;;  %v17825_v22 = vld [vmem:[#allocation19_spill] sm:$0xff]  ;;  %v17830_v13 = vld [vmem:[#allocation49_spill] sm:$0xff] }
 0x220   :  { %v3902_v6 = vsub.f32 %v13478_v56, %v17816_v23  ;;  %v3909_v63 = vsub.f32 %v13483_v39, %v17817_v60  ;;  %v4015_v28 = vand.u32 4294901760, %v4014_v11  ;;  %v4022_v61 = vand.u32 4294901760, %v4021_v0  ;;  %v17826_v7 = vld [vmem:[#allocation11_spill] sm:$0xff] }
 0x221   :  { %v14038_v27 = vpack.c.bf16 %v17819_v19, %v17818_v55  ;;  %9803 = vmatprep.subr.bf16.mxu0 %v14025_v35  ;;  %v17821_v44 = vand.u32 4294901760, %v13719_v34  ;;  %v17823_v45 = vand.u32 4294901760, %v17822_v9  ;;  %v9848_v36 = vpack.c.bf16 %v3896_v53, %v3889_v1  ;;  %9845 = vmatpush3.bf16.msra.mxu1 %v9844_v24 }
 0x222   :  { %v7761_v47 = vadd.f32 %v7760_v37, %v7759_v2  ;;  %v3903_v46 = vand.u32 4294901760, %v3902_v6  ;;  %v3910_v30 = vand.u32 4294901760, %v3909_v63  ;;  %vm3649_vm9 = vcmp.eq.s32.totalorder %v13745_v54, %v17825_v22  ;;  %9847 = vmatprep.subr.bf16.mxu1 %v9846_v41  ;;  %v17839_v41 = vld [vmem:[#allocation36_spill] sm:$0xff]  ;;  %v7724_v2 = vpop.f32.mrb[10].mxu0 }
 0x223   :  { %17820 = vst [vmem:[#allocation23_spill] sm:$0xff] %v14038_v27  ;;  %v14045_v16 = vpack.c.bf16 %v17823_v45, %v17821_v44  ;;  %9805 = vmatpush3.bf16.msra.mxu0 %v14038_v27  ;;  %v17827_v21 = vand.u32 4294901760, %v17826_v7  ;;  %v17828_v34 = vand.u32 4294901760, %v13766_v18  ;;  %v9850_v0 = vpack.c.bf16 %v4022_v61, %v4015_v28  ;;  %v7725_v44 = vpop.f32.mrb[11].mxu0  ;;  %v17844_v45 = vld [vmem:[#allocation27_spill] sm:$0xff]  ;;  %v14161_v22 = vld [vmem:[#allocation2 + $0x568] sm:$0xff] }
 0x224   :  { %v17831_v1 = vand.u32 4294901760, %v17830_v13  ;;  %v17832_v53 = vand.u32 4294901760, %v13789_v40  ;;  %v17834_v23 = vmov 0.0   ;;  %v9852_v60 = vpack.c.bf16 %v3910_v30, %v3903_v46  ;;  %v17849_v30 = vld [vmem:[#allocation33_spill] sm:$0xff] }
 0x225   :  { %17824 = vst [vmem:[#allocation39_spill] sm:$0xff] %v14045_v16  ;;  %v14054_v11 = vpack.c.bf16 %v17828_v34, %v17827_v21  ;;  %9807 = vmatprep.subr.bf16.mxu0 %v14045_v16  ;;  %v7310_v6 = vsel %vm3649_vm9, 1.0, %v17834_v23  ;;  %9849 = vmatpush3.bf16.msra.mxu1 %v9848_v36  ;;  %v17835_v18 = vand.u32 4294901760, %v13837_v14  ;;  %v17836_v63 = vand.u32 4294901760, %v13839_v17  ;;  %v17842_v14 = vld [vmem:[#allocation25_spill] sm:$0xff]  ;;  %17876 = vst [vmem:[#allocation33_spill] sm:$0xff] %v14153_v29 }
 0x226   :  { %v14061_v24 = vpack.c.bf16 %v17832_v53, %v17831_v1  ;;  %9851 = vmatprep.subr.bf16.mxu1 %v9850_v0  ;;  %v14075_v40 = vsub.f32 %v7310_v6, %v7310_v6  ;;  %v17838_v19 = vand.u32 4294901760, %v13847_v8  ;;  %v17840_v28 = vand.u32 4294901760, %v17839_v41  ;;  %v17847_v8 = vld [vmem:[#allocation38_spill] sm:$0xff]  ;;  %v17859_v41 = vld [vmem:[#allocation44_spill] sm:$0xff] }
 0x227   :  { %17829 = vst [vmem:[#allocation40_spill] sm:$0xff] %v14054_v11  ;;  %9809 = vmatpush3.bf16.msra.mxu0 %v14054_v11  ;;  %v14072_v55 = vpack.c.bf16 %v17836_v63, %v17835_v18  ;;  %v7726_v9 = vadd.f32 %v7725_v44, %v7724_v2  ;;  %v17843_v17 = vand.u32 4294901760, %v17842_v14  ;;  %v17845_v37 = vand.u32 4294901760, %v17844_v45  ;;  %v17854_v53 = vld [vmem:[#allocation34_spill] sm:$0xff]  ;;  %v17861_v2 = vld [vmem:[#allocation15_spill] sm:$0xff]  ;;  %v17862_v14 = vld [vmem:[#allocation17_spill] sm:$0xff] }
 0x228   :  { %17833 = vst [vmem:[#allocation43_spill] sm:$0xff] %v14061_v24  ;;  %9811 = vmatprep.subr.bf16.mxu0 %v14061_v24  ;;  %v14081_v61 = vpack.c.bf16 %v17840_v28, %v17838_v19  ;;  %v17848_v46 = vand.u32 4294901760, %v17847_v8  ;;  %v17850_v7 = vand.u32 4294901760, %v17849_v30  ;;  %v16824_v34 = vand.u32 4294901760, %v14075_v40  ;;  %v17858_v19 = vld [vmem:[#allocation42_spill] sm:$0xff]  ;;  %v17860_v28 = vld [vmem:[#allocation45_spill] sm:$0xff] }
 0x229   :  { %17837 = vst [vmem:[#allocation29_spill] sm:$0xff] %v14072_v55  ;;  %9853 = vmatpush3.bf16.msra.mxu1 %v9852_v60  ;;  %v14089_v36 = vpack.c.bf16 %v17845_v37, %v17843_v17  ;;  %v1732_v0 = vadd.f32 %v7726_v9, %v13933_v38  ;;  %v17852_v13 = vand.u32 4294901760, %v13851_v31  ;;  %v17855_v6 = vand.u32 4294901760, %v17854_v53  ;;  %v17856_v60 = vld [vmem:[#allocation41_spill] sm:$0xff]  ;;  %v17863_v17 = vld [vmem:[#allocation18_spill] sm:$0xff]  ;;  %v17864_v37 = vld [vmem:[#allocation47_spill] sm:$0xff] }
 0x22a   :  { %17841 = vst [vmem:[#allocation11_spill] sm:$0xff] %v14081_v61  ;;  %9887 = vmatprep.subr.bf16.mxu1 %v13826_v32  ;;  %v14096_v21 = vpack.c.bf16 %v17850_v7, %v17848_v46  ;;  %v17857_v38 = vand.u32 4294901760, %v17856_v60  ;;  %v3793_v63 = vsub.f32 %v14075_v40, %v16824_v34  ;;  %v9856_v44 = vpack.c.bf16 %v17861_v2, %v17860_v28  ;;  %v17865_v8 = vld [vmem:[#allocation9_spill] sm:$0xff]  ;;  %v17866_v30 = vld [vmem:[#allocation26_spill] sm:$0xff]  ;;  %v17867_v7 = vld [vmem:[#allocation32_spill] sm:$0xff] }
 0x22b   :  { %9813 = vmatpush3.bf16.msra.mxu0 %v14072_v55  ;;  %17846 = vst [vmem:[#allocation49_spill] sm:$0xff] %v14089_v36  ;;  %v14107_v1 = vadd.f32 %v7761_v47, %v1732_v0  ;;  %v9854_v47 = vpack.c.bf16 %v17859_v41, %v17858_v19  ;;  %v9858_v45 = vpack.c.bf16 %v17863_v17, %v17862_v14  ;;  %v17869_v53 = vld [vmem:[#allocation28_spill] sm:$0xff]  ;;  %17878 = vst [vmem:[#allocation41_spill] sm:$0xff] %v14157_v49 }
 0x22c   :  { %9815 = vmatprep.subr.bf16.mxu0 %v14081_v61  ;;  %17851 = vst [vmem:[#allocation36_spill] sm:$0xff] %v14096_v21  ;;  %7313 = vmatmul.mubr.msk.f32.vlgmr.msra.gmra.mrb[24].mxu1 %vm3649_vm9, %v17121_v15  ;;  %v14115_v18 = vpack.c.bf16 %v17857_v38, %v17855_v6  ;;  %v3794_v9 = vand.u32 4294901760, %v3793_v63  ;;  %v9860_v46 = vpack.c.bf16 %v17865_v8, %v17864_v37  ;;  %v17870_v6 = vld [vmem:[#allocation24_spill] sm:$0xff]  ;;  %v17872_v38 = vld [vmem:[#allocation10_spill] sm:$0xff]  ;;  %17881 = vst [vmem:[#allocation42_spill] sm:$0xff] %v14161_v22 }
 0x22d   :  { %9889 = vmatpush3.bf16.msra.mxu1 %v13940_v48  ;;  %4269 = vmatprep.mubr.f32.mxu1 %v17852_v13  ;;  %17853 = vst [vmem:[#allocation25_spill] sm:$0xff] %v14107_v1  ;;  %v9862_v0 = vpack.c.bf16 %v17867_v7, %v17866_v30  ;;  %v14138_v13 = vld [vmem:[#allocation2 + $0x550] sm:$0xff]  ;;  %v9864_v60 = vpack.c.bf16 %v17870_v6, %v17869_v53  ;;  %v17879_v1 = vld [vmem:[#allocation30_spill] sm:$0xff] }
 0x22e   :  { %9891 = vmatprep.subr.bf16.mxu1 %v13969_v20  ;;  %17868 = vst [vmem:[#allocation27_spill] sm:$0xff] %v14138_v13 }
 0x22f   :  { %9817 = vmatpush3.bf16.msra.mxu0 %v14089_v36 }
 0x230   :  { %9819 = vmatprep.subr.bf16.mxu0 %v14096_v21  ;;  %v7829_v34 = vpop.f32.mrb[12].mxu1 }
 0x231   :  { %9893 = vmatpush3.bf16.msra.mxu1 %v13975_v42 }
 0x232   :  { %9895 = vmatprep.subr.bf16.mxu1 %v13999_v51 }
 0x233   :  { %9821 = vmatpush3.bf16.msra.mxu0 %v14115_v18 }
 0x234   :  { %9855 = vmatprep.subr.bf16.mxu0 %v9854_v47  ;;  %v14145_v47 = vld [vmem:[#allocation2 + $0x558] sm:$0xff] }
 0x235   :  { %9897 = vmatpush3.bf16.msra.mxu1 %v14005_v43  ;;  %17873 = vst [vmem:[#allocation38_spill] sm:$0xff] %v14145_v47 }
 0x236   :  { %3795 = vmatmul.mubr.f32.vlgmr.msra.gmra.mrb[24].mxu0 %v3794_v9  ;;  %9899 = vmatprep.subr.bf16.mxu1 %v14025_v35  ;;  %v17874_v9 = vld [vmem:[#allocation48_spill] sm:$0xff] }
 0x237   :  { %9857 = vmatpush3.bf16.msra.mxu0 %v9856_v44  ;;  %4162 = vmatprep.mubr.f32.mxu0 %v13851_v31  ;;  %v17871_v31 = vld [vmem:[#allocation46_spill] sm:$0xff] }
 0x238   :  { %9859 = vmatprep.subr.bf16.mxu0 %v9858_v45  ;;  %v9866_v63 = vpack.c.bf16 %v17872_v38, %v17871_v31  ;;  %v17875_v45 = vld [vmem:[#allocation31_spill] sm:$0xff]  ;;  %v17880_v44 = vld [vmem:[#allocation50_spill] sm:$0xff] }
 0x239   :  { %9901 = vmatpush3.bf16.msra.mxu1 %v14038_v27  ;;  %v9870_v10 = vpack.c.bf16 %v17880_v44, %v17879_v1  ;;  %v14174_v44 = vld [vmem:[#allocation2 + $0x5f8] sm:$0xff]  ;;  %v14187_v27 = vld [vmem:[#allocation2 + $0x570] sm:$0xff] }
 0x23a   :  { %9903 = vmatprep.subr.bf16.mxu1 %v14045_v16  ;;  %17884 = vst [vmem:[#allocation45_spill] sm:$0xff] %v14174_v44  ;;  %17886 = vst [vmem:[#allocation15_spill] sm:$0xff] %v14187_v27  ;;  %v17888_v16 = vand.u32 4294901760, %v14153_v29 }
 0x23b   :  { %9861 = vmatpush3.bf16.msra.mxu0 %v9860_v46  ;;  %v9868_v46 = vpack.c.bf16 %v17875_v45, %v17874_v9  ;;  %v14172_v45 = vld [vmem:[#allocation2 + $0x5f0] sm:$0xff] }
 0x23c   :  { %9863 = vmatprep.subr.bf16.mxu0 %v9862_v0  ;;  %v14155_v0 = vld [vmem:[#allocation2 + $0x5e8] sm:$0xff]  ;;  %17883 = vst [vmem:[#allocation44_spill] sm:$0xff] %v14172_v45 }
 0x23d   :  { %9905 = vmatpush3.bf16.msra.mxu1 %v14054_v11  ;;  %17877 = vst [vmem:[#allocation34_spill] sm:$0xff] %v14155_v0 }
 0x23e   :  { %9907 = vmatprep.subr.bf16.mxu1 %v14061_v24  ;;  %v17882_v24 = vand.u32 4294901760, %v14138_v13 }
 0x23f   :  { %9865 = vmatpush3.bf16.msra.mxu0 %v9864_v60  ;;  %v7830_v60 = vpop.f32.mrb[13].mxu1 }
 0x240   :  { %9867 = vmatprep.subr.bf16.mxu0 %v9866_v63  ;;  %v14166_v11 = vsub.f32 %v14138_v13, %v17882_v24  ;;  %v7831_v5 = vadd.f32 %v7830_v60, %v7829_v34  ;;  %v9872_v24 = vpack.c.bf16 %v13863_v58, %v13858_v25  ;;  %v17885_v34 = vand.u32 4294901760, %v14145_v47  ;;  %v14189_v13 = vld [vmem:[#allocation2 + $0x578] sm:$0xff] }
 0x241   :  { %9909 = vmatpush3.bf16.msra.mxu1 %v14072_v55  ;;  %v9874_v63 = vpack.c.bf16 %v13874_v59, %v13869_v62  ;;  %17887 = vst [vmem:[#allocation17_spill] sm:$0xff] %v14189_v13  ;;  %v17889_v59 = vand.u32 4294901760, %v14155_v0 }
 0x242   :  { %9911 = vmatprep.subr.bf16.mxu1 %v14081_v61  ;;  %v14182_v60 = vsub.f32 %v14145_v47, %v17885_v34  ;;  %v14196_v34 = vld [vmem:[#allocation2 + $0x580] sm:$0xff]  ;;  %v14202_v47 = vsub.f32 %v14153_v29, %v17888_v16  ;;  %v17890_v61 = vand.u32 4294901760, %v14157_v49  ;;  %v17891_v16 = vand.u32 4294901760, %v14161_v22 }
 0x243   :  { %9869 = vmatpush3.bf16.msra.mxu0 %v9868_v46  ;;  %v9876_v46 = vpack.c.bf16 %v13914_v50, %v13909_v12  ;;  %v14207_v62 = vsub.f32 %v14155_v0, %v17889_v59 }
 0x244   :  { %9871 = vmatprep.subr.bf16.mxu0 %v9870_v10  ;;  %v14212_v55 = vsub.f32 %v14157_v49, %v17890_v61  ;;  %v14221_v29 = vsub.f32 %v14161_v22, %v17891_v16  ;;  %v9878_v61 = vpack.c.bf16 %v13930_v57, %v13925_v33  ;;  %v7794_v49 = vpop.f32.mrb[12].mxu0  ;;  %v17892_v10 = vand.u32 4294901760, %v14172_v45 }
 0x245   :  { %9913 = vmatpush3.bf16.msra.mxu1 %v14089_v36  ;;  %v14215_v36 = vld [vmem:[#allocation2 + $0x588] sm:$0xff]  ;;  %v17893_v16 = vand.u32 4294901760, %v14174_v44  ;;  %v17895_v0 = vand.u32 4294901760, %v14182_v60 }
 0x246   :  { %9915 = vmatprep.subr.bf16.mxu1 %v14096_v21  ;;  %v14233_v50 = vsub.f32 %v14172_v45, %v17892_v10  ;;  %v17899_v21 = vand.u32 4294901760, %v14189_v13  ;;  %v17905_v45 = vand.u32 4294901760, %v14075_v40 }
 0x247   :  { %9873 = vmatpush3.bf16.msra.mxu0 %v9872_v24  ;;  %v9880_v24 = vpack.c.bf16 %v13439_v26, %v13429_v4  ;;  %v14238_v59 = vsub.f32 %v14174_v44, %v17893_v16  ;;  %v7795_v4 = vpop.f32.mrb[13].mxu0  ;;  %v14252_v16 = vld [vmem:[#allocation2 + $0x500] sm:$0xff]  ;;  %v14254_v44 = vld [vmem:[#allocation2 + $0x508] sm:$0xff] }
 0x248   :  { %9875 = vmatprep.subr.bf16.mxu0 %v9874_v63  ;;  %v17894_v63 = vand.u32 4294901760, %v14166_v11  ;;  %v7796_v57 = vadd.f32 %v7795_v4, %v7794_v49  ;;  %v14265_v10 = vsub.f32 %v14189_v13, %v17899_v21  ;;  %v17901_v49 = vld [vmem:[#allocation21_spill] sm:$0xff]  ;;  %v17903_v4 = vand.u32 4294901760, %v14207_v62 }
 0x249   :  { %9917 = vmatpush3.bf16.msra.mxu1 %v14115_v18  ;;  %vm4552_vm10 = vcmp.eq.s32.totalorder %v13745_v54, %v17901_v49  ;;  %v16847_v21 = vand.u32 4294901760, %v14233_v50 }
 0x24a   :  { %v14244_v22 = vpack.c.bf16 %v17895_v0, %v17894_v63  ;;  %9951 = vmatprep.subr.bf16.mxu1 %v13826_v32  ;;  %v17897_v63 = vand.u32 4294901760, %v14187_v27  ;;  %17900 = vst [vmem:[#allocation9_spill] sm:$0xff] %v14265_v10  ;;  %v9882_v32 = vpack.c.bf16 %v13462_v3, %v13457_v52  ;;  %v17906_v3 = vand.u32 4294901760, %v14212_v55 }
 0x24b   :  { %9877 = vmatpush3.bf16.msra.mxu0 %v9876_v46  ;;  %v17902_v46 = vand.u32 4294901760, %v14202_v47  ;;  %v17907_v52 = vand.u32 4294901760, %v14221_v29 }
 0x24c   :  { %17896 = vst [vmem:[#allocation18_spill] sm:$0xff] %v14244_v22  ;;  %v14260_v26 = vsub.f32 %v14187_v27, %v17897_v63  ;;  %9879 = vmatprep.subr.bf16.mxu0 %v9878_v61  ;;  %v14277_v63 = vadd.f32 %v7831_v5, %v7796_v57  ;;  %4273 = vmatmul.mubr.f32.vlgmr.msra.gmra.mrb[26].mxu1 %v17905_v45  ;;  %v17910_v5 = vand.u32 4294901760, %v14196_v34  ;;  %v14309_v61 = vld [vmem:[#allocation2 + $0x590] sm:$0xff] }
 0x24d   :  { %v14275_v0 = vpack.c.bf16 %v17903_v4, %v17902_v46  ;;  %v14287_v22 = vpack.c.bf16 %v17907_v52, %v17906_v3  ;;  %9953 = vmatpush3.bf16.msra.mxu1 %v13940_v48  ;;  %7316 = vmatprep.mubr.msk.f32.mxu1 %vm3650_vm8, %v17121_v15  ;;  %v9884_v57 = vpack.c.bf16 %v13483_v39, %v13478_v56  ;;  %v17912_v48 = vand.u32 4294901760, %v14215_v36  ;;  %v14311_v56 = vld [vmem:[#allocation2 + $0x598] sm:$0xff]  ;;  %v17959_v46 = vld [vmem:[#allocation35_spill] sm:$0xff] }
 0x24e   :  { %17898 = vst [vmem:[#allocation47_spill] sm:$0xff] %v14260_v26  ;;  %v14299_v45 = vsub.f32 %v14196_v34, %v17910_v5  ;;  %9955 = vmatprep.subr.bf16.mxu1 %v13969_v20  ;;  %v16849_v39 = vand.u32 4294901760, %v14260_v26  ;;  %v16848_v5 = vand.u32 4294901760, %v14265_v10  ;;  %v17914_v3 = vand.u32 4294901760, %v14238_v59  ;;  %v17992_v10 = vld [vmem:[#allocation36_spill] sm:$0xff] }
 0x24f   :  { %17904 = vst [vmem:[#allocation26_spill] sm:$0xff] %v14275_v0  ;;  %17908 = vst [vmem:[#allocation32_spill] sm:$0xff] %v14287_v22  ;;  %9881 = vmatpush3.bf16.msra.mxu0 %v9880_v24  ;;  %v14307_v52 = vsub.f32 %v14215_v36, %v17912_v48  ;;  %v17916_v20 = vand.u32 4294901760, %v17858_v19  ;;  %v17917_v48 = vand.u32 4294901760, %v17859_v41  ;;  %v7319_v22 = vsel %vm4552_vm10, 1.0, %v17834_v23 }
 0x250   :  { %17911 = vst [vmem:[#allocation28_spill] sm:$0xff] %v14299_v45  ;;  %v14319_v24 = vpack.c.bf16 %v17914_v3, %v16847_v21  ;;  %9883 = vmatprep.subr.bf16.mxu0 %v9882_v32  ;;  %v14333_v0 = vpack.c.bf16 %v16848_v5, %v16849_v39  ;;  %v17919_v32 = vand.u32 4294901760, %v14252_v16  ;;  %v17921_v41 = vand.u32 4294901760, %v14254_v44  ;;  %v14348_v21 = vld [vmem:[#allocation2 + $0x510] sm:$0xff] }
 0x251   :  { %17913 = vst [vmem:[#allocation24_spill] sm:$0xff] %v14307_v52  ;;  %v9918_v4 = vpack.c.bf16 %v17917_v48, %v17916_v20  ;;  %9957 = vmatpush3.bf16.msra.mxu1 %v13975_v42  ;;  %v17923_v42 = vand.u32 4294901760, %v17860_v28  ;;  %v17924_v5 = vand.u32 4294901760, %v17861_v2  ;;  %v16850_v39 = vand.u32 4294901760, %v14299_v45 }
 0x252   :  { %17915 = vst [vmem:[#allocation46_spill] sm:$0xff] %v14319_v24  ;;  %17918 = vst [vmem:[#allocation10_spill] sm:$0xff] %v14333_v0  ;;  %v14339_v19 = vsub.f32 %v14252_v16, %v17919_v32  ;;  %v14344_v3 = vsub.f32 %v14254_v44, %v17921_v41  ;;  %9959 = vmatprep.subr.bf16.mxu1 %v13999_v51  ;;  %v17925_v41 = vand.u32 4294901760, %v17862_v14  ;;  %v17926_v20 = vand.u32 4294901760, %v17863_v17  ;;  %v14365_v51 = vld [vmem:[#allocation2 + $0x5a0] sm:$0xff]  ;;  %v14372_v0 = vld [vmem:[#allocation2 + $0x5a8] sm:$0xff] }
 0x253   :  { %9885 = vmatpush3.bf16.msra.mxu0 %v9884_v57  ;;  %v9920_v32 = vpack.c.bf16 %v17924_v5, %v17923_v42  ;;  %v14361_v24 = vsub.f32 %v7319_v22, %v7319_v22  ;;  %v14363_v57 = vld [vmem:[#allocation2 + $0x518] sm:$0xff]  ;;  %v17927_v28 = vand.u32 4294901760, %v17864_v37  ;;  %v17928_v2 = vand.u32 4294901760, %v17865_v8 }
 0x254   :  { %17920 = vst [vmem:[#allocation48_spill] sm:$0xff] %v14339_v19  ;;  %17922 = vst [vmem:[#allocation30_spill] sm:$0xff] %v14344_v3  ;;  %9919 = vmatprep.subr.bf16.mxu0 %v9918_v4  ;;  %v9922_v48 = vpack.c.bf16 %v17926_v20, %v17925_v41  ;;  %v17929_v17 = vand.u32 4294901760, %v14309_v61  ;;  %v17931_v37 = vand.u32 4294901760, %v14311_v56  ;;  %v17936_v14 = vand.u32 4294901760, %v17869_v53  ;;  %v17945_v53 = vld [vmem:[#allocation23_spill] sm:$0xff] }
 0x255   :  { %v9924_v5 = vpack.c.bf16 %v17928_v2, %v17927_v28  ;;  %9961 = vmatpush3.bf16.msra.mxu1 %v14005_v43  ;;  %v4818_v43 = vsub.f32 %v14299_v45, %v16850_v39  ;;  %v17935_v2 = vand.u32 4294901760, %v17867_v7  ;;  %v17938_v41 = vand.u32 4294901760, %v17871_v31  ;;  %v14424_v39 = vld [vmem:[#allocation2 + $0x520] sm:$0xff] }
 0x256   :  { %4165 = vmatmul.mubr.f32.vlgmr.msra.gmra.mrb[26].mxu0 %v14075_v40  ;;  %v14381_v4 = vsub.f32 %v14309_v61, %v17929_v17  ;;  %v14386_v8 = vsub.f32 %v14311_v56, %v17931_v37  ;;  %v17933_v40 = vand.u32 4294901760, %v14307_v52  ;;  %9963 = vmatprep.subr.bf16.mxu1 %v14025_v35  ;;  %v16856_v37 = vand.u32 4294901760, %v14372_v0 }
 0x257   :  { %9921 = vmatpush3.bf16.msra.mxu0 %v9920_v32  ;;  %7314 = vmatprep.mubr.msk.f32.mxu0 %vm3650_vm8, %v17121_v15  ;;  %v17934_v32 = vand.u32 4294901760, %v17866_v30  ;;  %v17939_v28 = vand.u32 4294901760, %v17872_v38  ;;  %v17941_v30 = vld [vmem:[#allocation31_spill] sm:$0xff]  ;;  %v17947_v38 = vand.u32 4294901760, %v14344_v3 }
 0x258   :  { %17930 = vst [vmem:[#allocation51_spill] sm:$0xff] %v14381_v4  ;;  %17932 = vst [vmem:[#allocation52_spill] sm:$0xff] %v14386_v8  ;;  %v4825_v20 = vsub.f32 %v14307_v52, %v17933_v40  ;;  %9923 = vmatprep.subr.bf16.mxu0 %v9922_v48  ;;  %v17937_v40 = vand.u32 4294901760, %v17870_v6  ;;  %v17940_v48 = vand.u32 4294901760, %v17874_v9  ;;  %v17942_v42 = vand.u32 4294901760, %v17941_v30 }
 0x259   :  { %v9926_v17 = vpack.c.bf16 %v17935_v2, %v17934_v32  ;;  %v9930_v35 = vpack.c.bf16 %v17939_v28, %v17938_v41  ;;  %v17943_v32 = vand.u32 4294901760, %v14348_v21  ;;  %9965 = vmatpush3.bf16.msra.mxu1 %v17945_v53  ;;  %v17946_v6 = vand.u32 4294901760, %v14339_v19  ;;  %v14435_v41 = vld [vmem:[#allocation2 + $0x528] sm:$0xff]  ;;  %v17948_v28 = vld [vmem:[#allocation39_spill] sm:$0xff] }
 0x25a   :  { %v9928_v22 = vpack.c.bf16 %v17937_v40, %v17936_v14  ;;  %v9932_v7 = vpack.c.bf16 %v17942_v42, %v17940_v48  ;;  %v4713_v9 = vsub.f32 %v14344_v3, %v17947_v38  ;;  %9967 = vmatprep.subr.bf16.mxu1 %v17948_v28  ;;  %v4819_v40 = vand.u32 4294901760, %v4818_v43  ;;  %v17954_v42 = vld [vmem:[#allocation50_spill] sm:$0xff]  ;;  %v17961_v3 = vld [vmem:[#allocation37_spill] sm:$0xff] }
 0x25b   :  { %v14422_v2 = vsub.f32 %v14348_v21, %v17943_v32  ;;  %v4706_v31 = vsub.f32 %v14339_v19, %v17946_v6  ;;  %9925 = vmatpush3.bf16.msra.mxu0 %v9924_v5  ;;  %v4826_v48 = vand.u32 4294901760, %v4825_v20  ;;  %v17949_v30 = vand.u32 4294901760, %v14363_v57 }
 0x25c   :  { %v17951_v53 = vand.u32 4294901760, %v14365_v51  ;;  %9927 = vmatprep.subr.bf16.mxu0 %v9926_v17  ;;  %v17953_v38 = vand.u32 4294901760, %v17879_v1  ;;  %v17955_v14 = vand.u32 4294901760, %v17954_v42  ;;  %v17956_v28 = vand.u32 4294901760, %v13858_v25  ;;  %v17964_v25 = vld [vmem:[#allocation8_spill] sm:$0xff] }
 0x25d   :  { %17944 = vst [vmem:[#allocation31_spill] sm:$0xff] %v14422_v2  ;;  %v14441_v32 = vsub.f32 %v14363_v57, %v17949_v30  ;;  %v17957_v43 = vand.u32 4294901760, %v13863_v58  ;;  %v14461_v30 = vsub.f32 %v14372_v0, %v16856_v37  ;;  %v17960_v17 = vand.u32 4294901760, %v17959_v46  ;;  %v14480_v37 = vld [vmem:[#allocation2 + $0x5b8] sm:$0xff] }
 0x25e   :  { %v14446_v6 = vsub.f32 %v14365_v51, %v17951_v53  ;;  %v9934_v5 = vpack.c.bf16 %v17955_v14, %v17953_v38  ;;  %v17962_v1 = vand.u32 4294901760, %v17961_v3  ;;  %v17963_v14 = vand.u32 4294901760, %v13909_v12  ;;  %v17966_v53 = vld [vmem:[#allocation40_spill] sm:$0xff] }
 0x25f   :  { %17950 = vst [vmem:[#allocation23_spill] sm:$0xff] %v14441_v32  ;;  %v14456_v20 = vpack.c.bf16 %v17957_v43, %v17956_v28  ;;  %17958 = vst [vmem:[#allocation50_spill] sm:$0xff] %v14461_v30  ;;  %v17965_v42 = vand.u32 4294901760, %v17964_v25  ;;  %v14478_v43 = vld [vmem:[#allocation2 + $0x5b0] sm:$0xff]  ;;  %9969 = vmatpush3.bf16.msra.mxu1 %v17966_v53  ;;  %v4707_v46 = vand.u32 4294901760, %v4706_v31  ;;  %v4714_v3 = vand.u32 4294901760, %v4713_v9  ;;  %9929 = vmatpush3.bf16.msra.mxu0 %v9928_v22 }
 0x260   :  { %17952 = vst [vmem:[#allocation39_spill] sm:$0xff] %v14446_v6  ;;  %v14468_v19 = vpack.c.bf16 %v17962_v1, %v17960_v17  ;;  %v17967_v17 = vand.u32 4294901760, %v14381_v4  ;;  %v17968_v1 = vand.u32 4294901760, %v14386_v8  ;;  %v14493_v25 = vld [vmem:[#allocation2 + $0x530] sm:$0xff]  ;;  %v17970_v28 = vld [vmem:[#allocation43_spill] sm:$0xff]  ;;  %v14498_v53 = vpack.c.bf16 %v4826_v48, %v4819_v40  ;;  %v17972_v9 = vld [vmem:[#allocation12_spill] sm:$0xff]  ;;  %9931 = vmatprep.subr.bf16.mxu0 %v9930_v35 }
 0x261   :  { %v14474_v58 = vpack.c.bf16 %v17965_v42, %v17963_v14  ;;  %17969 = vst [vmem:[#allocation35_spill] sm:$0xff] %v14493_v25  ;;  %v14495_v42 = vld [vmem:[#allocation2 + $0x538] sm:$0xff]  ;;  %9971 = vmatprep.subr.bf16.mxu1 %v17970_v28  ;;  %v17971_v31 = vand.u32 4294901760, %v13925_v33  ;;  %v17973_v38 = vand.u32 4294901760, %v17972_v9  ;;  %v17974_v22 = vand.u32 4294901760, %v14424_v39  ;;  %v14516_v48 = vld [vmem:[#allocation2 + $0x5c0] sm:$0xff] }
 0x262   :  { %v14486_v12 = vsub.f32 %v14381_v4, %v17967_v17  ;;  %v14491_v14 = vsub.f32 %v14386_v8, %v17968_v1  ;;  %v7899_v8 = vpop.f32.mrb[14].mxu1  ;;  %17976 = vst [vmem:[#allocation8_spill] sm:$0xff] %v14516_v48  ;;  %v17978_v9 = vand.u32 4294901760, %v14422_v2  ;;  %v17979_v52 = vand.u32 4294901760, %v14435_v41  ;;  %v17981_v33 = vld [vmem:[#allocation29_spill] sm:$0xff] }
 0x263   :  { %v14504_v17 = vpack.c.bf16 %v17973_v38, %v17971_v31  ;;  %v14512_v28 = vsub.f32 %v14424_v39, %v17974_v22  ;;  %v14518_v38 = vld [vmem:[#allocation2 + $0x5c8] sm:$0xff]  ;;  %v7900_v31 = vpop.f32.mrb[15].mxu1  ;;  %9973 = vmatpush3.bf16.msra.mxu1 %v17981_v33  ;;  %v14533_v45 = vpack.c.bf16 %v4714_v3, %v4707_v46  ;;  %9933 = vmatpush3.bf16.msra.mxu0 %v9932_v7  ;;  %v14552_v33 = vld [vmem:[#allocation2 + $0x5d8] sm:$0xff]  ;;  %v17986_v7 = vand.u32 4294901760, %v14461_v30 }
 0x264   :  { %17977 = vst [vmem:[#allocation40_spill] sm:$0xff] %v14518_v38  ;;  %v4720_v35 = vsub.f32 %v14422_v2, %v17978_v9  ;;  %v14526_v1 = vsub.f32 %v14435_v41, %v17979_v52  ;;  %v14530_v4 = vadd.f32 %v7900_v31, %v7899_v8  ;;  %v4833_v13 = vand.u32 4294901760, %v14486_v12  ;;  %v14537_v9 = vld [vmem:[#allocation2 + $0x540] sm:$0xff]  ;;  %v14548_v12 = vld [vmem:[#allocation2 + $0x548] sm:$0xff]  ;;  %9935 = vmatprep.subr.bf16.mxu0 %v9934_v5 }
 0x265   :  { %17975 = vst [vmem:[#allocation37_spill] sm:$0xff] %v14512_v28  ;;  %v4840_v27 = vand.u32 4294901760, %v14491_v14  ;;  %v17982_v2 = vld [vmem:[#allocation11_spill] sm:$0xff]  ;;  %v17983_v52 = vand.u32 4294901760, %v14441_v32  ;;  %v17984_v8 = vand.u32 4294901760, %v14446_v6  ;;  %v14550_v14 = vld [vmem:[#allocation2 + $0x5d0] sm:$0xff] }
 0x266   :  { %17980 = vst [vmem:[#allocation43_spill] sm:$0xff] %v14526_v1  ;;  %9975 = vmatprep.subr.bf16.mxu1 %v17982_v2  ;;  %17985 = vst [vmem:[#allocation12_spill] sm:$0xff] %v14550_v14  ;;  %v4853_v2 = vsub.f32 %v14461_v30, %v17986_v7  ;;  %v17987_v40 = vand.u32 4294901760, %v14478_v43  ;;  %v17988_v3 = vand.u32 4294901760, %v14480_v37  ;;  %v17989_v5 = vand.u32 4294901760, %v14493_v25 }
 0x267   :  { %v4727_v22 = vsub.f32 %v14441_v32, %v17983_v52  ;;  %v4846_v31 = vsub.f32 %v14446_v6, %v17984_v8  ;;  %v4721_v6 = vand.u32 4294901760, %v4720_v35  ;;  %v17990_v7 = vand.u32 4294901760, %v14495_v42  ;;  %9937 = vmatpush3.bf16.msra.mxu0 %v14456_v20 }
 0x268   :  { %v14561_v8 = vsub.f32 %v14478_v43, %v17987_v40  ;;  %v14566_v46 = vsub.f32 %v14480_v37, %v17988_v3  ;;  %v14572_v23 = vsub.f32 %v14493_v25, %v17989_v5  ;;  %v17991_v40 = vld [vmem:[#allocation49_spill] sm:$0xff]  ;;  %v17993_v26 = vand.u32 4294901760, %v14516_v48  ;;  %9939 = vmatprep.subr.bf16.mxu0 %v14468_v19 }
 0x269   :  { %v14577_v52 = vsub.f32 %v14495_v42, %v17990_v7  ;;  %9977 = vmatpush3.bf16.msra.mxu1 %v17991_v40  ;;  %v4728_v5 = vand.u32 4294901760, %v4727_v22  ;;  %v4847_v25 = vand.u32 4294901760, %v4846_v31  ;;  %v17994_v40 = vand.u32 4294901760, %v14518_v38  ;;  %v7864_v31 = vpop.f32.mrb[14].mxu0 }
 0x26a   :  { %9979 = vmatprep.subr.bf16.mxu1 %v17992_v10  ;;  %v14589_v7 = vsub.f32 %v14516_v48, %v17993_v26  ;;  %v4854_v35 = vand.u32 4294901760, %v4853_v2  ;;  %v17995_v32 = vand.u32 4294901760, %v14512_v28  ;;  %v10018_v3 = vpack.c.bf16 %v4840_v27, %v4833_v13  ;;  %v7865_v19 = vpop.f32.mrb[15].mxu0 }
 0x26b   :  { %v14594_v30 = vsub.f32 %v14518_v38, %v17994_v40  ;;  %v17996_v26 = vand.u32 4294901760, %v14526_v1  ;;  %v17997_v2 = vand.u32 4294901760, %v14537_v9  ;;  %v17998_v22 = vand.u32 4294901760, %v14548_v12  ;;  %9941 = vmatpush3.bf16.msra.mxu0 %v14474_v58 }
 0x26c   :  { %v4734_v20 = vsub.f32 %v14512_v28, %v17995_v32  ;;  %v18000_v13 = vand.u32 4294901760, %v14550_v14  ;;  %v18002_v38 = vand.u32 4294901760, %v14552_v33  ;;  %v16888_v10 = vand.u32 4294901760, %v14589_v7  ;;  %9943 = vmatprep.subr.bf16.mxu0 %v14504_v17 }
 0x26d   :  { %v4741_v48 = vsub.f32 %v14526_v1, %v17996_v26  ;;  %9981 = vmatpush3.bf16.msra.mxu1 %v14115_v18  ;;  %v14611_v32 = vsub.f32 %v14537_v9, %v17997_v2  ;;  %v14616_v27 = vsub.f32 %v14548_v12, %v17998_v22  ;;  %v7866_v18 = vadd.f32 %v7865_v19, %v7864_v31  ;;  %v18009_v19 = vld [vmem:[#allocation13_spill] sm:$0xff] }
 0x26e   :  { %v14621_v26 = vsub.f32 %v14550_v14, %v18000_v13  ;;  %v14626_v40 = vsub.f32 %v14552_v33, %v18002_v38  ;;  %10015 = vmatprep.subr.bf16.mxu1 %v14498_v53  ;;  %v10020_v2 = vpack.c.bf16 %v4728_v5, %v4721_v6  ;;  %v16890_v22 = vand.u32 4294901760, %v14594_v30  ;;  %v14892_v6 = vld [vmem:[#allocation2 + $0x6f8] sm:$0xff] }
 0x26f   :  { %17999 = vst [vmem:[#allocation29_spill] sm:$0xff] %v14616_v27  ;;  %v10022_v1 = vpack.c.bf16 %v4854_v35, %v4847_v25  ;;  %v4735_v13 = vand.u32 4294901760, %v4734_v20  ;;  %v18004_v28 = vand.u32 4294901760, %v14561_v8  ;;  %v18005_v38 = vand.u32 4294901760, %v14566_v46  ;;  %9945 = vmatpush3.bf16.msra.mxu0 %v18009_v19 }
 0x270   :  { %18001 = vst [vmem:[#allocation11_spill] sm:$0xff] %v14621_v26  ;;  %18003 = vst [vmem:[#allocation49_spill] sm:$0xff] %v14626_v40  ;;  %v2360_v58 = vadd.f32 %v7866_v18, %v14277_v63  ;;  %7317 = vmatmul.mubr.msk.f32.vlgmr.msra.gmra.mrb[28].mxu1 %vm3649_vm9, %v17121_v15  ;;  %v4742_v53 = vand.u32 4294901760, %v4741_v48  ;;  %v18007_v17 = vand.u32 4294901760, %v14572_v23  ;;  %v18008_v35 = vand.u32 4294901760, %v14577_v52 }
 0x271   :  { %v4860_v14 = vsub.f32 %v14561_v8, %v18004_v28  ;;  %v4867_v31 = vsub.f32 %v14566_v46, %v18005_v38  ;;  %10017 = vmatpush3.bf16.msra.mxu1 %v14533_v45  ;;  %7320 = vmatprep.mubr.msk.f32.mxu1 %vm4552_vm10, %v17121_v15  ;;  %v4874_v45 = vsub.f32 %v14589_v7, %v16888_v10  ;;  %v18012_v20 = vand.u32 4294901760, %v14215_v36 }
 0x272   :  { %v4748_v25 = vsub.f32 %v14572_v23, %v18007_v17  ;;  %v4755_v28 = vsub.f32 %v14577_v52, %v18008_v35  ;;  %10019 = vmatprep.subr.bf16.mxu1 %v10018_v3  ;;  %v4881_v18 = vsub.f32 %v14594_v30, %v16890_v22  ;;  %v14667_v38 = vadd.f32 %v14530_v4, %v2360_v58  ;;  %v18010_v17 = vld [vmem:[#allocation16_spill] sm:$0xff] }
 0x273   :  { %9947 = vmatprep.subr.bf16.mxu0 %v18010_v17  ;;  %v18011_v35 = vand.u32 4294901760, %v14196_v34  ;;  %v18013_v3 = vand.u32 4294901760, %v14361_v24  ;;  %v4861_v10 = vand.u32 4294901760, %v4860_v14  ;;  %v4868_v5 = vand.u32 4294901760, %v4867_v31 }
 0x274   :  { %v10024_v63 = vpack.c.bf16 %v4742_v53, %v4735_v13  ;;  %v4749_v49 = vand.u32 4294901760, %v4748_v25  ;;  %v4756_v22 = vand.u32 4294901760, %v4755_v28  ;;  %v18014_v4 = vand.u32 4294901760, %v14611_v32  ;;  %v18018_v13 = vld [vmem:[#allocation14_spill] sm:$0xff] }
 0x275   :  { %v14674_v48 = vpack.c.bf16 %v18012_v20, %v18011_v35  ;;  %v4689_v19 = vsub.f32 %v14361_v24, %v18013_v3  ;;  %10021 = vmatpush3.bf16.msra.mxu1 %v10020_v2  ;;  %v18015_v34 = vand.u32 4294901760, %v14616_v27  ;;  %v18016_v20 = vand.u32 4294901760, %v14621_v26  ;;  %9949 = vmatpush3.bf16.msra.mxu0 %v18018_v13 }
 0x276   :  { %v4762_v58 = vsub.f32 %v14611_v32, %v18014_v4  ;;  %v18017_v35 = vand.u32 4294901760, %v14626_v40  ;;  %10023 = vmatprep.subr.bf16.mxu1 %v10022_v1  ;;  %v18019_v2 = vand.u32 4294901760, %v14252_v16  ;;  %v18020_v31 = vand.u32 4294901760, %v14254_v44 }
 0x277   :  { %v4769_v36 = vsub.f32 %v14616_v27, %v18015_v34  ;;  %v4888_v17 = vsub.f32 %v14621_v26, %v18016_v20  ;;  %v4875_v25 = vand.u32 4294901760, %v4874_v45  ;;  %v4882_v28 = vand.u32 4294901760, %v4881_v18  ;;  %9983 = vmatprep.subr.bf16.mxu0 %v14674_v48 }
 0x278   :  { %v4895_v14 = vsub.f32 %v14626_v40, %v18017_v35  ;;  %v14696_v53 = vpack.c.bf16 %v18020_v31, %v18019_v2  ;;  %v4690_v3 = vand.u32 4294901760, %v4689_v19  ;;  %v10026_v4 = vpack.c.bf16 %v4868_v5, %v4861_v10  ;;  %7315 = vmatmul.mubr.msk.f32.vlgmr.msra.gmra.mrb[28].mxu0 %vm3649_vm9, %v17121_v15 }
 0x279   :  { %v18021_v34 = vand.u32 4294901760, %v14309_v61  ;;  %v18022_v20 = vand.u32 4294901760, %v14311_v56  ;;  %v10028_v13 = vpack.c.bf16 %v4756_v22, %v4749_v49  ;;  %v18023_v1 = vand.u32 4294901760, %v14348_v21  ;;  %10025 = vmatpush3.bf16.msra.mxu1 %v10024_v63 }
 0x27a   :  { %v18024_v16 = vand.u32 4294901760, %v14363_v57  ;;  %v18025_v45 = vand.u32 4294901760, %v14166_v11  ;;  %v18026_v19 = vand.u32 4294901760, %v14182_v60  ;;  %v4763_v49 = vand.u32 4294901760, %v4762_v58  ;;  %9985 = vmatpush3.bf16.msra.mxu0 %v14696_v53  ;;  %4691 = vmatprep.mubr.f32.mxu0 %v4690_v3 }
 0x27b   :  { %v14703_v35 = vpack.c.bf16 %v18022_v20, %v18021_v34  ;;  %v4770_v21 = vand.u32 4294901760, %v4769_v36  ;;  %v4889_v61 = vand.u32 4294901760, %v4888_v17  ;;  %v4896_v56 = vand.u32 4294901760, %v4895_v14  ;;  %10027 = vmatprep.subr.bf16.mxu1 %v10026_v4 }
 0x27c   :  { %v14709_v44 = vpack.c.bf16 %v18024_v16, %v18023_v1  ;;  %v4776_v18 = vsub.f32 %v14166_v11, %v18025_v45  ;;  %v4783_v10 = vsub.f32 %v14182_v60, %v18026_v19  ;;  %v10030_v57 = vpack.c.bf16 %v4882_v28, %v4875_v25 }
 0x27d   :  { %v18027_v22 = vand.u32 4294901760, %v14202_v47  ;;  %v18028_v2 = vand.u32 4294901760, %v14207_v62  ;;  %9987 = vmatprep.subr.bf16.mxu0 %v14703_v35  ;;  %v18029_v63 = vand.u32 4294901760, %v14365_v51  ;;  %v18030_v58 = vand.u32 4294901760, %v14372_v0  ;;  %10029 = vmatpush3.bf16.msra.mxu1 %v10028_v13 }
 0x27e   :  { %v18031_v17 = vand.u32 4294901760, %v14424_v39  ;;  %v18032_v14 = vand.u32 4294901760, %v14435_v41  ;;  %v4777_v28 = vand.u32 4294901760, %v4776_v18  ;;  %v4784_v3 = vand.u32 4294901760, %v4783_v10  ;;  %9989 = vmatpush3.bf16.msra.mxu0 %v14709_v44  ;;  %10031 = vmatprep.subr.bf16.mxu1 %v10030_v57  ;;  %v18039_v57 = vld [vmem:[#allocation47_spill] sm:$0xff] }
 0x27f   :  { %v4902_v5 = vsub.f32 %v14202_v47, %v18027_v22  ;;  %v4909_v31 = vsub.f32 %v14207_v62, %v18028_v2  ;;  %v14733_v36 = vpack.c.bf16 %v18030_v58, %v18029_v63  ;;  %v10032_v34 = vpack.c.bf16 %v4770_v21, %v4763_v49  ;;  %v18041_v2 = vld [vmem:[#allocation9_spill] sm:$0xff] }
 0x280   :  { %v14739_v25 = vpack.c.bf16 %v18032_v14, %v18031_v17  ;;  %v10034_v20 = vpack.c.bf16 %v4896_v56, %v4889_v61  ;;  %v18033_v4 = vand.u32 4294901760, %v14212_v55  ;;  %v18034_v51 = vand.u32 4294901760, %v14221_v29 }
 0x281   :  { %v4903_v39 = vand.u32 4294901760, %v4902_v5  ;;  %v4910_v41 = vand.u32 4294901760, %v4909_v31  ;;  %v18035_v16 = vand.u32 4294901760, %v14233_v50  ;;  %v18036_v13 = vand.u32 4294901760, %v14238_v59  ;;  %9991 = vmatprep.subr.bf16.mxu0 %v14733_v36  ;;  %10033 = vmatpush3.bf16.msra.mxu1 %v10032_v34  ;;  %v7969_v34 = vpop.f32.mrb[16].mxu1 }
 0x282   :  { %v4790_v1 = vsub.f32 %v14212_v55, %v18033_v4  ;;  %v4797_v0 = vsub.f32 %v14221_v29, %v18034_v51  ;;  %v18037_v19 = vand.u32 4294901760, %v14478_v43  ;;  %v18038_v10 = vand.u32 4294901760, %v14480_v37  ;;  %9993 = vmatpush3.bf16.msra.mxu0 %v14739_v25  ;;  %10035 = vmatprep.subr.bf16.mxu1 %v10034_v20  ;;  %v18043_v43 = vld [vmem:[#allocation35_spill] sm:$0xff]  ;;  %v18046_v4 = vld [vmem:[#allocation8_spill] sm:$0xff]  ;;  %v18050_v20 = vld [vmem:[#allocation22_spill] sm:$0xff] }
 0x283   :  { %v4916_v45 = vsub.f32 %v14233_v50, %v18035_v16  ;;  %v4923_v18 = vsub.f32 %v14238_v59, %v18036_v13  ;;  %v10036_v21 = vpack.c.bf16 %v4784_v3, %v4777_v28  ;;  %v18040_v22 = vand.u32 4294901760, %v18039_v57  ;;  %v18048_v51 = vld [vmem:[#allocation40_spill] sm:$0xff]  ;;  %v7970_v13 = vpop.f32.mrb[17].mxu1 }
 0x284   :  { %v14759_v49 = vpack.c.bf16 %v18038_v10, %v18037_v19  ;;  %v4791_v61 = vand.u32 4294901760, %v4790_v1  ;;  %v4798_v56 = vand.u32 4294901760, %v4797_v0  ;;  %v18042_v31 = vand.u32 4294901760, %v18041_v2 }
 0x285   :  { %v4804_v5 = vsub.f32 %v18039_v57, %v18040_v22  ;;  %v18044_v58 = vand.u32 4294901760, %v18043_v43  ;;  %v18045_v37 = vand.u32 4294901760, %v14495_v42  ;;  %v10038_v14 = vpack.c.bf16 %v4910_v41, %v4903_v39  ;;  %10037 = vmatpush3.bf16.msra.mxu1 %v10036_v21 }
 0x286   :  { %v4811_v63 = vsub.f32 %v18041_v2, %v18042_v31  ;;  %v4917_v28 = vand.u32 4294901760, %v4916_v45  ;;  %v4924_v3 = vand.u32 4294901760, %v4923_v18  ;;  %9995 = vmatprep.subr.bf16.mxu0 %v14759_v49  ;;  %v18047_v1 = vand.u32 4294901760, %v18046_v4  ;;  %v18053_v31 = vld [vmem:[#allocation12_spill] sm:$0xff] }
 0x287   :  { %v14772_v17 = vpack.c.bf16 %v18045_v37, %v18044_v58  ;;  %v18049_v0 = vand.u32 4294901760, %v18048_v51  ;;  %vm4551_vm11 = vcmp.eq.s32.totalorder %v13745_v54, %v18050_v20  ;;  %v7971_v19 = vadd.f32 %v7970_v13, %v7969_v34  ;;  %10039 = vmatprep.subr.bf16.mxu1 %v10038_v14  ;;  %v18065_v34 = vld [vmem:[#allocation34_spill] sm:$0xff]  ;;  %v7934_v51 = vpop.f32.mrb[16].mxu0  ;;  %18100 = vst [vmem:[#allocation12_spill] sm:$0xff] %v14892_v6  ;;  %v14915_v20 = vld [vmem:[#allocation2 + $0x680] sm:$0xff] }
 0x288   :  { %v10040_v42 = vpack.c.bf16 %v4798_v56, %v4791_v61  ;;  %v4805_v10 = vand.u32 4294901760, %v4804_v5  ;;  %v4812_v39 = vand.u32 4294901760, %v4811_v63  ;;  %v18051_v41 = vand.u32 4294901760, %v14537_v9  ;;  %v18060_v63 = vld [vmem:[#allocation38_spill] sm:$0xff] }
 0x289   :  { %v14779_v16 = vpack.c.bf16 %v18049_v0, %v18047_v1  ;;  %9997 = vmatpush3.bf16.msra.mxu0 %v14772_v17  ;;  %v18052_v45 = vand.u32 4294901760, %v14548_v12  ;;  %v10042_v22 = vpack.c.bf16 %v4924_v3, %v4917_v28  ;;  %v18054_v43 = vand.u32 4294901760, %v18053_v31  ;;  %v18058_v12 = vld [vmem:[#allocation27_spill] sm:$0xff]  ;;  %v18063_v28 = vld [vmem:[#allocation33_spill] sm:$0xff]  ;;  %v7935_v0 = vpop.f32.mrb[17].mxu0 }
 0x28a   :  { %v18055_v58 = vand.u32 4294901760, %v14552_v33  ;;  %v18057_v61 = vmov 0.0   ;;  %10041 = vmatpush3.bf16.msra.mxu1 %v10040_v42  ;;  %v10044_v9 = vpack.c.bf16 %v4812_v39, %v4805_v10  ;;  %v18059_v5 = vand.u32 4294901760, %v18058_v12  ;;  %v18068_v42 = vld [vmem:[#allocation41_spill] sm:$0xff]  ;;  %v18070_v39 = vld [vmem:[#allocation42_spill] sm:$0xff] }
 0x28b   :  { %v14788_v18 = vpack.c.bf16 %v18052_v45, %v18051_v41  ;;  %9999 = vmatprep.subr.bf16.mxu0 %v14779_v16  ;;  %v7318_v56 = vsel %vm4551_vm11, 1.0, %v18057_v61  ;;  %10043 = vmatprep.subr.bf16.mxu1 %v10042_v22  ;;  %v18061_v37 = vand.u32 4294901760, %v18060_v63  ;;  %v18064_v3 = vand.u32 4294901760, %v18063_v28  ;;  %v18073_v22 = vld [vmem:[#allocation44_spill] sm:$0xff]  ;;  %v14902_v61 = vld [vmem:[#allocation2 + $0x678] sm:$0xff] }
 0x28c   :  { %v14795_v21 = vpack.c.bf16 %v18055_v58, %v18054_v43  ;;  %v14809_v33 = vsub.f32 %v7318_v56, %v7318_v56  ;;  %v18066_v4 = vand.u32 4294901760, %v18065_v34  ;;  %v7936_v13 = vadd.f32 %v7935_v0, %v7934_v51  ;;  %v18075_v43 = vld [vmem:[#allocation45_spill] sm:$0xff]  ;;  %v18083_v51 = vld [vmem:[#allocation28_spill] sm:$0xff]  ;;  %18102 = vst [vmem:[#allocation38_spill] sm:$0xff] %v14902_v61 }
 0x28d   :  { %10001 = vmatpush3.bf16.msra.mxu0 %v14788_v18  ;;  %v14806_v14 = vpack.c.bf16 %v18061_v37, %v18059_v5  ;;  %v18069_v10 = vand.u32 4294901760, %v18068_v42  ;;  %v18071_v41 = vand.u32 4294901760, %v18070_v39  ;;  %v18074_v31 = vand.u32 4294901760, %v18073_v22  ;;  %v18079_v37 = vld [vmem:[#allocation15_spill] sm:$0xff]  ;;  %v18084_v0 = vld [vmem:[#allocation24_spill] sm:$0xff]  ;;  %v18088_v39 = vld [vmem:[#allocation30_spill] sm:$0xff] }
 0x28e   :  { %18056 = vst [vmem:[#allocation36_spill] sm:$0xff] %v14795_v21  ;;  %10003 = vmatprep.subr.bf16.mxu0 %v14795_v21  ;;  %v14815_v1 = vpack.c.bf16 %v18066_v4, %v18064_v3  ;;  %10045 = vmatpush3.bf16.msra.mxu1 %v10044_v9  ;;  %v18076_v58 = vand.u32 4294901760, %v18075_v43  ;;  %v16891_v9 = vand.u32 4294901760, %v14809_v33  ;;  %v2636_v12 = vadd.f32 %v7936_v13, %v14667_v38  ;;  %v18081_v3 = vld [vmem:[#allocation17_spill] sm:$0xff]  ;;  %v18090_v43 = vld [vmem:[#allocation52_spill] sm:$0xff] }
 0x28f   :  { %18062 = vst [vmem:[#allocation13_spill] sm:$0xff] %v14806_v14  ;;  %10079 = vmatprep.subr.bf16.mxu1 %v14674_v48  ;;  %v14823_v45 = vpack.c.bf16 %v18071_v41, %v18069_v10  ;;  %v18078_v5 = vand.u32 4294901760, %v14361_v24  ;;  %v18080_v28 = vand.u32 4294901760, %v18079_v37  ;;  %v18082_v34 = vand.u32 4294901760, %v18081_v3  ;;  %v18087_v10 = vld [vmem:[#allocation48_spill] sm:$0xff]  ;;  %v18093_v37 = vld [vmem:[#allocation39_spill] sm:$0xff] }
 0x290   :  { %18067 = vst [vmem:[#allocation16_spill] sm:$0xff] %v14815_v1  ;;  %v14830_v56 = vpack.c.bf16 %v18076_v58, %v18074_v31  ;;  %v2740_v63 = vadd.f32 %v7971_v19, %v2636_v12  ;;  %v4695_v4 = vsub.f32 %v14809_v33, %v16891_v9  ;;  %v10046_v13 = vpack.c.bf16 %v18084_v0, %v18083_v51  ;;  %v18085_v19 = vld [vmem:[#allocation25_spill] sm:$0xff]  ;;  %v18089_v31 = vld [vmem:[#allocation51_spill] sm:$0xff] }
 0x291   :  { %10005 = vmatpush3.bf16.msra.mxu0 %v14806_v14  ;;  %18072 = vst [vmem:[#allocation14_spill] sm:$0xff] %v14823_v45  ;;  %7321 = vmatmul.mubr.msk.f32.vlgmr.msra.gmra.mrb[30].mxu1 %vm4551_vm11, %v17121_v15  ;;  %v14847_v38 = vpack.c.bf16 %v18082_v34, %v18080_v28  ;;  %v10048_v41 = vpack.c.bf16 %v18088_v39, %v18087_v10  ;;  %v18091_v12 = vld [vmem:[#allocation31_spill] sm:$0xff]  ;;  %v18094_v28 = vld [vmem:[#allocation50_spill] sm:$0xff]  ;;  %v18095_v34 = vld [vmem:[#allocation37_spill] sm:$0xff] }
 0x292   :  { %10007 = vmatprep.subr.bf16.mxu0 %v14815_v1  ;;  %18077 = vst [vmem:[#allocation47_spill] sm:$0xff] %v14830_v56  ;;  %10081 = vmatpush3.bf16.msra.mxu1 %v14696_v53  ;;  %v14856_v42 = vadd.f32 %v2740_v63, %v18085_v19  ;;  %v4696_v22 = vand.u32 4294901760, %v4695_v4  ;;  %v10050_v58 = vpack.c.bf16 %v18090_v43, %v18089_v31  ;;  %v18096_v4 = vld [vmem:[#allocation43_spill] sm:$0xff] }
 0x293   :  { %5171 = vmatprep.mubr.f32.mxu1 %v18078_v5  ;;  %10083 = vmatprep.subr.bf16.mxu1 %v14703_v35  ;;  %v18092_v5 = vld [vmem:[#allocation23_spill] sm:$0xff]  ;;  %v10054_v3 = vpack.c.bf16 %v18094_v28, %v18093_v37  ;;  %v10060_v19 = vpack.c.bf16 %v14577_v52, %v14572_v23 }
 0x294   :  { %18086 = vst [vmem:[#allocation9_spill] sm:$0xff] %v14856_v42  ;;  %v10052_v63 = vpack.c.bf16 %v18092_v5, %v18091_v12  ;;  %v14890_v42 = vld [vmem:[#allocation2 + $0x6f0] sm:$0xff] }
 0x295   :  { %10009 = vmatpush3.bf16.msra.mxu0 %v14823_v45  ;;  %18099 = vst [vmem:[#allocation40_spill] sm:$0xff] %v14890_v42 }
 0x296   :  { %10011 = vmatprep.subr.bf16.mxu0 %v14830_v56  ;;  %10085 = vmatpush3.bf16.msra.mxu1 %v14709_v44 }
 0x297   :  { %10087 = vmatprep.subr.bf16.mxu1 %v14733_v36 }
 0x299   :  { %10013 = vmatpush3.bf16.msra.mxu0 %v14847_v38 }
 0x29a   :  { %10047 = vmatprep.subr.bf16.mxu0 %v10046_v13  ;;  %10089 = vmatpush3.bf16.msra.mxu1 %v14739_v25  ;;  %v10056_v13 = vpack.c.bf16 %v18096_v4, %v18095_v34 }
 0x29b   :  { %10091 = vmatprep.subr.bf16.mxu1 %v14759_v49 }
 0x29c   :  { %4697 = vmatmul.mubr.f32.vlgmr.msra.gmra.mrb[30].mxu0 %v4696_v22  ;;  %v8039_v22 = vpop.f32.mrb[18].mxu1 }
 0x29d   :  { %10049 = vmatpush3.bf16.msra.mxu0 %v10048_v41  ;;  %5064 = vmatprep.mubr.f32.mxu0 %v14361_v24  ;;  %v10058_v24 = vpack.c.bf16 %v14566_v46, %v14561_v8  ;;  %v14882_v41 = vld [vmem:[#allocation2 + $0x660] sm:$0xff] }
 0x29e   :  { %10051 = vmatprep.subr.bf16.mxu0 %v10050_v58  ;;  %10093 = vmatpush3.bf16.msra.mxu1 %v14772_v17  ;;  %18097 = vst [vmem:[#allocation35_spill] sm:$0xff] %v14882_v41  ;;  %v10062_v58 = vpack.c.bf16 %v14594_v30, %v14589_v7 }
 0x29f   :  { %10095 = vmatprep.subr.bf16.mxu1 %v14779_v16 }
 0x2a1   :  { %10053 = vmatpush3.bf16.msra.mxu0 %v10052_v63  ;;  %v14886_v63 = vld [vmem:[#allocation2 + $0x668] sm:$0xff] }
 0x2a2   :  { %10055 = vmatprep.subr.bf16.mxu0 %v10054_v3  ;;  %10097 = vmatpush3.bf16.msra.mxu1 %v14788_v18  ;;  %18098 = vst [vmem:[#allocation8_spill] sm:$0xff] %v14886_v63  ;;  %v8040_v3 = vpop.f32.mrb[19].mxu1 }
 0x2a3   :  { %10099 = vmatprep.subr.bf16.mxu1 %v14795_v21  ;;  %v8041_v9 = vadd.f32 %v8040_v3, %v8039_v22  ;;  %v10066_v22 = vpack.c.bf16 %v14626_v40, %v14621_v26  ;;  %v14900_v3 = vld [vmem:[#allocation2 + $0x670] sm:$0xff]  ;;  %v14917_v21 = vld [vmem:[#allocation2 + $0x688] sm:$0xff] }
 0x2a4   :  { %18101 = vst [vmem:[#allocation27_spill] sm:$0xff] %v14900_v3  ;;  %v14934_v40 = vld [vmem:[#allocation2 + $0x690] sm:$0xff] }
 0x2a5   :  { %10057 = vmatpush3.bf16.msra.mxu0 %v10056_v13  ;;  %v18104_v13 = vand.u32 4294901760, %v14886_v63 }
 0x2a6   :  { %10059 = vmatprep.subr.bf16.mxu0 %v10058_v24  ;;  %10101 = vmatpush3.bf16.msra.mxu1 %v14806_v14  ;;  %v10064_v24 = vpack.c.bf16 %v14616_v27, %v14611_v32 }
 0x2a7   :  { %10103 = vmatprep.subr.bf16.mxu1 %v14815_v1  ;;  %v14922_v14 = vsub.f32 %v14886_v63, %v18104_v13  ;;  %v14936_v13 = vld [vmem:[#allocation2 + $0x698] sm:$0xff]  ;;  %v18109_v63 = vand.u32 4294901760, %v14809_v33 }
 0x2a9   :  { %10061 = vmatpush3.bf16.msra.mxu0 %v10060_v19  ;;  %v18103_v19 = vand.u32 4294901760, %v14882_v41 }
 0x2aa   :  { %10063 = vmatprep.subr.bf16.mxu0 %v10062_v58  ;;  %10105 = vmatpush3.bf16.msra.mxu1 %v14823_v45  ;;  %v10068_v58 = vpack.c.bf16 %v14182_v60, %v14166_v11  ;;  %v8004_v11 = vpop.f32.mrb[18].mxu0  ;;  %v10072_v60 = vpack.c.bf16 %v14221_v29, %v14212_v55  ;;  %v18105_v45 = vand.u32 4294901760, %v14890_v42  ;;  %v10074_v29 = vpack.c.bf16 %v14238_v59, %v14233_v50 }
 0x2ab   :  { %v14910_v1 = vsub.f32 %v14882_v41, %v18103_v19  ;;  %10107 = vmatprep.subr.bf16.mxu1 %v14830_v56  ;;  %v14928_v41 = vld [vmem:[#allocation2 + $0x600] sm:$0xff]  ;;  %v14932_v56 = vld [vmem:[#allocation2 + $0x608] sm:$0xff] }
 0x2ac   :  { %v14941_v19 = vsub.f32 %v14890_v42, %v18105_v45  ;;  %v16906_v45 = vand.u32 4294901760, %v14922_v14  ;;  %v18108_v42 = vand.u32 4294901760, %v14902_v61 }
 0x2ad   :  { %10065 = vmatpush3.bf16.msra.mxu0 %v10064_v24  ;;  %v10070_v24 = vpack.c.bf16 %v14207_v62, %v14202_v47  ;;  %v8005_v47 = vpop.f32.mrb[19].mxu0  ;;  %v16907_v26 = vand.u32 4294901760, %v14910_v1 }
 0x2ae   :  { %10067 = vmatprep.subr.bf16.mxu0 %v10066_v22  ;;  %v18106_v22 = vand.u32 4294901760, %v14892_v6  ;;  %10109 = vmatpush3.bf16.msra.mxu1 %v14847_v38  ;;  %v8006_v27 = vadd.f32 %v8005_v47, %v8004_v11  ;;  %v14964_v50 = vsub.f32 %v14902_v61, %v18108_v42 }
 0x2af   :  { %10143 = vmatprep.subr.bf16.mxu1 %v14674_v48  ;;  %v14980_v42 = vpack.c.bf16 %v16906_v45, %v16907_v26  ;;  %v14999_v45 = vld [vmem:[#allocation2 + $0x618] sm:$0xff]  ;;  %v15004_v26 = vld [vmem:[#allocation2 + $0x6a0] sm:$0xff] }
 0x2b0   :  { %v14946_v62 = vsub.f32 %v14892_v6, %v18106_v22  ;;  %v18107_v22 = vand.u32 4294901760, %v14900_v3  ;;  %v14970_v47 = vadd.f32 %v8041_v9, %v8006_v27  ;;  %v18112_v27 = vand.u32 4294901760, %v14915_v20 }
 0x2b1   :  { %10069 = vmatpush3.bf16.msra.mxu0 %v10068_v58  ;;  %5175 = vmatmul.mubr.f32.vlgmr.msra.gmra.mrb[32].mxu1 %v18109_v63  ;;  %18110 = vst [vmem:[#allocation33_spill] sm:$0xff] %v14980_v42  ;;  %v18114_v63 = vand.u32 4294901760, %v14917_v21  ;;  %v14997_v58 = vld [vmem:[#allocation2 + $0x610] sm:$0xff]  ;;  %v18123_v42 = vand.u32 4294901760, %v14934_v40  ;;  %v18232_v54 = vand.u32 4294901760, %v15004_v26 }
 0x2b2   :  { %v14959_v6 = vsub.f32 %v14900_v3, %v18107_v22  ;;  %10071 = vmatprep.subr.bf16.mxu0 %v10070_v24  ;;  %v16909_v22 = vand.u32 4294901760, %v14941_v19  ;;  %v16908_v55 = vand.u32 4294901760, %v14946_v62  ;;  %10145 = vmatpush3.bf16.msra.mxu1 %v14696_v53  ;;  %v14990_v9 = vsub.f32 %v14915_v20, %v18112_v27 }
 0x2b3   :  { %7324 = vmatprep.mubr.msk.f32.mxu1 %vm4552_vm10, %v17121_v15  ;;  %v14995_v48 = vsub.f32 %v14917_v21, %v18114_v63  ;;  %10147 = vmatprep.subr.bf16.mxu1 %v14703_v35  ;;  %v10076_v53 = vpack.c.bf16 %v18041_v2, %v18039_v57  ;;  %v18118_v35 = vand.u32 4294901760, %v18084_v0  ;;  %v18119_v57 = vand.u32 4294901760, %v14928_v41 }
 0x2b4   :  { %18113 = vst [vmem:[#allocation34_spill] sm:$0xff] %v14990_v9  ;;  %v15012_v63 = vpack.c.bf16 %v16908_v55, %v16909_v22  ;;  %v18121_v27 = vand.u32 4294901760, %v14932_v56  ;;  %v15031_v55 = vsub.f32 %v14934_v40, %v18123_v42  ;;  %v18132_v3 = vand.u32 4294901760, %v18089_v31 }
 0x2b5   :  { %18115 = vst [vmem:[#allocation41_spill] sm:$0xff] %v14995_v48  ;;  %10073 = vmatpush3.bf16.msra.mxu0 %v10072_v60  ;;  %v18117_v60 = vand.u32 4294901760, %v18083_v51  ;;  %v15021_v2 = vsub.f32 %v14928_v41, %v18119_v57  ;;  %v18125_v51 = vand.u32 4294901760, %v14936_v13  ;;  %v18127_v57 = vand.u32 4294901760, %v14959_v6 }
 0x2b6   :  { %18116 = vst [vmem:[#allocation42_spill] sm:$0xff] %v15012_v63  ;;  %10075 = vmatprep.subr.bf16.mxu0 %v10074_v29  ;;  %v15026_v11 = vsub.f32 %v14932_v56, %v18121_v27  ;;  %18124 = vst [vmem:[#allocation15_spill] sm:$0xff] %v15031_v55  ;;  %v15033_v29 = vld [vmem:[#allocation2 + $0x6a8] sm:$0xff]  ;;  %v18128_v27 = vand.u32 4294901760, %v14964_v50  ;;  %10149 = vmatpush3.bf16.msra.mxu1 %v14709_v44  ;;  %v18134_v44 = vand.u32 4294901760, %v18091_v12  ;;  %v18135_v42 = vand.u32 4294901760, %v18092_v5 }
 0x2b7   :  { %v10110_v59 = vpack.c.bf16 %v18118_v35, %v18117_v60  ;;  %18120 = vst [vmem:[#allocation44_spill] sm:$0xff] %v15021_v2  ;;  %v15038_v0 = vsub.f32 %v14936_v13, %v18125_v51  ;;  %10151 = vmatprep.subr.bf16.mxu1 %v14733_v36  ;;  %v18130_v51 = vand.u32 4294901760, %v18087_v10  ;;  %v18131_v35 = vand.u32 4294901760, %v18088_v39  ;;  %v15075_v12 = vld [vmem:[#allocation2 + $0x628] sm:$0xff] }
 0x2b8   :  { %18122 = vst [vmem:[#allocation45_spill] sm:$0xff] %v15026_v11  ;;  %v15046_v22 = vpack.c.bf16 %v18128_v27, %v18127_v57  ;;  %v18133_v57 = vand.u32 4294901760, %v18090_v43  ;;  %v10116_v63 = vpack.c.bf16 %v18135_v42, %v18134_v44  ;;  %v16914_v61 = vand.u32 4294901760, %v15033_v29 }
 0x2b9   :  { %18126 = vst [vmem:[#allocation17_spill] sm:$0xff] %v15038_v0  ;;  %10077 = vmatpush3.bf16.msra.mxu0 %v10076_v53  ;;  %v10112_v60 = vpack.c.bf16 %v18131_v35, %v18130_v51  ;;  %v18136_v36 = vand.u32 4294901760, %v18093_v37  ;;  %v18137_v10 = vand.u32 4294901760, %v18094_v28  ;;  %v16913_v39 = vand.u32 4294901760, %v15021_v2 }
 0x2ba   :  { %18129 = vst [vmem:[#allocation28_spill] sm:$0xff] %v15046_v22  ;;  %v10114_v27 = vpack.c.bf16 %v18133_v57, %v18132_v3  ;;  %10111 = vmatprep.subr.bf16.mxu0 %v10110_v59  ;;  %v16912_v31 = vand.u32 4294901760, %v15026_v11  ;;  %v16915_v43 = vand.u32 4294901760, %v15031_v55  ;;  %v15073_v3 = vld [vmem:[#allocation2 + $0x620] sm:$0xff]  ;;  %v18138_v5 = vand.u32 4294901760, %v18095_v34  ;;  %10153 = vmatpush3.bf16.msra.mxu1 %v14739_v25  ;;  %v18168_v22 = vld [vmem:[#allocation49_spill] sm:$0xff] }
 0x2bb   :  { %v10118_v53 = vpack.c.bf16 %v18137_v10, %v18136_v36  ;;  %v18139_v35 = vand.u32 4294901760, %v18096_v4  ;;  %v16916_v37 = vand.u32 4294901760, %v15038_v0  ;;  %v18140_v28 = vand.u32 4294901760, %v14997_v58  ;;  %10155 = vmatprep.subr.bf16.mxu1 %v14759_v49 }
 0x2bc   :  { %v18142_v51 = vand.u32 4294901760, %v14999_v45  ;;  %5067 = vmatmul.mubr.f32.vlgmr.msra.gmra.mrb[32].mxu0 %v14809_v33  ;;  %v18144_v34 = vand.u32 4294901760, %v14990_v9  ;;  %v18145_v44 = vand.u32 4294901760, %v14995_v48  ;;  %v18146_v10 = vand.u32 4294901760, %v15004_v26 }
 0x2bd   :  { %v10120_v59 = vpack.c.bf16 %v18139_v35, %v18138_v5  ;;  %v15085_v42 = vsub.f32 %v14997_v58, %v18140_v28  ;;  %v15105_v35 = vld [vmem:[#allocation2 + $0x6b0] sm:$0xff]  ;;  %10113 = vmatpush3.bf16.msra.mxu0 %v10112_v60  ;;  %7322 = vmatprep.mubr.msk.f32.mxu0 %vm4552_vm10, %v17121_v15  ;;  %v18148_v25 = vand.u32 4294901760, %v14561_v8  ;;  %v18149_v33 = vand.u32 4294901760, %v14566_v46 }
 0x2be   :  { %v15090_v57 = vsub.f32 %v14999_v45, %v18142_v51  ;;  %v5723_v4 = vsub.f32 %v14990_v9, %v18144_v34  ;;  %v5730_v36 = vsub.f32 %v14995_v48, %v18145_v44  ;;  %v15103_v5 = vsub.f32 %v15004_v26, %v18146_v10  ;;  %10115 = vmatprep.subr.bf16.mxu0 %v10114_v27  ;;  %v15137_v27 = vld [vmem:[#allocation2 + $0x6b8] sm:$0xff] }
 0x2bf   :  { %18141 = vst [vmem:[#allocation24_spill] sm:$0xff] %v15085_v42  ;;  %v10122_v28 = vpack.c.bf16 %v18149_v33, %v18148_v25  ;;  %v15118_v51 = vsub.f32 %v15033_v29, %v16914_v61  ;;  %v5611_v60 = vsub.f32 %v15021_v2, %v16913_v39  ;;  %v5618_v46 = vsub.f32 %v15026_v11, %v16912_v31  ;;  %v18166_v33 = vld [vmem:[#allocation11_spill] sm:$0xff] }
 0x2c0   :  { %18143 = vst [vmem:[#allocation25_spill] sm:$0xff] %v15090_v57  ;;  %18147 = vst [vmem:[#allocation48_spill] sm:$0xff] %v15103_v5  ;;  %v5737_v8 = vsub.f32 %v15031_v55, %v16915_v43  ;;  %v5744_v10 = vsub.f32 %v15038_v0, %v16916_v37  ;;  %10157 = vmatpush3.bf16.msra.mxu1 %v14772_v17  ;;  %v18151_v31 = vand.u32 4294901760, %v14572_v23  ;;  %v18152_v39 = vand.u32 4294901760, %v14577_v52  ;;  %v18171_v0 = vld [vmem:[#allocation36_spill] sm:$0xff]  ;;  %v18195_v55 = vld [vmem:[#allocation47_spill] sm:$0xff] }
 0x2c1   :  { %18150 = vst [vmem:[#allocation30_spill] sm:$0xff] %v15118_v51  ;;  %v5724_v43 = vand.u32 4294901760, %v5723_v4  ;;  %v5731_v44 = vand.u32 4294901760, %v5730_v36  ;;  %10117 = vmatpush3.bf16.msra.mxu0 %v10116_v63  ;;  %10159 = vmatprep.subr.bf16.mxu1 %v14779_v16  ;;  %v18153_v37 = vand.u32 4294901760, %v14589_v7  ;;  %v18154_v49 = vand.u32 4294901760, %v14594_v30  ;;  %v15163_v30 = vld [vmem:[#allocation2 + $0x630] sm:$0xff] }
 0x2c2   :  { %v10124_v61 = vpack.c.bf16 %v18152_v39, %v18151_v31  ;;  %v18155_v17 = vand.u32 4294901760, %v15073_v3  ;;  %v18157_v52 = vand.u32 4294901760, %v15075_v12  ;;  %10119 = vmatprep.subr.bf16.mxu0 %v10118_v53  ;;  %v5612_v63 = vand.u32 4294901760, %v5611_v60  ;;  %v15176_v60 = vld [vmem:[#allocation2 + $0x638] sm:$0xff] }
 0x2c3   :  { %v10126_v25 = vpack.c.bf16 %v18154_v49, %v18153_v37  ;;  %v5619_v16 = vand.u32 4294901760, %v5618_v46  ;;  %v5738_v31 = vand.u32 4294901760, %v5737_v8  ;;  %v5745_v37 = vand.u32 4294901760, %v5744_v10  ;;  %v15178_v46 = vld [vmem:[#allocation2 + $0x6c0] sm:$0xff]  ;;  %v18164_v10 = vld [vmem:[#allocation29_spill] sm:$0xff] }
 0x2c4   :  { %v15155_v23 = vsub.f32 %v15073_v3, %v18155_v17  ;;  %v15160_v39 = vsub.f32 %v15075_v12, %v18157_v52  ;;  %v18159_v4 = vand.u32 4294901760, %v15085_v42  ;;  %v18160_v49 = vand.u32 4294901760, %v15090_v57  ;;  %10161 = vmatpush3.bf16.msra.mxu1 %v14788_v18 }
 0x2c5   :  { %v18161_v52 = vand.u32 4294901760, %v15105_v35  ;;  %v18163_v8 = vand.u32 4294901760, %v14611_v32  ;;  %v18165_v7 = vand.u32 4294901760, %v18164_v10  ;;  %v18167_v34 = vand.u32 4294901760, %v18166_v33  ;;  %10121 = vmatpush3.bf16.msra.mxu0 %v10120_v59  ;;  %10163 = vmatprep.subr.bf16.mxu1 %v18171_v0 }
 0x2c6   :  { %18156 = vst [vmem:[#allocation51_spill] sm:$0xff] %v15155_v23  ;;  %18158 = vst [vmem:[#allocation52_spill] sm:$0xff] %v15160_v39  ;;  %v5625_v36 = vsub.f32 %v15085_v42, %v18159_v4  ;;  %v5632_v17 = vsub.f32 %v15090_v57, %v18160_v49  ;;  %v18169_v49 = vand.u32 4294901760, %v18168_v22  ;;  %v15189_v57 = vpack.c.bf16 %v5731_v44, %v5724_v43  ;;  %v15203_v43 = vpop.permute.xlu1 %5454  ;;  %v8109_v44 = vpop.f32.mrb[20].mxu1 }
 0x2c7   :  { %v15174_v53 = vsub.f32 %v15105_v35, %v18161_v52  ;;  %v10128_v4 = vpack.c.bf16 %v18165_v7, %v18163_v8  ;;  %v18170_v52 = vand.u32 4294901760, %v15103_v5  ;;  %v18172_v18 = vand.u32 4294901760, %v15118_v51  ;;  %10123 = vmatprep.subr.bf16.mxu0 %v10122_v28  ;;  %v18175_v28 = vld [vmem:[#allocation13_spill] sm:$0xff] }
 0x2c8   :  { %v10130_v24 = vpack.c.bf16 %v18169_v49, %v18167_v34  ;;  %v15201_v34 = vld [vmem:[#allocation2 + $0x6c8] sm:$0xff]  ;;  %v15205_v8 = vpack.c.bf16 %v5619_v16, %v5612_v63  ;;  %v18173_v0 = vand.u32 4294901760, %v15137_v27  ;;  %v16932_v10 = vand.u32 4294901760, %v15176_v60  ;;  %10165 = vmatpush3.bf16.msra.mxu1 %v18175_v28 }
 0x2c9   :  { %18162 = vst [vmem:[#allocation31_spill] sm:$0xff] %v15174_v53  ;;  %v5751_v42 = vsub.f32 %v15103_v5, %v18170_v52  ;;  %v5758_v32 = vsub.f32 %v15118_v51, %v18172_v18  ;;  %v8110_v52 = vpop.f32.mrb[21].mxu1  ;;  %v15214_v18 = vpack.c.bf16 %v5745_v37, %v5738_v31  ;;  %v5626_v22 = vand.u32 4294901760, %v5625_v36  ;;  %v18177_v5 = vld [vmem:[#allocation20_spill] sm:$0xff]  ;;  %10125 = vmatpush3.bf16.msra.mxu0 %v10124_v61  ;;  %v15243_v61 = vld [vmem:[#allocation2 + $0x6d0] sm:$0xff] }
 0x2ca   :  { %v15210_v59 = vsub.f32 %v15137_v27, %v18173_v0  ;;  %v5633_v33 = vand.u32 4294901760, %v5632_v17  ;;  %v15217_v51 = vadd.f32 %v8110_v52, %v8109_v44  ;;  %v15221_v0 = vld [vmem:[#allocation2 + $0x640] sm:$0xff]  ;;  %vm5457_vm12 = vcmp.eq.s32.totalorder %v15203_v43, %v18177_v5  ;;  %v18178_v49 = vld [vmem:[#allocation16_spill] sm:$0xff]  ;;  %18184 = vst [vmem:[#allocation43_spill] sm:$0xff] %v15243_v61  ;;  %10127 = vmatprep.subr.bf16.mxu0 %v10126_v25  ;;  %v15287_v25 = vld [vmem:[#allocation2 + $0x658] sm:$0xff] }
 0x2cb   :  { %v5752_v63 = vand.u32 4294901760, %v5751_v42  ;;  %18176 = vst [vmem:[#allocation39_spill] sm:$0xff] %v15221_v0  ;;  %10167 = vmatprep.subr.bf16.mxu1 %v18178_v49  ;;  %v5759_v31 = vand.u32 4294901760, %v5758_v32  ;;  %v18179_v37 = vand.u32 4294901760, %v15155_v23  ;;  %v18180_v17 = vand.u32 4294901760, %v15160_v39  ;;  %v15241_v28 = vld [vmem:[#allocation2 + $0x648] sm:$0xff] }
 0x2cc   :  { %18174 = vst [vmem:[#allocation23_spill] sm:$0xff] %v15210_v59  ;;  %v18181_v44 = vand.u32 4294901760, %v15163_v30  ;;  %18183 = vst [vmem:[#allocation37_spill] sm:$0xff] %v15241_v28  ;;  %v15245_v32 = vld [vmem:[#allocation2 + $0x6d8] sm:$0xff]  ;;  %v18185_v49 = vand.u32 4294901760, %v14915_v20  ;;  %v18188_v7 = vand.u32 4294901760, %v15178_v46 }
 0x2cd   :  { %v15229_v36 = vsub.f32 %v15155_v23, %v18179_v37  ;;  %v15234_v42 = vsub.f32 %v15160_v39, %v18180_v17  ;;  %v18186_v37 = vand.u32 4294901760, %v14917_v21  ;;  %v15264_v23 = vpack.c.bf16 %v5633_v33, %v5626_v22  ;;  %10129 = vmatpush3.bf16.msra.mxu0 %v10128_v4  ;;  %v15300_v4 = vld [vmem:[#allocation2 + $0x6e0] sm:$0xff] }
 0x2ce   :  { %v15239_v52 = vsub.f32 %v15163_v30, %v18181_v44  ;;  %v15257_v44 = vsub.f32 %v15176_v60, %v16932_v10  ;;  %v15262_v39 = vsub.f32 %v15178_v46, %v18188_v7  ;;  %v18190_v20 = vand.u32 4294901760, %v15174_v53  ;;  %v18192_v10 = vld [vmem:[#allocation14_spill] sm:$0xff]  ;;  %10131 = vmatprep.subr.bf16.mxu0 %v10130_v24 }
 0x2cf   :  { %v15251_v16 = vpack.c.bf16 %v18186_v37, %v18185_v49  ;;  %v18191_v49 = vmov 0.0   ;;  %10169 = vmatpush3.bf16.msra.mxu1 %v18192_v10  ;;  %v18193_v17 = vand.u32 4294901760, %v15201_v34  ;;  %v15290_v11 = vpack.c.bf16 %v5759_v31, %v5752_v63  ;;  %v8074_v31 = vpop.f32.mrb[20].mxu0 }
 0x2d0   :  { %18182 = vst [vmem:[#allocation50_spill] sm:$0xff] %v15239_v52  ;;  %18187 = vst [vmem:[#allocation29_spill] sm:$0xff] %v15257_v44  ;;  %v15269_v21 = vsub.f32 %v15174_v53, %v18190_v20  ;;  %v7327_v37 = vsel %vm5457_vm12, 1.0, %v18191_v49  ;;  %v15285_v53 = vld [vmem:[#allocation2 + $0x650] sm:$0xff]  ;;  %10171 = vmatprep.subr.bf16.mxu1 %v18195_v55  ;;  %v5640_v10 = vand.u32 4294901760, %v15229_v36  ;;  %v18196_v22 = vand.u32 4294901760, %v15210_v59 }
 0x2d1   :  { %18189 = vst [vmem:[#allocation11_spill] sm:$0xff] %v15262_v39  ;;  %v15280_v7 = vsub.f32 %v15201_v34, %v18193_v17  ;;  %v5647_v17 = vand.u32 4294901760, %v15234_v42  ;;  %v15302_v55 = vld [vmem:[#allocation2 + $0x6e8] sm:$0xff]  ;;  %v15304_v63 = vsub.f32 %v7327_v37, %v7327_v37  ;;  %v18198_v42 = vand.u32 4294901760, %v15221_v0  ;;  %v8075_v2 = vpop.f32.mrb[21].mxu0  ;;  %v18204_v49 = vld [vmem:[#allocation18_spill] sm:$0xff] }
 0x2d2   :  { %v5772_v20 = vsub.f32 %v15210_v59, %v18196_v22  ;;  %18197 = vst [vmem:[#allocation36_spill] sm:$0xff] %v15302_v55  ;;  %v5766_v36 = vand.u32 4294901760, %v15269_v21  ;;  %v18199_v37 = vand.u32 4294901760, %v15241_v28  ;;  %v18200_v21 = vand.u32 4294901760, %v15243_v61  ;;  %10133 = vmatpush3.bf16.msra.mxu0 %v18204_v49 }
 0x2d3   :  { %18194 = vst [vmem:[#allocation49_spill] sm:$0xff] %v15280_v7  ;;  %v15310_v24 = vsub.f32 %v15221_v0, %v18198_v42  ;;  %10173 = vmatpush3.bf16.msra.mxu1 %v14847_v38  ;;  %v18202_v42 = vand.u32 4294901760, %v15245_v32  ;;  %v8076_v33 = vadd.f32 %v8075_v2, %v8074_v31  ;;  %v18205_v38 = vand.u32 4294901760, %v15239_v52 }
 0x2d4   :  { %v15319_v59 = vsub.f32 %v15241_v28, %v18199_v37  ;;  %v15324_v9 = vsub.f32 %v15243_v61, %v18200_v21  ;;  %10207 = vmatprep.subr.bf16.mxu1 %v15189_v57  ;;  %v18206_v21 = vld [vmem:[#allocation26_spill] sm:$0xff]  ;;  %v5773_v61 = vand.u32 4294901760, %v5772_v20  ;;  %v18207_v0 = vand.u32 4294901760, %v15257_v44 }
 0x2d5   :  { %v15329_v22 = vsub.f32 %v15245_v32, %v18202_v42  ;;  %v5653_v37 = vsub.f32 %v15239_v52, %v18205_v38  ;;  %10135 = vmatprep.subr.bf16.mxu0 %v18206_v21  ;;  %v18208_v2 = vand.u32 4294901760, %v15262_v39  ;;  %v3262_v31 = vadd.f32 %v8076_v33, %v14970_v47  ;;  %v18219_v57 = vld [vmem:[#allocation46_spill] sm:$0xff] }
 0x2d6   :  { %18201 = vst [vmem:[#allocation13_spill] sm:$0xff] %v15324_v9  ;;  %v5660_v42 = vsub.f32 %v15257_v44, %v18207_v0  ;;  %7325 = vmatmul.mubr.msk.f32.vlgmr.msra.gmra.mrb[34].mxu1 %vm4551_vm11, %v17121_v15  ;;  %v18210_v20 = vand.u32 4294901760, %v15285_v53  ;;  %v18211_v0 = vand.u32 4294901760, %v15287_v25  ;;  %v18213_v47 = vand.u32 4294901760, %v15280_v7 }
 0x2d7   :  { %18203 = vst [vmem:[#allocation16_spill] sm:$0xff] %v15329_v22  ;;  %v5779_v49 = vsub.f32 %v15262_v39, %v18208_v2  ;;  %10209 = vmatpush3.bf16.msra.mxu1 %v15205_v8  ;;  %7328 = vmatprep.mubr.msk.f32.mxu1 %vm5457_vm12, %v17121_v15  ;;  %v18215_v8 = vand.u32 4294901760, %v15300_v4  ;;  %v15386_v48 = vadd.f32 %v15217_v51, %v3262_v31  ;;  %v5654_v39 = vand.u32 4294901760, %v5653_v37 }
 0x2d8   :  { %v15355_v28 = vsub.f32 %v15285_v53, %v18210_v20  ;;  %v15360_v2 = vsub.f32 %v15287_v25, %v18211_v0  ;;  %v5786_v33 = vsub.f32 %v15280_v7, %v18213_v47  ;;  %v18214_v20 = vld [vmem:[#allocation32_spill] sm:$0xff]  ;;  %10211 = vmatprep.subr.bf16.mxu1 %v15214_v18  ;;  %v18217_v47 = vand.u32 4294901760, %v15302_v55 }
 0x2d9   :  { %10137 = vmatpush3.bf16.msra.mxu0 %v18214_v20  ;;  %v15378_v0 = vsub.f32 %v15300_v4, %v18215_v8  ;;  %v10216_v5 = vpack.c.bf16 %v5647_v17, %v5640_v10  ;;  %v18220_v20 = vand.u32 4294901760, %v14928_v41  ;;  %v18221_v18 = vand.u32 4294901760, %v14932_v56 }
 0x2da   :  { %18212 = vst [vmem:[#allocation14_spill] sm:$0xff] %v15360_v2  ;;  %v15383_v21 = vsub.f32 %v15302_v55, %v18217_v47  ;;  %10139 = vmatprep.subr.bf16.mxu0 %v18219_v57  ;;  %v18222_v8 = vand.u32 4294901760, %v15304_v63  ;;  %v10218_v52 = vpack.c.bf16 %v5773_v61, %v5766_v36  ;;  %v5661_v47 = vand.u32 4294901760, %v5660_v42  ;;  %v18227_v42 = vld [vmem:[#allocation10_spill] sm:$0xff] }
 0x2db   :  { %18216 = vst [vmem:[#allocation47_spill] sm:$0xff] %v15378_v0  ;;  %v15393_v7 = vpack.c.bf16 %v18221_v18, %v18220_v20  ;;  %v16963_v55 = vand.u32 4294901760, %v15355_v28  ;;  %v16962_v51 = vand.u32 4294901760, %v15360_v2  ;;  %10213 = vmatpush3.bf16.msra.mxu1 %v15264_v23  ;;  %v18223_v10 = vand.u32 4294901760, %v15310_v24 }
 0x2dc   :  { %18218 = vst [vmem:[#allocation18_spill] sm:$0xff] %v15383_v21  ;;  %v5594_v44 = vsub.f32 %v15304_v63, %v18222_v8  ;;  %v18224_v56 = vand.u32 4294901760, %v15319_v59  ;;  %v18225_v37 = vand.u32 4294901760, %v15324_v9  ;;  %v18226_v61 = vand.u32 4294901760, %v15329_v22  ;;  %10215 = vmatprep.subr.bf16.mxu1 %v15290_v11 }
 0x2dd   :  { %v5667_v41 = vsub.f32 %v15310_v24, %v18223_v10  ;;  %10141 = vmatpush3.bf16.msra.mxu0 %v18227_v42  ;;  %v5780_v23 = vand.u32 4294901760, %v5779_v49  ;;  %v5787_v31 = vand.u32 4294901760, %v5786_v33  ;;  %v16961_v20 = vand.u32 4294901760, %v15378_v0 }
 0x2de   :  { %v5674_v17 = vsub.f32 %v15319_v59, %v18224_v56  ;;  %v5793_v57 = vsub.f32 %v15324_v9, %v18225_v37  ;;  %v5800_v36 = vsub.f32 %v15329_v22, %v18226_v61  ;;  %v16960_v18 = vand.u32 4294901760, %v15383_v21  ;;  %10175 = vmatprep.subr.bf16.mxu0 %v15251_v16 }
 0x2df   :  { %v18228_v8 = vand.u32 4294901760, %v14934_v40  ;;  %v18229_v10 = vand.u32 4294901760, %v14936_v13  ;;  %v5595_v37 = vand.u32 4294901760, %v5594_v44  ;;  %v10220_v61 = vpack.c.bf16 %v5661_v47, %v5654_v39  ;;  %10217 = vmatpush3.bf16.msra.mxu1 %v10216_v5 }
 0x2e0   :  { %v18230_v42 = vand.u32 4294901760, %v14997_v58  ;;  %v18231_v11 = vand.u32 4294901760, %v14999_v45  ;;  %v5681_v33 = vsub.f32 %v15355_v28, %v16963_v55  ;;  %v5688_v40 = vsub.f32 %v15360_v2, %v16962_v51  ;;  %7323 = vmatmul.mubr.msk.f32.vlgmr.msra.gmra.mrb[34].mxu0 %vm4551_vm11, %v17121_v15  ;;  %10219 = vmatprep.subr.bf16.mxu1 %v10218_v52  ;;  %v15603_v51 = vld [vmem:[#allocation2 + $0x760] sm:$0xff]  ;;  %v15605_v55 = vld [vmem:[#allocation2 + $0x768] sm:$0xff] }
 0x2e1   :  { %v15422_v56 = vpack.c.bf16 %v18229_v10, %v18228_v8  ;;  %v5668_v13 = vand.u32 4294901760, %v5667_v41  ;;  %v5675_v58 = vand.u32 4294901760, %v5674_v17  ;;  %v5794_v39 = vand.u32 4294901760, %v5793_v57  ;;  %10177 = vmatpush3.bf16.msra.mxu0 %v15393_v7  ;;  %5596 = vmatprep.mubr.f32.mxu0 %v5595_v37 }
 0x2e2   :  { %v15428_v49 = vpack.c.bf16 %v18231_v11, %v18230_v42  ;;  %v5801_v45 = vand.u32 4294901760, %v5800_v36  ;;  %v10222_v44 = vpack.c.bf16 %v5787_v31, %v5780_v23  ;;  %v5807_v47 = vsub.f32 %v15378_v0, %v16961_v20 }
 0x2e3   :  { %v5814_v8 = vsub.f32 %v15383_v21, %v16960_v18  ;;  %10179 = vmatprep.subr.bf16.mxu0 %v15422_v56  ;;  %v18233_v5 = vand.u32 4294901760, %v15033_v29  ;;  %v18234_v52 = vand.u32 4294901760, %v15073_v3  ;;  %v18235_v17 = vand.u32 4294901760, %v15075_v12  ;;  %10221 = vmatpush3.bf16.msra.mxu1 %v10220_v61  ;;  %v18300_v18 = vld [vmem:[#allocation49_spill] sm:$0xff] }
 0x2e4   :  { %v5682_v36 = vand.u32 4294901760, %v5681_v33  ;;  %v5689_v23 = vand.u32 4294901760, %v5688_v40  ;;  %v10224_v31 = vpack.c.bf16 %v5675_v58, %v5668_v13  ;;  %v10226_v10 = vpack.c.bf16 %v5801_v45, %v5794_v39  ;;  %10223 = vmatprep.subr.bf16.mxu1 %v10222_v44 }
 0x2e5   :  { %v15452_v41 = vpack.c.bf16 %v18233_v5, %v18232_v54  ;;  %v15458_v57 = vpack.c.bf16 %v18235_v17, %v18234_v52  ;;  %v18236_v42 = vand.u32 4294901760, %v14910_v1  ;;  %v18237_v29 = vand.u32 4294901760, %v14922_v14  ;;  %10181 = vmatpush3.bf16.msra.mxu0 %v15428_v49 }
 0x2e6   :  { %v5808_v3 = vand.u32 4294901760, %v5807_v47  ;;  %v5815_v12 = vand.u32 4294901760, %v5814_v8  ;;  %v18238_v37 = vand.u32 4294901760, %v14941_v19  ;;  %v18239_v61 = vand.u32 4294901760, %v14946_v62 }
 0x2e7   :  { %v5695_v26 = vsub.f32 %v14910_v1, %v18236_v42  ;;  %v5702_v11 = vsub.f32 %v14922_v14, %v18237_v29  ;;  %10183 = vmatprep.subr.bf16.mxu0 %v15452_v41  ;;  %v18240_v13 = vand.u32 4294901760, %v15105_v35  ;;  %v18241_v58 = vand.u32 4294901760, %v15137_v27  ;;  %10225 = vmatpush3.bf16.msra.mxu1 %v10224_v31  ;;  %v8179_v42 = vpop.f32.mrb[22].mxu1 }
 0x2e8   :  { %v5821_v33 = vsub.f32 %v14941_v19, %v18238_v37  ;;  %v5828_v40 = vsub.f32 %v14946_v62, %v18239_v61  ;;  %v10228_v45 = vpack.c.bf16 %v5689_v23, %v5682_v36  ;;  %v18242_v8 = vand.u32 4294901760, %v14959_v6  ;;  %10227 = vmatprep.subr.bf16.mxu1 %v10226_v10  ;;  %v8180_v37 = vpop.f32.mrb[23].mxu1  ;;  %v18248_v10 = vld [vmem:[#allocation19_spill] sm:$0xff] }
 0x2e9   :  { %v15478_v39 = vpack.c.bf16 %v18241_v58, %v18240_v13  ;;  %v5696_v44 = vand.u32 4294901760, %v5695_v26  ;;  %v5703_v47 = vand.u32 4294901760, %v5702_v11  ;;  %v18243_v5 = vand.u32 4294901760, %v14964_v50  ;;  %10185 = vmatpush3.bf16.msra.mxu0 %v15458_v57  ;;  %v18254_v58 = vld [vmem:[#allocation43_spill] sm:$0xff] }
 0x2ea   :  { %v5709_v54 = vsub.f32 %v14959_v6, %v18242_v8  ;;  %v18244_v35 = vand.u32 4294901760, %v15163_v30  ;;  %v18245_v27 = vand.u32 4294901760, %v15176_v60  ;;  %v10230_v36 = vpack.c.bf16 %v5815_v12, %v5808_v3  ;;  %v18249_v12 = vld [vmem:[#allocation39_spill] sm:$0xff] }
 0x2eb   :  { %v5716_v52 = vsub.f32 %v14964_v50, %v18243_v5  ;;  %v5822_v23 = vand.u32 4294901760, %v5821_v33  ;;  %v5829_v31 = vand.u32 4294901760, %v5828_v40  ;;  %10187 = vmatprep.subr.bf16.mxu0 %v15478_v39  ;;  %v18246_v26 = vand.u32 4294901760, %v15178_v46  ;;  %10229 = vmatpush3.bf16.msra.mxu1 %v10228_v45  ;;  %v18251_v40 = vld [vmem:[#allocation37_spill] sm:$0xff] }
 0x2ec   :  { %v15491_v17 = vpack.c.bf16 %v18245_v27, %v18244_v35  ;;  %v18247_v29 = vand.u32 4294901760, %v15201_v34  ;;  %vm5456_vm13 = vcmp.eq.s32.totalorder %v15203_v43, %v18248_v10  ;;  %v8181_v30 = vadd.f32 %v8180_v37, %v8179_v42  ;;  %10231 = vmatprep.subr.bf16.mxu1 %v10230_v36 }
 0x2ed   :  { %v10232_v60 = vpack.c.bf16 %v5703_v47, %v5696_v44  ;;  %v5710_v61 = vand.u32 4294901760, %v5709_v54  ;;  %v5717_v3 = vand.u32 4294901760, %v5716_v52  ;;  %v18250_v33 = vand.u32 4294901760, %v18249_v12 }
 0x2ee   :  { %v15498_v11 = vpack.c.bf16 %v18247_v29, %v18246_v26  ;;  %10189 = vmatpush3.bf16.msra.mxu0 %v15491_v17  ;;  %v18252_v46 = vand.u32 4294901760, %v18251_v40  ;;  %v10234_v34 = vpack.c.bf16 %v5829_v31, %v5822_v23  ;;  %v18255_v8 = vand.u32 4294901760, %v18254_v58  ;;  %v18263_v23 = vld [vmem:[#allocation36_spill] sm:$0xff]  ;;  %v8144_v26 = vpop.f32.mrb[22].mxu0 }
 0x2ef   :  { %v18256_v5 = vand.u32 4294901760, %v15245_v32  ;;  %v18258_v44 = vmov 0.0   ;;  %10233 = vmatpush3.bf16.msra.mxu1 %v10232_v60  ;;  %v10236_v54 = vpack.c.bf16 %v5717_v3, %v5710_v61  ;;  %v18259_v52 = vand.u32 4294901760, %v15285_v53  ;;  %v8145_v29 = vpop.f32.mrb[23].mxu0  ;;  %v18266_v53 = vld [vmem:[#allocation35_spill] sm:$0xff]  ;;  %v18268_v60 = vld [vmem:[#allocation8_spill] sm:$0xff] }
 0x2f0   :  { %v15507_v13 = vpack.c.bf16 %v18252_v46, %v18250_v33  ;;  %10191 = vmatprep.subr.bf16.mxu0 %v15498_v11  ;;  %v7326_v47 = vsel %vm5456_vm13, 1.0, %v18258_v44  ;;  %10235 = vmatprep.subr.bf16.mxu1 %v10234_v34  ;;  %v18260_v35 = vand.u32 4294901760, %v15287_v25  ;;  %v18262_v32 = vand.u32 4294901760, %v15300_v4  ;;  %v18271_v4 = vld [vmem:[#allocation40_spill] sm:$0xff]  ;;  %18301 = vst [vmem:[#allocation36_spill] sm:$0xff] %v15603_v51  ;;  %18302 = vst [vmem:[#allocation35_spill] sm:$0xff] %v15605_v55 }
 0x2f1   :  { %v15514_v45 = vpack.c.bf16 %v18256_v5, %v18255_v8  ;;  %v15527_v36 = vsub.f32 %v7326_v47, %v7326_v47  ;;  %v18264_v31 = vand.u32 4294901760, %v18263_v23  ;;  %v8146_v37 = vadd.f32 %v8145_v29, %v8144_v26  ;;  %v18273_v33 = vld [vmem:[#allocation12_spill] sm:$0xff]  ;;  %v18277_v47 = vld [vmem:[#allocation27_spill] sm:$0xff]  ;;  %v18281_v23 = vld [vmem:[#allocation34_spill] sm:$0xff] }
 0x2f2   :  { %18253 = vst [vmem:[#allocation26_spill] sm:$0xff] %v15507_v13  ;;  %10193 = vmatpush3.bf16.msra.mxu0 %v15507_v13  ;;  %v15525_v27 = vpack.c.bf16 %v18260_v35, %v18259_v52  ;;  %v18267_v25 = vand.u32 4294901760, %v18266_v53  ;;  %v18269_v61 = vand.u32 4294901760, %v18268_v60  ;;  %v18272_v12 = vand.u32 4294901760, %v18271_v4  ;;  %v18279_v52 = vld [vmem:[#allocation38_spill] sm:$0xff]  ;;  %v18286_v53 = vld [vmem:[#allocation45_spill] sm:$0xff] }
 0x2f3   :  { %18257 = vst [vmem:[#allocation32_spill] sm:$0xff] %v15514_v45  ;;  %10195 = vmatprep.subr.bf16.mxu0 %v15514_v45  ;;  %v15534_v42 = vpack.c.bf16 %v18264_v31, %v18262_v32  ;;  %10237 = vmatpush3.bf16.msra.mxu1 %v10236_v54  ;;  %v18274_v40 = vand.u32 4294901760, %v18273_v33  ;;  %v16964_v34 = vand.u32 4294901760, %v15527_v36  ;;  %v3538_v58 = vadd.f32 %v8146_v37, %v15386_v48  ;;  %v18282_v31 = vld [vmem:[#allocation41_spill] sm:$0xff]  ;;  %v18285_v37 = vld [vmem:[#allocation44_spill] sm:$0xff] }
 0x2f4   :  { %18261 = vst [vmem:[#allocation46_spill] sm:$0xff] %v15525_v27  ;;  %10271 = vmatprep.subr.bf16.mxu1 %v15251_v16  ;;  %v15542_v3 = vpack.c.bf16 %v18269_v61, %v18267_v25  ;;  %v18276_v8 = vand.u32 4294901760, %v15304_v63  ;;  %v18278_v54 = vand.u32 4294901760, %v18277_v47  ;;  %v18280_v35 = vand.u32 4294901760, %v18279_v52  ;;  %v18287_v61 = vld [vmem:[#allocation15_spill] sm:$0xff]  ;;  %v18288_v4 = vld [vmem:[#allocation17_spill] sm:$0xff] }
 0x2f5   :  { %18265 = vst [vmem:[#allocation10_spill] sm:$0xff] %v15534_v42  ;;  %v15549_v46 = vpack.c.bf16 %v18274_v40, %v18272_v12  ;;  %v3642_v5 = vadd.f32 %v8181_v30, %v3538_v58  ;;  %v5600_v32 = vsub.f32 %v15527_v36, %v16964_v34  ;;  %v10238_v26 = vpack.c.bf16 %v18282_v31, %v18281_v23  ;;  %v18283_v30 = vld [vmem:[#allocation9_spill] sm:$0xff]  ;;  %v18289_v33 = vld [vmem:[#allocation24_spill] sm:$0xff] }
 0x2f6   :  { %10197 = vmatpush3.bf16.msra.mxu0 %v15525_v27  ;;  %18270 = vst [vmem:[#allocation39_spill] sm:$0xff] %v15542_v3  ;;  %7329 = vmatmul.mubr.msk.f32.vlgmr.msra.gmra.mrb[36].mxu1 %vm5456_vm13, %v17121_v15  ;;  %v15566_v48 = vpack.c.bf16 %v18280_v35, %v18278_v54  ;;  %v10240_v25 = vpack.c.bf16 %v18286_v53, %v18285_v37  ;;  %v18290_v40 = vld [vmem:[#allocation25_spill] sm:$0xff]  ;;  %v18293_v54 = vld [vmem:[#allocation51_spill] sm:$0xff]  ;;  %v18294_v52 = vld [vmem:[#allocation52_spill] sm:$0xff]  ;;  %v18309_v10 = vand.u32 4294901760, %v15605_v55 }
 0x2f7   :  { %10199 = vmatprep.subr.bf16.mxu0 %v15534_v42  ;;  %18275 = vst [vmem:[#allocation37_spill] sm:$0xff] %v15549_v46  ;;  %10273 = vmatpush3.bf16.msra.mxu1 %v15393_v7  ;;  %v15575_v29 = vadd.f32 %v3642_v5, %v18283_v30  ;;  %v5601_v60 = vand.u32 4294901760, %v5600_v32  ;;  %v10242_v12 = vpack.c.bf16 %v18288_v4, %v18287_v61  ;;  %v18292_v5 = vld [vmem:[#allocation30_spill] sm:$0xff]  ;;  %v18295_v32 = vld [vmem:[#allocation31_spill] sm:$0xff] }
 0x2f8   :  { %6076 = vmatprep.mubr.f32.mxu1 %v18276_v8  ;;  %10275 = vmatprep.subr.bf16.mxu1 %v15422_v56  ;;  %v10244_v58 = vpack.c.bf16 %v18290_v40, %v18289_v33  ;;  %v18291_v8 = vld [vmem:[#allocation48_spill] sm:$0xff]  ;;  %v10248_v35 = vpack.c.bf16 %v18294_v52, %v18293_v54  ;;  %v18297_v30 = vld [vmem:[#allocation50_spill] sm:$0xff] }
 0x2f9   :  { %18284 = vst [vmem:[#allocation43_spill] sm:$0xff] %v15575_v29  ;;  %v10246_v47 = vpack.c.bf16 %v18292_v5, %v18291_v8  ;;  %v15608_v29 = vld [vmem:[#allocation2 + $0x7f0] sm:$0xff] }
 0x2fa   :  { %10201 = vmatpush3.bf16.msra.mxu0 %v15542_v3  ;;  %18303 = vst [vmem:[#allocation8_spill] sm:$0xff] %v15608_v29 }
 0x2fb   :  { %10203 = vmatprep.subr.bf16.mxu0 %v15549_v46  ;;  %10277 = vmatpush3.bf16.msra.mxu1 %v15428_v49 }
 0x2fc   :  { %10279 = vmatprep.subr.bf16.mxu1 %v15452_v41 }
 0x2fe   :  { %10205 = vmatpush3.bf16.msra.mxu0 %v15566_v48 }
 0x2ff   :  { %10239 = vmatprep.subr.bf16.mxu0 %v10238_v26  ;;  %10281 = vmatpush3.bf16.msra.mxu1 %v15458_v57 }
 0x300   :  { %10283 = vmatprep.subr.bf16.mxu1 %v15478_v39 }
 0x301   :  { %5602 = vmatmul.mubr.f32.vlgmr.msra.gmra.mrb[36].mxu0 %v5601_v60 }
 0x302   :  { %10241 = vmatpush3.bf16.msra.mxu0 %v10240_v25  ;;  %5969 = vmatprep.mubr.f32.mxu0 %v15304_v63  ;;  %v18296_v63 = vld [vmem:[#allocation23_spill] sm:$0xff]  ;;  %v18298_v25 = vld [vmem:[#allocation29_spill] sm:$0xff] }
 0x303   :  { %10243 = vmatprep.subr.bf16.mxu0 %v10242_v12  ;;  %10285 = vmatpush3.bf16.msra.mxu1 %v15491_v17  ;;  %v10250_v26 = vpack.c.bf16 %v18296_v63, %v18295_v32  ;;  %v10252_v60 = vpack.c.bf16 %v18298_v25, %v18297_v30  ;;  %v8249_v12 = vpop.f32.mrb[24].mxu1 }
 0x304   :  { %10287 = vmatprep.subr.bf16.mxu1 %v15498_v11 }
 0x306   :  { %10245 = vmatpush3.bf16.msra.mxu0 %v10244_v58  ;;  %v18299_v58 = vld [vmem:[#allocation11_spill] sm:$0xff] }
 0x307   :  { %10247 = vmatprep.subr.bf16.mxu0 %v10246_v47  ;;  %10289 = vmatpush3.bf16.msra.mxu1 %v15507_v13  ;;  %v10254_v20 = vpack.c.bf16 %v18300_v18, %v18299_v58  ;;  %v8250_v47 = vpop.f32.mrb[25].mxu1  ;;  %v15619_v13 = vld [vmem:[#allocation2 + $0x778] sm:$0xff] }
 0x308   :  { %10291 = vmatprep.subr.bf16.mxu1 %v15514_v45  ;;  %v8251_v34 = vadd.f32 %v8250_v47, %v8249_v12  ;;  %v15617_v45 = vld [vmem:[#allocation2 + $0x770] sm:$0xff]  ;;  %18306 = vst [vmem:[#allocation27_spill] sm:$0xff] %v15619_v13  ;;  %v10258_v12 = vpack.c.bf16 %v15329_v22, %v15324_v9  ;;  %v10260_v22 = vpack.c.bf16 %v15360_v2, %v15355_v28  ;;  %v15657_v2 = vld [vmem:[#allocation2 + $0x708] sm:$0xff] }
 0x309   :  { %18305 = vst [vmem:[#allocation12_spill] sm:$0xff] %v15617_v45  ;;  %v18307_v47 = vld [vmem:[#allocation21_spill] sm:$0xff] }
 0x30a   :  { %10249 = vmatpush3.bf16.msra.mxu0 %v10248_v35  ;;  %v15610_v35 = vld [vmem:[#allocation2 + $0x7f8] sm:$0xff]  ;;  %vm6359_vm14 = vcmp.eq.s32.totalorder %v15203_v43, %v18307_v47  ;;  %v8214_v47 = vpop.f32.mrb[24].mxu0 }
 0x30b   :  { %10251 = vmatprep.subr.bf16.mxu0 %v10250_v26  ;;  %10293 = vmatpush3.bf16.msra.mxu1 %v15525_v27  ;;  %18304 = vst [vmem:[#allocation40_spill] sm:$0xff] %v15610_v35  ;;  %v10256_v26 = vpack.c.bf16 %v15319_v59, %v15310_v24  ;;  %v7335_v9 = vsel %vm6359_vm14, 1.0, %v18258_v44  ;;  %v18308_v27 = vand.u32 4294901760, %v15603_v51  ;;  %v15655_v44 = vld [vmem:[#allocation2 + $0x700] sm:$0xff] }
 0x30c   :  { %10295 = vmatprep.subr.bf16.mxu1 %v15534_v42  ;;  %v15627_v42 = vld [vmem:[#allocation2 + $0x788] sm:$0xff] }
 0x30d   :  { %v15644_v38 = vsub.f32 %v15603_v51, %v18308_v27  ;;  %v18310_v27 = vand.u32 4294901760, %v15608_v29 }
 0x30e   :  { %10253 = vmatpush3.bf16.msra.mxu0 %v10252_v60  ;;  %v15625_v60 = vld [vmem:[#allocation2 + $0x780] sm:$0xff] }
 0x30f   :  { %10255 = vmatprep.subr.bf16.mxu0 %v10254_v20  ;;  %10297 = vmatpush3.bf16.msra.mxu1 %v15542_v3  ;;  %v15649_v20 = vsub.f32 %v15605_v55, %v18309_v10  ;;  %v15662_v51 = vsub.f32 %v15608_v29, %v18310_v27  ;;  %v18311_v10 = vand.u32 4294901760, %v15610_v35  ;;  %v8215_v55 = vpop.f32.mrb[25].mxu0  ;;  %v10264_v3 = vpack.c.bf16 %v14922_v14, %v14910_v1  ;;  %v15687_v14 = vld [vmem:[#allocation2 + $0x790] sm:$0xff]  ;;  %v15689_v1 = vld [vmem:[#allocation2 + $0x798] sm:$0xff] }
 0x310   :  { %10299 = vmatprep.subr.bf16.mxu1 %v15549_v46  ;;  %v15672_v46 = vsub.f32 %v7335_v9, %v7335_v9  ;;  %v18314_v27 = vand.u32 4294901760, %v15619_v13  ;;  %v16986_v9 = vand.u32 4294901760, %v15644_v38 }
 0x312   :  { %10257 = vmatpush3.bf16.msra.mxu0 %v10256_v26  ;;  %v10262_v26 = vpack.c.bf16 %v15383_v21, %v15378_v0  ;;  %18312 = vst [vmem:[#allocation38_spill] sm:$0xff] %v15672_v46  ;;  %v18313_v21 = vand.u32 4294901760, %v15617_v45  ;;  %v15682_v29 = vsub.f32 %v15619_v13, %v18314_v27 }
 0x313   :  { %10259 = vmatprep.subr.bf16.mxu0 %v10258_v12  ;;  %v15667_v12 = vsub.f32 %v15610_v35, %v18311_v10  ;;  %10301 = vmatpush3.bf16.msra.mxu1 %v15566_v48  ;;  %v8216_v10 = vadd.f32 %v8215_v55, %v8214_v47  ;;  %v10266_v35 = vpack.c.bf16 %v14946_v62, %v14941_v19  ;;  %v18318_v55 = vand.u32 4294901760, %v15627_v42 }
 0x314   :  { %v15677_v0 = vsub.f32 %v15617_v45, %v18313_v21  ;;  %18315 = vst [vmem:[#allocation34_spill] sm:$0xff] %v15682_v29  ;;  %10335 = vmatprep.subr.bf16.mxu1 %v15251_v16  ;;  %v18316_v45 = vand.u32 4294901760, %v15625_v60  ;;  %v16989_v19 = vand.u32 4294901760, %v15655_v44  ;;  %v18320_v47 = vand.u32 4294901760, %v15527_v36 }
 0x315   :  { %v15701_v16 = vsub.f32 %v15627_v42, %v18318_v55  ;;  %v16987_v21 = vand.u32 4294901760, %v15667_v12  ;;  %v18350_v55 = vand.u32 4294901760, %v18293_v54 }
 0x316   :  { %10261 = vmatpush3.bf16.msra.mxu0 %v10260_v22  ;;  %v15696_v27 = vsub.f32 %v15625_v60, %v18316_v45  ;;  %v15705_v22 = vadd.f32 %v8251_v34, %v8216_v10  ;;  %6080 = vmatmul.mubr.f32.vlgmr.msra.gmra.mrb[38].mxu1 %v18320_v47  ;;  %v18321_v45 = vand.u32 4294901760, %v15649_v20  ;;  %v16990_v47 = vand.u32 4294901760, %v15677_v0 }
 0x317   :  { %10263 = vmatprep.subr.bf16.mxu0 %v10262_v26  ;;  %18319 = vst [vmem:[#allocation9_spill] sm:$0xff] %v15701_v16  ;;  %v16988_v26 = vand.u32 4294901760, %v15662_v51  ;;  %10337 = vmatpush3.bf16.msra.mxu1 %v15393_v7  ;;  %v15729_v7 = vld [vmem:[#allocation2 + $0x710] sm:$0xff]  ;;  %v18325_v10 = vand.u32 4294901760, %v18281_v23  ;;  %v18326_v34 = vand.u32 4294901760, %v18282_v31  ;;  %v18330_v31 = vand.u32 4294901760, %v15657_v2 }
 0x318   :  { %18317 = vst [vmem:[#allocation41_spill] sm:$0xff] %v15696_v27  ;;  %v15715_v13 = vpack.c.bf16 %v18321_v45, %v16986_v9  ;;  %7332 = vmatprep.mubr.msk.f32.mxu1 %vm5457_vm12, %v17121_v15  ;;  %10339 = vmatprep.subr.bf16.mxu1 %v15422_v56  ;;  %v10268_v45 = vpack.c.bf16 %v14964_v50, %v14959_v6  ;;  %v15746_v6 = vld [vmem:[#allocation2 + $0x718] sm:$0xff]  ;;  %v15774_v23 = vld [vmem:[#allocation2 + $0x7a0] sm:$0xff] }
 0x319   :  { %v15735_v9 = vpack.c.bf16 %v16987_v21, %v16988_v26  ;;  %v10302_v62 = vpack.c.bf16 %v18326_v34, %v18325_v10  ;;  %v15744_v56 = vsub.f32 %v15655_v44, %v16989_v19  ;;  %v18332_v10 = vand.u32 4294901760, %v15687_v14 }
 0x31a   :  { %18322 = vst [vmem:[#allocation44_spill] sm:$0xff] %v15715_v13  ;;  %10265 = vmatpush3.bf16.msra.mxu0 %v10264_v3  ;;  %v18328_v3 = vand.u32 4294901760, %v15682_v29  ;;  %v18334_v19 = vand.u32 4294901760, %v15689_v1  ;;  %v18337_v34 = vand.u32 4294901760, %v18286_v53  ;;  %v16993_v50 = vand.u32 4294901760, %v15746_v6  ;;  %v15793_v29 = vld [vmem:[#allocation2 + $0x720] sm:$0xff] }
 0x31b   :  { %18324 = vst [vmem:[#allocation45_spill] sm:$0xff] %v15735_v9  ;;  %10267 = vmatprep.subr.bf16.mxu0 %v10266_v35  ;;  %18327 = vst [vmem:[#allocation15_spill] sm:$0xff] %v15744_v56  ;;  %v15759_v35 = vsub.f32 %v15657_v2, %v18330_v31  ;;  %10341 = vmatpush3.bf16.msra.mxu1 %v15428_v49  ;;  %v15766_v26 = vsub.f32 %v15687_v14, %v18332_v10  ;;  %v15776_v31 = vld [vmem:[#allocation2 + $0x7a8] sm:$0xff]  ;;  %v18336_v49 = vand.u32 4294901760, %v18285_v37 }
 0x31c   :  { %v15753_v21 = vpack.c.bf16 %v18328_v3, %v16990_v47  ;;  %v15771_v3 = vsub.f32 %v15689_v1, %v18334_v19  ;;  %10343 = vmatprep.subr.bf16.mxu1 %v15452_v41  ;;  %v18338_v19 = vand.u32 4294901760, %v18287_v61  ;;  %v18340_v9 = vand.u32 4294901760, %v18289_v33  ;;  %v15795_v37 = vld [vmem:[#allocation2 + $0x728] sm:$0xff] }
 0x31d   :  { %18331 = vst [vmem:[#allocation24_spill] sm:$0xff] %v15759_v35  ;;  %18333 = vst [vmem:[#allocation25_spill] sm:$0xff] %v15766_v26  ;;  %v10304_v10 = vpack.c.bf16 %v18337_v34, %v18336_v49  ;;  %v18341_v13 = vand.u32 4294901760, %v18290_v40  ;;  %v16996_v41 = vand.u32 4294901760, %v15744_v56  ;;  %v18342_v53 = vand.u32 4294901760, %v15672_v46 }
 0x31e   :  { %18329 = vst [vmem:[#allocation17_spill] sm:$0xff] %v15753_v21  ;;  %18335 = vst [vmem:[#allocation48_spill] sm:$0xff] %v15771_v3  ;;  %10269 = vmatpush3.bf16.msra.mxu0 %v10268_v45  ;;  %v18339_v21 = vand.u32 4294901760, %v18288_v4  ;;  %v18343_v61 = vand.u32 4294901760, %v15696_v27  ;;  %v16995_v33 = vand.u32 4294901760, %v15759_v35  ;;  %v16998_v40 = vand.u32 4294901760, %v15774_v23 }
 0x31f   :  { %10303 = vmatprep.subr.bf16.mxu0 %v10302_v62  ;;  %v10308_v45 = vpack.c.bf16 %v18341_v13, %v18340_v9  ;;  %v15800_v62 = vsub.f32 %v15672_v46, %v18342_v53  ;;  %v16997_v13 = vand.u32 4294901760, %v15776_v31  ;;  %10345 = vmatpush3.bf16.msra.mxu1 %v15458_v57  ;;  %v18344_v9 = vand.u32 4294901760, %v15701_v16 }
 0x320   :  { %v10306_v47 = vpack.c.bf16 %v18339_v21, %v18338_v19  ;;  %v6625_v4 = vsub.f32 %v15696_v27, %v18343_v61  ;;  %v16994_v34 = vand.u32 4294901760, %v15766_v26  ;;  %v18345_v19 = vand.u32 4294901760, %v15729_v7  ;;  %10347 = vmatprep.subr.bf16.mxu1 %v15478_v39 }
 0x321   :  { %5972 = vmatmul.mubr.f32.vlgmr.msra.gmra.mrb[38].mxu0 %v15527_v36  ;;  %v6632_v21 = vsub.f32 %v15701_v16, %v18344_v9  ;;  %v18347_v57 = vand.u32 4294901760, %v18291_v8  ;;  %v18348_v36 = vand.u32 4294901760, %v18292_v5  ;;  %v15831_v9 = vsub.f32 %v15746_v6, %v16993_v50 }
 0x322   :  { %v15818_v53 = vsub.f32 %v15729_v7, %v18345_v19  ;;  %10305 = vmatpush3.bf16.msra.mxu0 %v10304_v10  ;;  %7330 = vmatprep.mubr.msk.f32.mxu0 %vm5457_vm12, %v17121_v15  ;;  %v16999_v19 = vand.u32 4294901760, %v15795_v37  ;;  %v18351_v10 = vand.u32 4294901760, %v18294_v52  ;;  %v18352_v5 = vand.u32 4294901760, %v18295_v32 }
 0x323   :  { %v10310_v61 = vpack.c.bf16 %v18348_v36, %v18347_v57  ;;  %18349 = vst [vmem:[#allocation51_spill] sm:$0xff] %v15831_v9  ;;  %10307 = vmatprep.subr.bf16.mxu0 %v10306_v47  ;;  %v18353_v57 = vand.u32 4294901760, %v18296_v63  ;;  %v6513_v50 = vsub.f32 %v15744_v56, %v16996_v41  ;;  %v6626_v49 = vand.u32 4294901760, %v6625_v4  ;;  %10349 = vmatpush3.bf16.msra.mxu1 %v15491_v17  ;;  %v18368_v41 = vld [vmem:[#allocation16_spill] sm:$0xff]  ;;  %v15900_v17 = vld [vmem:[#allocation2 + $0x7b0] sm:$0xff] }
 0x324   :  { %18346 = vst [vmem:[#allocation30_spill] sm:$0xff] %v15818_v53  ;;  %v10312_v8 = vpack.c.bf16 %v18351_v10, %v18350_v55  ;;  %v6520_v39 = vsub.f32 %v15759_v35, %v16995_v33  ;;  %v15853_v54 = vsub.f32 %v15774_v23, %v16998_v40  ;;  %v15858_v52 = vsub.f32 %v15776_v31, %v16997_v13  ;;  %v18366_v33 = vld [vmem:[#allocation13_spill] sm:$0xff]  ;;  %v18398_v35 = vld [vmem:[#allocation39_spill] sm:$0xff] }
 0x325   :  { %v10314_v36 = vpack.c.bf16 %v18353_v57, %v18352_v5  ;;  %v6633_v32 = vand.u32 4294901760, %v6632_v21  ;;  %v6639_v63 = vsub.f32 %v15766_v26, %v16994_v34  ;;  %v18356_v47 = vand.u32 4294901760, %v15771_v3  ;;  %10351 = vmatprep.subr.bf16.mxu1 %v15498_v11 }
 0x326   :  { %18354 = vst [vmem:[#allocation52_spill] sm:$0xff] %v15853_v54  ;;  %18355 = vst [vmem:[#allocation31_spill] sm:$0xff] %v15858_v52  ;;  %v17000_v55 = vand.u32 4294901760, %v15818_v53  ;;  %10309 = vmatpush3.bf16.msra.mxu0 %v10308_v45  ;;  %v18357_v10 = vand.u32 4294901760, %v18297_v30  ;;  %v18358_v5 = vand.u32 4294901760, %v18298_v25  ;;  %v18359_v21 = vand.u32 4294901760, %v15793_v29 }
 0x327   :  { %v6646_v4 = vsub.f32 %v15771_v3, %v18356_v47  ;;  %v15882_v47 = vsub.f32 %v15795_v37, %v16999_v19  ;;  %10311 = vmatprep.subr.bf16.mxu0 %v10310_v61  ;;  %v18362_v11 = vand.u32 4294901760, %v18299_v58  ;;  %v18363_v30 = vand.u32 4294901760, %v18300_v18  ;;  %v15902_v61 = vld [vmem:[#allocation2 + $0x7b8] sm:$0xff] }
 0x328   :  { %v10316_v57 = vpack.c.bf16 %v18358_v5, %v18357_v10  ;;  %v15877_v34 = vsub.f32 %v15793_v29, %v18359_v21  ;;  %v18364_v25 = vand.u32 4294901760, %v15310_v24  ;;  %v18365_v10 = vand.u32 4294901760, %v15319_v59  ;;  %v18371_v58 = vld [vmem:[#allocation14_spill] sm:$0xff] }
 0x329   :  { %18361 = vst [vmem:[#allocation50_spill] sm:$0xff] %v15882_v47  ;;  %v10318_v45 = vpack.c.bf16 %v18363_v30, %v18362_v11  ;;  %v18367_v21 = vand.u32 4294901760, %v18366_v33  ;;  %v18369_v13 = vand.u32 4294901760, %v18368_v41  ;;  %v6514_v19 = vand.u32 4294901760, %v6513_v50  ;;  %v15914_v41 = vld [vmem:[#allocation2 + $0x738] sm:$0xff]  ;;  %v15916_v50 = vld [vmem:[#allocation2 + $0x7c0] sm:$0xff] }
 0x32a   :  { %18360 = vst [vmem:[#allocation23_spill] sm:$0xff] %v15877_v34  ;;  %v15892_v5 = vpack.c.bf16 %v18365_v10, %v18364_v25  ;;  %v18370_v18 = vand.u32 4294901760, %v15355_v28  ;;  %v18372_v11 = vand.u32 4294901760, %v18371_v58  ;;  %v6521_v59 = vand.u32 4294901760, %v6520_v39  ;;  %v15912_v25 = vld [vmem:[#allocation2 + $0x730] sm:$0xff]  ;;  %10313 = vmatpush3.bf16.msra.mxu0 %v10312_v8  ;;  %v18378_v33 = vld [vmem:[#allocation18_spill] sm:$0xff] }
 0x32b   :  { %v15898_v40 = vpack.c.bf16 %v18369_v13, %v18367_v21  ;;  %v18373_v13 = vld [vmem:[#allocation26_spill] sm:$0xff]  ;;  %v15919_v10 = vpack.c.bf16 %v6633_v32, %v6626_v49  ;;  %v6640_v28 = vand.u32 4294901760, %v6639_v63  ;;  %v6647_v21 = vand.u32 4294901760, %v6646_v4  ;;  %v15931_v32 = vld [vmem:[#allocation2 + $0x7c8] sm:$0xff]  ;;  %v8319_v63 = vpop.f32.mrb[26].mxu1  ;;  %10315 = vmatprep.subr.bf16.mxu0 %v10314_v36 }
 0x32c   :  { %v15908_v24 = vpack.c.bf16 %v18372_v11, %v18370_v18  ;;  %10353 = vmatpush3.bf16.msra.mxu1 %v18373_v13  ;;  %v6527_v39 = vsub.f32 %v15818_v53, %v17000_v55  ;;  %v18374_v18 = vld [vmem:[#allocation32_spill] sm:$0xff]  ;;  %v18375_v58 = vand.u32 4294901760, %v15831_v9  ;;  %v8320_v55 = vpop.f32.mrb[27].mxu1  ;;  %v18379_v53 = vand.u32 4294901760, %v18378_v33 }
 0x32d   :  { %10355 = vmatprep.subr.bf16.mxu1 %v18374_v18  ;;  %v15943_v49 = vpack.c.bf16 %v6521_v59, %v6514_v19  ;;  %v18380_v3 = vand.u32 4294901760, %v15853_v54  ;;  %v18381_v4 = vand.u32 4294901760, %v15858_v52  ;;  %v15951_v13 = vadd.f32 %v8320_v55, %v8319_v63  ;;  %v18382_v18 = vld [vmem:[#allocation46_spill] sm:$0xff] }
 0x32e   :  { %v6534_v11 = vsub.f32 %v15831_v9, %v18375_v58  ;;  %v18376_v58 = vld [vmem:[#allocation47_spill] sm:$0xff]  ;;  %v15954_v26 = vpack.c.bf16 %v6647_v21, %v6640_v28  ;;  %10317 = vmatpush3.bf16.msra.mxu0 %v10316_v57  ;;  %v18383_v19 = vld [vmem:[#allocation10_spill] sm:$0xff]  ;;  %v18385_v55 = vand.u32 4294901760, %v15882_v47  ;;  %v18386_v28 = vand.u32 4294901760, %v15900_v17  ;;  %v15977_v57 = vld [vmem:[#allocation2 + $0x7d0] sm:$0xff] }
 0x32f   :  { %v18377_v9 = vand.u32 4294901760, %v18376_v58  ;;  %v6653_v36 = vsub.f32 %v15853_v54, %v18380_v3  ;;  %v6660_v8 = vsub.f32 %v15858_v52, %v18381_v4  ;;  %v6528_v58 = vand.u32 4294901760, %v6527_v39  ;;  %v15975_v39 = vld [vmem:[#allocation2 + $0x748] sm:$0xff]  ;;  %10319 = vmatprep.subr.bf16.mxu0 %v10318_v45 }
 0x330   :  { %10357 = vmatpush3.bf16.msra.mxu1 %v18382_v18  ;;  %v6535_v59 = vand.u32 4294901760, %v6534_v11  ;;  %v18384_v3 = vand.u32 4294901760, %v15877_v34  ;;  %v15968_v63 = vsub.f32 %v15882_v47, %v18385_v55  ;;  %v15973_v21 = vsub.f32 %v15900_v17, %v18386_v28  ;;  %v15979_v11 = vld [vmem:[#allocation2 + $0x7d8] sm:$0xff] }
 0x331   :  { %v15941_v30 = vpack.c.bf16 %v18379_v53, %v18377_v9  ;;  %v15957_v9 = vld [vmem:[#allocation2 + $0x740] sm:$0xff]  ;;  %10359 = vmatprep.subr.bf16.mxu1 %v18383_v19  ;;  %v18388_v4 = vand.u32 4294901760, %v15902_v61  ;;  %v18390_v19 = vand.u32 4294901760, %v15912_v25  ;;  %v18392_v55 = vand.u32 4294901760, %v15914_v41 }
 0x332   :  { %v15963_v33 = vsub.f32 %v15877_v34, %v18384_v3  ;;  %18387 = vst [vmem:[#allocation29_spill] sm:$0xff] %v15973_v21  ;;  %v18394_v53 = vand.u32 4294901760, %v15916_v50  ;;  %v6654_v45 = vand.u32 4294901760, %v6653_v36  ;;  %v6661_v34 = vand.u32 4294901760, %v6660_v8  ;;  %10321 = vmatpush3.bf16.msra.mxu0 %v15892_v5  ;;  %v16031_v5 = vld [vmem:[#allocation2 + $0x7e0] sm:$0xff] }
 0x333   :  { %v15984_v18 = vsub.f32 %v15902_v61, %v18388_v4  ;;  %v15989_v3 = vsub.f32 %v15912_v25, %v18390_v19  ;;  %v15994_v28 = vsub.f32 %v15914_v41, %v18392_v55  ;;  %v18396_v4 = vand.u32 4294901760, %v15625_v60  ;;  %v16017_v60 = vld [vmem:[#allocation2 + $0x750] sm:$0xff]  ;;  %10323 = vmatprep.subr.bf16.mxu0 %v15898_v40  ;;  %18403 = vst [vmem:[#allocation26_spill] sm:$0xff] %v16031_v5 }
 0x334   :  { %v15999_v47 = vsub.f32 %v15916_v50, %v18394_v53  ;;  %v18397_v52 = vand.u32 4294901760, %v15627_v42  ;;  %10361 = vmatpush3.bf16.msra.mxu1 %v18398_v35  ;;  %v18399_v55 = vand.u32 4294901760, %v15931_v32  ;;  %v16019_v42 = vld [vmem:[#allocation2 + $0x758] sm:$0xff]  ;;  %v10404_v35 = vpack.c.bf16 %v6535_v59, %v6528_v58  ;;  %v8284_v58 = vpop.f32.mrb[26].mxu0 }
 0x335   :  { %18389 = vst [vmem:[#allocation11_spill] sm:$0xff] %v15984_v18  ;;  %18391 = vst [vmem:[#allocation49_spill] sm:$0xff] %v15989_v3  ;;  %v10406_v59 = vpack.c.bf16 %v6661_v34, %v6654_v45  ;;  %v8285_v8 = vpop.f32.mrb[27].mxu0  ;;  %v18405_v53 = vand.u32 4294901760, %v15975_v39  ;;  %v18406_v34 = vand.u32 4294901760, %v15977_v57 }
 0x336   :  { %18393 = vst [vmem:[#allocation20_spill] sm:$0xff] %v15994_v28  ;;  %18395 = vst [vmem:[#allocation13_spill] sm:$0xff] %v15999_v47  ;;  %v16005_v54 = vpack.c.bf16 %v18397_v52, %v18396_v4  ;;  %v16012_v56 = vsub.f32 %v15931_v32, %v18399_v55  ;;  %v18402_v52 = vld [vmem:[#allocation37_spill] sm:$0xff]  ;;  %v6542_v4 = vand.u32 4294901760, %v15963_v33  ;;  %v6549_v55 = vand.u32 4294901760, %v15968_v63  ;;  %10325 = vmatpush3.bf16.msra.mxu0 %v15908_v24 }
 0x337   :  { %18401 = vst [vmem:[#allocation14_spill] sm:$0xff] %v16019_v42  ;;  %10363 = vmatprep.subr.bf16.mxu1 %v18402_v52  ;;  %v16033_v52 = vld [vmem:[#allocation2 + $0x7e8] sm:$0xff]  ;;  %v18404_v33 = vand.u32 4294901760, %v15957_v9  ;;  %v16047_v19 = vsub.f32 %v15975_v39, %v18405_v53  ;;  %v16052_v45 = vsub.f32 %v15977_v57, %v18406_v34  ;;  %v8286_v36 = vadd.f32 %v8285_v8, %v8284_v58 }
 0x338   :  { %18400 = vst [vmem:[#allocation16_spill] sm:$0xff] %v16012_v56  ;;  %10365 = vmatpush3.bf16.msra.mxu1 %v15566_v48  ;;  %v18408_v48 = vand.u32 4294901760, %v15973_v21  ;;  %10327 = vmatprep.subr.bf16.mxu0 %v15941_v30  ;;  %v18409_v34 = vand.u32 4294901760, %v15984_v18  ;;  %v18410_v8 = vand.u32 4294901760, %v15989_v3  ;;  %v18435_v30 = vand.u32 4294901760, %v15776_v31 }
 0x339   :  { %v16038_v63 = vsub.f32 %v15957_v9, %v18404_v33  ;;  %v18407_v33 = vand.u32 4294901760, %v15979_v11  ;;  %10399 = vmatprep.subr.bf16.mxu1 %v15919_v10  ;;  %v18411_v10 = vand.u32 4294901760, %v15994_v28  ;;  %v4167_v27 = vadd.f32 %v8286_v36, %v15705_v22 }
 0x33a   :  { %v6667_v53 = vsub.f32 %v15973_v21, %v18408_v48  ;;  %v6555_v24 = vsub.f32 %v15989_v3, %v18410_v8  ;;  %v18412_v48 = vand.u32 4294901760, %v15999_v47  ;;  %v18417_v36 = vand.u32 4294901760, %v16012_v56  ;;  %v18418_v3 = vld [vmem:[#allocation33_spill] sm:$0xff] }
 0x33b   :  { %v16057_v40 = vsub.f32 %v15979_v11, %v18407_v33  ;;  %v6674_v33 = vsub.f32 %v15984_v18, %v18409_v34  ;;  %v6562_v58 = vsub.f32 %v15994_v28, %v18411_v10  ;;  %7333 = vmatmul.mubr.msk.f32.vlgmr.msra.gmra.mrb[40].mxu1 %vm5456_vm13, %v17121_v15  ;;  %v18414_v18 = vand.u32 4294901760, %v16017_v60  ;;  %10329 = vmatpush3.bf16.msra.mxu0 %v18418_v3 }
 0x33c   :  { %v6681_v16 = vsub.f32 %v15999_v47, %v18412_v48  ;;  %v18415_v10 = vand.u32 4294901760, %v16019_v42  ;;  %10401 = vmatpush3.bf16.msra.mxu1 %v15943_v49  ;;  %7336 = vmatprep.mubr.msk.f32.mxu1 %vm6359_vm14, %v17121_v15  ;;  %v6688_v48 = vsub.f32 %v16012_v56, %v18417_v36  ;;  %v18419_v49 = vand.u32 4294901760, %v16031_v5 }
 0x33d   :  { %v16088_v8 = vsub.f32 %v16017_v60, %v18414_v18  ;;  %10403 = vmatprep.subr.bf16.mxu1 %v15954_v26  ;;  %v18420_v22 = vand.u32 4294901760, %v16033_v52  ;;  %v16119_v36 = vadd.f32 %v15951_v13, %v4167_v27  ;;  %v18421_v18 = vld [vmem:[#allocation42_spill] sm:$0xff]  ;;  %v10408_v47 = vpack.c.bf16 %v6549_v55, %v6542_v4 }
 0x33e   :  { %v16093_v28 = vsub.f32 %v16019_v42, %v18415_v10  ;;  %v16111_v10 = vsub.f32 %v16031_v5, %v18419_v49  ;;  %10331 = vmatprep.subr.bf16.mxu0 %v18421_v18  ;;  %v18422_v3 = vand.u32 4294901760, %v15655_v44  ;;  %v18423_v26 = vand.u32 4294901760, %v15657_v2 }
 0x33f   :  { %v16116_v21 = vsub.f32 %v16033_v52, %v18420_v22  ;;  %v6668_v56 = vand.u32 4294901760, %v6667_v53  ;;  %v6675_v49 = vand.u32 4294901760, %v6674_v33  ;;  %v6556_v46 = vand.u32 4294901760, %v6555_v24  ;;  %v18428_v24 = vld [vmem:[#allocation28_spill] sm:$0xff] }
 0x340   :  { %v16126_v34 = vpack.c.bf16 %v18423_v26, %v18422_v3  ;;  %v6563_v5 = vand.u32 4294901760, %v6562_v58  ;;  %v17043_v42 = vand.u32 4294901760, %v16088_v8  ;;  %10405 = vmatpush3.bf16.msra.mxu1 %v10404_v35  ;;  %v18424_v27 = vand.u32 4294901760, %v16038_v63  ;;  %10333 = vmatpush3.bf16.msra.mxu0 %v18428_v24 }
 0x341   :  { %v18425_v4 = vand.u32 4294901760, %v16047_v19  ;;  %v18426_v2 = vand.u32 4294901760, %v16052_v45  ;;  %v18427_v53 = vand.u32 4294901760, %v16057_v40  ;;  %10407 = vmatprep.subr.bf16.mxu1 %v10406_v59  ;;  %v6682_v35 = vand.u32 4294901760, %v6681_v16  ;;  %10367 = vmatprep.subr.bf16.mxu0 %v16005_v54 }
 0x342   :  { %v6569_v13 = vsub.f32 %v16038_v63, %v18424_v27  ;;  %v6689_v58 = vand.u32 4294901760, %v6688_v48  ;;  %v17042_v18 = vand.u32 4294901760, %v16111_v10  ;;  %v17041_v3 = vand.u32 4294901760, %v16116_v21 }
 0x343   :  { %v6576_v44 = vsub.f32 %v16047_v19, %v18425_v4  ;;  %v6695_v55 = vsub.f32 %v16052_v45, %v18426_v2  ;;  %v6702_v33 = vsub.f32 %v16057_v40, %v18427_v53  ;;  %v6497_v26 = vand.u32 4294901760, %v15800_v62  ;;  %7331 = vmatmul.mubr.msk.f32.vlgmr.msra.gmra.mrb[40].mxu0 %vm5456_vm13, %v17121_v15 }
 0x344   :  { %v10410_v27 = vpack.c.bf16 %v6675_v49, %v6668_v56  ;;  %v18429_v4 = vand.u32 4294901760, %v15687_v14  ;;  %v18430_v2 = vand.u32 4294901760, %v15689_v1  ;;  %v10412_v53 = vpack.c.bf16 %v6563_v5, %v6556_v46  ;;  %10409 = vmatpush3.bf16.msra.mxu1 %v10408_v47  ;;  %10369 = vmatpush3.bf16.msra.mxu0 %v16126_v34 }
 0x345   :  { %v18431_v59 = vand.u32 4294901760, %v15729_v7  ;;  %v18432_v16 = vand.u32 4294901760, %v15746_v6  ;;  %v6583_v24 = vsub.f32 %v16088_v8, %v17043_v42  ;;  %v18433_v62 = vand.u32 4294901760, %v16093_v28  ;;  %6498 = vmatprep.mubr.f32.mxu0 %v6497_v26 }
 0x346   :  { %v16151_v22 = vpack.c.bf16 %v18430_v2, %v18429_v4  ;;  %v6570_v46 = vand.u32 4294901760, %v6569_v13  ;;  %v6577_v14 = vand.u32 4294901760, %v6576_v44  ;;  %v6696_v1 = vand.u32 4294901760, %v6695_v55  ;;  %10411 = vmatprep.subr.bf16.mxu1 %v10410_v27 }
 0x347   :  { %v16157_v48 = vpack.c.bf16 %v18432_v16, %v18431_v59  ;;  %v6590_v56 = vsub.f32 %v16093_v28, %v18433_v62  ;;  %v6703_v7 = vand.u32 4294901760, %v6702_v33  ;;  %v10414_v6 = vpack.c.bf16 %v6689_v58, %v6682_v35 }
 0x348   :  { %v6709_v5 = vsub.f32 %v16111_v10, %v17042_v18  ;;  %v6716_v49 = vsub.f32 %v16116_v21, %v17041_v3  ;;  %10371 = vmatprep.subr.bf16.mxu0 %v16151_v22  ;;  %v18434_v47 = vand.u32 4294901760, %v15774_v23  ;;  %v18436_v44 = vand.u32 4294901760, %v15793_v29  ;;  %10413 = vmatpush3.bf16.msra.mxu1 %v10412_v53 }
 0x349   :  { %v18437_v55 = vand.u32 4294901760, %v15795_v37  ;;  %v6584_v35 = vand.u32 4294901760, %v6583_v24  ;;  %v6591_v58 = vand.u32 4294901760, %v6590_v56  ;;  %v10416_v26 = vpack.c.bf16 %v6577_v14, %v6570_v46  ;;  %10373 = vmatpush3.bf16.msra.mxu0 %v16157_v48  ;;  %10415 = vmatprep.subr.bf16.mxu1 %v10414_v6 }
 0x34a   :  { %v16181_v13 = vpack.c.bf16 %v18435_v30, %v18434_v47  ;;  %v10418_v4 = vpack.c.bf16 %v6703_v7, %v6696_v1  ;;  %v18438_v27 = vand.u32 4294901760, %v15644_v38  ;;  %v18439_v23 = vand.u32 4294901760, %v15649_v20 }
 0x34b   :  { %v16187_v33 = vpack.c.bf16 %v18437_v55, %v18436_v44  ;;  %v6710_v29 = vand.u32 4294901760, %v6709_v5  ;;  %v6717_v37 = vand.u32 4294901760, %v6716_v49  ;;  %v18440_v59 = vand.u32 4294901760, %v15662_v51  ;;  %v18445_v49 = vld [vmem:[#allocation34_spill] sm:$0xff] }
 0x34c   :  { %v6597_v2 = vsub.f32 %v15644_v38, %v18438_v27  ;;  %v6604_v31 = vsub.f32 %v15649_v20, %v18439_v23  ;;  %v18441_v53 = vand.u32 4294901760, %v15667_v12  ;;  %10375 = vmatprep.subr.bf16.mxu0 %v16181_v13  ;;  %v18442_v62 = vand.u32 4294901760, %v15900_v17  ;;  %10417 = vmatpush3.bf16.msra.mxu1 %v10416_v26  ;;  %v8389_v26 = vpop.f32.mrb[28].mxu1 }
 0x34d   :  { %v6723_v16 = vsub.f32 %v15662_v51, %v18440_v59  ;;  %v18443_v56 = vand.u32 4294901760, %v15902_v61  ;;  %v10420_v14 = vpack.c.bf16 %v6591_v58, %v6584_v35  ;;  %v18444_v6 = vand.u32 4294901760, %v15677_v0  ;;  %10377 = vmatpush3.bf16.msra.mxu0 %v16187_v33  ;;  %10419 = vmatprep.subr.bf16.mxu1 %v10418_v4 }
 0x34e   :  { %v6730_v24 = vsub.f32 %v15667_v12, %v18441_v53  ;;  %v6598_v1 = vand.u32 4294901760, %v6597_v2  ;;  %v6605_v7 = vand.u32 4294901760, %v6604_v31  ;;  %v18446_v47 = vand.u32 4294901760, %v18445_v49  ;;  %v18451_v31 = vld [vmem:[#allocation22_spill] sm:$0xff] }
 0x34f   :  { %v16207_v46 = vpack.c.bf16 %v18443_v56, %v18442_v62  ;;  %v6611_v5 = vsub.f32 %v15677_v0, %v18444_v6  ;;  %v18447_v17 = vand.u32 4294901760, %v15912_v25  ;;  %v18448_v61 = vand.u32 4294901760, %v15914_v41  ;;  %v8390_v25 = vpop.f32.mrb[29].mxu1 }
 0x350   :  { %v6618_v30 = vsub.f32 %v18445_v49, %v18446_v47  ;;  %v10422_v55 = vpack.c.bf16 %v6717_v37, %v6710_v29  ;;  %v6724_v35 = vand.u32 4294901760, %v6723_v16  ;;  %v6731_v58 = vand.u32 4294901760, %v6730_v24  ;;  %10421 = vmatpush3.bf16.msra.mxu1 %v10420_v14 }
 0x351   :  { %v16220_v44 = vpack.c.bf16 %v18448_v61, %v18447_v17  ;;  %10379 = vmatprep.subr.bf16.mxu0 %v16207_v46  ;;  %v18449_v27 = vand.u32 4294901760, %v15916_v50  ;;  %v18450_v2 = vand.u32 4294901760, %v15931_v32  ;;  %vm6358_vm15 = vcmp.eq.s32.totalorder %v15203_v43, %v18451_v31  ;;  %v8354_v17 = vpop.f32.mrb[28].mxu0 }
 0x352   :  { %v8391_v4 = vadd.f32 %v8390_v25, %v8389_v26  ;;  %v10424_v41 = vpack.c.bf16 %v6605_v7, %v6598_v1  ;;  %v6612_v59 = vand.u32 4294901760, %v6611_v5  ;;  %v6619_v29 = vand.u32 4294901760, %v6618_v30  ;;  %10423 = vmatprep.subr.bf16.mxu1 %v10422_v55  ;;  %v18458_v1 = vld [vmem:[#allocation14_spill] sm:$0xff]  ;;  %v8355_v61 = vpop.f32.mrb[29].mxu0  ;;  %v18469_v25 = vld [vmem:[#allocation40_spill] sm:$0xff] }
 0x353   :  { %v16227_v23 = vpack.c.bf16 %v18450_v2, %v18449_v27  ;;  %10381 = vmatpush3.bf16.msra.mxu0 %v16220_v44  ;;  %v18452_v37 = vand.u32 4294901760, %v15957_v9  ;;  %v18453_v50 = vand.u32 4294901760, %v15975_v39  ;;  %v10426_v32 = vpack.c.bf16 %v6731_v58, %v6724_v35  ;;  %v18465_v58 = vld [vmem:[#allocation35_spill] sm:$0xff]  ;;  %v18467_v2 = vld [vmem:[#allocation8_spill] sm:$0xff] }
 0x354   :  { %v18454_v53 = vand.u32 4294901760, %v15977_v57  ;;  %v18455_v24 = vand.u32 4294901760, %v15979_v11  ;;  %v18456_v56 = vmov 0.0   ;;  %10425 = vmatpush3.bf16.msra.mxu1 %v10424_v41  ;;  %v10428_v9 = vpack.c.bf16 %v6619_v29, %v6612_v59  ;;  %v18460_v11 = vld [vmem:[#allocation26_spill] sm:$0xff] }
 0x355   :  { %v16236_v16 = vpack.c.bf16 %v18453_v50, %v18452_v37  ;;  %10383 = vmatprep.subr.bf16.mxu0 %v16227_v23  ;;  %v7334_v14 = vsel %vm6358_vm15, 1.0, %v18456_v56  ;;  %10427 = vmatprep.subr.bf16.mxu1 %v10426_v32  ;;  %v18457_v39 = vand.u32 4294901760, %v16017_v60  ;;  %v18459_v7 = vand.u32 4294901760, %v18458_v1  ;;  %v18463_v60 = vld [vmem:[#allocation36_spill] sm:$0xff]  ;;  %v18471_v50 = vld [vmem:[#allocation38_spill] sm:$0xff]  ;;  %v18477_v1 = vld [vmem:[#allocation41_spill] sm:$0xff] }
 0x356   :  { %v16243_v62 = vpack.c.bf16 %v18455_v24, %v18454_v53  ;;  %v16256_v57 = vsub.f32 %v7334_v14, %v7334_v14  ;;  %v18461_v5 = vand.u32 4294901760, %v18460_v11  ;;  %v18462_v47 = vand.u32 4294901760, %v16033_v52  ;;  %v18473_v24 = vld [vmem:[#allocation12_spill] sm:$0xff]  ;;  %v18475_v14 = vld [vmem:[#allocation27_spill] sm:$0xff] }
 0x357   :  { %10385 = vmatpush3.bf16.msra.mxu0 %v16236_v16  ;;  %v16254_v6 = vpack.c.bf16 %v18459_v7, %v18457_v39  ;;  %v8356_v55 = vadd.f32 %v8355_v61, %v8354_v17  ;;  %v18464_v35 = vand.u32 4294901760, %v18463_v60  ;;  %v18466_v26 = vand.u32 4294901760, %v18465_v58  ;;  %v18478_v7 = vld [vmem:[#allocation9_spill] sm:$0xff]  ;;  %v18481_v17 = vld [vmem:[#allocation24_spill] sm:$0xff] }
 0x358   :  { %10387 = vmatprep.subr.bf16.mxu0 %v16243_v62  ;;  %v16263_v30 = vpack.c.bf16 %v18462_v47, %v18461_v5  ;;  %10429 = vmatpush3.bf16.msra.mxu1 %v10428_v9  ;;  %v18468_v52 = vand.u32 4294901760, %v18467_v2  ;;  %v18470_v41 = vand.u32 4294901760, %v18469_v25  ;;  %v6501_v29 = vand.u32 4294901760, %v16256_v57  ;;  %v18480_v47 = vld [vmem:[#allocation15_spill] sm:$0xff]  ;;  %v18482_v60 = vld [vmem:[#allocation25_spill] sm:$0xff]  ;;  %v18486_v25 = vld [vmem:[#allocation52_spill] sm:$0xff] }
 0x359   :  { %10463 = vmatprep.subr.bf16.mxu1 %v16005_v54  ;;  %v16271_v27 = vpack.c.bf16 %v18466_v26, %v18464_v35  ;;  %v4443_v37 = vadd.f32 %v8356_v55, %v16119_v36  ;;  %v18472_v32 = vand.u32 4294901760, %v18471_v50  ;;  %v18474_v56 = vand.u32 4294901760, %v18473_v24  ;;  %v18483_v35 = vld [vmem:[#allocation48_spill] sm:$0xff]  ;;  %v18484_v26 = vld [vmem:[#allocation30_spill] sm:$0xff]  ;;  %v18485_v2 = vld [vmem:[#allocation51_spill] sm:$0xff] }
 0x35a   :  { %v16278_v59 = vpack.c.bf16 %v18470_v41, %v18468_v52  ;;  %v18476_v9 = vand.u32 4294901760, %v18475_v14  ;;  %v6502_v39 = vsub.f32 %v16256_v57, %v6501_v29  ;;  %v10430_v11 = vpack.c.bf16 %v18478_v7, %v18477_v1  ;;  %v18487_v41 = vld [vmem:[#allocation31_spill] sm:$0xff] }
 0x35b   :  { %10389 = vmatpush3.bf16.msra.mxu0 %v16254_v6  ;;  %7337 = vmatmul.mubr.msk.f32.vlgmr.msra.gmra.mrb[42].mxu1 %vm6358_vm15, %v17121_v15  ;;  %v4547_v53 = vadd.f32 %v8391_v4, %v4443_v37  ;;  %v18479_v4 = vld [vmem:[#allocation43_spill] sm:$0xff]  ;;  %v10432_v61 = vpack.c.bf16 %v18481_v17, %v18480_v47  ;;  %v10434_v58 = vpack.c.bf16 %v18483_v35, %v18482_v60 }
 0x35c   :  { %10391 = vmatprep.subr.bf16.mxu0 %v16263_v30  ;;  %10465 = vmatpush3.bf16.msra.mxu1 %v16126_v34  ;;  %v16295_v36 = vpack.c.bf16 %v18476_v9, %v18474_v56  ;;  %v6503_v55 = vand.u32 4294901760, %v6502_v39  ;;  %v10436_v52 = vpack.c.bf16 %v18485_v2, %v18484_v26  ;;  %v10438_v37 = vpack.c.bf16 %v18487_v41, %v18486_v25  ;;  %v18490_v56 = vld [vmem:[#allocation29_spill] sm:$0xff]  ;;  %v18493_v39 = vld [vmem:[#allocation20_spill] sm:$0xff] }
 0x35d   :  { %6978 = vmatprep.mubr.f32.mxu1 %v18472_v32  ;;  %10467 = vmatprep.subr.bf16.mxu1 %v16151_v22  ;;  %v16304_v5 = vadd.f32 %v4547_v53, %v18479_v4  ;;  %v18488_v32 = vld [vmem:[#allocation23_spill] sm:$0xff]  ;;  %v18489_v53 = vld [vmem:[#allocation50_spill] sm:$0xff]  ;;  %v18492_v9 = vld [vmem:[#allocation49_spill] sm:$0xff]  ;;  %v10458_v18 = vpack.c.bf16 %v15667_v12, %v15662_v51  ;;  %v18497_v51 = vand.u32 4294901760, %v18477_v1 }
 0x35e   :  { %v10440_v24 = vpack.c.bf16 %v18489_v53, %v18488_v32 }
 0x35f   :  { %10393 = vmatpush3.bf16.msra.mxu0 %v16271_v27 }
 0x360   :  { %10395 = vmatprep.subr.bf16.mxu0 %v16278_v59  ;;  %10469 = vmatpush3.bf16.msra.mxu1 %v16157_v48 }
 0x361   :  { %10471 = vmatprep.subr.bf16.mxu1 %v16181_v13 }
 0x363   :  { %10397 = vmatpush3.bf16.msra.mxu0 %v16295_v36 }
 0x364   :  { %10431 = vmatprep.subr.bf16.mxu0 %v10430_v11  ;;  %10473 = vmatpush3.bf16.msra.mxu1 %v16187_v33  ;;  %v10444_v11 = vpack.c.bf16 %v18493_v39, %v18492_v9  ;;  %v8459_v4 = vpop.f32.mrb[30].mxu1 }
 0x365   :  { %10475 = vmatprep.subr.bf16.mxu1 %v16207_v46 }
 0x366   :  { %6504 = vmatmul.mubr.f32.vlgmr.msra.gmra.mrb[42].mxu0 %v6503_v55  ;;  %v18495_v55 = vld [vmem:[#allocation16_spill] sm:$0xff] }
 0x367   :  { %10433 = vmatpush3.bf16.msra.mxu0 %v10432_v61  ;;  %6871 = vmatprep.mubr.f32.mxu0 %v18471_v50  ;;  %v18491_v50 = vld [vmem:[#allocation11_spill] sm:$0xff]  ;;  %v18494_v61 = vld [vmem:[#allocation13_spill] sm:$0xff] }
 0x368   :  { %10435 = vmatprep.subr.bf16.mxu0 %v10434_v58  ;;  %10477 = vmatpush3.bf16.msra.mxu1 %v16220_v44  ;;  %v10442_v14 = vpack.c.bf16 %v18491_v50, %v18490_v56  ;;  %v10446_v58 = vpack.c.bf16 %v18495_v55, %v18494_v61 }
 0x369   :  { %10479 = vmatprep.subr.bf16.mxu1 %v16227_v23 }
 0x36b   :  { %10437 = vmatpush3.bf16.msra.mxu0 %v10436_v52  ;;  %v8460_v52 = vpop.f32.mrb[31].mxu1 }
 0x36c   :  { %10439 = vmatprep.subr.bf16.mxu0 %v10438_v37  ;;  %10481 = vmatpush3.bf16.msra.mxu1 %v16236_v16  ;;  %v8461_v3 = vadd.f32 %v8460_v52, %v8459_v4  ;;  %v10448_v37 = vpack.c.bf16 %v16047_v19, %v16038_v63 }
 0x36d   :  { %10483 = vmatprep.subr.bf16.mxu1 %v16243_v62 }
 0x36f   :  { %10441 = vmatpush3.bf16.msra.mxu0 %v10440_v24  ;;  %v10450_v24 = vpack.c.bf16 %v16057_v40, %v16052_v45  ;;  %v8424_v4 = vpop.f32.mrb[30].mxu0 }
 0x370   :  { %10443 = vmatprep.subr.bf16.mxu0 %v10442_v14  ;;  %10485 = vmatpush3.bf16.msra.mxu1 %v16254_v6  ;;  %v10452_v14 = vpack.c.bf16 %v16093_v28, %v16088_v8  ;;  %v8425_v52 = vpop.f32.mrb[31].mxu0 }
 0x371   :  { %10487 = vmatprep.subr.bf16.mxu1 %v16263_v30 }
 0x373   :  { %10445 = vmatpush3.bf16.msra.mxu0 %v10444_v11  ;;  %v10454_v11 = vpack.c.bf16 %v16116_v21, %v16111_v10 }
 0x374   :  { %10447 = vmatprep.subr.bf16.mxu0 %v10446_v58  ;;  %10489 = vmatpush3.bf16.msra.mxu1 %v16271_v27  ;;  %v8426_v58 = vadd.f32 %v8425_v52, %v8424_v4 }
 0x375   :  { %10491 = vmatprep.subr.bf16.mxu1 %v16278_v59 }
 0x376   :  { %v4931_v42 = vadd.f32 %v8461_v3, %v8426_v58 }
 0x377   :  { %10449 = vmatpush3.bf16.msra.mxu0 %v10448_v37  ;;  %v10456_v37 = vpack.c.bf16 %v15649_v20, %v15644_v38  ;;  %v10460_v38 = vpack.c.bf16 %v18445_v49, %v15677_v0  ;;  %v18498_v20 = vand.u32 4294901760, %v18478_v7  ;;  %v18502_v0 = vand.u32 4294901760, %v18483_v35 }
 0x378   :  { %10451 = vmatprep.subr.bf16.mxu0 %v10450_v24  ;;  %10493 = vmatpush3.bf16.msra.mxu1 %v16295_v36  ;;  %v18508_v7 = vand.u32 4294901760, %v18489_v53 }
 0x379   :  { %10527 = vmatprep.subr.bf16.mxu1 %v16005_v54  ;;  %v10494_v12 = vpack.c.bf16 %v18498_v20, %v18497_v51  ;;  %v18499_v54 = vand.u32 4294901760, %v18480_v47 }
 0x37b   :  { %10453 = vmatpush3.bf16.msra.mxu0 %v10452_v14  ;;  %6982 = vmatmul.mubr.f32.vlgmr.msra.gmra.mrb[44].mxu1 %v6501_v29  ;;  %v18505_v29 = vand.u32 4294901760, %v18486_v25  ;;  %v18514_v25 = vand.u32 4294901760, %v18495_v55 }
 0x37c   :  { %10455 = vmatprep.subr.bf16.mxu0 %v10454_v11  ;;  %10529 = vmatpush3.bf16.msra.mxu1 %v16126_v34  ;;  %v18500_v34 = vand.u32 4294901760, %v18481_v17  ;;  %v18509_v17 = vand.u32 4294901760, %v18490_v56 }
 0x37d   :  { %7340 = vmatprep.mubr.msk.f32.mxu1 %vm6359_vm14, %v17121_v15  ;;  %10531 = vmatprep.subr.bf16.mxu1 %v16151_v22  ;;  %v18501_v22 = vand.u32 4294901760, %v18482_v60 }
 0x37e   :  { %v10496_v3 = vpack.c.bf16 %v18500_v34, %v18499_v54 }
 0x37f   :  { %10457 = vmatpush3.bf16.msra.mxu0 %v10456_v37 }
 0x380   :  { %10459 = vmatprep.subr.bf16.mxu0 %v10458_v18  ;;  %10533 = vmatpush3.bf16.msra.mxu1 %v16157_v48  ;;  %v10498_v18 = vpack.c.bf16 %v18502_v0, %v18501_v22  ;;  %v18503_v48 = vand.u32 4294901760, %v18484_v26 }
 0x381   :  { %10535 = vmatprep.subr.bf16.mxu1 %v16181_v13  ;;  %v18504_v13 = vand.u32 4294901760, %v18485_v2  ;;  %v18513_v2 = vand.u32 4294901760, %v18494_v61 }
 0x383   :  { %10461 = vmatpush3.bf16.msra.mxu0 %v10460_v38  ;;  %v10500_v49 = vpack.c.bf16 %v18504_v13, %v18503_v48 }
 0x384   :  { %10495 = vmatprep.subr.bf16.mxu0 %v10494_v12  ;;  %10537 = vmatpush3.bf16.msra.mxu1 %v16187_v33  ;;  %v18507_v33 = vand.u32 4294901760, %v18488_v32  ;;  %v8529_v26 = vpop.f32.mrb[32].mxu1 }
 0x385   :  { %10539 = vmatprep.subr.bf16.mxu1 %v16207_v46  ;;  %v18510_v46 = vand.u32 4294901760, %v18491_v50  ;;  %v8530_v32 = vpop.f32.mrb[33].mxu1  ;;  %v18517_v50 = vand.u32 4294901760, %v16052_v45 }
 0x386   :  { %6874 = vmatmul.mubr.f32.vlgmr.msra.gmra.mrb[44].mxu0 %v16256_v57  ;;  %v18506_v57 = vand.u32 4294901760, %v18487_v41  ;;  %v10504_v47 = vpack.c.bf16 %v18508_v7, %v18507_v33  ;;  %v10510_v41 = vpack.c.bf16 %v18514_v25, %v18513_v2  ;;  %v8531_v53 = vadd.f32 %v8530_v32, %v8529_v26 }
 0x387   :  { %10497 = vmatpush3.bf16.msra.mxu0 %v10496_v3  ;;  %7338 = vmatprep.mubr.msk.f32.mxu0 %vm6359_vm14, %v17121_v15  ;;  %v10506_v60 = vpack.c.bf16 %v18510_v46, %v18509_v17 }
 0x388   :  { %10499 = vmatprep.subr.bf16.mxu0 %v10498_v18  ;;  %v10502_v1 = vpack.c.bf16 %v18506_v57, %v18505_v29  ;;  %10541 = vmatpush3.bf16.msra.mxu1 %v16220_v44  ;;  %v18511_v44 = vand.u32 4294901760, %v18492_v9  ;;  %v18518_v9 = vand.u32 4294901760, %v16057_v40 }
 0x389   :  { %10543 = vmatprep.subr.bf16.mxu1 %v16227_v23  ;;  %v18512_v23 = vand.u32 4294901760, %v18493_v39 }
 0x38a   :  { %v10514_v39 = vpack.c.bf16 %v18518_v9, %v18517_v50 }
 0x38b   :  { %10501 = vmatpush3.bf16.msra.mxu0 %v10500_v49  ;;  %v10508_v35 = vpack.c.bf16 %v18512_v23, %v18511_v44 }
 0x38c   :  { %10503 = vmatprep.subr.bf16.mxu0 %v10502_v1  ;;  %10545 = vmatpush3.bf16.msra.mxu1 %v16236_v16  ;;  %v18515_v16 = vand.u32 4294901760, %v16038_v63  ;;  %v18522_v63 = vand.u32 4294901760, %v16116_v21  ;;  %v18525_v21 = vld [vmem:[#allocation17_spill] sm:$0xff] }
 0x38d   :  { %10547 = vmatprep.subr.bf16.mxu1 %v16243_v62  ;;  %v18516_v62 = vand.u32 4294901760, %v16047_v19  ;;  %v18521_v19 = vand.u32 4294901760, %v16111_v10  ;;  %v18524_v10 = vld [vmem:[#allocation45_spill] sm:$0xff] }
 0x38f   :  { %10505 = vmatpush3.bf16.msra.mxu0 %v10504_v47  ;;  %v10512_v56 = vpack.c.bf16 %v18516_v62, %v18515_v16  ;;  %v10518_v55 = vpack.c.bf16 %v18522_v63, %v18521_v19  ;;  %v8494_v45 = vpop.f32.mrb[32].mxu0 }
 0x390   :  { %10507 = vmatprep.subr.bf16.mxu0 %v10506_v60  ;;  %10549 = vmatpush3.bf16.msra.mxu1 %v16254_v6  ;;  %v18519_v6 = vand.u32 4294901760, %v16088_v8  ;;  %v8495_v14 = vpop.f32.mrb[33].mxu0 }
 0x391   :  { %10551 = vmatprep.subr.bf16.mxu1 %v16263_v30  ;;  %v18520_v30 = vand.u32 4294901760, %v16093_v28  ;;  %v8496_v40 = vadd.f32 %v8495_v14, %v8494_v45  ;;  %v18523_v28 = vld [vmem:[#allocation44_spill] sm:$0xff]  ;;  %v7260_v45 = vld [vmem:[%s16458_s1] sm:$0xff] }
 0x393   :  { %10509 = vmatpush3.bf16.msra.mxu0 %v10508_v35  ;;  %v10516_v61 = vpack.c.bf16 %v18520_v30, %v18519_v6 }
 0x394   :  { %10511 = vmatprep.subr.bf16.mxu0 %v10510_v41  ;;  %10553 = vmatpush3.bf16.msra.mxu1 %v16271_v27  ;;  %v5069_v27 = vadd.f32 %v8496_v40, %v4931_v42 }
 0x395   :  { %10555 = vmatprep.subr.bf16.mxu1 %v16278_v59 }
 0x396   :  { %v5177_v8 = vadd.f32 %v8531_v53, %v5069_v27 }
 0x397   :  { %10513 = vmatpush3.bf16.msra.mxu0 %v10512_v56 }
 0x398   :  { %10515 = vmatprep.subr.bf16.mxu0 %v10514_v39  ;;  %10557 = vmatpush3.bf16.msra.mxu1 %v16295_v36 }
 0x39b   :  { %10517 = vmatpush3.bf16.msra.mxu0 %v10516_v61  ;;  %7341 = vmatmul.mubr.msk.f32.vlgmr.msra.gmra.mrb[46].mxu1 %vm6358_vm15, %v17121_v15 }
 0x39c   :  { %10519 = vmatprep.subr.bf16.mxu0 %v10518_v55 }
 0x39f   :  { %10521 = vmatpush3.bf16.msra.mxu0 %v18523_v28 }
 0x3a0   :  { %10523 = vmatprep.subr.bf16.mxu0 %v18524_v10 }
 0x3a3   :  { %10525 = vmatpush3.bf16.msra.mxu0 %v18525_v21 }
 0x3a6   :  { %7339 = vmatmul.mubr.msk.f32.vlgmr.msra.gmra.mrb[46].mxu0 %vm6358_vm15, %v17121_v15 }
 0x3a9   :  { %v8599_v59 = vpop.f32.mrb[34].mxu1 }
 0x3aa   :  { %v8600_v36 = vpop.f32.mrb[35].mxu1 }
 0x3ab   :  { %v8601_v42 = vadd.f32 %v8600_v36, %v8599_v59 }
 0x3b3   :  { %v8564_v11 = vpop.f32.mrb[34].mxu0 }
 0x3b4   :  { %v8565_v4 = vpop.f32.mrb[35].mxu0 }
 0x3b5   :  { %v8566_v52 = vadd.f32 %v8565_v4, %v8564_v11 }
 0x3b7   :  { %v5345_v58 = vadd.f32 %v8566_v52, %v5177_v8 }
 0x3b9   :  { %v5449_v37 = vadd.f32 %v8601_v42, %v5345_v58 }
 0x3bb   :  { %v5452_v24 = vadd.f32 %v5449_v37, %v16304_v5 }
 0x3c9   :  { %v8669_v38 = vpop.f32.mrb[36].mxu1 }
 0x3ca   :  { %v8670_v51 = vpop.f32.mrb[37].mxu1 }
 0x3cb   :  { %v8671_v20 = vadd.f32 %v8670_v51, %v8669_v38 }
 0x3d4   :  { %v8634_v12 = vpop.f32.mrb[36].mxu0 }
 0x3d5   :  { %v8635_v54 = vpop.f32.mrb[37].mxu0 }
 0x3d6   :  { %v8636_v34 = vadd.f32 %v8635_v54, %v8634_v12 }
 0x3d8   :  { %v5836_v3 = vadd.f32 %v8671_v20, %v8636_v34 }
 0x3e9   :  { %v8739_v22 = vpop.f32.mrb[38].mxu1 }
 0x3ea   :  { %v8740_v43 = vpop.f32.mrb[39].mxu1 }
 0x3eb   :  { %v8741_v15 = vadd.f32 %v8740_v43, %v8739_v22 }
 0x3f4   :  { %v8704_v31 = vpop.f32.mrb[38].mxu0 }
 0x3f5   :  { %v8705_v0 = vpop.f32.mrb[39].mxu0 }
 0x3f6   :  { %v8706_v18 = vadd.f32 %v8705_v0, %v8704_v31 }
 0x3f8   :  { %v5974_v48 = vadd.f32 %v8706_v18, %v5836_v3 }
 0x3fa   :  { %v6082_v13 = vadd.f32 %v8741_v15, %v5974_v48 }
 0x40e   :  { %v8809_v49 = vpop.f32.mrb[40].mxu1 }
 0x40f   :  { %v8810_v29 = vpop.f32.mrb[41].mxu1 }
 0x410   :  { %v8811_v57 = vadd.f32 %v8810_v29, %v8809_v49 }
 0x416   :  { %v8774_v1 = vpop.f32.mrb[40].mxu0 }
 0x417   :  { %v8775_v5 = vpop.f32.mrb[41].mxu0 }
 0x418   :  { %v8776_v33 = vadd.f32 %v8775_v5, %v8774_v1 }
 0x41a   :  { %v6250_v7 = vadd.f32 %v8776_v33, %v6082_v13 }
 0x41c   :  { %v6354_v47 = vadd.f32 %v8811_v57, %v6250_v7 }
 0x41e   :  { %v6357_v17 = vadd.f32 %v6354_v47, %v5452_v24 }
 0x42e   :  { %v8879_v46 = vpop.f32.mrb[42].mxu1 }
 0x42f   :  { %v8880_v60 = vpop.f32.mrb[43].mxu1 }
 0x430   :  { %v8881_v44 = vadd.f32 %v8880_v60, %v8879_v46 }
 0x439   :  { %v8844_v23 = vpop.f32.mrb[42].mxu0 }
 0x43a   :  { %v8845_v35 = vpop.f32.mrb[43].mxu0 }
 0x43b   :  { %v8846_v26 = vadd.f32 %v8845_v35, %v8844_v23 }
 0x43d   :  { %v6738_v2 = vadd.f32 %v8881_v44, %v8846_v26 }
 0x44e   :  { %v8949_v25 = vpop.f32.mrb[44].mxu1 }
 0x44f   :  { %v8950_v41 = vpop.f32.mrb[45].mxu1 }
 0x450   :  { %v8951_v32 = vadd.f32 %v8950_v41, %v8949_v25 }
 0x459   :  { %v8914_v53 = vpop.f32.mrb[44].mxu0 }
 0x45a   :  { %v8915_v16 = vpop.f32.mrb[45].mxu0 }
 0x45b   :  { %v8916_v62 = vadd.f32 %v8915_v16, %v8914_v53 }
 0x45d   :  { %v6876_v56 = vadd.f32 %v8916_v62, %v6738_v2 }
 0x45f   :  { %v6984_v50 = vadd.f32 %v8951_v32, %v6876_v56 }
 0x46e   :  { %v9019_v9 = vpop.f32.mrb[46].mxu1 }
 0x46f   :  { %v9020_v39 = vpop.f32.mrb[47].mxu1 }
 0x470   :  { %v9021_v6 = vadd.f32 %v9020_v39, %v9019_v9 }
 0x479   :  { %v8984_v30 = vpop.f32.mrb[46].mxu0 }
 0x47a   :  { %v8985_v61 = vpop.f32.mrb[47].mxu0 }
 0x47b   :  { %v8986_v19 = vadd.f32 %v8985_v61, %v8984_v30 }
 0x47d   :  { %v7152_v63 = vadd.f32 %v8986_v19, %v6984_v50 }
 0x47f   :  { %v7256_v55 = vadd.f32 %v9021_v6, %v7152_v63 }
 0x481   :  { %v7259_v14 = vadd.f32 %v7256_v55, %v6357_v17 }
 0x483   :  { %v7261_v40 = vadd.f32 %v7260_v45, %v7259_v14 }
 0x485   :  { %7262 = vst [vmem:[#allocation5] sm:$0xff] %v7261_v40 }
 0x486   :  { %10608 = shalt.err (!%p10605_p12)
}
 0x487   :  { %s10609_s10 = scalar_lea.hbm %s16460_s3, 128 }
 0x488   :  { %p10610_p13 = scmp.ne.s32.totalorder %s16460_s3, %s10609_s10  ;;  %p10613_p0 = scmp.lt.u32.totalorder %s10609_s10, %s16460_s3 }
 0x48a   :  { %p10615_p1 = pnand %p10613_p0, %p10610_p13 }
 0x48c   :  { %10618 = shalt.err (!%p10615_p1)
}
 0x48d   :  { %7272 = dma.vmem_to_hbm [thread:$0]  %s7270_s6, 128, %s16460_s3, [#allocation4]  }
 0x48e   :  { %10621 = dma.done.wait [#allocation4], 128  }
 0x48f   :  { %10622 = vsyncadd [#allocation4], 4294967168 }
 0x490   :  { %7276 = vsyncpa [#allocation3], 1 }
 0x491   :  { %7277 = vsyncpa [#allocation4], 1 }

</bundles_post_ra>
